<compile_context>
chip_gen: v6e
topology: v6e:2x2x1
jax: 0.10.0
libtpu: 0.0.40
codegen_flags: <defaults>
</compile_context>

<pallas_src>
import jax
import jax.numpy as jnp
import numpy as np
from jax import lax
from jax.experimental import pallas as pl
from jax.experimental.pallas import tpu as pltpu


# --------------------------------------------------------------------------
# padding / packing helpers (wrapper side)
# --------------------------------------------------------------------------
def _ru(x, m):
    return (x + m - 1) // m * m


def _pad_to(x, shape):
    out = jnp.zeros(shape, x.dtype)
    return out.at[tuple(slice(0, s) for s in x.shape)].set(x)


def _pad_gate_cols(w, H, Hp):
    """w: (..., 3H) packed [r|z|n] -> (..., 3Hp), each gate zero-padded."""
    parts = [_pad_to(w[..., g * H:(g + 1) * H], w.shape[:-1] + (Hp,))
             for g in range(3)]
    return jnp.concatenate(parts, axis=-1)


def _pack_params(params, F, H2, H3):
    """Fold fc1 into the GRU-1 input projection, fuse the two h1-consuming
    recurrent weights, and pad everything lane-dense."""
    Fp, H2p, H3p = _ru(F, 128), _ru(H2, 128), _ru(H3, 128)

    # fc1 has no activation -> fold it into the GRU-1 input projection.
    wx = params["w1"] @ params["wih1"]                       # (F, 3*H2)
    bx = params["b1"] @ params["wih1"] + params["bih1"]      # (1, 3*H2)

    def gate_mat(w, rows_p):
        return _pad_to(_pad_gate_cols(w, H2, H2p), (rows_p, 3 * H2p))

    def gate_bias(b):
        return _pad_gate_cols(b, H2, H2p)

    # Fused recurrent weight: h1 @ [whh1 | wih2]  (layer-1 hh, layer-2 ih).
    w_h1 = jnp.concatenate(
        [gate_mat(params["whh1"], H2p), gate_mat(params["wih2"], H2p)],
        axis=1)                                              # (H2p, 6*H2p)

    return (gate_mat(wx, Fp), gate_bias(bx),
            w_h1, gate_bias(params["bhh1"]), gate_bias(params["bih2"]),
            gate_mat(params["whh2"], H2p), gate_bias(params["bhh2"]),
            _pad_to(params["w2"], (H2p, H3p)), _pad_to(params["b2"], (1, H3p)),
            _pad_to(params["w3"], (H3p, H3p)), _pad_to(params["b3"], (1, H3p)),
            _pad_to(params["w4"], (H3p, Fp)), _pad_to(params["b4"], (1, Fp)))


# --------------------------------------------------------------------------
# kernel
# --------------------------------------------------------------------------
def _nsnet2_kernel(x_ref, h1_ref, h2_ref,
                   wx1_ref, bx1_ref,
                   wh1_ref, bhh1_ref, bih2_ref, whh2_ref, bhh2_ref,
                   w2_ref, b2_ref, w3_ref, b3_ref, w4_ref, b4_ref,
                   y_ref, h1o_ref, h2o_ref,
                   gi1_scr, y2_scr):
    t_id = pl.program_id(1)
    Tt, Bt, Fp = x_ref.shape
    H2p = h1_ref.shape[-1]
    G = 3 * H2p

    # Load initial hidden state at the start of each sequence (time tile 0);
    # the resident h1o/h2o output blocks carry the state across time tiles.
    @pl.when(t_id == 0)
    def _():
        h1o_ref[...] = h1_ref[...]
        h2o_ref[...] = h2_ref[...]

    # ---- batched GRU-1 input projection (fc1 folded in) -------------------
    x2d = x_ref[...].reshape(Tt * Bt, Fp)
    gi1 = jnp.dot(x2d, wx1_ref[...],
                  preferred_element_type=jnp.float32) + bx1_ref[...]
    gi1_scr[...] = gi1.reshape(Tt, Bt, G)

    # ---- loop-invariant hoists (JAX does not CSE broadcasts) ---------------
    w_h1 = wh1_ref[...]          # (H2p, 6*H2p) = [whh1 | wih2]
    whh2 = whh2_ref[...]
    bhh1 = jnp.broadcast_to(bhh1_ref[...], (Bt, G))
    bih2 = jnp.broadcast_to(bih2_ref[...], (Bt, G))
    bhh2 = jnp.broadcast_to(bhh2_ref[...], (Bt, G))

    def gates(gi, gh, h):
        r = jax.nn.sigmoid(gi[:, :H2p] + gh[:, :H2p])
        z = jax.nn.sigmoid(gi[:, H2p:2 * H2p] + gh[:, H2p:2 * H2p])
        n = jnp.tanh(gi[:, 2 * H2p:] + r * gh[:, 2 * H2p:])
        return (1.0 - z) * n + z * h

    def rec_h1(h1):
        # One fused MXU push: [gh1 | gi2_pre] = h1 @ [whh1 | wih2]
        return jnp.dot(h1, w_h1, preferred_element_type=jnp.float32)

    def rec_h2(h2):
        return jnp.dot(h2, whh2, preferred_element_type=jnp.float32) + bhh2

    # ---- skewed recurrence: iter t = GRU-1 step t + GRU-2 step t-1 --------
    h1_init = h1o_ref[...]
    h2_init = h2o_ref[...]

    # Prologue: GRU-1 step 0 (second half of the fused matmul is unused here).
    g0 = rec_h1(h1_init)
    h1 = gates(gi1_scr[0], g0[:, :G] + bhh1, h1_init)

    def body(t, carry):
        h1_prev, h2_prev = carry
        g = rec_h1(h1_prev)                                # fused: gh1 | gi2
        gh2 = rec_h2(h2_prev)
        h1_new = gates(gi1_scr[t], g[:, :G] + bhh1, h1_prev)   # L1 step t
        h2_new = gates(g[:, G:] + bih2, gh2, h2_prev)          # L2 step t-1
        y2_scr[t - 1] = h2_new
        return h1_new, h2_new

    h1_last, h2_prev = lax.fori_loop(1, Tt, body, (h1, h2_init), unroll=True)

    # Epilogue: GRU-2 final step of the tile (uses y1[Tt-1] == h1_last).
    g_last = rec_h1(h1_last)
    h2_last = gates(g_last[:, G:] + bih2, rec_h2(h2_prev), h2_prev)
    y2_scr[Tt - 1] = h2_last
    h1o_ref[...] = h1_last
    h2o_ref[...] = h2_last

    # ---- batched dense head: fc2+relu -> fc3+relu -> fc4+sigmoid -----------
    y2 = y2_scr[...].reshape(Tt * Bt, H2p)
    a = jnp.maximum(
        jnp.dot(y2, w2_ref[...], preferred_element_type=jnp.float32)
        + b2_ref[...], 0.0)
    a = jnp.maximum(
        jnp.dot(a, w3_ref[...], preferred_element_type=jnp.float32)
        + b3_ref[...], 0.0)
    a = jax.nn.sigmoid(
        jnp.dot(a, w4_ref[...], preferred_element_type=jnp.float32)
        + b4_ref[...])
    y_ref[...] = a.reshape(Tt, Bt, Fp)       # one lane-dense store


# --------------------------------------------------------------------------
# wrapper
# --------------------------------------------------------------------------
def nsnet2_forward(params, stft_noisy, h1_0, h2_0, *, t_tile=8):
    """stft_noisy: (B, T, F) f32; h1_0/h2_0: (1, B, H2) f32."""
    B, T, F = stft_noisy.shape
    H2 = h1_0.shape[-1]
    H3 = params["w2"].shape[1]
    Fp, H2p = _ru(F, 128), _ru(H2, 128)
    Bp = _ru(B, 8)
    Bt = 8                                            # one sublane group / tile
    Tt = max(d for d in range(1, min(t_tile, T) + 1) if T % d == 0)

    weights = _pack_params(params, F, H2, H3)

    x_tm = jnp.transpose(stft_noisy, (1, 0, 2)).astype(jnp.float32)  # (T,B,F)
    x_p = _pad_to(x_tm, (T, Bp, Fp))
    h1_p = _pad_to(h1_0[0].astype(jnp.float32), (Bp, H2p))
    h2_p = _pad_to(h2_0[0].astype(jnp.float32), (Bp, H2p))

    inputs = (x_p, h1_p, h2_p) + weights

    def _full(a):
        nd = a.ndim
        return pl.BlockSpec(a.shape, lambda b, t, _nd=nd: (0,) * _nd)

    in_specs = ([pl.BlockSpec((Tt, Bt, Fp), lambda b, t: (t, b, 0)),
                 pl.BlockSpec((Bt, H2p), lambda b, t: (b, 0)),
                 pl.BlockSpec((Bt, H2p), lambda b, t: (b, 0))]
                + [_full(w) for w in weights])
    out_specs = (pl.BlockSpec((Tt, Bt, Fp), lambda b, t: (t, b, 0)),
                 pl.BlockSpec((Bt, H2p), lambda b, t: (b, 0)),
                 pl.BlockSpec((Bt, H2p), lambda b, t: (b, 0)))
    out_shapes = (jax.ShapeDtypeStruct((T, Bp, Fp), jnp.float32),
                  jax.ShapeDtypeStruct((Bp, H2p), jnp.float32),
                  jax.ShapeDtypeStruct((Bp, H2p), jnp.float32))

    # VMEM budget from the actual resident buffers (x2 margin + 4 MiB).
    weight_elems = sum(int(np.prod(w.shape)) for w in weights)
    tile_elems = 4 * Tt * Bt * Fp + 6 * Bt * H2p      # double-buffered x/y + h
    scratch_elems = Tt * Bt * (3 * H2p + H2p)
    vmem_limit = min(8 * (weight_elems + tile_elems + scratch_elems)
                     + (4 << 20), 64 << 20)

    y_p, h1_out, h2_out = pl.pallas_call(
        _nsnet2_kernel,
        out_shape=out_shapes,
        grid=(Bp // Bt, T // Tt),
        in_specs=in_specs,
        out_specs=out_specs,
        scratch_shapes=[pltpu.VMEM((Tt, Bt, 3 * H2p), jnp.float32),
                        pltpu.VMEM((Tt, Bt, H2p), jnp.float32)],
        compiler_params=pltpu.CompilerParams(
            dimension_semantics=("parallel", "arbitrary"),
            vmem_limit_bytes=vmem_limit),
    )(*inputs)

    y = jnp.transpose(y_p[:, :B, :F], (1, 0, 2))              # (B, T, F)
    mask_pred = jnp.transpose(y, (0, 2, 1))[:, None, :, :]    # (B, 1, F, T)
    return mask_pred, h1_out[:B, :H2][None], h2_out[:B, :H2][None]


# --------------------------------------------------------------------------
# synthetic params + pure-JAX reference
# --------------------------------------------------------------------------
def init_params(key, F, H1, H2, H3):
    """Deterministic synthetic weights, stored pre-transposed (in, out);
    GRU gate packing keeps PyTorch order [r, z, n] along the output axis."""
    ks = jax.random.split(key, 16)
    w = lambda k, s: (0.1 * jax.random.normal(k, s)).astype(jnp.float32)
    return {
        "w1": w(ks[0], (F, H1)),        "b1": w(ks[1], (1, H1)),
        "wih1": w(ks[2], (H1, 3 * H2)), "whh1": w(ks[3], (H2, 3 * H2)),
        "bih1": w(ks[4], (1, 3 * H2)),  "bhh1": w(ks[5], (1, 3 * H2)),
        "wih2": w(ks[6], (H2, 3 * H2)), "whh2": w(ks[7], (H2, 3 * H2)),
        "bih2": w(ks[8], (1, 3 * H2)),  "bhh2": w(ks[9], (1, 3 * H2)),
        "w2": w(ks[10], (H2, H3)),      "b2": w(ks[11], (1, H3)),
        "w3": w(ks[12], (H3, H3)),      "b3": w(ks[13], (1, H3)),
        "w4": w(ks[14], (H3, F)),       "b4": w(ks[15], (1, F)),
    }


def nsnet2_ref(params, x, h1_0, h2_0):
    """Pure-JAX reference reproducing the PyTorch forward."""
    a = x @ params["w1"] + params["b1"]

    def gru(seq, h0, wih, whh, bih, bhh):
        H = h0.shape[-1]

        def step(h, x_t):
            gi = x_t @ wih + bih[0]
            gh = h @ whh + bhh[0]
            r = jax.nn.sigmoid(gi[:, :H] + gh[:, :H])
            z = jax.nn.sigmoid(gi[:, H:2 * H] + gh[:, H:2 * H])
            n = jnp.tanh(gi[:, 2 * H:] + r * gh[:, 2 * H:])
            h_new = (1.0 - z) * n + z * h
            return h_new, h_new

        h_last, ys = lax.scan(step, h0, jnp.transpose(seq, (1, 0, 2)))
        return jnp.transpose(ys, (1, 0, 2)), h_last

    y1, h1 = gru(a, h1_0[0], params["wih1"], params["whh1"],
                 params["bih1"], params["bhh1"])
    y2, h2 = gru(y1, h2_0[0], params["wih2"], params["whh2"],
                 params["bih2"], params["bhh2"])
    b = jax.nn.relu(y2 @ params["w2"] + params["b2"])
    b = jax.nn.relu(b @ params["w3"] + params["b3"])
    b = jax.nn.sigmoid(b @ params["w4"] + params["b4"])
    mask = jnp.transpose(b, (0, 2, 1))[:, None, :, :]
    return mask, h1[None], h2[None]


if __name__ == "__main__":
    B, T, F = 2, 8, 32          # batch, seq, n_features
    H1, H2, H3 = 32, 32, 32     # hidden_1, hidden_2, hidden_3

    key = jax.random.PRNGKey(0)
    kx, kh1, kh2, kp = jax.random.split(key, 4)
    params = init_params(kp, F, H1, H2, H3)
    stft_noisy = jax.random.normal(kx, (B, T, F), dtype=jnp.float32)
    h1_0 = 0.1 * jax.random.normal(kh1, (1, B, H2), dtype=jnp.float32)
    h2_0 = 0.1 * jax.random.normal(kh2, (1, B, H2), dtype=jnp.float32)

    mask, h1, h2 = jax.jit(nsnet2_forward)(params, stft_noisy, h1_0, h2_0)
    jax.block_until_ready((mask, h1, h2))

    mask_r, h1_r, h2_r = nsnet2_ref(params, stft_noisy, h1_0, h2_0)
    assert mask.shape == (B, 1, F, T)
    assert h1.shape == (1, B, H2) and h2.shape == (1, B, H2)
    assert np.allclose(np.asarray(mask), np.asarray(mask_r), atol=2e-4)
    assert np.allclose(np.asarray(h1), np.asarray(h1_r), atol=2e-4)
    assert np.allclose(np.asarray(h2), np.asarray(h2_r), atol=2e-4)
    print("KERNEL_OK")
</pallas_src>

<mosaic_0001>
module attributes {stable_mosaic.version = 11 : i64} {
  func.func @_nsnet2_kernel(%arg0: i32, %arg1: i32, %arg2: memref<8x8x128xf32, #tpu.memory_space<vmem>>, %arg3: memref<8x128xf32, #tpu.memory_space<vmem>>, %arg4: memref<8x128xf32, #tpu.memory_space<vmem>>, %arg5: memref<128x384xf32, #tpu.memory_space<vmem>>, %arg6: memref<1x384xf32, #tpu.memory_space<vmem>>, %arg7: memref<128x768xf32, #tpu.memory_space<vmem>>, %arg8: memref<1x384xf32, #tpu.memory_space<vmem>>, %arg9: memref<1x384xf32, #tpu.memory_space<vmem>>, %arg10: memref<128x384xf32, #tpu.memory_space<vmem>>, %arg11: memref<1x384xf32, #tpu.memory_space<vmem>>, %arg12: memref<128x128xf32, #tpu.memory_space<vmem>>, %arg13: memref<1x128xf32, #tpu.memory_space<vmem>>, %arg14: memref<128x128xf32, #tpu.memory_space<vmem>>, %arg15: memref<1x128xf32, #tpu.memory_space<vmem>>, %arg16: memref<128x128xf32, #tpu.memory_space<vmem>>, %arg17: memref<1x128xf32, #tpu.memory_space<vmem>>, %arg18: memref<8x8x128xf32, #tpu.memory_space<vmem>>, %arg19: memref<8x128xf32, #tpu.memory_space<vmem>>, %arg20: memref<8x128xf32, #tpu.memory_space<vmem>>, %arg21: memref<8x8x384xf32, #tpu.memory_space<vmem>>, %arg22: memref<8x8x128xf32, #tpu.memory_space<vmem>>) attributes {dimension_semantics = [#tpu.dimension_semantics<parallel>, #tpu.dimension_semantics<arbitrary>], iteration_bounds = array<i64: 1, 1>, scalar_prefetch = 0 : i64, scratch_operands = 2 : i64, tpu.core_type = #tpu.core_type<tc>, window_params = [{transform_indices = @transform_0, window_bounds = array<i64: 8, 8, 128>}, {transform_indices = @transform_1, window_bounds = array<i64: 8, 128>}, {transform_indices = @transform_2, window_bounds = array<i64: 8, 128>}, {pipeline_mode = #tpu.pipeline_mode<synchronous>, transform_indices = @transform_3, window_bounds = array<i64: 128, 384>}, {pipeline_mode = #tpu.pipeline_mode<synchronous>, transform_indices = @transform_4, window_bounds = array<i64: 1, 384>}, {pipeline_mode = #tpu.pipeline_mode<synchronous>, transform_indices = @transform_5, window_bounds = array<i64: 128, 768>}, {pipeline_mode = #tpu.pipeline_mode<synchronous>, transform_indices = @transform_6, window_bounds = array<i64: 1, 384>}, {pipeline_mode = #tpu.pipeline_mode<synchronous>, transform_indices = @transform_7, window_bounds = array<i64: 1, 384>}, {pipeline_mode = #tpu.pipeline_mode<synchronous>, transform_indices = @transform_8, window_bounds = array<i64: 128, 384>}, {pipeline_mode = #tpu.pipeline_mode<synchronous>, transform_indices = @transform_9, window_bounds = array<i64: 1, 384>}, {pipeline_mode = #tpu.pipeline_mode<synchronous>, transform_indices = @transform_10, window_bounds = array<i64: 128, 128>}, {pipeline_mode = #tpu.pipeline_mode<synchronous>, transform_indices = @transform_11, window_bounds = array<i64: 1, 128>}, {pipeline_mode = #tpu.pipeline_mode<synchronous>, transform_indices = @transform_12, window_bounds = array<i64: 128, 128>}, {pipeline_mode = #tpu.pipeline_mode<synchronous>, transform_indices = @transform_13, window_bounds = array<i64: 1, 128>}, {pipeline_mode = #tpu.pipeline_mode<synchronous>, transform_indices = @transform_14, window_bounds = array<i64: 128, 128>}, {pipeline_mode = #tpu.pipeline_mode<synchronous>, transform_indices = @transform_15, window_bounds = array<i64: 1, 128>}, {transform_indices = @transform_16, window_bounds = array<i64: 8, 8, 128>}, {transform_indices = @transform_17, window_bounds = array<i64: 8, 128>}, {transform_indices = @transform_18, window_bounds = array<i64: 8, 128>}]} {
    %c0_i32 = arith.constant 0 : i32
    %0 = arith.cmpi eq, %arg1, %c0_i32 : i32
    %1 = arith.extui %0 : i1 to i32
    %c0_i32_0 = arith.constant 0 : i32
    %2 = arith.cmpi ne, %1, %c0_i32_0 : i32
    scf.if %2 {
      %c0_158 = arith.constant 0 : index
      %c0_159 = arith.constant 0 : index
      %589 = vector.load %arg3[%c0_158, %c0_159] : memref<8x128xf32, #tpu.memory_space<vmem>>, vector<8x128xf32>
      %c0_160 = arith.constant 0 : index
      %c0_161 = arith.constant 0 : index
      %590 = vector.load %arg19[%c0_160, %c0_161] : memref<8x128xf32, #tpu.memory_space<vmem>>, vector<8x128xf32>
      tpu.vector_store %arg19[%c0_160, %c0_161], %589 {strides = array<i32>} : memref<8x128xf32, #tpu.memory_space<vmem>>, vector<8x128xf32>,
      %c0_162 = arith.constant 0 : index
      %c0_163 = arith.constant 0 : index
      %591 = vector.load %arg4[%c0_162, %c0_163] : memref<8x128xf32, #tpu.memory_space<vmem>>, vector<8x128xf32>
      %c0_164 = arith.constant 0 : index
      %c0_165 = arith.constant 0 : index
      %592 = vector.load %arg20[%c0_164, %c0_165] : memref<8x128xf32, #tpu.memory_space<vmem>>, vector<8x128xf32>
      tpu.vector_store %arg20[%c0_164, %c0_165], %591 {strides = array<i32>} : memref<8x128xf32, #tpu.memory_space<vmem>>, vector<8x128xf32>,
    } else {
    }
    %c0 = arith.constant 0 : index
    %c0_1 = arith.constant 0 : index
    %c0_2 = arith.constant 0 : index
    %3 = vector.load %arg2[%c0, %c0_1, %c0_2] : memref<8x8x128xf32, #tpu.memory_space<vmem>>, vector<8x8x128xf32>
    %4 = vector.shape_cast %3 : vector<8x8x128xf32> to vector<64x128xf32>
    %c0_3 = arith.constant 0 : index
    %c0_4 = arith.constant 0 : index
    %5 = vector.load %arg5[%c0_3, %c0_4] : memref<128x384xf32, #tpu.memory_space<vmem>>, vector<128x384xf32>
    %cst = arith.constant dense<0.000000e+00> : vector<64x384xf32>
    %6 = tpu.matmul %4, %5, %cst {dimension_numbers = #tpu.dot_dimension_numbers<[1], [0], [0], [1], [0, 0, 1, 1], [], []>} : vector<64x128xf32>, vector<128x384xf32>, vector<64x384xf32> -> vector<64x384xf32>
    %c0_5 = arith.constant 0 : index
    %c0_6 = arith.constant 0 : index
    %7 = vector.load %arg6[%c0_5, %c0_6] : memref<1x384xf32, #tpu.memory_space<vmem>>, vector<1x384xf32>
    %8 = vector.broadcast %7 : vector<1x384xf32> to vector<64x384xf32>
    %9 = arith.addf %6, %8 : vector<64x384xf32>
    %10 = vector.shape_cast %9 : vector<64x384xf32> to vector<8x8x384xf32>
    %c0_7 = arith.constant 0 : index
    %c0_8 = arith.constant 0 : index
    %c0_9 = arith.constant 0 : index
    %11 = vector.load %arg21[%c0_7, %c0_8, %c0_9] : memref<8x8x384xf32, #tpu.memory_space<vmem>>, vector<8x8x384xf32>
    tpu.vector_store %arg21[%c0_7, %c0_8, %c0_9], %10 {strides = array<i32>} : memref<8x8x384xf32, #tpu.memory_space<vmem>>, vector<8x8x384xf32>,
    %c0_10 = arith.constant 0 : index
    %c0_11 = arith.constant 0 : index
    %12 = vector.load %arg7[%c0_10, %c0_11] : memref<128x768xf32, #tpu.memory_space<vmem>>, vector<128x768xf32>
    %c0_12 = arith.constant 0 : index
    %c0_13 = arith.constant 0 : index
    %13 = vector.load %arg10[%c0_12, %c0_13] : memref<128x384xf32, #tpu.memory_space<vmem>>, vector<128x384xf32>
    %c0_14 = arith.constant 0 : index
    %c0_15 = arith.constant 0 : index
    %14 = vector.load %arg8[%c0_14, %c0_15] : memref<1x384xf32, #tpu.memory_space<vmem>>, vector<1x384xf32>
    %15 = vector.shape_cast %14 : vector<1x384xf32> to vector<1x384xf32>
    %16 = vector.broadcast %15 : vector<1x384xf32> to vector<8x384xf32>
    %c0_16 = arith.constant 0 : index
    %c0_17 = arith.constant 0 : index
    %17 = vector.load %arg9[%c0_16, %c0_17] : memref<1x384xf32, #tpu.memory_space<vmem>>, vector<1x384xf32>
    %18 = vector.shape_cast %17 : vector<1x384xf32> to vector<1x384xf32>
    %19 = vector.broadcast %18 : vector<1x384xf32> to vector<8x384xf32>
    %c0_18 = arith.constant 0 : index
    %c0_19 = arith.constant 0 : index
    %20 = vector.load %arg11[%c0_18, %c0_19] : memref<1x384xf32, #tpu.memory_space<vmem>>, vector<1x384xf32>
    %21 = vector.shape_cast %20 : vector<1x384xf32> to vector<1x384xf32>
    %22 = vector.broadcast %21 : vector<1x384xf32> to vector<8x384xf32>
    %c0_20 = arith.constant 0 : index
    %c0_21 = arith.constant 0 : index
    %23 = vector.load %arg19[%c0_20, %c0_21] : memref<8x128xf32, #tpu.memory_space<vmem>>, vector<8x128xf32>
    %c0_22 = arith.constant 0 : index
    %c0_23 = arith.constant 0 : index
    %24 = vector.load %arg20[%c0_22, %c0_23] : memref<8x128xf32, #tpu.memory_space<vmem>>, vector<8x128xf32>
    %cst_24 = arith.constant dense<0.000000e+00> : vector<8x768xf32>
    %25 = tpu.matmul %23, %12, %cst_24 {dimension_numbers = #tpu.dot_dimension_numbers<[1], [0], [0], [1], [0, 0, 1, 1], [], []>} : vector<8x128xf32>, vector<128x768xf32>, vector<8x768xf32> -> vector<8x768xf32>
    %c0_25 = arith.constant 0 : index
    %c0_26 = arith.constant 0 : index
    %c0_27 = arith.constant 0 : index
    %26 = vector.load %arg21[%c0_25, %c0_26, %c0_27] : memref<8x8x384xf32, #tpu.memory_space<vmem>>, vector<1x8x384xf32>
    %27 = vector.shape_cast %26 : vector<1x8x384xf32> to vector<8x384xf32>
    %28 = vector.extract_strided_slice %25 {offsets = [0, 0], sizes = [8, 384], strides = [1, 1]} : vector<8x768xf32> to vector<8x384xf32>
    %29 = arith.addf %28, %16 : vector<8x384xf32>
    %30 = vector.extract_strided_slice %27 {offsets = [0, 0], sizes = [8, 128], strides = [1, 1]} : vector<8x384xf32> to vector<8x128xf32>
    %31 = vector.extract_strided_slice %29 {offsets = [0, 0], sizes = [8, 128], strides = [1, 1]} : vector<8x384xf32> to vector<8x128xf32>
    %32 = arith.addf %30, %31 : vector<8x128xf32>
    %33 = arith.negf %32 : vector<8x128xf32>
    %34 = math.exp %33 : vector<8x128xf32>
    %cst_28 = arith.constant 1.000000e+00 : f32
    %35 = vector.broadcast %cst_28 : f32 to vector<8x128xf32>
    %36 = arith.addf %35, %34 : vector<8x128xf32>
    %37 = arith.divf %35, %36 : vector<8x128xf32>
    %38 = vector.extract_strided_slice %27 {offsets = [0, 128], sizes = [8, 128], strides = [1, 1]} : vector<8x384xf32> to vector<8x128xf32>
    %39 = vector.extract_strided_slice %29 {offsets = [0, 128], sizes = [8, 128], strides = [1, 1]} : vector<8x384xf32> to vector<8x128xf32>
    %40 = arith.addf %38, %39 : vector<8x128xf32>
    %41 = arith.negf %40 : vector<8x128xf32>
    %42 = math.exp %41 : vector<8x128xf32>
    %cst_29 = arith.constant 1.000000e+00 : f32
    %43 = vector.broadcast %cst_29 : f32 to vector<8x128xf32>
    %44 = arith.addf %43, %42 : vector<8x128xf32>
    %45 = arith.divf %43, %44 : vector<8x128xf32>
    %46 = vector.extract_strided_slice %27 {offsets = [0, 256], sizes = [8, 128], strides = [1, 1]} : vector<8x384xf32> to vector<8x128xf32>
    %47 = vector.extract_strided_slice %29 {offsets = [0, 256], sizes = [8, 128], strides = [1, 1]} : vector<8x384xf32> to vector<8x128xf32>
    %48 = arith.mulf %37, %47 : vector<8x128xf32>
    %49 = arith.addf %46, %48 : vector<8x128xf32>
    %50 = math.tanh %49 : vector<8x128xf32>
    %cst_30 = arith.constant 1.000000e+00 : f32
    %51 = vector.broadcast %cst_30 : f32 to vector<8x128xf32>
    %52 = arith.subf %51, %45 : vector<8x128xf32>
    %53 = arith.mulf %52, %50 : vector<8x128xf32>
    %54 = arith.mulf %45, %23 : vector<8x128xf32>
    %55 = arith.addf %53, %54 : vector<8x128xf32>
    %c1_i32 = arith.constant 1 : i32
    %cst_31 = arith.constant dense<0.000000e+00> : vector<8x768xf32>
    %56 = tpu.matmul %55, %12, %cst_31 {dimension_numbers = #tpu.dot_dimension_numbers<[1], [0], [0], [1], [0, 0, 1, 1], [], []>} : vector<8x128xf32>, vector<128x768xf32>, vector<8x768xf32> -> vector<8x768xf32>
    %cst_32 = arith.constant dense<0.000000e+00> : vector<8x384xf32>
    %57 = tpu.matmul %24, %13, %cst_32 {dimension_numbers = #tpu.dot_dimension_numbers<[1], [0], [0], [1], [0, 0, 1, 1], [], []>} : vector<8x128xf32>, vector<128x384xf32>, vector<8x384xf32> -> vector<8x384xf32>
    %58 = arith.addf %57, %22 : vector<8x384xf32>
    %59 = arith.index_cast %c1_i32 : i32 to index
    %c0_33 = arith.constant 0 : index
    %c0_34 = arith.constant 0 : index
    %60 = vector.load %arg21[%59, %c0_33, %c0_34] : memref<8x8x384xf32, #tpu.memory_space<vmem>>, vector<1x8x384xf32>
    %61 = vector.shape_cast %60 : vector<1x8x384xf32> to vector<8x384xf32>
    %62 = vector.extract_strided_slice %56 {offsets = [0, 0], sizes = [8, 384], strides = [1, 1]} : vector<8x768xf32> to vector<8x384xf32>
    %63 = arith.addf %62, %16 : vector<8x384xf32>
    %64 = vector.extract_strided_slice %61 {offsets = [0, 0], sizes = [8, 128], strides = [1, 1]} : vector<8x384xf32> to vector<8x128xf32>
    %65 = vector.extract_strided_slice %63 {offsets = [0, 0], sizes = [8, 128], strides = [1, 1]} : vector<8x384xf32> to vector<8x128xf32>
    %66 = arith.addf %64, %65 : vector<8x128xf32>
    %67 = arith.negf %66 : vector<8x128xf32>
    %68 = math.exp %67 : vector<8x128xf32>
    %cst_35 = arith.constant 1.000000e+00 : f32
    %69 = vector.broadcast %cst_35 : f32 to vector<8x128xf32>
    %70 = arith.addf %69, %68 : vector<8x128xf32>
    %71 = arith.divf %69, %70 : vector<8x128xf32>
    %72 = vector.extract_strided_slice %61 {offsets = [0, 128], sizes = [8, 128], strides = [1, 1]} : vector<8x384xf32> to vector<8x128xf32>
    %73 = vector.extract_strided_slice %63 {offsets = [0, 128], sizes = [8, 128], strides = [1, 1]} : vector<8x384xf32> to vector<8x128xf32>
    %74 = arith.addf %72, %73 : vector<8x128xf32>
    %75 = arith.negf %74 : vector<8x128xf32>
    %76 = math.exp %75 : vector<8x128xf32>
    %cst_36 = arith.constant 1.000000e+00 : f32
    %77 = vector.broadcast %cst_36 : f32 to vector<8x128xf32>
    %78 = arith.addf %77, %76 : vector<8x128xf32>
    %79 = arith.divf %77, %78 : vector<8x128xf32>
    %80 = vector.extract_strided_slice %61 {offsets = [0, 256], sizes = [8, 128], strides = [1, 1]} : vector<8x384xf32> to vector<8x128xf32>
    %81 = vector.extract_strided_slice %63 {offsets = [0, 256], sizes = [8, 128], strides = [1, 1]} : vector<8x384xf32> to vector<8x128xf32>
    %82 = arith.mulf %71, %81 : vector<8x128xf32>
    %83 = arith.addf %80, %82 : vector<8x128xf32>
    %84 = math.tanh %83 : vector<8x128xf32>
    %cst_37 = arith.constant 1.000000e+00 : f32
    %85 = vector.broadcast %cst_37 : f32 to vector<8x128xf32>
    %86 = arith.subf %85, %79 : vector<8x128xf32>
    %87 = arith.mulf %86, %84 : vector<8x128xf32>
    %88 = arith.mulf %79, %55 : vector<8x128xf32>
    %89 = arith.addf %87, %88 : vector<8x128xf32>
    %90 = vector.extract_strided_slice %56 {offsets = [0, 384], sizes = [8, 384], strides = [1, 1]} : vector<8x768xf32> to vector<8x384xf32>
    %91 = arith.addf %90, %19 : vector<8x384xf32>
    %92 = vector.extract_strided_slice %91 {offsets = [0, 0], sizes = [8, 128], strides = [1, 1]} : vector<8x384xf32> to vector<8x128xf32>
    %93 = vector.extract_strided_slice %58 {offsets = [0, 0], sizes = [8, 128], strides = [1, 1]} : vector<8x384xf32> to vector<8x128xf32>
    %94 = arith.addf %92, %93 : vector<8x128xf32>
    %95 = arith.negf %94 : vector<8x128xf32>
    %96 = math.exp %95 : vector<8x128xf32>
    %cst_38 = arith.constant 1.000000e+00 : f32
    %97 = vector.broadcast %cst_38 : f32 to vector<8x128xf32>
    %98 = arith.addf %97, %96 : vector<8x128xf32>
    %99 = arith.divf %97, %98 : vector<8x128xf32>
    %100 = vector.extract_strided_slice %91 {offsets = [0, 128], sizes = [8, 128], strides = [1, 1]} : vector<8x384xf32> to vector<8x128xf32>
    %101 = vector.extract_strided_slice %58 {offsets = [0, 128], sizes = [8, 128], strides = [1, 1]} : vector<8x384xf32> to vector<8x128xf32>
    %102 = arith.addf %100, %101 : vector<8x128xf32>
    %103 = arith.negf %102 : vector<8x128xf32>
    %104 = math.exp %103 : vector<8x128xf32>
    %cst_39 = arith.constant 1.000000e+00 : f32
    %105 = vector.broadcast %cst_39 : f32 to vector<8x128xf32>
    %106 = arith.addf %105, %104 : vector<8x128xf32>
    %107 = arith.divf %105, %106 : vector<8x128xf32>
    %108 = vector.extract_strided_slice %91 {offsets = [0, 256], sizes = [8, 128], strides = [1, 1]} : vector<8x384xf32> to vector<8x128xf32>
    %109 = vector.extract_strided_slice %58 {offsets = [0, 256], sizes = [8, 128], strides = [1, 1]} : vector<8x384xf32> to vector<8x128xf32>
    %110 = arith.mulf %99, %109 : vector<8x128xf32>
    %111 = arith.addf %108, %110 : vector<8x128xf32>
    %112 = math.tanh %111 : vector<8x128xf32>
    %cst_40 = arith.constant 1.000000e+00 : f32
    %113 = vector.broadcast %cst_40 : f32 to vector<8x128xf32>
    %114 = arith.subf %113, %107 : vector<8x128xf32>
    %115 = arith.mulf %114, %112 : vector<8x128xf32>
    %116 = arith.mulf %107, %24 : vector<8x128xf32>
    %117 = arith.addf %115, %116 : vector<8x128xf32>
    %c1_i32_41 = arith.constant 1 : i32
    %118 = arith.subi %c1_i32, %c1_i32_41 : i32
    %119 = arith.index_cast %118 : i32 to index
    %c0_42 = arith.constant 0 : index
    %c0_43 = arith.constant 0 : index
    %120 = vector.load %arg22[%119, %c0_42, %c0_43] : memref<8x8x128xf32, #tpu.memory_space<vmem>>, vector<1x8x128xf32>
    %121 = vector.shape_cast %120 : vector<1x8x128xf32> to vector<8x128xf32>
    %122 = vector.shape_cast %117 : vector<8x128xf32> to vector<1x8x128xf32>
    tpu.vector_store %arg22[%119, %c0_42, %c0_43], %122 {strides = array<i32>} : memref<8x8x128xf32, #tpu.memory_space<vmem>>, vector<1x8x128xf32>,
    %c2_i32 = arith.constant 2 : i32
    %cst_44 = arith.constant dense<0.000000e+00> : vector<8x768xf32>
    %123 = tpu.matmul %89, %12, %cst_44 {dimension_numbers = #tpu.dot_dimension_numbers<[1], [0], [0], [1], [0, 0, 1, 1], [], []>} : vector<8x128xf32>, vector<128x768xf32>, vector<8x768xf32> -> vector<8x768xf32>
    %cst_45 = arith.constant dense<0.000000e+00> : vector<8x384xf32>
    %124 = tpu.matmul %117, %13, %cst_45 {dimension_numbers = #tpu.dot_dimension_numbers<[1], [0], [0], [1], [0, 0, 1, 1], [], []>} : vector<8x128xf32>, vector<128x384xf32>, vector<8x384xf32> -> vector<8x384xf32>
    %125 = arith.addf %124, %22 : vector<8x384xf32>
    %126 = arith.index_cast %c2_i32 : i32 to index
    %c0_46 = arith.constant 0 : index
    %c0_47 = arith.constant 0 : index
    %127 = vector.load %arg21[%126, %c0_46, %c0_47] : memref<8x8x384xf32, #tpu.memory_space<vmem>>, vector<1x8x384xf32>
    %128 = vector.shape_cast %127 : vector<1x8x384xf32> to vector<8x384xf32>
    %129 = vector.extract_strided_slice %123 {offsets = [0, 0], sizes = [8, 384], strides = [1, 1]} : vector<8x768xf32> to vector<8x384xf32>
    %130 = arith.addf %129, %16 : vector<8x384xf32>
    %131 = vector.extract_strided_slice %128 {offsets = [0, 0], sizes = [8, 128], strides = [1, 1]} : vector<8x384xf32> to vector<8x128xf32>
    %132 = vector.extract_strided_slice %130 {offsets = [0, 0], sizes = [8, 128], strides = [1, 1]} : vector<8x384xf32> to vector<8x128xf32>
    %133 = arith.addf %131, %132 : vector<8x128xf32>
    %134 = arith.negf %133 : vector<8x128xf32>
    %135 = math.exp %134 : vector<8x128xf32>
    %cst_48 = arith.constant 1.000000e+00 : f32
    %136 = vector.broadcast %cst_48 : f32 to vector<8x128xf32>
    %137 = arith.addf %136, %135 : vector<8x128xf32>
    %138 = arith.divf %136, %137 : vector<8x128xf32>
    %139 = vector.extract_strided_slice %128 {offsets = [0, 128], sizes = [8, 128], strides = [1, 1]} : vector<8x384xf32> to vector<8x128xf32>
    %140 = vector.extract_strided_slice %130 {offsets = [0, 128], sizes = [8, 128], strides = [1, 1]} : vector<8x384xf32> to vector<8x128xf32>
    %141 = arith.addf %139, %140 : vector<8x128xf32>
    %142 = arith.negf %141 : vector<8x128xf32>
    %143 = math.exp %142 : vector<8x128xf32>
    %cst_49 = arith.constant 1.000000e+00 : f32
    %144 = vector.broadcast %cst_49 : f32 to vector<8x128xf32>
    %145 = arith.addf %144, %143 : vector<8x128xf32>
    %146 = arith.divf %144, %145 : vector<8x128xf32>
    %147 = vector.extract_strided_slice %128 {offsets = [0, 256], sizes = [8, 128], strides = [1, 1]} : vector<8x384xf32> to vector<8x128xf32>
    %148 = vector.extract_strided_slice %130 {offsets = [0, 256], sizes = [8, 128], strides = [1, 1]} : vector<8x384xf32> to vector<8x128xf32>
    %149 = arith.mulf %138, %148 : vector<8x128xf32>
    %150 = arith.addf %147, %149 : vector<8x128xf32>
    %151 = math.tanh %150 : vector<8x128xf32>
    %cst_50 = arith.constant 1.000000e+00 : f32
    %152 = vector.broadcast %cst_50 : f32 to vector<8x128xf32>
    %153 = arith.subf %152, %146 : vector<8x128xf32>
    %154 = arith.mulf %153, %151 : vector<8x128xf32>
    %155 = arith.mulf %146, %89 : vector<8x128xf32>
    %156 = arith.addf %154, %155 : vector<8x128xf32>
    %157 = vector.extract_strided_slice %123 {offsets = [0, 384], sizes = [8, 384], strides = [1, 1]} : vector<8x768xf32> to vector<8x384xf32>
    %158 = arith.addf %157, %19 : vector<8x384xf32>
    %159 = vector.extract_strided_slice %158 {offsets = [0, 0], sizes = [8, 128], strides = [1, 1]} : vector<8x384xf32> to vector<8x128xf32>
    %160 = vector.extract_strided_slice %125 {offsets = [0, 0], sizes = [8, 128], strides = [1, 1]} : vector<8x384xf32> to vector<8x128xf32>
    %161 = arith.addf %159, %160 : vector<8x128xf32>
    %162 = arith.negf %161 : vector<8x128xf32>
    %163 = math.exp %162 : vector<8x128xf32>
    %cst_51 = arith.constant 1.000000e+00 : f32
    %164 = vector.broadcast %cst_51 : f32 to vector<8x128xf32>
    %165 = arith.addf %164, %163 : vector<8x128xf32>
    %166 = arith.divf %164, %165 : vector<8x128xf32>
    %167 = vector.extract_strided_slice %158 {offsets = [0, 128], sizes = [8, 128], strides = [1, 1]} : vector<8x384xf32> to vector<8x128xf32>
    %168 = vector.extract_strided_slice %125 {offsets = [0, 128], sizes = [8, 128], strides = [1, 1]} : vector<8x384xf32> to vector<8x128xf32>
    %169 = arith.addf %167, %168 : vector<8x128xf32>
    %170 = arith.negf %169 : vector<8x128xf32>
    %171 = math.exp %170 : vector<8x128xf32>
    %cst_52 = arith.constant 1.000000e+00 : f32
    %172 = vector.broadcast %cst_52 : f32 to vector<8x128xf32>
    %173 = arith.addf %172, %171 : vector<8x128xf32>
    %174 = arith.divf %172, %173 : vector<8x128xf32>
    %175 = vector.extract_strided_slice %158 {offsets = [0, 256], sizes = [8, 128], strides = [1, 1]} : vector<8x384xf32> to vector<8x128xf32>
    %176 = vector.extract_strided_slice %125 {offsets = [0, 256], sizes = [8, 128], strides = [1, 1]} : vector<8x384xf32> to vector<8x128xf32>
    %177 = arith.mulf %166, %176 : vector<8x128xf32>
    %178 = arith.addf %175, %177 : vector<8x128xf32>
    %179 = math.tanh %178 : vector<8x128xf32>
    %cst_53 = arith.constant 1.000000e+00 : f32
    %180 = vector.broadcast %cst_53 : f32 to vector<8x128xf32>
    %181 = arith.subf %180, %174 : vector<8x128xf32>
    %182 = arith.mulf %181, %179 : vector<8x128xf32>
    %183 = arith.mulf %174, %117 : vector<8x128xf32>
    %184 = arith.addf %182, %183 : vector<8x128xf32>
    %c1_i32_54 = arith.constant 1 : i32
    %185 = arith.subi %c2_i32, %c1_i32_54 : i32
    %186 = arith.index_cast %185 : i32 to index
    %c0_55 = arith.constant 0 : index
    %c0_56 = arith.constant 0 : index
    %187 = vector.load %arg22[%186, %c0_55, %c0_56] : memref<8x8x128xf32, #tpu.memory_space<vmem>>, vector<1x8x128xf32>
    %188 = vector.shape_cast %187 : vector<1x8x128xf32> to vector<8x128xf32>
    %189 = vector.shape_cast %184 : vector<8x128xf32> to vector<1x8x128xf32>
    tpu.vector_store %arg22[%186, %c0_55, %c0_56], %189 {strides = array<i32>} : memref<8x8x128xf32, #tpu.memory_space<vmem>>, vector<1x8x128xf32>,
    %c3_i32 = arith.constant 3 : i32
    %cst_57 = arith.constant dense<0.000000e+00> : vector<8x768xf32>
    %190 = tpu.matmul %156, %12, %cst_57 {dimension_numbers = #tpu.dot_dimension_numbers<[1], [0], [0], [1], [0, 0, 1, 1], [], []>} : vector<8x128xf32>, vector<128x768xf32>, vector<8x768xf32> -> vector<8x768xf32>
    %cst_58 = arith.constant dense<0.000000e+00> : vector<8x384xf32>
    %191 = tpu.matmul %184, %13, %cst_58 {dimension_numbers = #tpu.dot_dimension_numbers<[1], [0], [0], [1], [0, 0, 1, 1], [], []>} : vector<8x128xf32>, vector<128x384xf32>, vector<8x384xf32> -> vector<8x384xf32>
    %192 = arith.addf %191, %22 : vector<8x384xf32>
    %193 = arith.index_cast %c3_i32 : i32 to index
    %c0_59 = arith.constant 0 : index
    %c0_60 = arith.constant 0 : index
    %194 = vector.load %arg21[%193, %c0_59, %c0_60] : memref<8x8x384xf32, #tpu.memory_space<vmem>>, vector<1x8x384xf32>
    %195 = vector.shape_cast %194 : vector<1x8x384xf32> to vector<8x384xf32>
    %196 = vector.extract_strided_slice %190 {offsets = [0, 0], sizes = [8, 384], strides = [1, 1]} : vector<8x768xf32> to vector<8x384xf32>
    %197 = arith.addf %196, %16 : vector<8x384xf32>
    %198 = vector.extract_strided_slice %195 {offsets = [0, 0], sizes = [8, 128], strides = [1, 1]} : vector<8x384xf32> to vector<8x128xf32>
    %199 = vector.extract_strided_slice %197 {offsets = [0, 0], sizes = [8, 128], strides = [1, 1]} : vector<8x384xf32> to vector<8x128xf32>
    %200 = arith.addf %198, %199 : vector<8x128xf32>
    %201 = arith.negf %200 : vector<8x128xf32>
    %202 = math.exp %201 : vector<8x128xf32>
    %cst_61 = arith.constant 1.000000e+00 : f32
    %203 = vector.broadcast %cst_61 : f32 to vector<8x128xf32>
    %204 = arith.addf %203, %202 : vector<8x128xf32>
    %205 = arith.divf %203, %204 : vector<8x128xf32>
    %206 = vector.extract_strided_slice %195 {offsets = [0, 128], sizes = [8, 128], strides = [1, 1]} : vector<8x384xf32> to vector<8x128xf32>
    %207 = vector.extract_strided_slice %197 {offsets = [0, 128], sizes = [8, 128], strides = [1, 1]} : vector<8x384xf32> to vector<8x128xf32>
    %208 = arith.addf %206, %207 : vector<8x128xf32>
    %209 = arith.negf %208 : vector<8x128xf32>
    %210 = math.exp %209 : vector<8x128xf32>
    %cst_62 = arith.constant 1.000000e+00 : f32
    %211 = vector.broadcast %cst_62 : f32 to vector<8x128xf32>
    %212 = arith.addf %211, %210 : vector<8x128xf32>
    %213 = arith.divf %211, %212 : vector<8x128xf32>
    %214 = vector.extract_strided_slice %195 {offsets = [0, 256], sizes = [8, 128], strides = [1, 1]} : vector<8x384xf32> to vector<8x128xf32>
    %215 = vector.extract_strided_slice %197 {offsets = [0, 256], sizes = [8, 128], strides = [1, 1]} : vector<8x384xf32> to vector<8x128xf32>
    %216 = arith.mulf %205, %215 : vector<8x128xf32>
    %217 = arith.addf %214, %216 : vector<8x128xf32>
    %218 = math.tanh %217 : vector<8x128xf32>
    %cst_63 = arith.constant 1.000000e+00 : f32
    %219 = vector.broadcast %cst_63 : f32 to vector<8x128xf32>
    %220 = arith.subf %219, %213 : vector<8x128xf32>
    %221 = arith.mulf %220, %218 : vector<8x128xf32>
    %222 = arith.mulf %213, %156 : vector<8x128xf32>
    %223 = arith.addf %221, %222 : vector<8x128xf32>
    %224 = vector.extract_strided_slice %190 {offsets = [0, 384], sizes = [8, 384], strides = [1, 1]} : vector<8x768xf32> to vector<8x384xf32>
    %225 = arith.addf %224, %19 : vector<8x384xf32>
    %226 = vector.extract_strided_slice %225 {offsets = [0, 0], sizes = [8, 128], strides = [1, 1]} : vector<8x384xf32> to vector<8x128xf32>
    %227 = vector.extract_strided_slice %192 {offsets = [0, 0], sizes = [8, 128], strides = [1, 1]} : vector<8x384xf32> to vector<8x128xf32>
    %228 = arith.addf %226, %227 : vector<8x128xf32>
    %229 = arith.negf %228 : vector<8x128xf32>
    %230 = math.exp %229 : vector<8x128xf32>
    %cst_64 = arith.constant 1.000000e+00 : f32
    %231 = vector.broadcast %cst_64 : f32 to vector<8x128xf32>
    %232 = arith.addf %231, %230 : vector<8x128xf32>
    %233 = arith.divf %231, %232 : vector<8x128xf32>
    %234 = vector.extract_strided_slice %225 {offsets = [0, 128], sizes = [8, 128], strides = [1, 1]} : vector<8x384xf32> to vector<8x128xf32>
    %235 = vector.extract_strided_slice %192 {offsets = [0, 128], sizes = [8, 128], strides = [1, 1]} : vector<8x384xf32> to vector<8x128xf32>
    %236 = arith.addf %234, %235 : vector<8x128xf32>
    %237 = arith.negf %236 : vector<8x128xf32>
    %238 = math.exp %237 : vector<8x128xf32>
    %cst_65 = arith.constant 1.000000e+00 : f32
    %239 = vector.broadcast %cst_65 : f32 to vector<8x128xf32>
    %240 = arith.addf %239, %238 : vector<8x128xf32>
    %241 = arith.divf %239, %240 : vector<8x128xf32>
    %242 = vector.extract_strided_slice %225 {offsets = [0, 256], sizes = [8, 128], strides = [1, 1]} : vector<8x384xf32> to vector<8x128xf32>
    %243 = vector.extract_strided_slice %192 {offsets = [0, 256], sizes = [8, 128], strides = [1, 1]} : vector<8x384xf32> to vector<8x128xf32>
    %244 = arith.mulf %233, %243 : vector<8x128xf32>
    %245 = arith.addf %242, %244 : vector<8x128xf32>
    %246 = math.tanh %245 : vector<8x128xf32>
    %cst_66 = arith.constant 1.000000e+00 : f32
    %247 = vector.broadcast %cst_66 : f32 to vector<8x128xf32>
    %248 = arith.subf %247, %241 : vector<8x128xf32>
    %249 = arith.mulf %248, %246 : vector<8x128xf32>
    %250 = arith.mulf %241, %184 : vector<8x128xf32>
    %251 = arith.addf %249, %250 : vector<8x128xf32>
    %c1_i32_67 = arith.constant 1 : i32
    %252 = arith.subi %c3_i32, %c1_i32_67 : i32
    %253 = arith.index_cast %252 : i32 to index
    %c0_68 = arith.constant 0 : index
    %c0_69 = arith.constant 0 : index
    %254 = vector.load %arg22[%253, %c0_68, %c0_69] : memref<8x8x128xf32, #tpu.memory_space<vmem>>, vector<1x8x128xf32>
    %255 = vector.shape_cast %254 : vector<1x8x128xf32> to vector<8x128xf32>
    %256 = vector.shape_cast %251 : vector<8x128xf32> to vector<1x8x128xf32>
    tpu.vector_store %arg22[%253, %c0_68, %c0_69], %256 {strides = array<i32>} : memref<8x8x128xf32, #tpu.memory_space<vmem>>, vector<1x8x128xf32>,
    %c4_i32 = arith.constant 4 : i32
    %cst_70 = arith.constant dense<0.000000e+00> : vector<8x768xf32>
    %257 = tpu.matmul %223, %12, %cst_70 {dimension_numbers = #tpu.dot_dimension_numbers<[1], [0], [0], [1], [0, 0, 1, 1], [], []>} : vector<8x128xf32>, vector<128x768xf32>, vector<8x768xf32> -> vector<8x768xf32>
    %cst_71 = arith.constant dense<0.000000e+00> : vector<8x384xf32>
    %258 = tpu.matmul %251, %13, %cst_71 {dimension_numbers = #tpu.dot_dimension_numbers<[1], [0], [0], [1], [0, 0, 1, 1], [], []>} : vector<8x128xf32>, vector<128x384xf32>, vector<8x384xf32> -> vector<8x384xf32>
    %259 = arith.addf %258, %22 : vector<8x384xf32>
    %260 = arith.index_cast %c4_i32 : i32 to index
    %c0_72 = arith.constant 0 : index
    %c0_73 = arith.constant 0 : index
    %261 = vector.load %arg21[%260, %c0_72, %c0_73] : memref<8x8x384xf32, #tpu.memory_space<vmem>>, vector<1x8x384xf32>
    %262 = vector.shape_cast %261 : vector<1x8x384xf32> to vector<8x384xf32>
    %263 = vector.extract_strided_slice %257 {offsets = [0, 0], sizes = [8, 384], strides = [1, 1]} : vector<8x768xf32> to vector<8x384xf32>
    %264 = arith.addf %263, %16 : vector<8x384xf32>
    %265 = vector.extract_strided_slice %262 {offsets = [0, 0], sizes = [8, 128], strides = [1, 1]} : vector<8x384xf32> to vector<8x128xf32>
    %266 = vector.extract_strided_slice %264 {offsets = [0, 0], sizes = [8, 128], strides = [1, 1]} : vector<8x384xf32> to vector<8x128xf32>
    %267 = arith.addf %265, %266 : vector<8x128xf32>
    %268 = arith.negf %267 : vector<8x128xf32>
    %269 = math.exp %268 : vector<8x128xf32>
    %cst_74 = arith.constant 1.000000e+00 : f32
    %270 = vector.broadcast %cst_74 : f32 to vector<8x128xf32>
    %271 = arith.addf %270, %269 : vector<8x128xf32>
    %272 = arith.divf %270, %271 : vector<8x128xf32>
    %273 = vector.extract_strided_slice %262 {offsets = [0, 128], sizes = [8, 128], strides = [1, 1]} : vector<8x384xf32> to vector<8x128xf32>
    %274 = vector.extract_strided_slice %264 {offsets = [0, 128], sizes = [8, 128], strides = [1, 1]} : vector<8x384xf32> to vector<8x128xf32>
    %275 = arith.addf %273, %274 : vector<8x128xf32>
    %276 = arith.negf %275 : vector<8x128xf32>
    %277 = math.exp %276 : vector<8x128xf32>
    %cst_75 = arith.constant 1.000000e+00 : f32
    %278 = vector.broadcast %cst_75 : f32 to vector<8x128xf32>
    %279 = arith.addf %278, %277 : vector<8x128xf32>
    %280 = arith.divf %278, %279 : vector<8x128xf32>
    %281 = vector.extract_strided_slice %262 {offsets = [0, 256], sizes = [8, 128], strides = [1, 1]} : vector<8x384xf32> to vector<8x128xf32>
    %282 = vector.extract_strided_slice %264 {offsets = [0, 256], sizes = [8, 128], strides = [1, 1]} : vector<8x384xf32> to vector<8x128xf32>
    %283 = arith.mulf %272, %282 : vector<8x128xf32>
    %284 = arith.addf %281, %283 : vector<8x128xf32>
    %285 = math.tanh %284 : vector<8x128xf32>
    %cst_76 = arith.constant 1.000000e+00 : f32
    %286 = vector.broadcast %cst_76 : f32 to vector<8x128xf32>
    %287 = arith.subf %286, %280 : vector<8x128xf32>
    %288 = arith.mulf %287, %285 : vector<8x128xf32>
    %289 = arith.mulf %280, %223 : vector<8x128xf32>
    %290 = arith.addf %288, %289 : vector<8x128xf32>
    %291 = vector.extract_strided_slice %257 {offsets = [0, 384], sizes = [8, 384], strides = [1, 1]} : vector<8x768xf32> to vector<8x384xf32>
    %292 = arith.addf %291, %19 : vector<8x384xf32>
    %293 = vector.extract_strided_slice %292 {offsets = [0, 0], sizes = [8, 128], strides = [1, 1]} : vector<8x384xf32> to vector<8x128xf32>
    %294 = vector.extract_strided_slice %259 {offsets = [0, 0], sizes = [8, 128], strides = [1, 1]} : vector<8x384xf32> to vector<8x128xf32>
    %295 = arith.addf %293, %294 : vector<8x128xf32>
    %296 = arith.negf %295 : vector<8x128xf32>
    %297 = math.exp %296 : vector<8x128xf32>
    %cst_77 = arith.constant 1.000000e+00 : f32
    %298 = vector.broadcast %cst_77 : f32 to vector<8x128xf32>
    %299 = arith.addf %298, %297 : vector<8x128xf32>
    %300 = arith.divf %298, %299 : vector<8x128xf32>
    %301 = vector.extract_strided_slice %292 {offsets = [0, 128], sizes = [8, 128], strides = [1, 1]} : vector<8x384xf32> to vector<8x128xf32>
    %302 = vector.extract_strided_slice %259 {offsets = [0, 128], sizes = [8, 128], strides = [1, 1]} : vector<8x384xf32> to vector<8x128xf32>
    %303 = arith.addf %301, %302 : vector<8x128xf32>
    %304 = arith.negf %303 : vector<8x128xf32>
    %305 = math.exp %304 : vector<8x128xf32>
    %cst_78 = arith.constant 1.000000e+00 : f32
    %306 = vector.broadcast %cst_78 : f32 to vector<8x128xf32>
    %307 = arith.addf %306, %305 : vector<8x128xf32>
    %308 = arith.divf %306, %307 : vector<8x128xf32>
    %309 = vector.extract_strided_slice %292 {offsets = [0, 256], sizes = [8, 128], strides = [1, 1]} : vector<8x384xf32> to vector<8x128xf32>
    %310 = vector.extract_strided_slice %259 {offsets = [0, 256], sizes = [8, 128], strides = [1, 1]} : vector<8x384xf32> to vector<8x128xf32>
    %311 = arith.mulf %300, %310 : vector<8x128xf32>
    %312 = arith.addf %309, %311 : vector<8x128xf32>
    %313 = math.tanh %312 : vector<8x128xf32>
    %cst_79 = arith.constant 1.000000e+00 : f32
    %314 = vector.broadcast %cst_79 : f32 to vector<8x128xf32>
    %315 = arith.subf %314, %308 : vector<8x128xf32>
    %316 = arith.mulf %315, %313 : vector<8x128xf32>
    %317 = arith.mulf %308, %251 : vector<8x128xf32>
    %318 = arith.addf %316, %317 : vector<8x128xf32>
    %c1_i32_80 = arith.constant 1 : i32
    %319 = arith.subi %c4_i32, %c1_i32_80 : i32
    %320 = arith.index_cast %319 : i32 to index
    %c0_81 = arith.constant 0 : index
    %c0_82 = arith.constant 0 : index
    %321 = vector.load %arg22[%320, %c0_81, %c0_82] : memref<8x8x128xf32, #tpu.memory_space<vmem>>, vector<1x8x128xf32>
    %322 = vector.shape_cast %321 : vector<1x8x128xf32> to vector<8x128xf32>
    %323 = vector.shape_cast %318 : vector<8x128xf32> to vector<1x8x128xf32>
    tpu.vector_store %arg22[%320, %c0_81, %c0_82], %323 {strides = array<i32>} : memref<8x8x128xf32, #tpu.memory_space<vmem>>, vector<1x8x128xf32>,
    %c5_i32 = arith.constant 5 : i32
    %cst_83 = arith.constant dense<0.000000e+00> : vector<8x768xf32>
    %324 = tpu.matmul %290, %12, %cst_83 {dimension_numbers = #tpu.dot_dimension_numbers<[1], [0], [0], [1], [0, 0, 1, 1], [], []>} : vector<8x128xf32>, vector<128x768xf32>, vector<8x768xf32> -> vector<8x768xf32>
    %cst_84 = arith.constant dense<0.000000e+00> : vector<8x384xf32>
    %325 = tpu.matmul %318, %13, %cst_84 {dimension_numbers = #tpu.dot_dimension_numbers<[1], [0], [0], [1], [0, 0, 1, 1], [], []>} : vector<8x128xf32>, vector<128x384xf32>, vector<8x384xf32> -> vector<8x384xf32>
    %326 = arith.addf %325, %22 : vector<8x384xf32>
    %327 = arith.index_cast %c5_i32 : i32 to index
    %c0_85 = arith.constant 0 : index
    %c0_86 = arith.constant 0 : index
    %328 = vector.load %arg21[%327, %c0_85, %c0_86] : memref<8x8x384xf32, #tpu.memory_space<vmem>>, vector<1x8x384xf32>
    %329 = vector.shape_cast %328 : vector<1x8x384xf32> to vector<8x384xf32>
    %330 = vector.extract_strided_slice %324 {offsets = [0, 0], sizes = [8, 384], strides = [1, 1]} : vector<8x768xf32> to vector<8x384xf32>
    %331 = arith.addf %330, %16 : vector<8x384xf32>
    %332 = vector.extract_strided_slice %329 {offsets = [0, 0], sizes = [8, 128], strides = [1, 1]} : vector<8x384xf32> to vector<8x128xf32>
    %333 = vector.extract_strided_slice %331 {offsets = [0, 0], sizes = [8, 128], strides = [1, 1]} : vector<8x384xf32> to vector<8x128xf32>
    %334 = arith.addf %332, %333 : vector<8x128xf32>
    %335 = arith.negf %334 : vector<8x128xf32>
    %336 = math.exp %335 : vector<8x128xf32>
    %cst_87 = arith.constant 1.000000e+00 : f32
    %337 = vector.broadcast %cst_87 : f32 to vector<8x128xf32>
    %338 = arith.addf %337, %336 : vector<8x128xf32>
    %339 = arith.divf %337, %338 : vector<8x128xf32>
    %340 = vector.extract_strided_slice %329 {offsets = [0, 128], sizes = [8, 128], strides = [1, 1]} : vector<8x384xf32> to vector<8x128xf32>
    %341 = vector.extract_strided_slice %331 {offsets = [0, 128], sizes = [8, 128], strides = [1, 1]} : vector<8x384xf32> to vector<8x128xf32>
    %342 = arith.addf %340, %341 : vector<8x128xf32>
    %343 = arith.negf %342 : vector<8x128xf32>
    %344 = math.exp %343 : vector<8x128xf32>
    %cst_88 = arith.constant 1.000000e+00 : f32
    %345 = vector.broadcast %cst_88 : f32 to vector<8x128xf32>
    %346 = arith.addf %345, %344 : vector<8x128xf32>
    %347 = arith.divf %345, %346 : vector<8x128xf32>
    %348 = vector.extract_strided_slice %329 {offsets = [0, 256], sizes = [8, 128], strides = [1, 1]} : vector<8x384xf32> to vector<8x128xf32>
    %349 = vector.extract_strided_slice %331 {offsets = [0, 256], sizes = [8, 128], strides = [1, 1]} : vector<8x384xf32> to vector<8x128xf32>
    %350 = arith.mulf %339, %349 : vector<8x128xf32>
    %351 = arith.addf %348, %350 : vector<8x128xf32>
    %352 = math.tanh %351 : vector<8x128xf32>
    %cst_89 = arith.constant 1.000000e+00 : f32
    %353 = vector.broadcast %cst_89 : f32 to vector<8x128xf32>
    %354 = arith.subf %353, %347 : vector<8x128xf32>
    %355 = arith.mulf %354, %352 : vector<8x128xf32>
    %356 = arith.mulf %347, %290 : vector<8x128xf32>
    %357 = arith.addf %355, %356 : vector<8x128xf32>
    %358 = vector.extract_strided_slice %324 {offsets = [0, 384], sizes = [8, 384], strides = [1, 1]} : vector<8x768xf32> to vector<8x384xf32>
    %359 = arith.addf %358, %19 : vector<8x384xf32>
    %360 = vector.extract_strided_slice %359 {offsets = [0, 0], sizes = [8, 128], strides = [1, 1]} : vector<8x384xf32> to vector<8x128xf32>
    %361 = vector.extract_strided_slice %326 {offsets = [0, 0], sizes = [8, 128], strides = [1, 1]} : vector<8x384xf32> to vector<8x128xf32>
    %362 = arith.addf %360, %361 : vector<8x128xf32>
    %363 = arith.negf %362 : vector<8x128xf32>
    %364 = math.exp %363 : vector<8x128xf32>
    %cst_90 = arith.constant 1.000000e+00 : f32
    %365 = vector.broadcast %cst_90 : f32 to vector<8x128xf32>
    %366 = arith.addf %365, %364 : vector<8x128xf32>
    %367 = arith.divf %365, %366 : vector<8x128xf32>
    %368 = vector.extract_strided_slice %359 {offsets = [0, 128], sizes = [8, 128], strides = [1, 1]} : vector<8x384xf32> to vector<8x128xf32>
    %369 = vector.extract_strided_slice %326 {offsets = [0, 128], sizes = [8, 128], strides = [1, 1]} : vector<8x384xf32> to vector<8x128xf32>
    %370 = arith.addf %368, %369 : vector<8x128xf32>
    %371 = arith.negf %370 : vector<8x128xf32>
    %372 = math.exp %371 : vector<8x128xf32>
    %cst_91 = arith.constant 1.000000e+00 : f32
    %373 = vector.broadcast %cst_91 : f32 to vector<8x128xf32>
    %374 = arith.addf %373, %372 : vector<8x128xf32>
    %375 = arith.divf %373, %374 : vector<8x128xf32>
    %376 = vector.extract_strided_slice %359 {offsets = [0, 256], sizes = [8, 128], strides = [1, 1]} : vector<8x384xf32> to vector<8x128xf32>
    %377 = vector.extract_strided_slice %326 {offsets = [0, 256], sizes = [8, 128], strides = [1, 1]} : vector<8x384xf32> to vector<8x128xf32>
    %378 = arith.mulf %367, %377 : vector<8x128xf32>
    %379 = arith.addf %376, %378 : vector<8x128xf32>
    %380 = math.tanh %379 : vector<8x128xf32>
    %cst_92 = arith.constant 1.000000e+00 : f32
    %381 = vector.broadcast %cst_92 : f32 to vector<8x128xf32>
    %382 = arith.subf %381, %375 : vector<8x128xf32>
    %383 = arith.mulf %382, %380 : vector<8x128xf32>
    %384 = arith.mulf %375, %318 : vector<8x128xf32>
    %385 = arith.addf %383, %384 : vector<8x128xf32>
    %c1_i32_93 = arith.constant 1 : i32
    %386 = arith.subi %c5_i32, %c1_i32_93 : i32
    %387 = arith.index_cast %386 : i32 to index
    %c0_94 = arith.constant 0 : index
    %c0_95 = arith.constant 0 : index
    %388 = vector.load %arg22[%387, %c0_94, %c0_95] : memref<8x8x128xf32, #tpu.memory_space<vmem>>, vector<1x8x128xf32>
    %389 = vector.shape_cast %388 : vector<1x8x128xf32> to vector<8x128xf32>
    %390 = vector.shape_cast %385 : vector<8x128xf32> to vector<1x8x128xf32>
    tpu.vector_store %arg22[%387, %c0_94, %c0_95], %390 {strides = array<i32>} : memref<8x8x128xf32, #tpu.memory_space<vmem>>, vector<1x8x128xf32>,
    %c6_i32 = arith.constant 6 : i32
    %cst_96 = arith.constant dense<0.000000e+00> : vector<8x768xf32>
    %391 = tpu.matmul %357, %12, %cst_96 {dimension_numbers = #tpu.dot_dimension_numbers<[1], [0], [0], [1], [0, 0, 1, 1], [], []>} : vector<8x128xf32>, vector<128x768xf32>, vector<8x768xf32> -> vector<8x768xf32>
    %cst_97 = arith.constant dense<0.000000e+00> : vector<8x384xf32>
    %392 = tpu.matmul %385, %13, %cst_97 {dimension_numbers = #tpu.dot_dimension_numbers<[1], [0], [0], [1], [0, 0, 1, 1], [], []>} : vector<8x128xf32>, vector<128x384xf32>, vector<8x384xf32> -> vector<8x384xf32>
    %393 = arith.addf %392, %22 : vector<8x384xf32>
    %394 = arith.index_cast %c6_i32 : i32 to index
    %c0_98 = arith.constant 0 : index
    %c0_99 = arith.constant 0 : index
    %395 = vector.load %arg21[%394, %c0_98, %c0_99] : memref<8x8x384xf32, #tpu.memory_space<vmem>>, vector<1x8x384xf32>
    %396 = vector.shape_cast %395 : vector<1x8x384xf32> to vector<8x384xf32>
    %397 = vector.extract_strided_slice %391 {offsets = [0, 0], sizes = [8, 384], strides = [1, 1]} : vector<8x768xf32> to vector<8x384xf32>
    %398 = arith.addf %397, %16 : vector<8x384xf32>
    %399 = vector.extract_strided_slice %396 {offsets = [0, 0], sizes = [8, 128], strides = [1, 1]} : vector<8x384xf32> to vector<8x128xf32>
    %400 = vector.extract_strided_slice %398 {offsets = [0, 0], sizes = [8, 128], strides = [1, 1]} : vector<8x384xf32> to vector<8x128xf32>
    %401 = arith.addf %399, %400 : vector<8x128xf32>
    %402 = arith.negf %401 : vector<8x128xf32>
    %403 = math.exp %402 : vector<8x128xf32>
    %cst_100 = arith.constant 1.000000e+00 : f32
    %404 = vector.broadcast %cst_100 : f32 to vector<8x128xf32>
    %405 = arith.addf %404, %403 : vector<8x128xf32>
    %406 = arith.divf %404, %405 : vector<8x128xf32>
    %407 = vector.extract_strided_slice %396 {offsets = [0, 128], sizes = [8, 128], strides = [1, 1]} : vector<8x384xf32> to vector<8x128xf32>
    %408 = vector.extract_strided_slice %398 {offsets = [0, 128], sizes = [8, 128], strides = [1, 1]} : vector<8x384xf32> to vector<8x128xf32>
    %409 = arith.addf %407, %408 : vector<8x128xf32>
    %410 = arith.negf %409 : vector<8x128xf32>
    %411 = math.exp %410 : vector<8x128xf32>
    %cst_101 = arith.constant 1.000000e+00 : f32
    %412 = vector.broadcast %cst_101 : f32 to vector<8x128xf32>
    %413 = arith.addf %412, %411 : vector<8x128xf32>
    %414 = arith.divf %412, %413 : vector<8x128xf32>
    %415 = vector.extract_strided_slice %396 {offsets = [0, 256], sizes = [8, 128], strides = [1, 1]} : vector<8x384xf32> to vector<8x128xf32>
    %416 = vector.extract_strided_slice %398 {offsets = [0, 256], sizes = [8, 128], strides = [1, 1]} : vector<8x384xf32> to vector<8x128xf32>
    %417 = arith.mulf %406, %416 : vector<8x128xf32>
    %418 = arith.addf %415, %417 : vector<8x128xf32>
    %419 = math.tanh %418 : vector<8x128xf32>
    %cst_102 = arith.constant 1.000000e+00 : f32
    %420 = vector.broadcast %cst_102 : f32 to vector<8x128xf32>
    %421 = arith.subf %420, %414 : vector<8x128xf32>
    %422 = arith.mulf %421, %419 : vector<8x128xf32>
    %423 = arith.mulf %414, %357 : vector<8x128xf32>
    %424 = arith.addf %422, %423 : vector<8x128xf32>
    %425 = vector.extract_strided_slice %391 {offsets = [0, 384], sizes = [8, 384], strides = [1, 1]} : vector<8x768xf32> to vector<8x384xf32>
    %426 = arith.addf %425, %19 : vector<8x384xf32>
    %427 = vector.extract_strided_slice %426 {offsets = [0, 0], sizes = [8, 128], strides = [1, 1]} : vector<8x384xf32> to vector<8x128xf32>
    %428 = vector.extract_strided_slice %393 {offsets = [0, 0], sizes = [8, 128], strides = [1, 1]} : vector<8x384xf32> to vector<8x128xf32>
    %429 = arith.addf %427, %428 : vector<8x128xf32>
    %430 = arith.negf %429 : vector<8x128xf32>
    %431 = math.exp %430 : vector<8x128xf32>
    %cst_103 = arith.constant 1.000000e+00 : f32
    %432 = vector.broadcast %cst_103 : f32 to vector<8x128xf32>
    %433 = arith.addf %432, %431 : vector<8x128xf32>
    %434 = arith.divf %432, %433 : vector<8x128xf32>
    %435 = vector.extract_strided_slice %426 {offsets = [0, 128], sizes = [8, 128], strides = [1, 1]} : vector<8x384xf32> to vector<8x128xf32>
    %436 = vector.extract_strided_slice %393 {offsets = [0, 128], sizes = [8, 128], strides = [1, 1]} : vector<8x384xf32> to vector<8x128xf32>
    %437 = arith.addf %435, %436 : vector<8x128xf32>
    %438 = arith.negf %437 : vector<8x128xf32>
    %439 = math.exp %438 : vector<8x128xf32>
    %cst_104 = arith.constant 1.000000e+00 : f32
    %440 = vector.broadcast %cst_104 : f32 to vector<8x128xf32>
    %441 = arith.addf %440, %439 : vector<8x128xf32>
    %442 = arith.divf %440, %441 : vector<8x128xf32>
    %443 = vector.extract_strided_slice %426 {offsets = [0, 256], sizes = [8, 128], strides = [1, 1]} : vector<8x384xf32> to vector<8x128xf32>
    %444 = vector.extract_strided_slice %393 {offsets = [0, 256], sizes = [8, 128], strides = [1, 1]} : vector<8x384xf32> to vector<8x128xf32>
    %445 = arith.mulf %434, %444 : vector<8x128xf32>
    %446 = arith.addf %443, %445 : vector<8x128xf32>
    %447 = math.tanh %446 : vector<8x128xf32>
    %cst_105 = arith.constant 1.000000e+00 : f32
    %448 = vector.broadcast %cst_105 : f32 to vector<8x128xf32>
    %449 = arith.subf %448, %442 : vector<8x128xf32>
    %450 = arith.mulf %449, %447 : vector<8x128xf32>
    %451 = arith.mulf %442, %385 : vector<8x128xf32>
    %452 = arith.addf %450, %451 : vector<8x128xf32>
    %c1_i32_106 = arith.constant 1 : i32
    %453 = arith.subi %c6_i32, %c1_i32_106 : i32
    %454 = arith.index_cast %453 : i32 to index
    %c0_107 = arith.constant 0 : index
    %c0_108 = arith.constant 0 : index
    %455 = vector.load %arg22[%454, %c0_107, %c0_108] : memref<8x8x128xf32, #tpu.memory_space<vmem>>, vector<1x8x128xf32>
    %456 = vector.shape_cast %455 : vector<1x8x128xf32> to vector<8x128xf32>
    %457 = vector.shape_cast %452 : vector<8x128xf32> to vector<1x8x128xf32>
    tpu.vector_store %arg22[%454, %c0_107, %c0_108], %457 {strides = array<i32>} : memref<8x8x128xf32, #tpu.memory_space<vmem>>, vector<1x8x128xf32>,
    %c7_i32 = arith.constant 7 : i32
    %cst_109 = arith.constant dense<0.000000e+00> : vector<8x768xf32>
    %458 = tpu.matmul %424, %12, %cst_109 {dimension_numbers = #tpu.dot_dimension_numbers<[1], [0], [0], [1], [0, 0, 1, 1], [], []>} : vector<8x128xf32>, vector<128x768xf32>, vector<8x768xf32> -> vector<8x768xf32>
    %cst_110 = arith.constant dense<0.000000e+00> : vector<8x384xf32>
    %459 = tpu.matmul %452, %13, %cst_110 {dimension_numbers = #tpu.dot_dimension_numbers<[1], [0], [0], [1], [0, 0, 1, 1], [], []>} : vector<8x128xf32>, vector<128x384xf32>, vector<8x384xf32> -> vector<8x384xf32>
    %460 = arith.addf %459, %22 : vector<8x384xf32>
    %461 = arith.index_cast %c7_i32 : i32 to index
    %c0_111 = arith.constant 0 : index
    %c0_112 = arith.constant 0 : index
    %462 = vector.load %arg21[%461, %c0_111, %c0_112] : memref<8x8x384xf32, #tpu.memory_space<vmem>>, vector<1x8x384xf32>
    %463 = vector.shape_cast %462 : vector<1x8x384xf32> to vector<8x384xf32>
    %464 = vector.extract_strided_slice %458 {offsets = [0, 0], sizes = [8, 384], strides = [1, 1]} : vector<8x768xf32> to vector<8x384xf32>
    %465 = arith.addf %464, %16 : vector<8x384xf32>
    %466 = vector.extract_strided_slice %463 {offsets = [0, 0], sizes = [8, 128], strides = [1, 1]} : vector<8x384xf32> to vector<8x128xf32>
    %467 = vector.extract_strided_slice %465 {offsets = [0, 0], sizes = [8, 128], strides = [1, 1]} : vector<8x384xf32> to vector<8x128xf32>
    %468 = arith.addf %466, %467 : vector<8x128xf32>
    %469 = arith.negf %468 : vector<8x128xf32>
    %470 = math.exp %469 : vector<8x128xf32>
    %cst_113 = arith.constant 1.000000e+00 : f32
    %471 = vector.broadcast %cst_113 : f32 to vector<8x128xf32>
    %472 = arith.addf %471, %470 : vector<8x128xf32>
    %473 = arith.divf %471, %472 : vector<8x128xf32>
    %474 = vector.extract_strided_slice %463 {offsets = [0, 128], sizes = [8, 128], strides = [1, 1]} : vector<8x384xf32> to vector<8x128xf32>
    %475 = vector.extract_strided_slice %465 {offsets = [0, 128], sizes = [8, 128], strides = [1, 1]} : vector<8x384xf32> to vector<8x128xf32>
    %476 = arith.addf %474, %475 : vector<8x128xf32>
    %477 = arith.negf %476 : vector<8x128xf32>
    %478 = math.exp %477 : vector<8x128xf32>
    %cst_114 = arith.constant 1.000000e+00 : f32
    %479 = vector.broadcast %cst_114 : f32 to vector<8x128xf32>
    %480 = arith.addf %479, %478 : vector<8x128xf32>
    %481 = arith.divf %479, %480 : vector<8x128xf32>
    %482 = vector.extract_strided_slice %463 {offsets = [0, 256], sizes = [8, 128], strides = [1, 1]} : vector<8x384xf32> to vector<8x128xf32>
    %483 = vector.extract_strided_slice %465 {offsets = [0, 256], sizes = [8, 128], strides = [1, 1]} : vector<8x384xf32> to vector<8x128xf32>
    %484 = arith.mulf %473, %483 : vector<8x128xf32>
    %485 = arith.addf %482, %484 : vector<8x128xf32>
    %486 = math.tanh %485 : vector<8x128xf32>
    %cst_115 = arith.constant 1.000000e+00 : f32
    %487 = vector.broadcast %cst_115 : f32 to vector<8x128xf32>
    %488 = arith.subf %487, %481 : vector<8x128xf32>
    %489 = arith.mulf %488, %486 : vector<8x128xf32>
    %490 = arith.mulf %481, %424 : vector<8x128xf32>
    %491 = arith.addf %489, %490 : vector<8x128xf32>
    %492 = vector.extract_strided_slice %458 {offsets = [0, 384], sizes = [8, 384], strides = [1, 1]} : vector<8x768xf32> to vector<8x384xf32>
    %493 = arith.addf %492, %19 : vector<8x384xf32>
    %494 = vector.extract_strided_slice %493 {offsets = [0, 0], sizes = [8, 128], strides = [1, 1]} : vector<8x384xf32> to vector<8x128xf32>
    %495 = vector.extract_strided_slice %460 {offsets = [0, 0], sizes = [8, 128], strides = [1, 1]} : vector<8x384xf32> to vector<8x128xf32>
    %496 = arith.addf %494, %495 : vector<8x128xf32>
    %497 = arith.negf %496 : vector<8x128xf32>
    %498 = math.exp %497 : vector<8x128xf32>
    %cst_116 = arith.constant 1.000000e+00 : f32
    %499 = vector.broadcast %cst_116 : f32 to vector<8x128xf32>
    %500 = arith.addf %499, %498 : vector<8x128xf32>
    %501 = arith.divf %499, %500 : vector<8x128xf32>
    %502 = vector.extract_strided_slice %493 {offsets = [0, 128], sizes = [8, 128], strides = [1, 1]} : vector<8x384xf32> to vector<8x128xf32>
    %503 = vector.extract_strided_slice %460 {offsets = [0, 128], sizes = [8, 128], strides = [1, 1]} : vector<8x384xf32> to vector<8x128xf32>
    %504 = arith.addf %502, %503 : vector<8x128xf32>
    %505 = arith.negf %504 : vector<8x128xf32>
    %506 = math.exp %505 : vector<8x128xf32>
    %cst_117 = arith.constant 1.000000e+00 : f32
    %507 = vector.broadcast %cst_117 : f32 to vector<8x128xf32>
    %508 = arith.addf %507, %506 : vector<8x128xf32>
    %509 = arith.divf %507, %508 : vector<8x128xf32>
    %510 = vector.extract_strided_slice %493 {offsets = [0, 256], sizes = [8, 128], strides = [1, 1]} : vector<8x384xf32> to vector<8x128xf32>
    %511 = vector.extract_strided_slice %460 {offsets = [0, 256], sizes = [8, 128], strides = [1, 1]} : vector<8x384xf32> to vector<8x128xf32>
    %512 = arith.mulf %501, %511 : vector<8x128xf32>
    %513 = arith.addf %510, %512 : vector<8x128xf32>
    %514 = math.tanh %513 : vector<8x128xf32>
    %cst_118 = arith.constant 1.000000e+00 : f32
    %515 = vector.broadcast %cst_118 : f32 to vector<8x128xf32>
    %516 = arith.subf %515, %509 : vector<8x128xf32>
    %517 = arith.mulf %516, %514 : vector<8x128xf32>
    %518 = arith.mulf %509, %452 : vector<8x128xf32>
    %519 = arith.addf %517, %518 : vector<8x128xf32>
    %c1_i32_119 = arith.constant 1 : i32
    %520 = arith.subi %c7_i32, %c1_i32_119 : i32
    %521 = arith.index_cast %520 : i32 to index
    %c0_120 = arith.constant 0 : index
    %c0_121 = arith.constant 0 : index
    %522 = vector.load %arg22[%521, %c0_120, %c0_121] : memref<8x8x128xf32, #tpu.memory_space<vmem>>, vector<1x8x128xf32>
    %523 = vector.shape_cast %522 : vector<1x8x128xf32> to vector<8x128xf32>
    %524 = vector.shape_cast %519 : vector<8x128xf32> to vector<1x8x128xf32>
    tpu.vector_store %arg22[%521, %c0_120, %c0_121], %524 {strides = array<i32>} : memref<8x8x128xf32, #tpu.memory_space<vmem>>, vector<1x8x128xf32>,
    %c7_i32_122 = arith.constant 7 : i32
    %cst_123 = arith.constant dense<0.000000e+00> : vector<8x768xf32>
    %525 = tpu.matmul %491, %12, %cst_123 {dimension_numbers = #tpu.dot_dimension_numbers<[1], [0], [0], [1], [0, 0, 1, 1], [], []>} : vector<8x128xf32>, vector<128x768xf32>, vector<8x768xf32> -> vector<8x768xf32>
    %526 = vector.extract_strided_slice %525 {offsets = [0, 384], sizes = [8, 384], strides = [1, 1]} : vector<8x768xf32> to vector<8x384xf32>
    %527 = arith.addf %526, %19 : vector<8x384xf32>
    %cst_124 = arith.constant dense<0.000000e+00> : vector<8x384xf32>
    %528 = tpu.matmul %519, %13, %cst_124 {dimension_numbers = #tpu.dot_dimension_numbers<[1], [0], [0], [1], [0, 0, 1, 1], [], []>} : vector<8x128xf32>, vector<128x384xf32>, vector<8x384xf32> -> vector<8x384xf32>
    %529 = arith.addf %528, %22 : vector<8x384xf32>
    %530 = vector.extract_strided_slice %527 {offsets = [0, 0], sizes = [8, 128], strides = [1, 1]} : vector<8x384xf32> to vector<8x128xf32>
    %531 = vector.extract_strided_slice %529 {offsets = [0, 0], sizes = [8, 128], strides = [1, 1]} : vector<8x384xf32> to vector<8x128xf32>
    %532 = arith.addf %530, %531 : vector<8x128xf32>
    %533 = arith.negf %532 : vector<8x128xf32>
    %534 = math.exp %533 : vector<8x128xf32>
    %cst_125 = arith.constant 1.000000e+00 : f32
    %535 = vector.broadcast %cst_125 : f32 to vector<8x128xf32>
    %536 = arith.addf %535, %534 : vector<8x128xf32>
    %537 = arith.divf %535, %536 : vector<8x128xf32>
    %538 = vector.extract_strided_slice %527 {offsets = [0, 128], sizes = [8, 128], strides = [1, 1]} : vector<8x384xf32> to vector<8x128xf32>
    %539 = vector.extract_strided_slice %529 {offsets = [0, 128], sizes = [8, 128], strides = [1, 1]} : vector<8x384xf32> to vector<8x128xf32>
    %540 = arith.addf %538, %539 : vector<8x128xf32>
    %541 = arith.negf %540 : vector<8x128xf32>
    %542 = math.exp %541 : vector<8x128xf32>
    %cst_126 = arith.constant 1.000000e+00 : f32
    %543 = vector.broadcast %cst_126 : f32 to vector<8x128xf32>
    %544 = arith.addf %543, %542 : vector<8x128xf32>
    %545 = arith.divf %543, %544 : vector<8x128xf32>
    %546 = vector.extract_strided_slice %527 {offsets = [0, 256], sizes = [8, 128], strides = [1, 1]} : vector<8x384xf32> to vector<8x128xf32>
    %547 = vector.extract_strided_slice %529 {offsets = [0, 256], sizes = [8, 128], strides = [1, 1]} : vector<8x384xf32> to vector<8x128xf32>
    %548 = arith.mulf %537, %547 : vector<8x128xf32>
    %549 = arith.addf %546, %548 : vector<8x128xf32>
    %550 = math.tanh %549 : vector<8x128xf32>
    %cst_127 = arith.constant 1.000000e+00 : f32
    %551 = vector.broadcast %cst_127 : f32 to vector<8x128xf32>
    %552 = arith.subf %551, %545 : vector<8x128xf32>
    %553 = arith.mulf %552, %550 : vector<8x128xf32>
    %554 = arith.mulf %545, %519 : vector<8x128xf32>
    %555 = arith.addf %553, %554 : vector<8x128xf32>
    %c7 = arith.constant 7 : index
    %c0_128 = arith.constant 0 : index
    %c0_129 = arith.constant 0 : index
    %556 = vector.load %arg22[%c7, %c0_128, %c0_129] : memref<8x8x128xf32, #tpu.memory_space<vmem>>, vector<1x8x128xf32>
    %557 = vector.shape_cast %556 : vector<1x8x128xf32> to vector<8x128xf32>
    %558 = vector.shape_cast %555 : vector<8x128xf32> to vector<1x8x128xf32>
    tpu.vector_store %arg22[%c7, %c0_128, %c0_129], %558 {strides = array<i32>} : memref<8x8x128xf32, #tpu.memory_space<vmem>>, vector<1x8x128xf32>,
    %c0_130 = arith.constant 0 : index
    %c0_131 = arith.constant 0 : index
    %559 = vector.load %arg19[%c0_130, %c0_131] : memref<8x128xf32, #tpu.memory_space<vmem>>, vector<8x128xf32>
    tpu.vector_store %arg19[%c0_130, %c0_131], %491 {strides = array<i32>} : memref<8x128xf32, #tpu.memory_space<vmem>>, vector<8x128xf32>,
    %c0_132 = arith.constant 0 : index
    %c0_133 = arith.constant 0 : index
    %560 = vector.load %arg20[%c0_132, %c0_133] : memref<8x128xf32, #tpu.memory_space<vmem>>, vector<8x128xf32>
    tpu.vector_store %arg20[%c0_132, %c0_133], %555 {strides = array<i32>} : memref<8x128xf32, #tpu.memory_space<vmem>>, vector<8x128xf32>,
    %c0_134 = arith.constant 0 : index
    %c0_135 = arith.constant 0 : index
    %c0_136 = arith.constant 0 : index
    %561 = vector.load %arg22[%c0_134, %c0_135, %c0_136] : memref<8x8x128xf32, #tpu.memory_space<vmem>>, vector<8x8x128xf32>
    %562 = vector.shape_cast %561 : vector<8x8x128xf32> to vector<64x128xf32>
    %c0_137 = arith.constant 0 : index
    %c0_138 = arith.constant 0 : index
    %563 = vector.load %arg12[%c0_137, %c0_138] : memref<128x128xf32, #tpu.memory_space<vmem>>, vector<128x128xf32>
    %cst_139 = arith.constant dense<0.000000e+00> : vector<64x128xf32>
    %564 = tpu.matmul %562, %563, %cst_139 {dimension_numbers = #tpu.dot_dimension_numbers<[1], [0], [0], [1], [0, 0, 1, 1], [], []>} : vector<64x128xf32>, vector<128x128xf32>, vector<64x128xf32> -> vector<64x128xf32>
    %c0_140 = arith.constant 0 : index
    %c0_141 = arith.constant 0 : index
    %565 = vector.load %arg13[%c0_140, %c0_141] : memref<1x128xf32, #tpu.memory_space<vmem>>, vector<1x128xf32>
    %566 = vector.broadcast %565 : vector<1x128xf32> to vector<64x128xf32>
    %567 = arith.addf %564, %566 : vector<64x128xf32>
    %cst_142 = arith.constant 0.000000e+00 : f32
    %568 = vector.broadcast %cst_142 : f32 to vector<64x128xf32>
    %569 = arith.maximumf %567, %568 : vector<64x128xf32>
    %c0_143 = arith.constant 0 : index
    %c0_144 = arith.constant 0 : index
    %570 = vector.load %arg14[%c0_143, %c0_144] : memref<128x128xf32, #tpu.memory_space<vmem>>, vector<128x128xf32>
    %cst_145 = arith.constant dense<0.000000e+00> : vector<64x128xf32>
    %571 = tpu.matmul %569, %570, %cst_145 {dimension_numbers = #tpu.dot_dimension_numbers<[1], [0], [0], [1], [0, 0, 1, 1], [], []>} : vector<64x128xf32>, vector<128x128xf32>, vector<64x128xf32> -> vector<64x128xf32>
    %c0_146 = arith.constant 0 : index
    %c0_147 = arith.constant 0 : index
    %572 = vector.load %arg15[%c0_146, %c0_147] : memref<1x128xf32, #tpu.memory_space<vmem>>, vector<1x128xf32>
    %573 = vector.broadcast %572 : vector<1x128xf32> to vector<64x128xf32>
    %574 = arith.addf %571, %573 : vector<64x128xf32>
    %cst_148 = arith.constant 0.000000e+00 : f32
    %575 = vector.broadcast %cst_148 : f32 to vector<64x128xf32>
    %576 = arith.maximumf %574, %575 : vector<64x128xf32>
    %c0_149 = arith.constant 0 : index
    %c0_150 = arith.constant 0 : index
    %577 = vector.load %arg16[%c0_149, %c0_150] : memref<128x128xf32, #tpu.memory_space<vmem>>, vector<128x128xf32>
    %cst_151 = arith.constant dense<0.000000e+00> : vector<64x128xf32>
    %578 = tpu.matmul %576, %577, %cst_151 {dimension_numbers = #tpu.dot_dimension_numbers<[1], [0], [0], [1], [0, 0, 1, 1], [], []>} : vector<64x128xf32>, vector<128x128xf32>, vector<64x128xf32> -> vector<64x128xf32>
    %c0_152 = arith.constant 0 : index
    %c0_153 = arith.constant 0 : index
    %579 = vector.load %arg17[%c0_152, %c0_153] : memref<1x128xf32, #tpu.memory_space<vmem>>, vector<1x128xf32>
    %580 = vector.broadcast %579 : vector<1x128xf32> to vector<64x128xf32>
    %581 = arith.addf %578, %580 : vector<64x128xf32>
    %582 = arith.negf %581 : vector<64x128xf32>
    %583 = math.exp %582 : vector<64x128xf32>
    %cst_154 = arith.constant 1.000000e+00 : f32
    %584 = vector.broadcast %cst_154 : f32 to vector<64x128xf32>
    %585 = arith.addf %584, %583 : vector<64x128xf32>
    %586 = arith.divf %584, %585 : vector<64x128xf32>
    %587 = vector.shape_cast %586 : vector<64x128xf32> to vector<8x8x128xf32>
    %c0_155 = arith.constant 0 : index
    %c0_156 = arith.constant 0 : index
    %c0_157 = arith.constant 0 : index
    %588 = vector.load %arg18[%c0_155, %c0_156, %c0_157] : memref<8x8x128xf32, #tpu.memory_space<vmem>>, vector<8x8x128xf32>
    tpu.vector_store %arg18[%c0_155, %c0_156, %c0_157], %587 {strides = array<i32>} : memref<8x8x128xf32, #tpu.memory_space<vmem>>, vector<8x8x128xf32>,
    return
  }
  func.func @transform_0(%arg0: i32, %arg1: i32) -> (i32, i32, i32) {
    %c0_i32 = arith.constant 0 : i32
    %c0_i32_0 = arith.constant 0 : i32
    return %arg1, %arg0, %c0_i32 : i32, i32, i32
  }
  func.func @transform_1(%arg0: i32, %arg1: i32) -> (i32, i32) {
    %c0_i32 = arith.constant 0 : i32
    %c0_i32_0 = arith.constant 0 : i32
    return %arg0, %c0_i32 : i32, i32
  }
  func.func @transform_2(%arg0: i32, %arg1: i32) -> (i32, i32) {
    %c0_i32 = arith.constant 0 : i32
    %c0_i32_0 = arith.constant 0 : i32
    return %arg0, %c0_i32 : i32, i32
  }
  func.func @transform_3(%arg0: i32, %arg1: i32) -> (i32, i32) {
    %c0_i32 = arith.constant 0 : i32
    %c0_i32_0 = arith.constant 0 : i32
    %c0_i32_1 = arith.constant 0 : i32
    return %c0_i32, %c0_i32_0 : i32, i32
  }
  func.func @transform_4(%arg0: i32, %arg1: i32) -> (i32, i32) {
    %c0_i32 = arith.constant 0 : i32
    %c0_i32_0 = arith.constant 0 : i32
    %c0_i32_1 = arith.constant 0 : i32
    return %c0_i32, %c0_i32_0 : i32, i32
  }
  func.func @transform_5(%arg0: i32, %arg1: i32) -> (i32, i32) {
    %c0_i32 = arith.constant 0 : i32
    %c0_i32_0 = arith.constant 0 : i32
    %c0_i32_1 = arith.constant 0 : i32
    return %c0_i32, %c0_i32_0 : i32, i32
  }
  func.func @transform_6(%arg0: i32, %arg1: i32) -> (i32, i32) {
    %c0_i32 = arith.constant 0 : i32
    %c0_i32_0 = arith.constant 0 : i32
    %c0_i32_1 = arith.constant 0 : i32
    return %c0_i32, %c0_i32_0 : i32, i32
  }
  func.func @transform_7(%arg0: i32, %arg1: i32) -> (i32, i32) {
    %c0_i32 = arith.constant 0 : i32
    %c0_i32_0 = arith.constant 0 : i32
    %c0_i32_1 = arith.constant 0 : i32
    return %c0_i32, %c0_i32_0 : i32, i32
  }
  func.func @transform_8(%arg0: i32, %arg1: i32) -> (i32, i32) {
    %c0_i32 = arith.constant 0 : i32
    %c0_i32_0 = arith.constant 0 : i32
    %c0_i32_1 = arith.constant 0 : i32
    return %c0_i32, %c0_i32_0 : i32, i32
  }
  func.func @transform_9(%arg0: i32, %arg1: i32) -> (i32, i32) {
    %c0_i32 = arith.constant 0 : i32
    %c0_i32_0 = arith.constant 0 : i32
    %c0_i32_1 = arith.constant 0 : i32
    return %c0_i32, %c0_i32_0 : i32, i32
  }
  func.func @transform_10(%arg0: i32, %arg1: i32) -> (i32, i32) {
    %c0_i32 = arith.constant 0 : i32
    %c0_i32_0 = arith.constant 0 : i32
    %c0_i32_1 = arith.constant 0 : i32
    return %c0_i32, %c0_i32_0 : i32, i32
  }
  func.func @transform_11(%arg0: i32, %arg1: i32) -> (i32, i32) {
    %c0_i32 = arith.constant 0 : i32
    %c0_i32_0 = arith.constant 0 : i32
    %c0_i32_1 = arith.constant 0 : i32
    return %c0_i32, %c0_i32_0 : i32, i32
  }
  func.func @transform_12(%arg0: i32, %arg1: i32) -> (i32, i32) {
    %c0_i32 = arith.constant 0 : i32
    %c0_i32_0 = arith.constant 0 : i32
    %c0_i32_1 = arith.constant 0 : i32
    return %c0_i32, %c0_i32_0 : i32, i32
  }
  func.func @transform_13(%arg0: i32, %arg1: i32) -> (i32, i32) {
    %c0_i32 = arith.constant 0 : i32
    %c0_i32_0 = arith.constant 0 : i32
    %c0_i32_1 = arith.constant 0 : i32
    return %c0_i32, %c0_i32_0 : i32, i32
  }
  func.func @transform_14(%arg0: i32, %arg1: i32) -> (i32, i32) {
    %c0_i32 = arith.constant 0 : i32
    %c0_i32_0 = arith.constant 0 : i32
    %c0_i32_1 = arith.constant 0 : i32
    return %c0_i32, %c0_i32_0 : i32, i32
  }
  func.func @transform_15(%arg0: i32, %arg1: i32) -> (i32, i32) {
    %c0_i32 = arith.constant 0 : i32
    %c0_i32_0 = arith.constant 0 : i32
    %c0_i32_1 = arith.constant 0 : i32
    return %c0_i32, %c0_i32_0 : i32, i32
  }
  func.func @transform_16(%arg0: i32, %arg1: i32) -> (i32, i32, i32) {
    %c0_i32 = arith.constant 0 : i32
    %c0_i32_0 = arith.constant 0 : i32
    return %arg1, %arg0, %c0_i32 : i32, i32, i32
  }
  func.func @transform_17(%arg0: i32, %arg1: i32) -> (i32, i32) {
    %c0_i32 = arith.constant 0 : i32
    %c0_i32_0 = arith.constant 0 : i32
    return %arg0, %c0_i32 : i32, i32
  }
  func.func @transform_18(%arg0: i32, %arg1: i32) -> (i32, i32) {
    %c0_i32 = arith.constant 0 : i32
    %c0_i32_0 = arith.constant 0 : i32
    return %arg0, %c0_i32 : i32, i32
  }
}

</mosaic_0001>

<bundles_post_ra>
// kernel: nsnet2_forward.1
= control target key start
LH: loop header
LB: loop body
LE: loop exit
PB: predicated region body
PF: predicated region fallthrough
CT: control target
= control target key end

     0   :  { %v9934_v3 = vmov 0.0   ;;  %vm5599_vm0 = vmmov 0   ;;  %s9912_s3 = inlined_call_operand.vmem [shape: f32[128,384], index: 3, kind: input, shape index: {}]   ;;  %s9913_s0 = inlined_call_operand.vmem [shape: f32[8,8,128], index: 0, kind: input, shape index: {}]   ;;  %s9914_s5 = inlined_call_operand.vmem [shape: f32[128,768], index: 5, kind: input, shape index: {}]   ;;  %s9915_s1 = inlined_call_operand.vmem [shape: f32[8,128], index: 1, kind: input, shape index: {}]   ;;  %s9916_s8 = inlined_call_operand.vmem [shape: f32[128,384], index: 8, kind: input, shape index: {}]   ;;  %s9917_s4 = inlined_call_operand.vmem [shape: f32[1,384], index: 4, kind: input, shape index: {}]   ;;  %s9918_s6 = inlined_call_operand.vmem [shape: f32[1,384], index: 6, kind: input, shape index: {}]   ;;  %s9919_s2 = inlined_call_operand.vmem [shape: f32[8,128], index: 2, kind: input, shape index: {}]   ;;  %s9920_s7 = inlined_call_operand.vmem [shape: f32[1,384], index: 7, kind: input, shape index: {}]   ;;  %s9921_s9 = inlined_call_operand.vmem [shape: f32[1,384], index: 9, kind: input, shape index: {}]   ;;  %s9922_s17 = inlined_call_operand.vmem [shape: f32[8,128], index: 17, kind: output, shape index: {1}]   ;;  %s9923_s10 = inlined_call_operand.vmem [shape: f32[128,128], index: 10, kind: input, shape index: {}]   ;;  %s9924_s12 = inlined_call_operand.vmem [shape: f32[128,128], index: 12, kind: input, shape index: {}]   ;;  %s9925_s14 = inlined_call_operand.vmem [shape: f32[128,128], index: 14, kind: input, shape index: {}]   ;;  %s9926_s11 = inlined_call_operand.vmem [shape: f32[1,128], index: 11, kind: input, shape index: {}]   ;;  %s9927_s18 = inlined_call_operand.vmem [shape: f32[8,128], index: 18, kind: output, shape index: {2}]   ;;  %s9928_s13 = inlined_call_operand.vmem [shape: f32[1,128], index: 13, kind: input, shape index: {}]   ;;  %s9929_s15 = inlined_call_operand.vmem [shape: f32[1,128], index: 15, kind: input, shape index: {}]   ;;  %s9930_s16 = inlined_call_operand.vmem [shape: f32[8,8,128], index: 16, kind: output, shape index: {0}]  }
   0x1   :  { %10424 = sst [smem:[#allocation119_spill]] %s9912_s3  ;;  %201 = vmatprep.mubr.f32.mxu0 %v9934_v3 }
   0x2   :  { %10425 = sst [smem:[#allocation120_spill]] %s9913_s0 }
   0x3   :  { %10426 = sst [smem:[#allocation121_spill]] %s9914_s5 }
   0x4   :  { %s10427_s29 = sld [smem:[#allocation119_spill]] }
   0x5   :  { %s10428_s27 = sld [smem:[#allocation120_spill]] }
   0x6   :  { %s10429_s24 = sld [smem:[#allocation121_spill]] }
   0xa   :  { %v118_v0 = vld [vmem:[%s10427_s29 + $0x170] sm:$0xff]  ;;  %v117_v1 = vld [vmem:[%s10427_s29 + $0x168] sm:$0xff]  ;;  %v115_v2 = vld [vmem:[%s10427_s29 + $0x158] sm:$0xff] }
   0xb   :  { %137 = vmatprep.subr.mxu0 %v118_v0  ;;  %v114_v4 = vld [vmem:[%s10427_s29 + $0x150] sm:$0xff]  ;;  %v112_v5 = vld [vmem:[%s10427_s29 + $0x140] sm:$0xff]  ;;  %v111_v6 = vld [vmem:[%s10427_s29 + $0x138] sm:$0xff] }
   0xc   :  { %138 = vmatpush1.msra.mxu0 %v117_v1  ;;  %v109_v7 = vld [vmem:[%s10427_s29 + $0x128] sm:$0xff]  ;;  %v108_v8 = vld [vmem:[%s10427_s29 + $0x120] sm:$0xff]  ;;  %v106_v9 = vld [vmem:[%s10427_s29 + $0x110] sm:$0xff] }
   0xd   :  { %139 = vmatprep.subr.mxu0 %v115_v2  ;;  %v105_v10 = vld [vmem:[%s10427_s29 + $0x108] sm:$0xff]  ;;  %v103_v11 = vld [vmem:[%s10427_s29 + $0xf8] sm:$0xff]  ;;  %v102_v12 = vld [vmem:[%s10427_s29 + $0xf0] sm:$0xff] }
   0xe   :  { %140 = vmatpush1.msra.mxu0 %v114_v4  ;;  %v100_v13 = vld [vmem:[%s10427_s29 + $0xe0] sm:$0xff]  ;;  %v99_v15 = vld [vmem:[%s10427_s29 + $0xd8] sm:$0xff]  ;;  %v97_v17 = vld [vmem:[%s10427_s29 + $0xc8] sm:$0xff] }
   0xf   :  { %141 = vmatprep.subr.mxu0 %v112_v5  ;;  %v5738_v14 = vld [vmem:[%s10428_s27] sm:$0xff]  ;;  %v119_v16 = vld [vmem:[%s10427_s29 + $0x178] sm:$0xff]  ;;  %v113_v20 = vld [vmem:[%s10427_s29 + $0x148] sm:$0xff] }
  0x10   :  { %142 = vmatpush1.msra.mxu0 %v111_v6  ;;  %4692 = vmatprep.mubr.f32.mxu1 %v5738_v14  ;;  %v116_v18 = vld [vmem:[%s10427_s29 + $0x160] sm:$0xff]  ;;  %v94_v21 = vld [vmem:[%s10427_s29 + $0xb0] sm:$0xff]  ;;  %v93_v22 = vld [vmem:[%s10427_s29 + $0xa8] sm:$0xff] }
  0x11   :  { %143 = vmatprep.subr.mxu0 %v109_v7  ;;  %4660 = vmatprep.subr.mxu1 %v119_v16  ;;  %v96_v19 = vld [vmem:[%s10427_s29 + $0xc0] sm:$0xff]  ;;  %v110_v23 = vld [vmem:[%s10427_s29 + $0x130] sm:$0xff]  ;;  %v91_v24 = vld [vmem:[%s10427_s29 + $0x98] sm:$0xff] }
  0x12   :  { %144 = vmatpush1.msra.mxu0 %v108_v8  ;;  %4661 = vmatpush3.msra.mxu1 %v119_v16  ;;  %v90_v25 = vld [vmem:[%s10427_s29 + $0x90] sm:$0xff]  ;;  %v107_v26 = vld [vmem:[%s10427_s29 + $0x118] sm:$0xff]  ;;  %v88_v27 = vld [vmem:[%s10427_s29 + $0x80] sm:$0xff] }
  0x13   :  { %145 = vmatprep.subr.mxu0 %v106_v9  ;;  %4662 = vmatprep.subr.mxu1 %v116_v18  ;;  %v87_v28 = vld [vmem:[%s10427_s29 + $0x78] sm:$0xff]  ;;  %v104_v29 = vld [vmem:[%s10427_s29 + $0x100] sm:$0xff]  ;;  %v85_v30 = vld [vmem:[%s10427_s29 + $0x68] sm:$0xff] }
  0x14   :  { %146 = vmatpush1.msra.mxu0 %v105_v10  ;;  %4663 = vmatpush3.msra.mxu1 %v116_v18  ;;  %v84_v31 = vld [vmem:[%s10427_s29 + $0x60] sm:$0xff]  ;;  %v101_v32 = vld [vmem:[%s10427_s29 + $0xe8] sm:$0xff]  ;;  %v82_v33 = vld [vmem:[%s10427_s29 + $0x50] sm:$0xff] }
  0x15   :  { %147 = vmatprep.subr.mxu0 %v103_v11  ;;  %4664 = vmatprep.subr.mxu1 %v113_v20  ;;  %v81_v34 = vld [vmem:[%s10427_s29 + $0x48] sm:$0xff]  ;;  %v98_v35 = vld [vmem:[%s10427_s29 + $0xd0] sm:$0xff]  ;;  %v79_v36 = vld [vmem:[%s10427_s29 + $0x38] sm:$0xff] }
  0x16   :  { %148 = vmatpush1.msra.mxu0 %v102_v12  ;;  %4665 = vmatpush3.msra.mxu1 %v113_v20  ;;  %v78_v37 = vld [vmem:[%s10427_s29 + $0x30] sm:$0xff]  ;;  %v95_v38 = vld [vmem:[%s10427_s29 + $0xb8] sm:$0xff]  ;;  %v76_v39 = vld [vmem:[%s10427_s29 + $0x20] sm:$0xff] }
  0x17   :  { %149 = vmatprep.subr.mxu0 %v100_v13  ;;  %4666 = vmatprep.subr.mxu1 %v110_v23  ;;  %v75_v40 = vld [vmem:[%s10427_s29 + $0x18] sm:$0xff]  ;;  %v92_v41 = vld [vmem:[%s10427_s29 + $0xa0] sm:$0xff]  ;;  %v73_v42 = vld [vmem:[%s10427_s29 + $0x8] sm:$0xff] }
  0x18   :  { %150 = vmatpush1.msra.mxu0 %v99_v15  ;;  %4667 = vmatpush3.msra.mxu1 %v110_v23  ;;  %v72_v43 = vld [vmem:[%s10427_s29] sm:$0xff]  ;;  %v89_v44 = vld [vmem:[%s10427_s29 + $0x88] sm:$0xff]  ;;  %v5834_v45 = vld [vmem:[%s10429_s24 + $0x2d8] sm:$0xff] }
  0x19   :  { %151 = vmatprep.subr.mxu0 %v97_v17  ;;  %4668 = vmatprep.subr.mxu1 %v107_v26  ;;  %v5839_v46 = vld [vmem:[%s10429_s24 + $0x2d0] sm:$0xff]  ;;  %v5844_v47 = vld [vmem:[%s10429_s24 + $0x2a8] sm:$0xff]  ;;  %v5851_v48 = vld [vmem:[%s10429_s24 + $0x2a0] sm:$0xff] }
  0x1a   :  { %152 = vmatpush1.msra.mxu0 %v96_v19  ;;  %4669 = vmatpush3.msra.mxu1 %v107_v26  ;;  %v86_v49 = vld [vmem:[%s10427_s29 + $0x70] sm:$0xff]  ;;  %v5861_v50 = vld [vmem:[%s10428_s27 + $0x8] sm:$0xff]  ;;  %v5866_v51 = vld [vmem:[%s10429_s24 + $0x278] sm:$0xff] }
  0x1b   :  { %153 = vmatprep.subr.mxu0 %v94_v21  ;;  %4670 = vmatprep.subr.mxu1 %v104_v29  ;;  %v5872_v52 = vld [vmem:[%s10429_s24 + $0x270] sm:$0xff]  ;;  %v5878_v53 = vld [vmem:[%s10429_s24 + $0x248] sm:$0xff]  ;;  %v5885_v54 = vld [vmem:[%s10429_s24 + $0x240] sm:$0xff] }
  0x1c   :  { %154 = vmatpush1.msra.mxu0 %v93_v22  ;;  %4671 = vmatpush3.msra.mxu1 %v104_v29  ;;  %v83_v55 = vld [vmem:[%s10427_s29 + $0x58] sm:$0xff]  ;;  %v5895_v56 = vld [vmem:[%s10428_s27 + $0x10] sm:$0xff]  ;;  %v5912_v59 = vld [vmem:[%s10429_s24 + $0x1e8] sm:$0xff] }
  0x1d   :  { %155 = vmatprep.subr.mxu0 %v91_v24  ;;  %4672 = vmatprep.subr.mxu1 %v101_v32  ;;  %v5900_v57 = vld [vmem:[%s10429_s24 + $0x218] sm:$0xff]  ;;  %v5906_v58 = vld [vmem:[%s10429_s24 + $0x210] sm:$0xff]  ;;  %v5919_v60 = vld [vmem:[%s10429_s24 + $0x1e0] sm:$0xff] }
  0x1e   :  { %156 = vmatpush1.msra.mxu0 %v90_v25  ;;  %4673 = vmatpush3.msra.mxu1 %v101_v32  ;;  %v80_v61 = vld [vmem:[%s10427_s29 + $0x40] sm:$0xff]  ;;  %v5929_v62 = vld [vmem:[%s10428_s27 + $0x18] sm:$0xff]  ;;  %v5940_v0 = vld [vmem:[%s10429_s24 + $0x1b0] sm:$0xff] }
  0x1f   :  { %157 = vmatprep.subr.mxu0 %v88_v27  ;;  %4674 = vmatprep.subr.mxu1 %v98_v35  ;;  %v5934_v63 = vld [vmem:[%s10429_s24 + $0x1b8] sm:$0xff]  ;;  %10430 = vst [vmem:[#allocation4_spill] sm:$0xff] %v5940_v0  ;;  %v5946_v1 = vld [vmem:[%s10429_s24 + $0x188] sm:$0xff]  ;;  %v5953_v2 = vld [vmem:[%s10429_s24 + $0x180] sm:$0xff] }
  0x20   :  { %158 = vmatpush1.msra.mxu0 %v87_v28  ;;  %4675 = vmatpush3.msra.mxu1 %v98_v35  ;;  %v77_v4 = vld [vmem:[%s10427_s29 + $0x28] sm:$0xff]  ;;  %v5963_v5 = vld [vmem:[%s10428_s27 + $0x20] sm:$0xff]  ;;  %v5968_v6 = vld [vmem:[%s10429_s24 + $0x158] sm:$0xff] }
  0x21   :  { %159 = vmatprep.subr.mxu0 %v85_v30  ;;  %4676 = vmatprep.subr.mxu1 %v95_v38  ;;  %v5974_v7 = vld [vmem:[%s10429_s24 + $0x150] sm:$0xff]  ;;  %v5980_v8 = vld [vmem:[%s10429_s24 + $0x128] sm:$0xff]  ;;  %v5987_v9 = vld [vmem:[%s10429_s24 + $0x120] sm:$0xff] }
  0x22   :  { %160 = vmatpush1.msra.mxu0 %v84_v31  ;;  %4677 = vmatpush3.msra.mxu1 %v95_v38  ;;  %v74_v10 = vld [vmem:[%s10427_s29 + $0x10] sm:$0xff]  ;;  %v5997_v11 = vld [vmem:[%s10428_s27 + $0x28] sm:$0xff]  ;;  %v6002_v12 = vld [vmem:[%s10429_s24 + $0xf8] sm:$0xff] }
  0x23   :  { %161 = vmatprep.subr.mxu0 %v82_v33  ;;  %4678 = vmatprep.subr.mxu1 %v92_v41  ;;  %v6008_v13 = vld [vmem:[%s10429_s24 + $0xf0] sm:$0xff]  ;;  %v6021_v15 = vld [vmem:[%s10429_s24 + $0xc0] sm:$0xff]  ;;  %v6026_v16 = vld [vmem:[%s10429_s24 + $0x2e8] sm:$0xff] }
  0x24   :  { %162 = vmatpush1.msra.mxu0 %v81_v34  ;;  %4679 = vmatpush3.msra.mxu1 %v92_v41  ;;  %v70_v17 = vld [vmem:[%s10428_s27 + $0x30] sm:$0xff]  ;;  %v6036_v18 = vld [vmem:[%s10429_s24 + $0x98] sm:$0xff]  ;;  %v6048_v20 = vld [vmem:[%s10429_s24 + $0x68] sm:$0xff] }
  0x25   :  { %163 = vmatprep.subr.mxu0 %v79_v36  ;;  %4680 = vmatprep.subr.mxu1 %v89_v44  ;;  %v6042_v19 = vld [vmem:[%s10429_s24 + $0x90] sm:$0xff]  ;;  %v6055_v21 = vld [vmem:[%s10429_s24 + $0x60] sm:$0xff]  ;;  %v71_v23 = vld [vmem:[%s10428_s27 + $0x38] sm:$0xff] }
  0x26   :  { %164 = vmatpush1.msra.mxu0 %v78_v37  ;;  %4681 = vmatpush3.msra.mxu1 %v89_v44  ;;  %v6060_v22 = vld [vmem:[%s10429_s24 + $0x2e0] sm:$0xff]  ;;  %v6070_v24 = vld [vmem:[%s10429_s24 + $0x38] sm:$0xff]  ;;  %v6076_v25 = vld [vmem:[%s10429_s24 + $0x30] sm:$0xff] }
  0x27   :  { %165 = vmatprep.subr.mxu0 %v76_v39  ;;  %4682 = vmatprep.subr.mxu1 %v86_v49  ;;  %v6083_v26 = vld [vmem:[%s10429_s24 + $0x8] sm:$0xff]  ;;  %v6089_v27 = vld [vmem:[%s10429_s24 + $0x2b8] sm:$0xff]  ;;  %v6095_v28 = vld [vmem:[%s10429_s24] sm:$0xff] }
  0x28   :  { %166 = vmatpush1.msra.mxu0 %v75_v40  ;;  %4683 = vmatpush3.msra.mxu1 %v86_v49  ;;  %v6100_v29 = vld [vmem:[%s10429_s24 + $0x2b0] sm:$0xff]  ;;  %v6107_v30 = vld [vmem:[%s9915_s1] sm:$0xff]  ;;  %v6112_v31 = vld [vmem:[%s10429_s24 + $0x288] sm:$0xff] }
  0x29   :  { %167 = vmatprep.subr.mxu0 %v73_v42  ;;  %4684 = vmatprep.subr.mxu1 %v83_v55  ;;  %v6119_v32 = vld [vmem:[%s10429_s24 + $0x280] sm:$0xff]  ;;  %v6126_v33 = vld [vmem:[%s10429_s24 + $0x258] sm:$0xff]  ;;  %v6133_v34 = vld [vmem:[%s10429_s24 + $0x250] sm:$0xff] }
  0x2a   :  { %168 = vmatpush1.msra.mxu0 %v72_v43  ;;  %4685 = vmatpush3.msra.mxu1 %v83_v55  ;;  %10431 = vst [vmem:[#allocation5_spill] sm:$0xff] %v6119_v32  ;;  %10432 = vst [vmem:[#allocation6_spill] sm:$0xff] %v6126_v33  ;;  %v6139_v35 = vld [vmem:[%s10429_s24 + $0x228] sm:$0xff]  ;;  %v6146_v36 = vld [vmem:[%s10429_s24 + $0x220] sm:$0xff] }
  0x2b   :  { %202 = vmatmul.mubr.f32.vlgmr.msra.gmra.mxu0 %v5738_v14  ;;  %576 = vmatprep.subr.mxu0 %v5834_v45  ;;  %v6014_v14 = vld [vmem:[%s10429_s24 + $0xc8] sm:$0xff]  ;;  %10433 = vst [vmem:[#allocation7_spill] sm:$0xff] %v6133_v34  ;;  %10434 = vst [vmem:[#allocation8_spill] sm:$0xff] %v6139_v35  ;;  %v6153_v37 = vld [vmem:[%s10429_s24 + $0x1f8] sm:$0xff] }
  0x2c   :  { %577 = vmatpush1.msra.mxu0 %v5839_v46  ;;  %207 = vmatprep.mubr.f32.mxu0 %v9934_v3  ;;  %10435 = vst [vmem:[#allocation9_spill] sm:$0xff] %v6146_v36  ;;  %10436 = vst [vmem:[#allocation10_spill] sm:$0xff] %v6153_v37  ;;  %v6160_v38 = vld [vmem:[%s10429_s24 + $0x1f0] sm:$0xff]  ;;  %v6167_v39 = vld [vmem:[%s10429_s24 + $0x1c8] sm:$0xff] }
  0x2d   :  { %578 = vmatprep.subr.mxu0 %v5844_v47  ;;  %4686 = vmatprep.subr.mxu1 %v80_v61  ;;  %10437 = vst [vmem:[#allocation11_spill] sm:$0xff] %v6160_v38  ;;  %10438 = vst [vmem:[#allocation12_spill] sm:$0xff] %v6167_v39  ;;  %v6174_v40 = vld [vmem:[%s10429_s24 + $0x1c0] sm:$0xff]  ;;  %v6181_v41 = vld [vmem:[%s10429_s24 + $0x198] sm:$0xff] }
  0x2e   :  { %579 = vmatpush1.msra.mxu0 %v5851_v48  ;;  %4687 = vmatpush3.msra.mxu1 %v80_v61  ;;  %10439 = vst [vmem:[#allocation13_spill] sm:$0xff] %v6174_v40  ;;  %10440 = vst [vmem:[#allocation14_spill] sm:$0xff] %v6181_v41  ;;  %v6187_v42 = vld [vmem:[%s10429_s24 + $0x190] sm:$0xff]  ;;  %v6194_v43 = vld [vmem:[%s10429_s24 + $0x168] sm:$0xff] }
  0x2f   :  { %208 = vmatmul.mubr.f32.gmra.mxu0 %v5861_v50  ;;  %580 = vmatprep.subr.mxu0 %v5866_v51  ;;  %10441 = vst [vmem:[#allocation15_spill] sm:$0xff] %v6187_v42  ;;  %10442 = vst [vmem:[#allocation16_spill] sm:$0xff] %v6194_v43  ;;  %v6201_v44 = vld [vmem:[%s10429_s24 + $0x160] sm:$0xff]  ;;  %v6207_v49 = vld [vmem:[%s10429_s24 + $0x138] sm:$0xff] }
  0x30   :  { %581 = vmatpush1.msra.mxu0 %v5872_v52  ;;  %213 = vmatprep.mubr.f32.mxu0 %v9934_v3  ;;  %10443 = vst [vmem:[#allocation17_spill] sm:$0xff] %v6201_v44  ;;  %10444 = vst [vmem:[#allocation18_spill] sm:$0xff] %v6207_v49  ;;  %v6221_v55 = vld [vmem:[%s10429_s24 + $0x108] sm:$0xff]  ;;  %v6235_v61 = vld [vmem:[%s10429_s24 + $0xd8] sm:$0xff] }
  0x31   :  { %582 = vmatprep.subr.mxu0 %v5878_v53  ;;  %4688 = vmatprep.subr.mxu1 %v77_v4  ;;  %10446 = vst [vmem:[#allocation20_spill] sm:$0xff] %v6221_v55  ;;  %10448 = vst [vmem:[#allocation22_spill] sm:$0xff] %v6235_v61 }
  0x32   :  { %583 = vmatpush1.msra.mxu0 %v5885_v54  ;;  %4689 = vmatpush3.msra.mxu1 %v77_v4  ;;  %v6249_v4 = vld [vmem:[%s10429_s24 + $0xa8] sm:$0xff] }
  0x33   :  { %214 = vmatmul.mubr.f32.gmra.mxu0 %v5895_v56  ;;  %584 = vmatprep.subr.mxu0 %v5900_v57  ;;  %10450 = vst [vmem:[#allocation24_spill] sm:$0xff] %v6249_v4 }
  0x34   :  { %585 = vmatpush1.msra.mxu0 %v5906_v58  ;;  %219 = vmatprep.mubr.f32.mxu0 %v9934_v3 }
  0x35   :  { %586 = vmatprep.subr.mxu0 %v5912_v59  ;;  %4690 = vmatprep.subr.mxu1 %v74_v10 }
  0x36   :  { %587 = vmatpush1.msra.mxu0 %v5919_v60  ;;  %4691 = vmatpush3.msra.mxu1 %v74_v10  ;;  %v6263_v10 = vld [vmem:[%s10429_s24 + $0x78] sm:$0xff] }
  0x37   :  { %220 = vmatmul.mubr.f32.gmra.mxu0 %v5929_v62  ;;  %588 = vmatprep.subr.mxu0 %v5934_v63  ;;  %10452 = vst [vmem:[#allocation26_spill] sm:$0xff] %v6263_v10 }
  0x38   :  { %589 = vmatpush1.msra.mxu0 %v5940_v0  ;;  %225 = vmatprep.mubr.f32.mxu0 %v9934_v3 }
  0x39   :  { %590 = vmatprep.subr.mxu0 %v5946_v1  ;;  %647 = vmatprep.subr.mxu1 %v6026_v16 }
  0x3a   :  { %591 = vmatpush1.msra.mxu0 %v5953_v2  ;;  %4693 = vmatmul.mubr.f32.vlgmr.msra.gmra.mxu1 %v5861_v50  ;;  %v6214_v50 = vld [vmem:[%s10429_s24 + $0x130] sm:$0xff] }
  0x3b   :  { %226 = vmatmul.mubr.f32.gmra.mxu0 %v5963_v5  ;;  %592 = vmatprep.subr.mxu0 %v5968_v6  ;;  %10445 = vst [vmem:[#allocation19_spill] sm:$0xff] %v6214_v50 }
  0x3c   :  { %593 = vmatpush1.msra.mxu0 %v5974_v7  ;;  %231 = vmatprep.mubr.f32.mxu0 %v9934_v3 }
  0x3d   :  { %594 = vmatprep.subr.mxu0 %v5980_v8  ;;  %648 = vmatpush1.msra.mxu1 %v6060_v22 }
  0x3e   :  { %595 = vmatpush1.msra.mxu0 %v5987_v9  ;;  %649 = vmatprep.subr.mxu1 %v6089_v27 }
  0x3f   :  { %232 = vmatmul.mubr.f32.gmra.mxu0 %v5997_v11  ;;  %596 = vmatprep.subr.mxu0 %v6002_v12 }
  0x40   :  { %597 = vmatpush1.msra.mxu0 %v6008_v13  ;;  %237 = vmatprep.mubr.f32.mxu0 %v9934_v3 }
  0x41   :  { %598 = vmatprep.subr.mxu0 %v6014_v14  ;;  %650 = vmatpush1.msra.mxu1 %v6100_v29 }
  0x42   :  { %599 = vmatpush1.msra.mxu0 %v6021_v15  ;;  %651 = vmatprep.subr.mxu1 %v6112_v31 }
  0x43   :  { %238 = vmatmul.mubr.f32.gmra.mxu0 %v70_v17  ;;  %600 = vmatprep.subr.mxu0 %v6036_v18 }
  0x44   :  { %601 = vmatpush1.msra.mxu0 %v6042_v19  ;;  %243 = vmatprep.mubr.f32.mxu0 %v9934_v3 }
  0x45   :  { %602 = vmatprep.subr.mxu0 %v6048_v20  ;;  %652 = vmatpush1.msra.mxu1 %v6119_v32 }
  0x46   :  { %603 = vmatpush1.msra.mxu0 %v6055_v21  ;;  %4695 = vmatprep.mubr.f32.mxu1 %v5895_v56  ;;  %v6228_v56 = vld [vmem:[%s10429_s24 + $0x100] sm:$0xff] }
  0x47   :  { %244 = vmatmul.mubr.f32.gmra.mxu0 %v71_v23  ;;  %604 = vmatprep.subr.mxu0 %v6070_v24  ;;  %10447 = vst [vmem:[#allocation21_spill] sm:$0xff] %v6228_v56 }
  0x48   :  { %605 = vmatpush1.msra.mxu0 %v6076_v25  ;;  %640 = vmatprep.mubr.f32.mxu0 %v9934_v3 }
  0x49   :  { %606 = vmatprep.subr.mxu0 %v6083_v26  ;;  %653 = vmatprep.subr.mxu1 %v6126_v33 }
  0x4a   :  { %607 = vmatpush1.msra.mxu0 %v6095_v28  ;;  %4696 = vmatmul.mubr.f32.gmra.mxu1 %v5929_v62  ;;  %v6242_v62 = vld [vmem:[%s10429_s24 + $0xd0] sm:$0xff] }
  0x4b   :  { %641 = vmatmul.mubr.f32.vlgmr.msra.gmra.mxu0 %v6107_v30  ;;  %654 = vmatpush1.msra.mxu1 %v6133_v34  ;;  %10449 = vst [vmem:[#allocation23_spill] sm:$0xff] %v6242_v62 }
  0x4c   :  { %4698 = vmatprep.mubr.f32.mxu1 %v5963_v5  ;;  %655 = vmatprep.subr.mxu1 %v6139_v35  ;;  %v6256_v5 = vld [vmem:[%s10429_s24 + $0xa0] sm:$0xff] }
  0x4d   :  { %744 = vmatprep.subr.mxu0 %v5834_v45  ;;  %656 = vmatpush1.msra.mxu1 %v6146_v36  ;;  %10451 = vst [vmem:[#allocation25_spill] sm:$0xff] %v6256_v5 }
  0x4e   :  { %745 = vmatpush1.msra.mxu0 %v5839_v46  ;;  %657 = vmatprep.subr.mxu1 %v6153_v37 }
  0x4f   :  { %4699 = vmatmul.mubr.f32.gmra.mxu1 %v5997_v11  ;;  %746 = vmatprep.subr.mxu0 %v5844_v47  ;;  %v6270_v11 = vld [vmem:[%s10429_s24 + $0x70] sm:$0xff] }
  0x50   :  { %658 = vmatpush1.msra.mxu1 %v6160_v38  ;;  %4701 = vmatprep.mubr.f32.mxu1 %v70_v17  ;;  %10453 = vst [vmem:[#allocation27_spill] sm:$0xff] %v6270_v11  ;;  %v6277_v17 = vld [vmem:[%s10429_s24 + $0x48] sm:$0xff] }
  0x51   :  { %659 = vmatprep.subr.mxu1 %v6167_v39  ;;  %747 = vmatpush1.msra.mxu0 %v5851_v48  ;;  %10454 = vst [vmem:[#allocation28_spill] sm:$0xff] %v6277_v17 }
  0x52   :  { %660 = vmatpush1.msra.mxu1 %v6174_v40  ;;  %748 = vmatprep.subr.mxu0 %v5866_v51 }
  0x53   :  { %661 = vmatprep.subr.mxu1 %v6181_v41  ;;  %4702 = vmatmul.mubr.f32.gmra.mxu1 %v71_v23  ;;  %v6284_v23 = vld [vmem:[%s10429_s24 + $0x40] sm:$0xff] }
  0x54   :  { %662 = vmatpush1.msra.mxu1 %v6187_v42  ;;  %711 = vmatprep.mubr.f32.mxu1 %v9934_v3  ;;  %10455 = vst [vmem:[#allocation29_spill] sm:$0xff] %v6284_v23  ;;  %v6291_v3 = vld [vmem:[%s10429_s24 + $0x18] sm:$0xff] }
  0x55   :  { %663 = vmatprep.subr.mxu1 %v6194_v43  ;;  %749 = vmatpush1.msra.mxu0 %v5872_v52  ;;  %10456 = vst [vmem:[#allocation30_spill] sm:$0xff] %v6291_v3 }
  0x56   :  { %664 = vmatpush1.msra.mxu1 %v6201_v44  ;;  %750 = vmatprep.subr.mxu0 %v5878_v53 }
  0x57   :  { %665 = vmatprep.subr.mxu1 %v6207_v49  ;;  %751 = vmatpush1.msra.mxu0 %v5885_v54 }
  0x58   :  { %666 = vmatpush1.msra.mxu1 %v6214_v50  ;;  %752 = vmatprep.subr.mxu0 %v5900_v57 }
  0x59   :  { %667 = vmatprep.subr.mxu1 %v6221_v55  ;;  %753 = vmatpush1.msra.mxu0 %v5906_v58 }
  0x5a   :  { %668 = vmatpush1.msra.mxu1 %v6228_v56  ;;  %754 = vmatprep.subr.mxu0 %v5912_v59 }
  0x5b   :  { %669 = vmatprep.subr.mxu1 %v6235_v61  ;;  %755 = vmatpush1.msra.mxu0 %v5919_v60 }
  0x5c   :  { %670 = vmatpush1.msra.mxu1 %v6242_v62  ;;  %756 = vmatprep.subr.mxu0 %v5934_v63 }
  0x5d   :  { %671 = vmatprep.subr.mxu1 %v6249_v4  ;;  %757 = vmatpush1.msra.mxu0 %v5940_v0  ;;  %v6298_v0 = vld [vmem:[%s10429_s24 + $0x10] sm:$0xff] }
  0x5e   :  { %672 = vmatpush1.msra.mxu1 %v6256_v5  ;;  %758 = vmatprep.subr.mxu0 %v5946_v1  ;;  %10457 = vst [vmem:[#allocation31_spill] sm:$0xff] %v6298_v0 }
  0x5f   :  { %673 = vmatprep.subr.mxu1 %v6263_v10  ;;  %759 = vmatpush1.msra.mxu0 %v5953_v2 }
  0x60   :  { %674 = vmatpush1.msra.mxu1 %v6270_v11  ;;  %760 = vmatprep.subr.mxu0 %v5968_v6 }
  0x61   :  { %675 = vmatprep.subr.mxu1 %v6277_v17  ;;  %761 = vmatpush1.msra.mxu0 %v5974_v7 }
  0x62   :  { %676 = vmatpush1.msra.mxu1 %v6284_v23  ;;  %762 = vmatprep.subr.mxu0 %v5980_v8 }
  0x63   :  { %677 = vmatprep.subr.mxu1 %v6291_v3  ;;  %763 = vmatpush1.msra.mxu0 %v5987_v9 }
  0x64   :  { %678 = vmatpush1.msra.mxu1 %v6298_v0  ;;  %764 = vmatprep.subr.mxu0 %v6002_v12 }
  0x65   :  { %712 = vmatmul.mubr.f32.vlgmr.msra.gmra.mxu1 %v6107_v30  ;;  %815 = vmatprep.subr.mxu1 %v6026_v16 }
  0x66   :  { %816 = vmatpush1.msra.mxu1 %v6060_v22  ;;  %765 = vmatpush1.msra.mxu0 %v6008_v13 }
  0x67   :  { %817 = vmatprep.subr.mxu1 %v6089_v27  ;;  %766 = vmatprep.subr.mxu0 %v6014_v14 }
  0x68   :  { %818 = vmatpush1.msra.mxu1 %v6100_v29  ;;  %767 = vmatpush1.msra.mxu0 %v6021_v15 }
  0x69   :  { %819 = vmatprep.subr.mxu1 %v6112_v31  ;;  %768 = vmatprep.subr.mxu0 %v6036_v18 }
  0x6a   :  { %820 = vmatpush1.msra.mxu1 %v6119_v32  ;;  %769 = vmatpush1.msra.mxu0 %v6042_v19 }
  0x6b   :  { %821 = vmatprep.subr.mxu1 %v6126_v33  ;;  %770 = vmatprep.subr.mxu0 %v6048_v20 }
  0x6c   :  { %822 = vmatpush1.msra.mxu1 %v6133_v34  ;;  %771 = vmatpush1.msra.mxu0 %v6055_v21 }
  0x6d   :  { %823 = vmatprep.subr.mxu1 %v6139_v35  ;;  %772 = vmatprep.subr.mxu0 %v6070_v24  ;;  %v10458_v35 = vmov 0.0  }
  0x6e   :  { %824 = vmatpush1.msra.mxu1 %v6146_v36  ;;  %773 = vmatpush1.msra.mxu0 %v6076_v25 }
  0x6f   :  { %825 = vmatprep.subr.mxu1 %v6153_v37  ;;  %774 = vmatprep.subr.mxu0 %v6083_v26 }
  0x70   :  { %826 = vmatpush1.msra.mxu1 %v6160_v38  ;;  %775 = vmatpush1.msra.mxu0 %v6095_v28 }
  0x71   :  { %827 = vmatprep.subr.mxu1 %v6167_v39  ;;  %808 = vmatprep.mubr.f32.mxu0 %v10458_v35 }
  0x72   :  { %828 = vmatpush1.msra.mxu1 %v6174_v40  ;;  %879 = vmatprep.mubr.f32.mxu1 %v10458_v35 }
  0x73   :  { %829 = vmatprep.subr.mxu1 %v6181_v41 }
  0x74   :  { %830 = vmatpush1.msra.mxu1 %v6187_v42 }
  0x75   :  { %831 = vmatprep.subr.mxu1 %v6194_v43 }
  0x76   :  { %832 = vmatpush1.msra.mxu1 %v6201_v44 }
  0x77   :  { %833 = vmatprep.subr.mxu1 %v6207_v49 }
  0x78   :  { %834 = vmatpush1.msra.mxu1 %v6214_v50 }
  0x79   :  { %835 = vmatprep.subr.mxu1 %v6221_v55 }
  0x7a   :  { %836 = vmatpush1.msra.mxu1 %v6228_v56 }
  0x7b   :  { %837 = vmatprep.subr.mxu1 %v6235_v61 }
  0x7c   :  { %838 = vmatpush1.msra.mxu1 %v6242_v62  ;;  %v6357_v62 = vld [vmem:[%s10429_s24 + $0x2f8] sm:$0xff] }
  0x7d   :  { %839 = vmatprep.subr.mxu1 %v6249_v4  ;;  %886 = vmatprep.subr.mxu0 %v6357_v62 }
  0x7e   :  { %840 = vmatpush1.msra.mxu1 %v6256_v5 }
  0x7f   :  { %841 = vmatprep.subr.mxu1 %v6263_v10  ;;  %v6363_v10 = vld [vmem:[%s9916_s8 + $0x170] sm:$0xff] }
  0x80   :  { %842 = vmatpush1.msra.mxu1 %v6270_v11  ;;  %10459 = vst [vmem:[#allocation32_spill] sm:$0xff] %v6363_v10 }
  0x81   :  { %843 = vmatprep.subr.mxu1 %v6277_v17  ;;  %v122_v17 = vlaneseq }
  0x82   :  { %844 = vmatpush1.msra.mxu1 %v6284_v23 }
  0x83   :  { %845 = vmatprep.subr.mxu1 %v6291_v3  ;;  %v123_v23 = vshrl.u32 %v122_v17, 7 }
  0x84   :  { %846 = vmatpush1.msra.mxu1 %v6298_v0  ;;  %v120_v0 = vld [vmem:[%s9917_s4] sm:$0x7] }
  0x85   :  { %957 = vmatprep.subr.mxu1 %v6363_v10  ;;  %v6366_v11 = vsub.s32 0, %v123_v23  ;;  %v6371_v5 = vsub.s32 1, %v123_v23 }
  0x87   :  { %10460 = vst [vmem:[#allocation33_spill] sm:$0xff] %v6366_v11  ;;  %10461 = vst [vmem:[#allocation34_spill] sm:$0xff] %v6371_v5  ;;  %v125_v61 = vrot.slane %v120_v0, %v6366_v11  ;;  %v129_v55 = vrot.slane %v120_v0, %v6371_v5 }
  0xeb   :  { %v203_v3 = vpop.f32.mrf.mxu0 }
  0xed   :  { %v205_v4 = vpop.f32.mrf.mxu0 }
  0xef   :  { %v209_v56 = vpop.f32.mrf.mxu0 }
  0xf0   :  { %v6375_v50 = vadd.f32 %v209_v56, %v125_v61 }
  0xf1   :  { %v211_v10 = vpop.f32.mrf.mxu0 }
  0xf2   :  { %10462 = vst [vmem:[#allocation35_spill] sm:$0xff] %v6375_v50  ;;  %v6377_v49 = vadd.f32 %v211_v10, %v129_v55  ;;  %v6391_v10 = vsub.s32 2, %v123_v23 }
  0xf3   :  { %v215_v17 = vpop.f32.mrf.mxu0 }
  0xf4   :  { %10463 = vst [vmem:[#allocation36_spill] sm:$0xff] %v6377_v49  ;;  %v6379_v44 = vadd.f32 %v215_v17, %v125_v61 }
  0xf5   :  { %v217_v43 = vpop.f32.mrf.mxu0 }
  0xf6   :  { %10464 = vst [vmem:[#allocation37_spill] sm:$0xff] %v6379_v44  ;;  %v6381_v42 = vadd.f32 %v217_v43, %v129_v55 }
  0xf7   :  { %v221_v41 = vpop.f32.mrf.mxu0 }
  0xf8   :  { %10465 = vst [vmem:[#allocation38_spill] sm:$0xff] %v6381_v42  ;;  %v6383_v40 = vadd.f32 %v221_v41, %v125_v61  ;;  %v133_v41 = vrot.slane %v120_v0, %v6391_v10 }
  0xf9   :  { %v223_v39 = vpop.f32.mrf.mxu0 }
  0xfa   :  { %10466 = vst [vmem:[#allocation39_spill] sm:$0xff] %v6383_v40  ;;  %v6385_v38 = vadd.f32 %v223_v39, %v129_v55 }
  0xfb   :  { %v227_v37 = vpop.f32.mrf.mxu0 }
  0xfc   :  { %10467 = vst [vmem:[#allocation40_spill] sm:$0xff] %v6385_v38  ;;  %v6387_v36 = vadd.f32 %v227_v37, %v125_v61  ;;  %v523_v37 = vld [vmem:[%s9918_s6] sm:$0x7] }
  0xfd   :  { %v229_v56 = vpop.f32.mrf.mxu0  ;;  %v6416_v34 = vrot.slane %v523_v37, %v6371_v5 }
  0xfe   :  { %10468 = vst [vmem:[#allocation41_spill] sm:$0xff] %v6387_v36  ;;  %v6389_v50 = vadd.f32 %v229_v56, %v129_v55  ;;  %v4694_v56 = vpop.f32.mrf.mxu1  ;;  %v204_v36 = vadd.f32 %v203_v3, %v125_v61 }
  0xff   :  { %v233_v49 = vpop.f32.mrf.mxu0  ;;  %v6405_v23 = vadd.f32 %v4694_v56, %v133_v41  ;;  %10478 = vst [vmem:[#allocation51_spill] sm:$0xff] %v6416_v34 }
 0x100   :  { %10469 = vst [vmem:[#allocation42_spill] sm:$0xff] %v6389_v50  ;;  %v6393_v17 = vadd.f32 %v233_v49, %v125_v61 }
 0x101   :  { %v235_v44 = vpop.f32.mrf.mxu0  ;;  %10474 = vst [vmem:[#allocation47_spill] sm:$0xff] %v6405_v23 }
 0x102   :  { %10470 = vst [vmem:[#allocation43_spill] sm:$0xff] %v6393_v17  ;;  %v6395_v43 = vadd.f32 %v235_v44, %v129_v55  ;;  %v6410_v44 = vrot.slane %v523_v37, %v6366_v11 }
 0x103   :  { %v239_v40 = vpop.f32.mrf.mxu0 }
 0x104   :  { %10471 = vst [vmem:[#allocation44_spill] sm:$0xff] %v6395_v43  ;;  %v6398_v42 = vadd.f32 %v239_v40, %v125_v61  ;;  %10476 = vst [vmem:[#allocation49_spill] sm:$0xff] %v6410_v44 }
 0x105   :  { %v241_v39 = vpop.f32.mrf.mxu0 }
 0x106   :  { %10472 = vst [vmem:[#allocation45_spill] sm:$0xff] %v6398_v42  ;;  %v6403_v50 = vadd.f32 %v241_v39, %v129_v55  ;;  %v316_v42 = vpop.f32.mrf.mxu1 }
 0x107   :  { %v245_v49 = vpop.f32.mrf.mxu0 }
 0x108   :  { %10473 = vst [vmem:[#allocation46_spill] sm:$0xff] %v6403_v50  ;;  %v6407_v17 = vadd.f32 %v245_v49, %v125_v61 }
 0x109   :  { %v247_v0 = vpop.f32.mrf.mxu0 }
 0x10a   :  { %10475 = vst [vmem:[#allocation48_spill] sm:$0xff] %v6407_v17  ;;  %v6412_v43 = vadd.f32 %v247_v0, %v129_v55  ;;  %v4697_v56 = vpop.f32.mrf.mxu1 }
 0x10b   :  { %v642_v40 = vpop.f32.mrf.mxu0  ;;  %v6418_v23 = vadd.f32 %v4697_v56, %v133_v41 }
 0x10c   :  { %10477 = vst [vmem:[#allocation50_spill] sm:$0xff] %v6412_v43  ;;  %v720_v38 = vadd.f32 %v642_v40, %v6410_v44  ;;  %v326_v49 = vpop.f32.mrf.mxu1  ;;  %v206_v43 = vadd.f32 %v205_v4, %v129_v55  ;;  %v6432_v55 = vrot.slane %v523_v37, %v6391_v10  ;;  %v6441_v37 = vld [vmem:[%s10429_s24 + $0x2f0] sm:$0xff] }
 0x10d   :  { %v644_v39 = vpop.f32.mrf.mxu0  ;;  %10479 = vst [vmem:[#allocation52_spill] sm:$0xff] %v6418_v23  ;;  %v6421_v33 = vadd.f32 %v326_v49, %v133_v41  ;;  %v6559_v23 = vld [vmem:[%s10429_s24 + $0x200] sm:$0xff] }
 0x10e   :  { %v723_v50 = vadd.f32 %v720_v38, %v204_v36  ;;  %v721_v11 = vadd.f32 %v644_v39, %v6416_v34  ;;  %10485 = vst [vmem:[#allocation58_spill] sm:$0xff] %v6432_v55  ;;  %10492 = vst [vmem:[#allocation65_spill] sm:$0xff] %v6559_v23 }
 0x10f   :  { %10480 = vst [vmem:[#allocation53_spill] sm:$0xff] %v6421_v33  ;;  %v4700_v0 = vpop.f32.mrf.mxu1  ;;  %v6564_v33 = vld [vmem:[%s9916_s8 + $0xf0] sm:$0xff] }
 0x110   :  { %v4385_v17 = vmul.f32 -1.442695, %v723_v50  ;;  %v6423_v3 = vadd.f32 %v4700_v0, %v133_v41  ;;  %v730_v40 = vadd.f32 %v721_v11, %v206_v43  ;;  %10493 = vst [vmem:[#allocation66_spill] sm:$0xff] %v6564_v33 }
 0x111   :  { %v336_v61 = vpop.f32.mrf.mxu1 }
 0x112   :  { %5118 = vpow2.f32 %v4385_v17  ;;  %10481 = vst [vmem:[#allocation54_spill] sm:$0xff] %v6423_v3  ;;  %v6425_v5 = vadd.f32 %v336_v61, %v133_v41  ;;  %v4386_v38 = vmul.f32 -1.442695, %v730_v40  ;;  %v6547_v3 = vld [vmem:[%s10429_s24 + $0x208] sm:$0xff] }
 0x113   :  { %v4703_v44 = vpop.f32.mrf.mxu1  ;;  %10490 = vst [vmem:[#allocation63_spill] sm:$0xff] %v6547_v3 }
 0x114   :  { %10482 = vst [vmem:[#allocation55_spill] sm:$0xff] %v6425_v5  ;;  %v6427_v32 = vadd.f32 %v4703_v44, %v133_v41  ;;  %5120 = vpow2.f32 %v4386_v38  ;;  %v317_v44 = vadd.f32 %v316_v42, %v133_v41  ;;  %v6446_v42 = vld [vmem:[%s9916_s8 + $0x168] sm:$0xff]  ;;  %v6552_v5 = vld [vmem:[%s9916_s8 + $0xf8] sm:$0xff] }
 0x115   :  { %v346_v36 = vpop.f32.mrf.mxu1  ;;  %10491 = vst [vmem:[#allocation64_spill] sm:$0xff] %v6552_v5 }
 0x116   :  { %10483 = vst [vmem:[#allocation56_spill] sm:$0xff] %v6427_v32  ;;  %v6429_v56 = vadd.f32 %v346_v36, %v133_v41  ;;  %v6451_v41 = vld [vmem:[%s10429_s24 + $0x2c8] sm:$0xff] }
 0x118   :  { %10484 = vst [vmem:[#allocation57_spill] sm:$0xff] %v6429_v56 }
 0x11f   :  { %v5119_v50 = vpop.eup %5118 }
 0x120   :  { %v727_v39 = vadd.f32 1.0, %v5119_v50 }
 0x121   :  { %v5121_v4 = vpop.eup %5120 }
 0x122   :  { %5122 = vrcp.f32 %v727_v39  ;;  %v734_v11 = vadd.f32 1.0, %v5121_v4  ;;  %v6475_v4 = vld [vmem:[%s10429_s24 + $0x298] sm:$0xff] }
 0x124   :  { %5124 = vrcp.f32 %v734_v11  ;;  %v6487_v11 = vld [vmem:[%s10429_s24 + $0x290] sm:$0xff] }
 0x125   :  { %v713_v49 = vpop.f32.mrf.mxu1 }
 0x126   :  { %v722_v43 = vadd.f32 %v713_v49, %v6432_v55  ;;  %v6468_v49 = vld [vmem:[%s9916_s8 + $0x150] sm:$0xff] }
 0x127   :  { %v715_v17 = vpop.f32.mrf.mxu1 }
 0x128   :  { %v6480_v17 = vld [vmem:[%s9916_s8 + $0x140] sm:$0xff] }
 0x12f   :  { %v5123_v0 = vpop.eup %5122 }
 0x130   :  { %v737_v61 = vmul.f32 %v5123_v0, %v722_v43  ;;  %v6492_v43 = vld [vmem:[%s9916_s8 + $0x138] sm:$0xff]  ;;  %v6499_v0 = vld [vmem:[%s10429_s24 + $0x268] sm:$0xff] }
 0x131   :  { %v5125_v36 = vpop.eup %5124 }
 0x132   :  { %v738_v40 = vadd.f32 %v737_v61, %v317_v44  ;;  %v740_v38 = vsub.f32 1.0, %v5125_v36  ;;  %v742_v39 = vmul.f32 %v5125_v36, %v6107_v30  ;;  %v6456_v30 = vld [vmem:[%s9916_s8 + $0x158] sm:$0xff]  ;;  %v6504_v44 = vld [vmem:[%s9916_s8 + $0x128] sm:$0xff]  ;;  %v6511_v61 = vld [vmem:[%s10429_s24 + $0x260] sm:$0xff] }
 0x133   :  { %v6523_v36 = vld [vmem:[%s10429_s24 + $0x238] sm:$0xff] }
 0x134   :  { %5126 = vtanh.f32 %v738_v40  ;;  %v6516_v40 = vld [vmem:[%s9916_s8 + $0x120] sm:$0xff]  ;;  %10486 = vst [vmem:[#allocation59_spill] sm:$0xff] %v6523_v36 }
 0x141   :  { %v5127_v32 = vpop.eup %5126 }
 0x142   :  { %v741_v50 = vmul.f32 %v5127_v32, %v740_v38  ;;  %v6463_v32 = vld [vmem:[%s10429_s24 + $0x2c0] sm:$0xff]  ;;  %v6528_v38 = vld [vmem:[%s9916_s8 + $0x110] sm:$0xff] }
 0x143   :  { %10487 = vst [vmem:[#allocation60_spill] sm:$0xff] %v6528_v38 }
 0x144   :  { %v6436_v56 = vadd.f32 %v742_v39, %v741_v50  ;;  %v6535_v50 = vld [vmem:[%s10429_s24 + $0x230] sm:$0xff]  ;;  %v6540_v39 = vld [vmem:[%s9916_s8 + $0x108] sm:$0xff] }
 0x145   :  { %10488 = vst [vmem:[#allocation61_spill] sm:$0xff] %v6535_v50  ;;  %10489 = vst [vmem:[#allocation62_spill] sm:$0xff] %v6540_v39 }
 0x146   :  { %809 = vmatmul.mubr.f32.vlgmr.msra.gmra.mxu0 %v6436_v56  ;;  %880 = vmatmul.mubr.f32.vlgmr.msra.gmra.mxu1 %v6436_v56 }
 0x147   :  { %887 = vmatpush1.msra.mxu0 %v6441_v37  ;;  %958 = vmatpush1.msra.mxu1 %v6446_v42 }
 0x148   :  { %888 = vmatprep.subr.mxu0 %v6451_v41  ;;  %959 = vmatprep.subr.mxu1 %v6456_v30 }
 0x149   :  { %889 = vmatpush1.msra.mxu0 %v6463_v32  ;;  %960 = vmatpush1.msra.mxu1 %v6468_v49 }
 0x14a   :  { %890 = vmatprep.subr.mxu0 %v6475_v4  ;;  %961 = vmatprep.subr.mxu1 %v6480_v17 }
 0x14b   :  { %891 = vmatpush1.msra.mxu0 %v6487_v11  ;;  %962 = vmatpush1.msra.mxu1 %v6492_v43 }
 0x14c   :  { %892 = vmatprep.subr.mxu0 %v6499_v0  ;;  %963 = vmatprep.subr.mxu1 %v6504_v44 }
 0x14d   :  { %893 = vmatpush1.msra.mxu0 %v6511_v61  ;;  %964 = vmatpush1.msra.mxu1 %v6516_v40 }
 0x14e   :  { %894 = vmatprep.subr.mxu0 %v6523_v36  ;;  %965 = vmatprep.subr.mxu1 %v6528_v38  ;;  %v6571_v36 = vld [vmem:[%s10429_s24 + $0x1d8] sm:$0xff]  ;;  %v6576_v38 = vld [vmem:[%s9916_s8 + $0xe0] sm:$0xff] }
 0x14f   :  { %895 = vmatpush1.msra.mxu0 %v6535_v50  ;;  %966 = vmatpush1.msra.mxu1 %v6540_v39  ;;  %10494 = vst [vmem:[#allocation67_spill] sm:$0xff] %v6571_v36  ;;  %10495 = vst [vmem:[#allocation68_spill] sm:$0xff] %v6576_v38  ;;  %v6583_v50 = vld [vmem:[%s10429_s24 + $0x1d0] sm:$0xff]  ;;  %v6588_v39 = vld [vmem:[%s9916_s8 + $0xd8] sm:$0xff] }
 0x150   :  { %896 = vmatprep.subr.mxu0 %v6547_v3  ;;  %967 = vmatprep.subr.mxu1 %v6552_v5  ;;  %10496 = vst [vmem:[#allocation69_spill] sm:$0xff] %v6583_v50  ;;  %10497 = vst [vmem:[#allocation70_spill] sm:$0xff] %v6588_v39  ;;  %v6595_v3 = vld [vmem:[%s10429_s24 + $0x1a8] sm:$0xff] }
 0x151   :  { %897 = vmatpush1.msra.mxu0 %v6559_v23  ;;  %968 = vmatpush1.msra.mxu1 %v6564_v33  ;;  %10498 = vst [vmem:[#allocation71_spill] sm:$0xff] %v6595_v3  ;;  %v6600_v5 = vld [vmem:[%s9916_s8 + $0xc8] sm:$0xff]  ;;  %v6607_v23 = vld [vmem:[%s10429_s24 + $0x1a0] sm:$0xff] }
 0x152   :  { %10499 = vst [vmem:[#allocation72_spill] sm:$0xff] %v6600_v5  ;;  %898 = vmatprep.subr.mxu0 %v6571_v36  ;;  %969 = vmatprep.subr.mxu1 %v6576_v38  ;;  %10500 = vst [vmem:[#allocation73_spill] sm:$0xff] %v6607_v23  ;;  %v6612_v33 = vld [vmem:[%s9916_s8 + $0xc0] sm:$0xff]  ;;  %v6619_v36 = vld [vmem:[%s10429_s24 + $0x178] sm:$0xff] }
 0x153   :  { %10501 = vst [vmem:[#allocation74_spill] sm:$0xff] %v6612_v33  ;;  %899 = vmatpush1.msra.mxu0 %v6583_v50  ;;  %970 = vmatpush1.msra.mxu1 %v6588_v39  ;;  %10502 = vst [vmem:[#allocation75_spill] sm:$0xff] %v6619_v36  ;;  %v6624_v38 = vld [vmem:[%s9916_s8 + $0xb0] sm:$0xff]  ;;  %v6636_v39 = vld [vmem:[%s9916_s8 + $0xa8] sm:$0xff] }
 0x154   :  { %10503 = vst [vmem:[#allocation76_spill] sm:$0xff] %v6624_v38  ;;  %900 = vmatprep.subr.mxu0 %v6595_v3  ;;  %971 = vmatprep.subr.mxu1 %v6600_v5  ;;  %v6631_v50 = vld [vmem:[%s10429_s24 + $0x170] sm:$0xff]  ;;  %10505 = vst [vmem:[#allocation78_spill] sm:$0xff] %v6636_v39  ;;  %v6643_v3 = vld [vmem:[%s10429_s24 + $0x148] sm:$0xff] }
 0x155   :  { %10504 = vst [vmem:[#allocation77_spill] sm:$0xff] %v6631_v50  ;;  %901 = vmatpush1.msra.mxu0 %v6607_v23  ;;  %972 = vmatpush1.msra.mxu1 %v6612_v33  ;;  %10506 = vst [vmem:[#allocation79_spill] sm:$0xff] %v6643_v3  ;;  %v6648_v5 = vld [vmem:[%s9916_s8 + $0x98] sm:$0xff]  ;;  %v6655_v23 = vld [vmem:[%s10429_s24 + $0x140] sm:$0xff] }
 0x156   :  { %10507 = vst [vmem:[#allocation80_spill] sm:$0xff] %v6648_v5  ;;  %902 = vmatprep.subr.mxu0 %v6619_v36  ;;  %973 = vmatprep.subr.mxu1 %v6624_v38  ;;  %10508 = vst [vmem:[#allocation81_spill] sm:$0xff] %v6655_v23  ;;  %v6660_v33 = vld [vmem:[%s9916_s8 + $0x90] sm:$0xff]  ;;  %v6667_v36 = vld [vmem:[%s10429_s24 + $0x118] sm:$0xff] }
 0x157   :  { %10509 = vst [vmem:[#allocation82_spill] sm:$0xff] %v6660_v33  ;;  %903 = vmatpush1.msra.mxu0 %v6631_v50  ;;  %974 = vmatpush1.msra.mxu1 %v6636_v39  ;;  %10510 = vst [vmem:[#allocation83_spill] sm:$0xff] %v6667_v36  ;;  %v6672_v38 = vld [vmem:[%s9916_s8 + $0x80] sm:$0xff]  ;;  %v6679_v50 = vld [vmem:[%s10429_s24 + $0x110] sm:$0xff] }
 0x158   :  { %10511 = vst [vmem:[#allocation84_spill] sm:$0xff] %v6672_v38  ;;  %904 = vmatprep.subr.mxu0 %v6643_v3  ;;  %975 = vmatprep.subr.mxu1 %v6648_v5  ;;  %10512 = vst [vmem:[#allocation85_spill] sm:$0xff] %v6679_v50  ;;  %v6684_v39 = vld [vmem:[%s9916_s8 + $0x78] sm:$0xff]  ;;  %v6691_v3 = vld [vmem:[%s10429_s24 + $0xe8] sm:$0xff] }
 0x159   :  { %10513 = vst [vmem:[#allocation86_spill] sm:$0xff] %v6684_v39  ;;  %905 = vmatpush1.msra.mxu0 %v6655_v23  ;;  %976 = vmatpush1.msra.mxu1 %v6660_v33  ;;  %10514 = vst [vmem:[#allocation87_spill] sm:$0xff] %v6691_v3  ;;  %v6696_v5 = vld [vmem:[%s9916_s8 + $0x68] sm:$0xff]  ;;  %v6703_v23 = vld [vmem:[%s10429_s24 + $0xe0] sm:$0xff] }
 0x15a   :  { %10515 = vst [vmem:[#allocation88_spill] sm:$0xff] %v6696_v5  ;;  %906 = vmatprep.subr.mxu0 %v6667_v36  ;;  %977 = vmatprep.subr.mxu1 %v6672_v38  ;;  %10516 = vst [vmem:[#allocation89_spill] sm:$0xff] %v6703_v23  ;;  %v6708_v33 = vld [vmem:[%s9916_s8 + $0x60] sm:$0xff]  ;;  %v6715_v36 = vld [vmem:[%s10429_s24 + $0xb8] sm:$0xff] }
 0x15b   :  { %10517 = vst [vmem:[#allocation90_spill] sm:$0xff] %v6708_v33  ;;  %907 = vmatpush1.msra.mxu0 %v6679_v50  ;;  %978 = vmatpush1.msra.mxu1 %v6684_v39  ;;  %10518 = vst [vmem:[#allocation91_spill] sm:$0xff] %v6715_v36  ;;  %v6720_v38 = vld [vmem:[%s9916_s8 + $0x50] sm:$0xff]  ;;  %v6732_v39 = vld [vmem:[%s9916_s8 + $0x48] sm:$0xff] }
 0x15c   :  { %10519 = vst [vmem:[#allocation92_spill] sm:$0xff] %v6720_v38  ;;  %908 = vmatprep.subr.mxu0 %v6691_v3  ;;  %979 = vmatprep.subr.mxu1 %v6696_v5  ;;  %v6727_v50 = vld [vmem:[%s10429_s24 + $0xb0] sm:$0xff]  ;;  %10521 = vst [vmem:[#allocation94_spill] sm:$0xff] %v6732_v39  ;;  %v6739_v3 = vld [vmem:[%s10429_s24 + $0x88] sm:$0xff] }
 0x15d   :  { %10520 = vst [vmem:[#allocation93_spill] sm:$0xff] %v6727_v50  ;;  %909 = vmatpush1.msra.mxu0 %v6703_v23  ;;  %980 = vmatpush1.msra.mxu1 %v6708_v33  ;;  %10522 = vst [vmem:[#allocation95_spill] sm:$0xff] %v6739_v3  ;;  %v6744_v5 = vld [vmem:[%s9916_s8 + $0x38] sm:$0xff]  ;;  %v6751_v23 = vld [vmem:[%s10429_s24 + $0x80] sm:$0xff] }
 0x15e   :  { %10523 = vst [vmem:[#allocation96_spill] sm:$0xff] %v6744_v5  ;;  %910 = vmatprep.subr.mxu0 %v6715_v36  ;;  %981 = vmatprep.subr.mxu1 %v6720_v38  ;;  %10524 = vst [vmem:[#allocation97_spill] sm:$0xff] %v6751_v23  ;;  %v6756_v33 = vld [vmem:[%s9916_s8 + $0x30] sm:$0xff]  ;;  %v6763_v36 = vld [vmem:[%s10429_s24 + $0x58] sm:$0xff] }
 0x15f   :  { %10525 = vst [vmem:[#allocation98_spill] sm:$0xff] %v6756_v33  ;;  %911 = vmatpush1.msra.mxu0 %v6727_v50  ;;  %982 = vmatpush1.msra.mxu1 %v6732_v39  ;;  %v6768_v38 = vld [vmem:[%s9916_s8 + $0x20] sm:$0xff]  ;;  %v6775_v50 = vld [vmem:[%s10429_s24 + $0x50] sm:$0xff]  ;;  %v6780_v39 = vld [vmem:[%s9916_s8 + $0x18] sm:$0xff] }
 0x160   :  { %10526 = vst [vmem:[#allocation99_spill] sm:$0xff] %v6768_v38  ;;  %912 = vmatprep.subr.mxu0 %v6739_v3  ;;  %983 = vmatprep.subr.mxu1 %v6744_v5  ;;  %10527 = vst [vmem:[#allocation100_spill] sm:$0xff] %v6780_v39  ;;  %v6787_v3 = vld [vmem:[%s10429_s24 + $0x28] sm:$0xff] }
 0x161   :  { %913 = vmatpush1.msra.mxu0 %v6751_v23  ;;  %984 = vmatpush1.msra.mxu1 %v6756_v33  ;;  %v6792_v5 = vld [vmem:[%s9916_s8 + $0x8] sm:$0xff]  ;;  %v6799_v23 = vld [vmem:[%s10429_s24 + $0x20] sm:$0xff] }
 0x162   :  { %914 = vmatprep.subr.mxu0 %v6763_v36  ;;  %985 = vmatprep.subr.mxu1 %v6768_v38  ;;  %10528 = vst [vmem:[#allocation101_spill] sm:$0xff] %v6799_v23  ;;  %v6806_v33 = vld [vmem:[%s9916_s8] sm:$0xff] }
 0x163   :  { %915 = vmatpush1.msra.mxu0 %v6775_v50  ;;  %986 = vmatpush1.msra.mxu1 %v6780_v39  ;;  %10529 = vst [vmem:[#allocation102_spill] sm:$0xff] %v6806_v33  ;;  %v6813_v38 = vld [vmem:[%s9919_s2] sm:$0xff]  ;;  %v6822_v39 = vld [vmem:[%s9916_s8 + $0x178] sm:$0xff] }
 0x164   :  { %916 = vmatprep.subr.mxu0 %v6787_v3  ;;  %987 = vmatprep.subr.mxu1 %v6792_v5  ;;  %10530 = vst [vmem:[#allocation103_spill] sm:$0xff] %v6822_v39 }
 0x165   :  { %917 = vmatpush1.msra.mxu0 %v6799_v23  ;;  %950 = vmatprep.mubr.f32.mxu0 %v10458_v35  ;;  %v6830_v23 = vld [vmem:[%s9916_s8 + $0x160] sm:$0xff] }
 0x166   :  { %988 = vmatpush1.msra.mxu1 %v6806_v33  ;;  %1021 = vmatprep.mubr.f32.mxu1 %v10458_v35  ;;  %v6840_v33 = vld [vmem:[%s9916_s8 + $0x148] sm:$0xff] }
 0x167   :  { %951 = vmatmul.mubr.f32.vlgmr.msra.gmra.mxu0 %v6436_v56  ;;  %1022 = vmatmul.mubr.f32.vlgmr.msra.gmra.mxu1 %v6813_v38 }
 0x168   :  { %4704 = vmatprep.subr.mxu0 %v10458_v35  ;;  %4736 = vmatprep.mubr.msk.f32.mxu0 %vm5599_vm0, %v10458_v35 }
 0x169   :  { %4705 = vmatpush3.msra.mxu0 %v6822_v39  ;;  %1151 = vmatprep.subr.mxu1 %v5834_v45  ;;  %v6849_v39 = vld [vmem:[%s9916_s8 + $0x130] sm:$0xff]  ;;  %v6858_v45 = vld [vmem:[%s9916_s8 + $0x118] sm:$0xff] }
 0x16a   :  { %4706 = vmatprep.subr.mxu0 %v10458_v35  ;;  %1152 = vmatpush1.msra.mxu1 %v5839_v46  ;;  %v6867_v46 = vld [vmem:[%s9916_s8 + $0x100] sm:$0xff] }
 0x16b   :  { %4707 = vmatpush3.msra.mxu0 %v6830_v23  ;;  %1153 = vmatprep.subr.mxu1 %v5844_v47  ;;  %v6876_v47 = vld [vmem:[%s9916_s8 + $0xe8] sm:$0xff] }
 0x16c   :  { %4708 = vmatprep.subr.mxu0 %v10458_v35  ;;  %1154 = vmatpush1.msra.mxu1 %v5851_v48  ;;  %v6885_v48 = vld [vmem:[%s9916_s8 + $0xd0] sm:$0xff] }
 0x16d   :  { %4709 = vmatpush3.msra.mxu0 %v6840_v33  ;;  %1155 = vmatprep.subr.mxu1 %v5866_v51  ;;  %10531 = vst [vmem:[#allocation104_spill] sm:$0xff] %v6885_v48  ;;  %v6894_v51 = vld [vmem:[%s9916_s8 + $0xb8] sm:$0xff] }
 0x16e   :  { %4710 = vmatprep.subr.mxu0 %v10458_v35  ;;  %1156 = vmatpush1.msra.mxu1 %v5872_v52  ;;  %10532 = vst [vmem:[#allocation105_spill] sm:$0xff] %v6894_v51  ;;  %v10533_v52 = vld [vmem:[#allocation4_spill] sm:$0xff] }
 0x16f   :  { %4711 = vmatpush3.msra.mxu0 %v6849_v39  ;;  %1157 = vmatprep.subr.mxu1 %v5878_v53  ;;  %v6903_v53 = vld [vmem:[%s9916_s8 + $0xa0] sm:$0xff] }
 0x170   :  { %4712 = vmatprep.subr.mxu0 %v10458_v35  ;;  %1158 = vmatpush1.msra.mxu1 %v5885_v54  ;;  %10534 = vst [vmem:[#allocation4_spill] sm:$0xff] %v6903_v53  ;;  %v6912_v54 = vld [vmem:[%s9916_s8 + $0x88] sm:$0xff] }
 0x171   :  { %4713 = vmatpush3.msra.mxu0 %v6858_v45  ;;  %1159 = vmatprep.subr.mxu1 %v5900_v57  ;;  %10535 = vst [vmem:[#allocation106_spill] sm:$0xff] %v6912_v54  ;;  %v6921_v57 = vld [vmem:[%s9916_s8 + $0x70] sm:$0xff] }
 0x172   :  { %4714 = vmatprep.subr.mxu0 %v10458_v35  ;;  %1160 = vmatpush1.msra.mxu1 %v5906_v58  ;;  %10536 = vst [vmem:[#allocation107_spill] sm:$0xff] %v6921_v57  ;;  %v6930_v58 = vld [vmem:[%s9916_s8 + $0x58] sm:$0xff] }
 0x173   :  { %4715 = vmatpush3.msra.mxu0 %v6867_v46  ;;  %1161 = vmatprep.subr.mxu1 %v5912_v59  ;;  %10537 = vst [vmem:[#allocation108_spill] sm:$0xff] %v6930_v58  ;;  %v6939_v59 = vld [vmem:[%s9916_s8 + $0x40] sm:$0xff] }
 0x174   :  { %4716 = vmatprep.subr.mxu0 %v10458_v35  ;;  %1162 = vmatpush1.msra.mxu1 %v5919_v60  ;;  %10538 = vst [vmem:[#allocation109_spill] sm:$0xff] %v6939_v59  ;;  %v6948_v60 = vld [vmem:[%s9916_s8 + $0x28] sm:$0xff] }
 0x175   :  { %4717 = vmatpush3.msra.mxu0 %v6876_v47  ;;  %1163 = vmatprep.subr.mxu1 %v5934_v63  ;;  %10539 = vst [vmem:[#allocation110_spill] sm:$0xff] %v6948_v60  ;;  %v6957_v63 = vld [vmem:[%s9916_s8 + $0x10] sm:$0xff] }
 0x176   :  { %4718 = vmatprep.subr.mxu0 %v10458_v35  ;;  %1164 = vmatpush1.msra.mxu1 %v10533_v52  ;;  %10540 = vst [vmem:[#allocation111_spill] sm:$0xff] %v6957_v63  ;;  %v10565_v52 = vld [vmem:[#allocation29_spill] sm:$0xff] }
 0x177   :  { %4719 = vmatpush3.msra.mxu0 %v6885_v48  ;;  %1165 = vmatprep.subr.mxu1 %v5946_v1  ;;  %v10541_v1 = vld [vmem:[#allocation5_spill] sm:$0xff] }
 0x178   :  { %4720 = vmatprep.subr.mxu0 %v10458_v35  ;;  %1166 = vmatpush1.msra.mxu1 %v5953_v2  ;;  %v10542_v2 = vld [vmem:[#allocation6_spill] sm:$0xff] }
 0x179   :  { %4721 = vmatpush3.msra.mxu0 %v6894_v51  ;;  %1167 = vmatprep.subr.mxu1 %v5968_v6  ;;  %v10543_v6 = vld [vmem:[#allocation7_spill] sm:$0xff] }
 0x17a   :  { %4722 = vmatprep.subr.mxu0 %v10458_v35  ;;  %1168 = vmatpush1.msra.mxu1 %v5974_v7  ;;  %v10544_v7 = vld [vmem:[#allocation8_spill] sm:$0xff] }
 0x17b   :  { %4723 = vmatpush3.msra.mxu0 %v6903_v53  ;;  %1169 = vmatprep.subr.mxu1 %v5980_v8  ;;  %v10545_v8 = vld [vmem:[#allocation9_spill] sm:$0xff] }
 0x17c   :  { %4724 = vmatprep.subr.mxu0 %v10458_v35  ;;  %1170 = vmatpush1.msra.mxu1 %v5987_v9  ;;  %v10546_v9 = vld [vmem:[#allocation10_spill] sm:$0xff] }
 0x17d   :  { %4725 = vmatpush3.msra.mxu0 %v6912_v54  ;;  %1171 = vmatprep.subr.mxu1 %v6002_v12  ;;  %v10547_v12 = vld [vmem:[#allocation11_spill] sm:$0xff] }
 0x17e   :  { %4726 = vmatprep.subr.mxu0 %v10458_v35  ;;  %1172 = vmatpush1.msra.mxu1 %v6008_v13  ;;  %v10548_v13 = vld [vmem:[#allocation12_spill] sm:$0xff] }
 0x17f   :  { %4727 = vmatpush3.msra.mxu0 %v6921_v57  ;;  %1173 = vmatprep.subr.mxu1 %v6014_v14  ;;  %v10549_v14 = vld [vmem:[#allocation13_spill] sm:$0xff] }
 0x180   :  { %4728 = vmatprep.subr.mxu0 %v10458_v35  ;;  %1174 = vmatpush1.msra.mxu1 %v6021_v15  ;;  %v10550_v15 = vld [vmem:[#allocation14_spill] sm:$0xff] }
 0x181   :  { %4729 = vmatpush3.msra.mxu0 %v6930_v58  ;;  %1175 = vmatprep.subr.mxu1 %v6036_v18  ;;  %v10552_v18 = vld [vmem:[#allocation16_spill] sm:$0xff] }
 0x182   :  { %4730 = vmatprep.subr.mxu0 %v10458_v35  ;;  %1176 = vmatpush1.msra.mxu1 %v6042_v19  ;;  %v10553_v19 = vld [vmem:[#allocation17_spill] sm:$0xff] }
 0x183   :  { %4731 = vmatpush3.msra.mxu0 %v6939_v59  ;;  %1177 = vmatprep.subr.mxu1 %v6048_v20  ;;  %v10554_v20 = vld [vmem:[#allocation18_spill] sm:$0xff] }
 0x184   :  { %4732 = vmatprep.subr.mxu0 %v10458_v35  ;;  %1178 = vmatpush1.msra.mxu1 %v6055_v21  ;;  %v10555_v21 = vld [vmem:[#allocation19_spill] sm:$0xff] }
 0x185   :  { %4733 = vmatpush3.msra.mxu0 %v6948_v60  ;;  %1179 = vmatprep.subr.mxu1 %v6070_v24  ;;  %v10557_v24 = vld [vmem:[#allocation21_spill] sm:$0xff] }
 0x186   :  { %4734 = vmatprep.subr.mxu0 %v10458_v35  ;;  %1180 = vmatpush1.msra.mxu1 %v6076_v25  ;;  %v10558_v25 = vld [vmem:[#allocation22_spill] sm:$0xff] }
 0x187   :  { %4735 = vmatpush3.msra.mxu0 %v6957_v63  ;;  %1181 = vmatprep.subr.mxu1 %v6083_v26  ;;  %v10559_v26 = vld [vmem:[#allocation23_spill] sm:$0xff] }
 0x188   :  { %4737 = vmatmul.mubr.f32.vlgmr.msra.gmra.mxu0 %v6813_v38  ;;  %1222 = vmatprep.subr.mxu0 %v6026_v16  ;;  %v10551_v16 = vld [vmem:[#allocation15_spill] sm:$0xff] }
 0x189   :  { %1223 = vmatpush1.msra.mxu0 %v6060_v22  ;;  %1182 = vmatpush1.msra.mxu1 %v6095_v28  ;;  %v10556_v22 = vld [vmem:[#allocation20_spill] sm:$0xff]  ;;  %v10561_v28 = vld [vmem:[#allocation25_spill] sm:$0xff] }
 0x18a   :  { %1224 = vmatprep.subr.mxu0 %v6089_v27  ;;  %1215 = vmatprep.mubr.f32.mxu1 %v10458_v35  ;;  %v10560_v27 = vld [vmem:[#allocation24_spill] sm:$0xff] }
 0x18b   :  { %1225 = vmatpush1.msra.mxu0 %v6100_v29  ;;  %1286 = vmatprep.mubr.f32.mxu0 %v10458_v35  ;;  %v10562_v29 = vld [vmem:[#allocation26_spill] sm:$0xff] }
 0x18c   :  { %1226 = vmatprep.subr.mxu0 %v6112_v31  ;;  %1293 = vmatprep.subr.mxu1 %v6357_v62  ;;  %v10563_v31 = vld [vmem:[#allocation27_spill] sm:$0xff]  ;;  %v10564_v62 = vld [vmem:[#allocation28_spill] sm:$0xff] }
 0x18d   :  { %1227 = vmatpush1.msra.mxu0 %v10541_v1  ;;  %v10566_v1 = vld [vmem:[#allocation30_spill] sm:$0xff] }
 0x18e   :  { %1228 = vmatprep.subr.mxu0 %v10542_v2  ;;  %v10567_v2 = vld [vmem:[#allocation31_spill] sm:$0xff] }
 0x18f   :  { %1229 = vmatpush1.msra.mxu0 %v10543_v6  ;;  %v10568_v6 = vld [vmem:[#allocation32_spill] sm:$0xff] }
 0x190   :  { %1230 = vmatprep.subr.mxu0 %v10544_v7 }
 0x191   :  { %1231 = vmatpush1.msra.mxu0 %v10545_v8  ;;  %v10569_v8 = vld [vmem:[#allocation49_spill] sm:$0xff] }
 0x192   :  { %1232 = vmatprep.subr.mxu0 %v10546_v9 }
 0x193   :  { %1233 = vmatpush1.msra.mxu0 %v10547_v12 }
 0x194   :  { %1234 = vmatprep.subr.mxu0 %v10548_v13  ;;  %v10570_v13 = vld [vmem:[#allocation35_spill] sm:$0xff] }
 0x195   :  { %1235 = vmatpush1.msra.mxu0 %v10549_v14 }
 0x196   :  { %1236 = vmatprep.subr.mxu0 %v10550_v15 }
 0x197   :  { %1237 = vmatpush1.msra.mxu0 %v10551_v16 }
 0x198   :  { %1238 = vmatprep.subr.mxu0 %v10552_v18  ;;  %v10571_v18 = vld [vmem:[#allocation36_spill] sm:$0xff] }
 0x199   :  { %1239 = vmatpush1.msra.mxu0 %v10553_v19 }
 0x19a   :  { %1240 = vmatprep.subr.mxu0 %v10554_v20 }
 0x19b   :  { %1241 = vmatpush1.msra.mxu0 %v10555_v21 }
 0x19c   :  { %1242 = vmatprep.subr.mxu0 %v10556_v22 }
 0x19d   :  { %1243 = vmatpush1.msra.mxu0 %v10557_v24 }
 0x19e   :  { %1244 = vmatprep.subr.mxu0 %v10558_v25  ;;  %v540_v25 = vld [vmem:[%s9920_s7] sm:$0x7] }
 0x19f   :  { %1245 = vmatpush1.msra.mxu0 %v10559_v26  ;;  %v557_v26 = vld [vmem:[%s9921_s9] sm:$0x7] }
 0x1a0   :  { %1246 = vmatprep.subr.mxu0 %v10560_v27 }
 0x1a1   :  { %1247 = vmatpush1.msra.mxu0 %v10561_v28  ;;  %v10572_v28 = vld [vmem:[#allocation33_spill] sm:$0xff] }
 0x1a2   :  { %1248 = vmatprep.subr.mxu0 %v10562_v29  ;;  %v7015_v29 = vrot.slane %v540_v25, %v10572_v28 }
 0x1a3   :  { %1249 = vmatpush1.msra.mxu0 %v10563_v31  ;;  %v7018_v31 = vrot.slane %v557_v26, %v10572_v28 }
 0x1a4   :  { %1250 = vmatprep.subr.mxu0 %v10564_v62  ;;  %10573 = vst [vmem:[#allocation5_spill] sm:$0xff] %v7015_v29 }
 0x1a5   :  { %1251 = vmatpush1.msra.mxu0 %v10565_v52  ;;  %10574 = vst [vmem:[#allocation6_spill] sm:$0xff] %v7018_v31 }
 0x1a6   :  { %1252 = vmatprep.subr.mxu0 %v10566_v1 }
 0x1a7   :  { %1253 = vmatpush1.msra.mxu0 %v10567_v2 }
 0x1a8   :  { %1364 = vmatprep.subr.mxu0 %v10568_v6 }
 0x206   :  { %v810_v7 = vpop.f32.mrf.mxu0  ;;  %v881_v24 = vpop.f32.mrf.mxu1 }
 0x207   :  { %v1102_v9 = vadd.f32 %v810_v7, %v10569_v8  ;;  %v10575_v7 = vld [vmem:[#allocation34_spill] sm:$0xff] }
 0x208   :  { %v812_v12 = vpop.f32.mrf.mxu0  ;;  %v883_v62 = vpop.f32.mrf.mxu1 }
 0x209   :  { %v1105_v14 = vadd.f32 %v1102_v9, %v10570_v13  ;;  %v1103_v16 = vadd.f32 %v812_v12, %v6416_v34  ;;  %v1126_v2 = vadd.f32 %v883_v62, %v7015_v29  ;;  %v7023_v9 = vrot.slane %v557_v26, %v10575_v7 }
 0x20a   :  { %v1104_v12 = vadd.f32 %v881_v24, %v6432_v55 }
 0x20b   :  { %v4387_v15 = vmul.f32 -1.442695, %v1105_v14  ;;  %v1112_v19 = vadd.f32 %v1103_v16, %v10571_v18 }
 0x20d   :  { %5128 = vpow2.f32 %v4387_v15  ;;  %v4388_v20 = vmul.f32 -1.442695, %v1112_v19  ;;  %v7027_v15 = vrot.slane %v540_v25, %v10575_v7 }
 0x20f   :  { %5130 = vpow2.f32 %v4388_v20 }
 0x21a   :  { %v5129_v21 = vpop.eup %5128 }
 0x21b   :  { %v1109_v22 = vadd.f32 1.0, %v5129_v21 }
 0x21c   :  { %v5131_v27 = vpop.eup %5130 }
 0x21d   :  { %5132 = vrcp.f32 %v1109_v22  ;;  %v1116_v52 = vadd.f32 1.0, %v5131_v27  ;;  %v10576_v22 = vld [vmem:[#allocation47_spill] sm:$0xff] }
 0x21f   :  { %5134 = vrcp.f32 %v1116_v52 }
 0x227   :  { %v1023_v1 = vpop.f32.mrf.mxu1  ;;  %v952_v19 = vpop.f32.mrf.mxu0 }
 0x228   :  { %v1024_v6 = vadd.f32 %v1023_v1, %v7018_v31  ;;  %v1127_v28 = vadd.f32 %v952_v19, %v7027_v15  ;;  %v10591_v19 = vld [vmem:[#allocation71_spill] sm:$0xff] }
 0x229   :  { %v1025_v13 = vpop.f32.mrf.mxu1 }
 0x22a   :  { %v5133_v14 = vpop.eup %5132  ;;  %v1129_v16 = vadd.f32 %v1126_v2, %v1024_v6  ;;  %v1026_v21 = vadd.f32 %v1025_v13, %v7023_v9  ;;  %v10588_v13 = vld [vmem:[#allocation68_spill] sm:$0xff] }
 0x22b   :  { %v1119_v18 = vmul.f32 %v5133_v14, %v1104_v12 }
 0x22c   :  { %v4389_v20 = vmul.f32 -1.442695, %v1129_v16  ;;  %v1136_v62 = vadd.f32 %v1127_v28, %v1026_v21  ;;  %v5135_v1 = vpop.eup %5134  ;;  %v10589_v16 = vld [vmem:[#allocation69_spill] sm:$0xff]  ;;  %v10596_v28 = vld [vmem:[#allocation76_spill] sm:$0xff] }
 0x22d   :  { %v1120_v27 = vadd.f32 %v1119_v18, %v10576_v22  ;;  %v1122_v7 = vsub.f32 1.0, %v5135_v1  ;;  %v1124_v52 = vmul.f32 %v5135_v1, %v6436_v56  ;;  %v10590_v18 = vld [vmem:[#allocation70_spill] sm:$0xff]  ;;  %v10593_v21 = vld [vmem:[#allocation73_spill] sm:$0xff]  ;;  %v10599_v1 = vld [vmem:[#allocation79_spill] sm:$0xff] }
 0x22e   :  { %5136 = vpow2.f32 %v4389_v20  ;;  %v4390_v24 = vmul.f32 -1.442695, %v1136_v62  ;;  %v10592_v20 = vld [vmem:[#allocation72_spill] sm:$0xff]  ;;  %v10594_v22 = vld [vmem:[#allocation74_spill] sm:$0xff]  ;;  %v10597_v62 = vld [vmem:[#allocation77_spill] sm:$0xff] }
 0x22f   :  { %5138 = vtanh.f32 %v1120_v27  ;;  %v10595_v27 = vld [vmem:[#allocation75_spill] sm:$0xff] }
 0x230   :  { %5140 = vpow2.f32 %v4390_v24  ;;  %v10598_v24 = vld [vmem:[#allocation78_spill] sm:$0xff] }
 0x23b   :  { %v5137_v55 = vpop.eup %5136 }
 0x23c   :  { %v5139_v31 = vpop.eup %5138  ;;  %v1133_v2 = vadd.f32 1.0, %v5137_v55  ;;  %v7046_v55 = vrot.slane %v557_v26, %v6391_v10  ;;  %v10587_v26 = vld [vmem:[#allocation67_spill] sm:$0xff] }
 0x23d   :  { %v1123_v6 = vmul.f32 %v5139_v31, %v1122_v7  ;;  %v5141_v56 = vpop.eup %5140  ;;  %v954_v31 = vpop.f32.mrf.mxu0  ;;  %v10600_v7 = vld [vmem:[#allocation80_spill] sm:$0xff] }
 0x23e   :  { %5142 = vrcp.f32 %v1133_v2  ;;  %10577 = vst [vmem:[#allocation7_spill] sm:$0xff] %v7046_v55  ;;  %v10601_v2 = vld [vmem:[#allocation81_spill] sm:$0xff] }
 0x23f   :  { %v7033_v12 = vadd.f32 %v1124_v52, %v1123_v6  ;;  %v10602_v6 = vld [vmem:[#allocation82_spill] sm:$0xff]  ;;  %v10603_v52 = vld [vmem:[#allocation83_spill] sm:$0xff] }
 0x241   :  { %1216 = vmatmul.mubr.f32.vlgmr.msra.gmra.mxu1 %v7033_v12  ;;  %1287 = vmatmul.mubr.f32.vlgmr.msra.gmra.mxu0 %v7033_v12 }
 0x242   :  { %1294 = vmatpush1.msra.mxu1 %v6441_v37  ;;  %1365 = vmatpush1.msra.mxu0 %v6446_v42  ;;  %v7053_v37 = vrot.slane %v540_v25, %v6391_v10  ;;  %v1140_v42 = vadd.f32 1.0, %v5141_v56  ;;  %v10583_v10 = vld [vmem:[#allocation63_spill] sm:$0xff]  ;;  %v10586_v25 = vld [vmem:[#allocation66_spill] sm:$0xff]  ;;  %v10604_v56 = vld [vmem:[#allocation84_spill] sm:$0xff] }
 0x243   :  { %1295 = vmatprep.subr.mxu1 %v6451_v41  ;;  %1366 = vmatprep.subr.mxu0 %v6456_v30 }
 0x244   :  { %1296 = vmatpush1.msra.mxu1 %v6463_v32  ;;  %1367 = vmatpush1.msra.mxu0 %v6468_v49  ;;  %10578 = vst [vmem:[#allocation8_spill] sm:$0xff] %v7053_v37  ;;  %v10579_v32 = vld [vmem:[#allocation59_spill] sm:$0xff]  ;;  %v10580_v49 = vld [vmem:[#allocation60_spill] sm:$0xff]  ;;  %5144 = vrcp.f32 %v1140_v42  ;;  %v10606_v42 = vld [vmem:[#allocation86_spill] sm:$0xff] }
 0x245   :  { %1297 = vmatprep.subr.mxu1 %v6475_v4  ;;  %1368 = vmatprep.subr.mxu0 %v6480_v17  ;;  %v10581_v17 = vld [vmem:[#allocation61_spill] sm:$0xff] }
 0x246   :  { %1298 = vmatpush1.msra.mxu1 %v6487_v11  ;;  %1369 = vmatpush1.msra.mxu0 %v6492_v43  ;;  %v10582_v11 = vld [vmem:[#allocation62_spill] sm:$0xff] }
 0x247   :  { %1299 = vmatprep.subr.mxu1 %v6499_v0  ;;  %1370 = vmatprep.subr.mxu0 %v6504_v44  ;;  %v10584_v0 = vld [vmem:[#allocation64_spill] sm:$0xff]  ;;  %v1128_v44 = vadd.f32 %v954_v31, %v7053_v37  ;;  %v10605_v31 = vld [vmem:[#allocation85_spill] sm:$0xff] }
 0x248   :  { %v1094_v41 = vpop.f32.mrf.mxu0  ;;  %1300 = vmatpush1.msra.mxu1 %v6511_v61  ;;  %1371 = vmatpush1.msra.mxu0 %v6516_v40  ;;  %v10585_v40 = vld [vmem:[#allocation65_spill] sm:$0xff] }
 0x249   :  { %v1095_v30 = vadd.f32 %v1094_v41, %v7046_v55  ;;  %1301 = vmatprep.subr.mxu1 %v10579_v32  ;;  %1372 = vmatprep.subr.mxu0 %v10580_v49  ;;  %v10607_v41 = vld [vmem:[#allocation87_spill] sm:$0xff]  ;;  %v10609_v32 = vld [vmem:[#allocation89_spill] sm:$0xff]  ;;  %v10610_v49 = vld [vmem:[#allocation90_spill] sm:$0xff] }
 0x24a   :  { %v4738_v4 = vpop.f32.mrf.mxu0  ;;  %1302 = vmatpush1.msra.mxu1 %v10581_v17  ;;  %1373 = vmatpush1.msra.mxu0 %v10582_v11  ;;  %v10611_v17 = vld [vmem:[#allocation91_spill] sm:$0xff]  ;;  %v10612_v11 = vld [vmem:[#allocation92_spill] sm:$0xff] }
 0x24b   :  { %v5143_v43 = vpop.eup %5142  ;;  %1303 = vmatprep.subr.mxu1 %v10583_v10  ;;  %1374 = vmatprep.subr.mxu0 %v10584_v0  ;;  %v10614_v10 = vld [vmem:[#allocation94_spill] sm:$0xff]  ;;  %v10615_v0 = vld [vmem:[#allocation95_spill] sm:$0xff] }
 0x24c   :  { %v1143_v61 = vmul.f32 %v5143_v43, %v1095_v30  ;;  %1304 = vmatpush1.msra.mxu1 %v10585_v40  ;;  %1375 = vmatpush1.msra.mxu0 %v10586_v25  ;;  %v10608_v30 = vld [vmem:[#allocation88_spill] sm:$0xff]  ;;  %v10613_v43 = vld [vmem:[#allocation93_spill] sm:$0xff]  ;;  %v10618_v40 = vld [vmem:[#allocation98_spill] sm:$0xff] }
 0x24d   :  { %1305 = vmatprep.subr.mxu1 %v10587_v26  ;;  %1376 = vmatprep.subr.mxu0 %v10588_v13  ;;  %v10619_v13 = vld [vmem:[#allocation99_spill] sm:$0xff] }
 0x24e   :  { %v1144_v14 = vadd.f32 %v1143_v61, %v1128_v44  ;;  %1306 = vmatpush1.msra.mxu1 %v10589_v16  ;;  %1377 = vmatpush1.msra.mxu0 %v10590_v18  ;;  %v10616_v44 = vld [vmem:[#allocation96_spill] sm:$0xff]  ;;  %v10617_v61 = vld [vmem:[#allocation97_spill] sm:$0xff] }
 0x24f   :  { %1307 = vmatprep.subr.mxu1 %v10591_v19  ;;  %1378 = vmatprep.subr.mxu0 %v10592_v20  ;;  %v10621_v19 = vld [vmem:[#allocation101_spill] sm:$0xff] }
 0x250   :  { %5146 = vtanh.f32 %v1144_v14  ;;  %1308 = vmatpush1.msra.mxu1 %v10593_v21  ;;  %1379 = vmatpush1.msra.mxu0 %v10594_v22  ;;  %v10620_v14 = vld [vmem:[#allocation100_spill] sm:$0xff]  ;;  %v10623_v21 = vld [vmem:[#allocation102_spill] sm:$0xff]  ;;  %v7121_v22 = vld [vmem:[%s10429_s24 + $0x2d8] sm:$0xff] }
 0x251   :  { %1309 = vmatprep.subr.mxu1 %v10595_v27  ;;  %1380 = vmatprep.subr.mxu0 %v10596_v28  ;;  %v5145_v4 = vpop.eup %5144  ;;  %v7128_v27 = vld [vmem:[%s10429_s24 + $0x2d0] sm:$0xff]  ;;  %v7135_v28 = vld [vmem:[%s10429_s24 + $0x2a8] sm:$0xff] }
 0x252   :  { %1310 = vmatpush1.msra.mxu1 %v10597_v62  ;;  %1381 = vmatpush1.msra.mxu0 %v10598_v24  ;;  %v1146_v25 = vsub.f32 1.0, %v5145_v4  ;;  %v1148_v18 = vmul.f32 %v5145_v4, %v6813_v38  ;;  %v10624_v38 = vld [vmem:[#allocation103_spill] sm:$0xff]  ;;  %v7142_v62 = vld [vmem:[%s10429_s24 + $0x2a0] sm:$0xff] }
 0x253   :  { %1311 = vmatprep.subr.mxu1 %v10599_v1  ;;  %1382 = vmatprep.subr.mxu0 %v10600_v7  ;;  %v7149_v24 = vld [vmem:[%s10429_s24 + $0x278] sm:$0xff]  ;;  %v7156_v1 = vld [vmem:[%s10429_s24 + $0x270] sm:$0xff]  ;;  %v7163_v7 = vld [vmem:[%s10429_s24 + $0x248] sm:$0xff] }
 0x254   :  { %1312 = vmatpush1.msra.mxu1 %v10601_v2  ;;  %1383 = vmatpush1.msra.mxu0 %v10602_v6  ;;  %v7170_v2 = vld [vmem:[%s10429_s24 + $0x240] sm:$0xff]  ;;  %v7177_v6 = vld [vmem:[%s10429_s24 + $0x218] sm:$0xff] }
 0x255   :  { %1313 = vmatprep.subr.mxu1 %v10603_v52  ;;  %1384 = vmatprep.subr.mxu0 %v10604_v56  ;;  %v7184_v52 = vld [vmem:[%s10429_s24 + $0x210] sm:$0xff]  ;;  %v7191_v56 = vld [vmem:[%s10429_s24 + $0x1e8] sm:$0xff]  ;;  %v7226_v4 = vld [vmem:[%s10429_s24 + $0x180] sm:$0xff] }
 0x256   :  { %1314 = vmatpush1.msra.mxu1 %v10605_v31  ;;  %1385 = vmatpush1.msra.mxu0 %v10606_v42  ;;  %v7198_v31 = vld [vmem:[%s10429_s24 + $0x1e0] sm:$0xff]  ;;  %v7205_v42 = vld [vmem:[%s10429_s24 + $0x1b8] sm:$0xff]  ;;  %10628 = vst [vmem:[#allocation13_spill] sm:$0xff] %v7226_v4 }
 0x257   :  { %1315 = vmatprep.subr.mxu1 %v10607_v41  ;;  %1386 = vmatprep.subr.mxu0 %v10608_v30  ;;  %10625 = vst [vmem:[#allocation10_spill] sm:$0xff] %v7205_v42  ;;  %v7212_v41 = vld [vmem:[%s10429_s24 + $0x1b0] sm:$0xff]  ;;  %v7219_v30 = vld [vmem:[%s10429_s24 + $0x188] sm:$0xff] }
 0x258   :  { %1316 = vmatpush1.msra.mxu1 %v10609_v32  ;;  %1387 = vmatpush1.msra.mxu0 %v10610_v49  ;;  %10626 = vst [vmem:[#allocation11_spill] sm:$0xff] %v7212_v41  ;;  %10627 = vst [vmem:[#allocation12_spill] sm:$0xff] %v7219_v30 }
 0x259   :  { %1317 = vmatprep.subr.mxu1 %v10611_v17  ;;  %1388 = vmatprep.subr.mxu0 %v10612_v11 }
 0x25a   :  { %1318 = vmatpush1.msra.mxu1 %v10613_v43  ;;  %1389 = vmatpush1.msra.mxu0 %v10614_v10 }
 0x25b   :  { %1319 = vmatprep.subr.mxu1 %v10615_v0  ;;  %1390 = vmatprep.subr.mxu0 %v10616_v44 }
 0x25c   :  { %1320 = vmatpush1.msra.mxu1 %v10617_v61  ;;  %1391 = vmatpush1.msra.mxu0 %v10618_v40 }
 0x25d   :  { %v5147_v26 = vpop.eup %5146  ;;  %1321 = vmatprep.subr.mxu1 %v6763_v36  ;;  %1392 = vmatprep.subr.mxu0 %v10619_v13 }
 0x25e   :  { %1322 = vmatpush1.msra.mxu1 %v6775_v50  ;;  %1393 = vmatpush1.msra.mxu0 %v10620_v14  ;;  %v1147_v16 = vmul.f32 %v5147_v26, %v1146_v25  ;;  %v7233_v25 = vld [vmem:[%s10429_s24 + $0x158] sm:$0xff]  ;;  %v7240_v26 = vld [vmem:[%s10429_s24 + $0x150] sm:$0xff] }
 0x25f   :  { %1323 = vmatprep.subr.mxu1 %v6787_v3  ;;  %1394 = vmatprep.subr.mxu0 %v6792_v5  ;;  %10629 = vst [vmem:[#allocation14_spill] sm:$0xff] %v7233_v25  ;;  %10630 = vst [vmem:[#allocation15_spill] sm:$0xff] %v7240_v26 }
 0x260   :  { %1324 = vmatpush1.msra.mxu1 %v10621_v19  ;;  %1357 = vmatprep.mubr.f32.mxu1 %v10458_v35  ;;  %v7108_v20 = vadd.f32 %v1148_v18, %v1147_v16  ;;  %v7247_v16 = vld [vmem:[%s10429_s24 + $0x128] sm:$0xff]  ;;  %v7254_v18 = vld [vmem:[%s10429_s24 + $0x120] sm:$0xff] }
 0x261   :  { %1395 = vmatpush1.msra.mxu0 %v10623_v21  ;;  %1428 = vmatprep.mubr.f32.mxu0 %v10458_v35  ;;  %10631 = vst [vmem:[#allocation16_spill] sm:$0xff] %v7247_v16  ;;  %10632 = vst [vmem:[#allocation17_spill] sm:$0xff] %v7254_v18 }
 0x262   :  { %10622 = vst [vmem:[#allocation9_spill] sm:$0xff] %v7108_v20  ;;  %1358 = vmatmul.mubr.f32.vlgmr.msra.gmra.mxu1 %v7033_v12  ;;  %1429 = vmatmul.mubr.f32.vlgmr.msra.gmra.mxu0 %v7108_v20 }
 0x263   :  { %4739 = vmatprep.subr.mxu1 %v10458_v35  ;;  %4771 = vmatprep.mubr.msk.f32.mxu1 %vm5599_vm0, %v10458_v35 }
 0x264   :  { %4740 = vmatpush3.msra.mxu1 %v10624_v38  ;;  %1559 = vmatprep.subr.mxu0 %v7121_v22 }
 0x265   :  { %4741 = vmatprep.subr.mxu1 %v10458_v35  ;;  %1560 = vmatpush1.msra.mxu0 %v7128_v27 }
 0x266   :  { %4742 = vmatpush3.msra.mxu1 %v6830_v23  ;;  %1561 = vmatprep.subr.mxu0 %v7135_v28 }
 0x267   :  { %4743 = vmatprep.subr.mxu1 %v10458_v35  ;;  %1562 = vmatpush1.msra.mxu0 %v7142_v62 }
 0x268   :  { %4744 = vmatpush3.msra.mxu1 %v6840_v33  ;;  %1563 = vmatprep.subr.mxu0 %v7149_v24 }
 0x269   :  { %4745 = vmatprep.subr.mxu1 %v10458_v35  ;;  %1564 = vmatpush1.msra.mxu0 %v7156_v1 }
 0x26a   :  { %4746 = vmatpush3.msra.mxu1 %v6849_v39  ;;  %1565 = vmatprep.subr.mxu0 %v7163_v7 }
 0x26b   :  { %4747 = vmatprep.subr.mxu1 %v10458_v35  ;;  %1566 = vmatpush1.msra.mxu0 %v7170_v2 }
 0x26c   :  { %4748 = vmatpush3.msra.mxu1 %v6858_v45  ;;  %1567 = vmatprep.subr.mxu0 %v7177_v6 }
 0x26d   :  { %4749 = vmatprep.subr.mxu1 %v10458_v35  ;;  %1568 = vmatpush1.msra.mxu0 %v7184_v52 }
 0x26e   :  { %4750 = vmatpush3.msra.mxu1 %v6867_v46  ;;  %1569 = vmatprep.subr.mxu0 %v7191_v56 }
 0x26f   :  { %4751 = vmatprep.subr.mxu1 %v10458_v35  ;;  %1570 = vmatpush1.msra.mxu0 %v7198_v31 }
 0x270   :  { %4752 = vmatpush3.msra.mxu1 %v6876_v47  ;;  %1571 = vmatprep.subr.mxu0 %v7205_v42 }
 0x271   :  { %4753 = vmatprep.subr.mxu1 %v10458_v35  ;;  %1572 = vmatpush1.msra.mxu0 %v7212_v41 }
 0x272   :  { %4754 = vmatpush3.msra.mxu1 %v6885_v48  ;;  %1573 = vmatprep.subr.mxu0 %v7219_v30 }
 0x273   :  { %4755 = vmatprep.subr.mxu1 %v10458_v35  ;;  %1574 = vmatpush1.msra.mxu0 %v7226_v4 }
 0x274   :  { %4756 = vmatpush3.msra.mxu1 %v6894_v51  ;;  %1575 = vmatprep.subr.mxu0 %v7233_v25 }
 0x275   :  { %4757 = vmatprep.subr.mxu1 %v10458_v35  ;;  %1576 = vmatpush1.msra.mxu0 %v7240_v26  ;;  %v10680_v26 = vld [vmem:[#allocation38_spill] sm:$0xff] }
 0x276   :  { %4758 = vmatpush3.msra.mxu1 %v6903_v53  ;;  %1577 = vmatprep.subr.mxu0 %v7247_v16  ;;  %v7261_v53 = vld [vmem:[%s10429_s24 + $0xf8] sm:$0xff]  ;;  %v7268_v16 = vld [vmem:[%s10429_s24 + $0xf0] sm:$0xff] }
 0x277   :  { %4759 = vmatprep.subr.mxu1 %v10458_v35  ;;  %1578 = vmatpush1.msra.mxu0 %v7254_v18  ;;  %10633 = vst [vmem:[#allocation18_spill] sm:$0xff] %v7261_v53  ;;  %10634 = vst [vmem:[#allocation19_spill] sm:$0xff] %v7268_v16 }
 0x278   :  { %4760 = vmatpush3.msra.mxu1 %v6912_v54  ;;  %1579 = vmatprep.subr.mxu0 %v7261_v53  ;;  %v7275_v54 = vld [vmem:[%s10429_s24 + $0xc8] sm:$0xff]  ;;  %v7282_v53 = vld [vmem:[%s10429_s24 + $0xc0] sm:$0xff] }
 0x279   :  { %4761 = vmatprep.subr.mxu1 %v10458_v35  ;;  %1580 = vmatpush1.msra.mxu0 %v7268_v16  ;;  %10635 = vst [vmem:[#allocation20_spill] sm:$0xff] %v7275_v54  ;;  %10636 = vst [vmem:[#allocation21_spill] sm:$0xff] %v7282_v53 }
 0x27a   :  { %4762 = vmatpush3.msra.mxu1 %v6921_v57  ;;  %1581 = vmatprep.subr.mxu0 %v7275_v54  ;;  %v7289_v57 = vld [vmem:[%s10429_s24 + $0x98] sm:$0xff]  ;;  %v7296_v54 = vld [vmem:[%s10429_s24 + $0x90] sm:$0xff] }
 0x27b   :  { %4763 = vmatprep.subr.mxu1 %v10458_v35  ;;  %1582 = vmatpush1.msra.mxu0 %v7282_v53  ;;  %10637 = vst [vmem:[#allocation22_spill] sm:$0xff] %v7289_v57  ;;  %10638 = vst [vmem:[#allocation23_spill] sm:$0xff] %v7296_v54  ;;  %v10679_v53 = vld [vmem:[#allocation37_spill] sm:$0xff] }
 0x27c   :  { %4764 = vmatpush3.msra.mxu1 %v6930_v58  ;;  %1583 = vmatprep.subr.mxu0 %v7289_v57  ;;  %v7303_v58 = vld [vmem:[%s10429_s24 + $0x68] sm:$0xff]  ;;  %v7310_v57 = vld [vmem:[%s10429_s24 + $0x60] sm:$0xff] }
 0x27d   :  { %4765 = vmatprep.subr.mxu1 %v10458_v35  ;;  %1584 = vmatpush1.msra.mxu0 %v7296_v54  ;;  %10639 = vst [vmem:[#allocation24_spill] sm:$0xff] %v7303_v58  ;;  %10640 = vst [vmem:[#allocation25_spill] sm:$0xff] %v7310_v57 }
 0x27e   :  { %4766 = vmatpush3.msra.mxu1 %v6939_v59  ;;  %1585 = vmatprep.subr.mxu0 %v7303_v58  ;;  %v7317_v59 = vld [vmem:[%s10429_s24 + $0x38] sm:$0xff]  ;;  %v7324_v58 = vld [vmem:[%s10429_s24 + $0x30] sm:$0xff] }
 0x27f   :  { %4767 = vmatprep.subr.mxu1 %v10458_v35  ;;  %1586 = vmatpush1.msra.mxu0 %v7310_v57  ;;  %10641 = vst [vmem:[#allocation26_spill] sm:$0xff] %v7317_v59  ;;  %10642 = vst [vmem:[#allocation27_spill] sm:$0xff] %v7324_v58 }
 0x280   :  { %4768 = vmatpush3.msra.mxu1 %v6948_v60  ;;  %1587 = vmatprep.subr.mxu0 %v7317_v59  ;;  %v7331_v60 = vld [vmem:[%s10429_s24 + $0x8] sm:$0xff] }
 0x281   :  { %4769 = vmatprep.subr.mxu1 %v10458_v35  ;;  %1588 = vmatpush1.msra.mxu0 %v7324_v58  ;;  %10643 = vst [vmem:[#allocation28_spill] sm:$0xff] %v7331_v60  ;;  %v7338_v59 = vld [vmem:[%s10429_s24 + $0x2e8] sm:$0xff]  ;;  %v7356_v58 = vld [vmem:[%s10429_s24 + $0x2b8] sm:$0xff] }
 0x282   :  { %4770 = vmatpush3.msra.mxu1 %v6957_v63  ;;  %1589 = vmatprep.subr.mxu0 %v7331_v60  ;;  %10644 = vst [vmem:[#allocation29_spill] sm:$0xff] %v7338_v59  ;;  %v7344_v63 = vld [vmem:[%s10429_s24 + $0x2e0] sm:$0xff]  ;;  %10647 = vst [vmem:[#allocation32_spill] sm:$0xff] %v7356_v58 }
 0x283   :  { %4772 = vmatmul.mubr.f32.vlgmr.msra.gmra.mxu1 %v7108_v20  ;;  %1630 = vmatprep.subr.mxu1 %v7338_v59  ;;  %10645 = vst [vmem:[#allocation30_spill] sm:$0xff] %v7344_v63  ;;  %v7350_v60 = vld [vmem:[%s10429_s24] sm:$0xff]  ;;  %v7388_v59 = vld [vmem:[%s10429_s24 + $0x258] sm:$0xff] }
 0x284   :  { %1631 = vmatpush1.msra.mxu1 %v7344_v63  ;;  %10646 = vst [vmem:[#allocation31_spill] sm:$0xff] %v7350_v60  ;;  %1590 = vmatpush1.msra.mxu0 %v7350_v60  ;;  %v7363_v63 = vld [vmem:[%s10429_s24 + $0x2b0] sm:$0xff]  ;;  %v7370_v60 = vld [vmem:[%s10429_s24 + $0x288] sm:$0xff]  ;;  %10652 = vst [vmem:[#allocation47_spill] sm:$0xff] %v7388_v59 }
 0x285   :  { %1632 = vmatprep.subr.mxu1 %v7356_v58  ;;  %1623 = vmatprep.mubr.f32.mxu0 %v10458_v35  ;;  %10648 = vst [vmem:[#allocation35_spill] sm:$0xff] %v7363_v63  ;;  %10649 = vst [vmem:[#allocation36_spill] sm:$0xff] %v7370_v60  ;;  %v7376_v58 = vld [vmem:[%s10429_s24 + $0x2f8] sm:$0xff] }
 0x286   :  { %1633 = vmatpush1.msra.mxu1 %v7363_v63  ;;  %1694 = vmatprep.mubr.f32.mxu1 %v10458_v35  ;;  %10650 = vst [vmem:[#allocation33_spill] sm:$0xff] %v7376_v58  ;;  %v7382_v63 = vld [vmem:[%s10429_s24 + $0x280] sm:$0xff] }
 0x287   :  { %1634 = vmatprep.subr.mxu1 %v7370_v60  ;;  %1701 = vmatprep.subr.mxu0 %v7376_v58  ;;  %10651 = vst [vmem:[#allocation34_spill] sm:$0xff] %v7382_v63  ;;  %v7394_v60 = vld [vmem:[%s10429_s24 + $0x250] sm:$0xff]  ;;  %v7400_v58 = vld [vmem:[%s10429_s24 + $0x228] sm:$0xff] }
 0x288   :  { %1635 = vmatpush1.msra.mxu1 %v7382_v63  ;;  %10653 = vst [vmem:[#allocation59_spill] sm:$0xff] %v7394_v60  ;;  %10654 = vst [vmem:[#allocation60_spill] sm:$0xff] %v7400_v58  ;;  %v7406_v63 = vld [vmem:[%s10429_s24 + $0x220] sm:$0xff] }
 0x289   :  { %1636 = vmatprep.subr.mxu1 %v7388_v59  ;;  %10655 = vst [vmem:[#allocation61_spill] sm:$0xff] %v7406_v63  ;;  %v7412_v59 = vld [vmem:[%s10429_s24 + $0x1f8] sm:$0xff] }
 0x28a   :  { %1637 = vmatpush1.msra.mxu1 %v7394_v60  ;;  %10656 = vst [vmem:[#allocation62_spill] sm:$0xff] %v7412_v59  ;;  %v7418_v60 = vld [vmem:[%s10429_s24 + $0x1f0] sm:$0xff] }
 0x28b   :  { %1638 = vmatprep.subr.mxu1 %v7400_v58  ;;  %10657 = vst [vmem:[#allocation63_spill] sm:$0xff] %v7418_v60  ;;  %v7424_v58 = vld [vmem:[%s10429_s24 + $0x1c8] sm:$0xff] }
 0x28c   :  { %1639 = vmatpush1.msra.mxu1 %v7406_v63  ;;  %10658 = vst [vmem:[#allocation64_spill] sm:$0xff] %v7424_v58  ;;  %v7430_v63 = vld [vmem:[%s10429_s24 + $0x1c0] sm:$0xff] }
 0x28d   :  { %1640 = vmatprep.subr.mxu1 %v7412_v59  ;;  %10659 = vst [vmem:[#allocation65_spill] sm:$0xff] %v7430_v63  ;;  %v7436_v59 = vld [vmem:[%s10429_s24 + $0x198] sm:$0xff] }
 0x28e   :  { %1641 = vmatpush1.msra.mxu1 %v7418_v60  ;;  %10660 = vst [vmem:[#allocation66_spill] sm:$0xff] %v7436_v59  ;;  %v7442_v60 = vld [vmem:[%s10429_s24 + $0x190] sm:$0xff] }
 0x28f   :  { %1642 = vmatprep.subr.mxu1 %v7424_v58  ;;  %10661 = vst [vmem:[#allocation67_spill] sm:$0xff] %v7442_v60  ;;  %v7448_v58 = vld [vmem:[%s10429_s24 + $0x168] sm:$0xff] }
 0x290   :  { %1643 = vmatpush1.msra.mxu1 %v7430_v63  ;;  %10662 = vst [vmem:[#allocation68_spill] sm:$0xff] %v7448_v58  ;;  %v7454_v63 = vld [vmem:[%s10429_s24 + $0x160] sm:$0xff] }
 0x291   :  { %1644 = vmatprep.subr.mxu1 %v7436_v59  ;;  %10663 = vst [vmem:[#allocation69_spill] sm:$0xff] %v7454_v63  ;;  %v7460_v59 = vld [vmem:[%s10429_s24 + $0x138] sm:$0xff] }
 0x292   :  { %1645 = vmatpush1.msra.mxu1 %v7442_v60  ;;  %10664 = vst [vmem:[#allocation70_spill] sm:$0xff] %v7460_v59  ;;  %v7466_v60 = vld [vmem:[%s10429_s24 + $0x130] sm:$0xff] }
 0x293   :  { %1646 = vmatprep.subr.mxu1 %v7448_v58  ;;  %10665 = vst [vmem:[#allocation71_spill] sm:$0xff] %v7466_v60  ;;  %v7472_v58 = vld [vmem:[%s10429_s24 + $0x108] sm:$0xff] }
 0x294   :  { %1647 = vmatpush1.msra.mxu1 %v7454_v63  ;;  %10666 = vst [vmem:[#allocation72_spill] sm:$0xff] %v7472_v58  ;;  %v7478_v63 = vld [vmem:[%s10429_s24 + $0x100] sm:$0xff] }
 0x295   :  { %1648 = vmatprep.subr.mxu1 %v7460_v59  ;;  %10667 = vst [vmem:[#allocation73_spill] sm:$0xff] %v7478_v63  ;;  %v7484_v59 = vld [vmem:[%s10429_s24 + $0xd8] sm:$0xff] }
 0x296   :  { %1649 = vmatpush1.msra.mxu1 %v7466_v60  ;;  %10668 = vst [vmem:[#allocation74_spill] sm:$0xff] %v7484_v59  ;;  %v7490_v60 = vld [vmem:[%s10429_s24 + $0xd0] sm:$0xff] }
 0x297   :  { %1650 = vmatprep.subr.mxu1 %v7472_v58  ;;  %10669 = vst [vmem:[#allocation75_spill] sm:$0xff] %v7490_v60  ;;  %v7496_v58 = vld [vmem:[%s10429_s24 + $0xa8] sm:$0xff] }
 0x298   :  { %1651 = vmatpush1.msra.mxu1 %v7478_v63  ;;  %10670 = vst [vmem:[#allocation76_spill] sm:$0xff] %v7496_v58  ;;  %v7502_v63 = vld [vmem:[%s10429_s24 + $0xa0] sm:$0xff] }
 0x299   :  { %1652 = vmatprep.subr.mxu1 %v7484_v59  ;;  %10671 = vst [vmem:[#allocation77_spill] sm:$0xff] %v7502_v63  ;;  %v7508_v59 = vld [vmem:[%s10429_s24 + $0x78] sm:$0xff] }
 0x29a   :  { %1653 = vmatpush1.msra.mxu1 %v7490_v60  ;;  %10672 = vst [vmem:[#allocation78_spill] sm:$0xff] %v7508_v59  ;;  %v7514_v60 = vld [vmem:[%s10429_s24 + $0x70] sm:$0xff] }
 0x29b   :  { %1654 = vmatprep.subr.mxu1 %v7496_v58  ;;  %10673 = vst [vmem:[#allocation79_spill] sm:$0xff] %v7514_v60  ;;  %v7520_v58 = vld [vmem:[%s10429_s24 + $0x48] sm:$0xff] }
 0x29c   :  { %1655 = vmatpush1.msra.mxu1 %v7502_v63  ;;  %10674 = vst [vmem:[#allocation80_spill] sm:$0xff] %v7520_v58  ;;  %v7526_v63 = vld [vmem:[%s10429_s24 + $0x40] sm:$0xff] }
 0x29d   :  { %1656 = vmatprep.subr.mxu1 %v7508_v59  ;;  %10675 = vst [vmem:[#allocation81_spill] sm:$0xff] %v7526_v63  ;;  %v7532_v59 = vld [vmem:[%s10429_s24 + $0x18] sm:$0xff] }
 0x29e   :  { %1657 = vmatpush1.msra.mxu1 %v7514_v60  ;;  %10676 = vst [vmem:[#allocation82_spill] sm:$0xff] %v7532_v59  ;;  %v7538_v60 = vld [vmem:[%s10429_s24 + $0x10] sm:$0xff] }
 0x29f   :  { %1658 = vmatprep.subr.mxu1 %v7520_v58  ;;  %10677 = vst [vmem:[#allocation83_spill] sm:$0xff] %v7538_v60  ;;  %v7544_v58 = vld [vmem:[%s9916_s8 + $0x170] sm:$0xff] }
 0x2a0   :  { %1659 = vmatpush1.msra.mxu1 %v7526_v63  ;;  %10678 = vst [vmem:[#allocation84_spill] sm:$0xff] %v7544_v58 }
 0x2a1   :  { %1660 = vmatprep.subr.mxu1 %v7532_v59 }
 0x2a2   :  { %1661 = vmatpush1.msra.mxu1 %v7538_v60 }
 0x2a3   :  { %1772 = vmatprep.subr.mxu1 %v7544_v58 }
 0x301   :  { %v1217_v63 = vpop.f32.mrf.mxu1  ;;  %v1288_v30 = vpop.f32.mrf.mxu0 }
 0x302   :  { %v1509_v57 = vadd.f32 %v1217_v63, %v10569_v8  ;;  %v10681_v8 = vld [vmem:[#allocation6_spill] sm:$0xff] }
 0x303   :  { %v1219_v54 = vpop.f32.mrf.mxu1  ;;  %v1290_v58 = vpop.f32.mrf.mxu0 }
 0x304   :  { %v1512_v59 = vadd.f32 %v1509_v57, %v10679_v53  ;;  %v1510_v18 = vadd.f32 %v1219_v54, %v6416_v34  ;;  %v1533_v63 = vadd.f32 %v1290_v58, %v7015_v29  ;;  %v10682_v57 = vld [vmem:[#allocation58_spill] sm:$0xff] }
 0x306   :  { %v4391_v16 = vmul.f32 -1.442695, %v1512_v59  ;;  %v1519_v25 = vadd.f32 %v1510_v18, %v10680_v26  ;;  %v1511_v59 = vadd.f32 %v1288_v30, %v10682_v57 }
 0x308   :  { %5148 = vpow2.f32 %v4391_v16  ;;  %v4392_v60 = vmul.f32 -1.442695, %v1519_v25 }
 0x30a   :  { %5150 = vpow2.f32 %v4392_v60 }
 0x315   :  { %v5149_v51 = vpop.eup %5148 }
 0x316   :  { %v1516_v4 = vadd.f32 1.0, %v5149_v51 }
 0x317   :  { %v5151_v48 = vpop.eup %5150 }
 0x318   :  { %5152 = vrcp.f32 %v1516_v4  ;;  %v1523_v41 = vadd.f32 1.0, %v5151_v48  ;;  %v10683_v4 = vld [vmem:[#allocation53_spill] sm:$0xff] }
 0x31a   :  { %5154 = vrcp.f32 %v1523_v41 }
 0x322   :  { %v1430_v42 = vpop.f32.mrf.mxu0  ;;  %v1359_v60 = vpop.f32.mrf.mxu1 }
 0x323   :  { %v1431_v53 = vadd.f32 %v1430_v42, %v10681_v8  ;;  %v1534_v48 = vadd.f32 %v1359_v60, %v7027_v15  ;;  %v7607_v60 = vld [vmem:[%s9916_s8 + $0x140] sm:$0xff] }
 0x324   :  { %v1432_v54 = vpop.f32.mrf.mxu0 }
 0x325   :  { %v5153_v16 = vpop.eup %5152  ;;  %v1536_v34 = vadd.f32 %v1533_v63, %v1431_v53  ;;  %v1433_v51 = vadd.f32 %v1432_v54, %v7023_v9  ;;  %v7595_v54 = vld [vmem:[%s9916_s8 + $0x150] sm:$0xff] }
 0x326   :  { %v1526_v26 = vmul.f32 %v5153_v16, %v1511_v59  ;;  %v7565_v59 = vld [vmem:[%s10429_s24 + $0x2f0] sm:$0xff] }
 0x327   :  { %v4393_v25 = vmul.f32 -1.442695, %v1536_v34  ;;  %v1543_v58 = vadd.f32 %v1534_v48, %v1433_v51  ;;  %v5155_v42 = vpop.eup %5154  ;;  %v7613_v51 = vld [vmem:[%s10429_s24 + $0x290] sm:$0xff]  ;;  %v7631_v48 = vld [vmem:[%s9916_s8 + $0x128] sm:$0xff] }
 0x328   :  { %v1527_v18 = vadd.f32 %v1526_v26, %v10683_v4  ;;  %v1529_v57 = vsub.f32 1.0, %v5155_v42  ;;  %v1531_v41 = vmul.f32 %v5155_v42, %v7033_v12  ;;  %v7583_v12 = vld [vmem:[%s9916_s8 + $0x158] sm:$0xff]  ;;  %10684 = vst [vmem:[#allocation85_spill] sm:$0xff] %v7631_v48 }
 0x329   :  { %5156 = vpow2.f32 %v4393_v25  ;;  %v4394_v29 = vmul.f32 -1.442695, %v1543_v58  ;;  %v7601_v26 = vld [vmem:[%s10429_s24 + $0x298] sm:$0xff]  ;;  %v1361_v25 = vpop.f32.mrf.mxu1 }
 0x32a   :  { %5158 = vtanh.f32 %v1527_v18  ;;  %v7619_v4 = vld [vmem:[%s9916_s8 + $0x138] sm:$0xff]  ;;  %v7625_v18 = vld [vmem:[%s10429_s24 + $0x268] sm:$0xff] }
 0x32b   :  { %5160 = vpow2.f32 %v4394_v29  ;;  %v7577_v29 = vld [vmem:[%s10429_s24 + $0x2c8] sm:$0xff] }
 0x336   :  { %v5157_v30 = vpop.eup %5156 }
 0x337   :  { %v5159_v8 = vpop.eup %5158  ;;  %v1540_v63 = vadd.f32 1.0, %v5157_v30  ;;  %v7637_v30 = vld [vmem:[%s10429_s24 + $0x260] sm:$0xff] }
 0x338   :  { %v1530_v53 = vmul.f32 %v5159_v8, %v1529_v57  ;;  %v7571_v8 = vld [vmem:[%s9916_s8 + $0x168] sm:$0xff]  ;;  %v7589_v57 = vld [vmem:[%s10429_s24 + $0x2c0] sm:$0xff]  ;;  %v5161_v16 = vpop.eup %5160  ;;  %10685 = vst [vmem:[#allocation86_spill] sm:$0xff] %v7637_v30 }
 0x339   :  { %5162 = vrcp.f32 %v1540_v63  ;;  %v1547_v58 = vadd.f32 1.0, %v5161_v16  ;;  %v7643_v63 = vld [vmem:[%s9916_s8 + $0x120] sm:$0xff] }
 0x33a   :  { %v7558_v34 = vadd.f32 %v1531_v41, %v1530_v53  ;;  %10686 = vst [vmem:[#allocation87_spill] sm:$0xff] %v7643_v63  ;;  %v7649_v53 = vld [vmem:[%s10429_s24 + $0x238] sm:$0xff]  ;;  %v7655_v41 = vld [vmem:[%s9916_s8 + $0x110] sm:$0xff] }
 0x33b   :  { %10687 = vst [vmem:[#allocation88_spill] sm:$0xff] %v7649_v53  ;;  %5164 = vrcp.f32 %v1547_v58 }
 0x33c   :  { %1624 = vmatmul.mubr.f32.vlgmr.msra.gmra.mxu0 %v7558_v34  ;;  %1695 = vmatmul.mubr.f32.vlgmr.msra.gmra.mxu1 %v7558_v34 }
 0x33d   :  { %1702 = vmatpush1.msra.mxu0 %v7565_v59  ;;  %1773 = vmatpush1.msra.mxu1 %v7571_v8 }
 0x33e   :  { %1703 = vmatprep.subr.mxu0 %v7577_v29  ;;  %1774 = vmatprep.subr.mxu1 %v7583_v12 }
 0x33f   :  { %1704 = vmatpush1.msra.mxu0 %v7589_v57  ;;  %1775 = vmatpush1.msra.mxu1 %v7595_v54 }
 0x340   :  { %1705 = vmatprep.subr.mxu0 %v7601_v26  ;;  %1776 = vmatprep.subr.mxu1 %v7607_v60 }
 0x341   :  { %1706 = vmatpush1.msra.mxu0 %v7613_v51  ;;  %1777 = vmatpush1.msra.mxu1 %v7619_v4 }
 0x342   :  { %1707 = vmatprep.subr.mxu0 %v7625_v18  ;;  %1778 = vmatprep.subr.mxu1 %v7631_v48 }
 0x343   :  { %v1501_v42 = vpop.f32.mrf.mxu1  ;;  %1708 = vmatpush1.msra.mxu0 %v7637_v30  ;;  %1779 = vmatpush1.msra.mxu1 %v7643_v63  ;;  %v7662_v63 = vld [vmem:[%s10429_s24 + $0x230] sm:$0xff] }
 0x344   :  { %1709 = vmatprep.subr.mxu0 %v7649_v53  ;;  %1780 = vmatprep.subr.mxu1 %v7655_v41  ;;  %v1502_v16 = vadd.f32 %v1501_v42, %v7046_v55  ;;  %10688 = vst [vmem:[#allocation89_spill] sm:$0xff] %v7662_v63  ;;  %v7668_v53 = vld [vmem:[%s9916_s8 + $0x108] sm:$0xff] }
 0x345   :  { %v4773_v30 = vpop.f32.mrf.mxu1  ;;  %1710 = vmatpush1.msra.mxu0 %v7662_v63  ;;  %10689 = vst [vmem:[#allocation90_spill] sm:$0xff] %v7668_v53  ;;  %1781 = vmatpush1.msra.mxu1 %v7668_v53  ;;  %v7674_v42 = vld [vmem:[%s10429_s24 + $0x208] sm:$0xff]  ;;  %v1535_v63 = vadd.f32 %v1361_v25, %v7053_v37  ;;  %v7687_v53 = vld [vmem:[%s10429_s24 + $0x200] sm:$0xff]  ;;  %v7699_v25 = vld [vmem:[%s10429_s24 + $0x1d8] sm:$0xff] }
 0x346   :  { %v5163_v48 = vpop.eup %5162  ;;  %10690 = vst [vmem:[#allocation91_spill] sm:$0xff] %v7674_v42  ;;  %1711 = vmatprep.subr.mxu0 %v7674_v42  ;;  %v7680_v30 = vld [vmem:[%s9916_s8 + $0xf8] sm:$0xff]  ;;  %v7693_v42 = vld [vmem:[%s9916_s8 + $0xf0] sm:$0xff]  ;;  %10692 = vst [vmem:[#allocation93_spill] sm:$0xff] %v7699_v25  ;;  %1765 = vmatprep.mubr.f32.mxu0 %v10458_v35 }
 0x347   :  { %1782 = vmatprep.subr.mxu1 %v7680_v30  ;;  %v1550_v55 = vmul.f32 %v5163_v48, %v1502_v16  ;;  %1712 = vmatpush1.msra.mxu0 %v7687_v53  ;;  %10691 = vst [vmem:[#allocation92_spill] sm:$0xff] %v7693_v42  ;;  %v7705_v48 = vld [vmem:[%s9916_s8 + $0xe0] sm:$0xff]  ;;  %v7711_v16 = vld [vmem:[%s10429_s24 + $0x1d0] sm:$0xff] }
 0x348   :  { %1783 = vmatpush1.msra.mxu1 %v7693_v42  ;;  %1713 = vmatprep.subr.mxu0 %v7699_v25  ;;  %v7717_v42 = vld [vmem:[%s9916_s8 + $0xd8] sm:$0xff]  ;;  %v7723_v25 = vld [vmem:[%s10429_s24 + $0x1a8] sm:$0xff] }
 0x349   :  { %1784 = vmatprep.subr.mxu1 %v7705_v48  ;;  %v1551_v58 = vadd.f32 %v1550_v55, %v1535_v63  ;;  %1714 = vmatpush1.msra.mxu0 %v7711_v16  ;;  %10693 = vst [vmem:[#allocation94_spill] sm:$0xff] %v7717_v42  ;;  %10694 = vst [vmem:[#allocation95_spill] sm:$0xff] %v7723_v25  ;;  %v7729_v55 = vld [vmem:[%s9916_s8 + $0xc8] sm:$0xff]  ;;  %v7735_v63 = vld [vmem:[%s10429_s24 + $0x1a0] sm:$0xff] }
 0x34a   :  { %1785 = vmatpush1.msra.mxu1 %v7717_v42  ;;  %1715 = vmatprep.subr.mxu0 %v7723_v25  ;;  %10695 = vst [vmem:[#allocation96_spill] sm:$0xff] %v7729_v55  ;;  %10696 = vst [vmem:[#allocation97_spill] sm:$0xff] %v7735_v63  ;;  %v7741_v42 = vld [vmem:[%s9916_s8 + $0xc0] sm:$0xff]  ;;  %v7747_v25 = vld [vmem:[%s10429_s24 + $0x178] sm:$0xff] }
 0x34b   :  { %1786 = vmatprep.subr.mxu1 %v7729_v55  ;;  %5166 = vtanh.f32 %v1551_v58  ;;  %1716 = vmatpush1.msra.mxu0 %v7735_v63  ;;  %10697 = vst [vmem:[#allocation98_spill] sm:$0xff] %v7741_v42  ;;  %10698 = vst [vmem:[#allocation99_spill] sm:$0xff] %v7747_v25  ;;  %v7753_v58 = vld [vmem:[%s9916_s8 + $0xb0] sm:$0xff] }
 0x34c   :  { %1787 = vmatpush1.msra.mxu1 %v7741_v42  ;;  %1717 = vmatprep.subr.mxu0 %v7747_v25  ;;  %10699 = vst [vmem:[#allocation100_spill] sm:$0xff] %v7753_v58  ;;  %v7759_v63 = vld [vmem:[%s10429_s24 + $0x170] sm:$0xff]  ;;  %v7765_v42 = vld [vmem:[%s9916_s8 + $0xa8] sm:$0xff] }
 0x34d   :  { %1788 = vmatprep.subr.mxu1 %v7753_v58  ;;  %10700 = vst [vmem:[#allocation101_spill] sm:$0xff] %v7759_v63  ;;  %1718 = vmatpush1.msra.mxu0 %v7759_v63  ;;  %10701 = vst [vmem:[#allocation102_spill] sm:$0xff] %v7765_v42  ;;  %v7771_v25 = vld [vmem:[%s10429_s24 + $0x148] sm:$0xff]  ;;  %v7777_v58 = vld [vmem:[%s9916_s8 + $0x98] sm:$0xff] }
 0x34e   :  { %1789 = vmatpush1.msra.mxu1 %v7765_v42  ;;  %10702 = vst [vmem:[#allocation103_spill] sm:$0xff] %v7771_v25  ;;  %1719 = vmatprep.subr.mxu0 %v7771_v25  ;;  %10703 = vst [vmem:[#allocation37_spill] sm:$0xff] %v7777_v58  ;;  %v7783_v63 = vld [vmem:[%s10429_s24 + $0x140] sm:$0xff]  ;;  %v7789_v42 = vld [vmem:[%s9916_s8 + $0x90] sm:$0xff] }
 0x34f   :  { %1790 = vmatprep.subr.mxu1 %v7777_v58  ;;  %10704 = vst [vmem:[#allocation38_spill] sm:$0xff] %v7783_v63  ;;  %1720 = vmatpush1.msra.mxu0 %v7783_v63  ;;  %10705 = vst [vmem:[#allocation53_spill] sm:$0xff] %v7789_v42  ;;  %v7795_v25 = vld [vmem:[%s10429_s24 + $0x118] sm:$0xff]  ;;  %v7801_v58 = vld [vmem:[%s9916_s8 + $0x80] sm:$0xff] }
 0x350   :  { %1791 = vmatpush1.msra.mxu1 %v7789_v42  ;;  %10706 = vst [vmem:[#allocation112_spill] sm:$0xff] %v7795_v25  ;;  %1721 = vmatprep.subr.mxu0 %v7795_v25  ;;  %10707 = vst [vmem:[#allocation113_spill] sm:$0xff] %v7801_v58  ;;  %v7807_v63 = vld [vmem:[%s10429_s24 + $0x110] sm:$0xff]  ;;  %v7813_v42 = vld [vmem:[%s9916_s8 + $0x78] sm:$0xff] }
 0x351   :  { %1792 = vmatprep.subr.mxu1 %v7801_v58  ;;  %10708 = vst [vmem:[#allocation114_spill] sm:$0xff] %v7807_v63  ;;  %1722 = vmatpush1.msra.mxu0 %v7807_v63  ;;  %10709 = vst [vmem:[#allocation115_spill] sm:$0xff] %v7813_v42  ;;  %v7819_v25 = vld [vmem:[%s10429_s24 + $0xe8] sm:$0xff]  ;;  %v5165_v63 = vpop.eup %5164 }
 0x352   :  { %1793 = vmatpush1.msra.mxu1 %v7813_v42  ;;  %10710 = vst [vmem:[#allocation116_spill] sm:$0xff] %v7819_v25  ;;  %1723 = vmatprep.subr.mxu0 %v7819_v25  ;;  %v7825_v58 = vld [vmem:[%s9916_s8 + $0x68] sm:$0xff] }
 0x353   :  { %10711 = vst [vmem:[#allocation117_spill] sm:$0xff] %v7825_v58  ;;  %1794 = vmatprep.subr.mxu1 %v7825_v58  ;;  %1724 = vmatpush1.msra.mxu0 %v10609_v32  ;;  %v1553_v32 = vsub.f32 1.0, %v5165_v63 }
 0x354   :  { %1795 = vmatpush1.msra.mxu1 %v10610_v49  ;;  %1725 = vmatprep.subr.mxu0 %v10611_v17  ;;  %v1555_v17 = vmul.f32 %v5165_v63, %v7108_v20  ;;  %v10734_v63 = vld [vmem:[#allocation24_spill] sm:$0xff]  ;;  %v10748_v20 = vld [vmem:[#allocation34_spill] sm:$0xff] }
 0x355   :  { %1796 = vmatprep.subr.mxu1 %v10612_v11  ;;  %1726 = vmatpush1.msra.mxu0 %v10613_v43  ;;  %v10723_v43 = vld [vmem:[#allocation17_spill] sm:$0xff] }
 0x356   :  { %1797 = vmatpush1.msra.mxu1 %v10614_v10  ;;  %1727 = vmatprep.subr.mxu0 %v10615_v0  ;;  %v10724_v10 = vld [vmem:[#allocation106_spill] sm:$0xff] }
 0x357   :  { %1798 = vmatprep.subr.mxu1 %v10616_v44  ;;  %1728 = vmatpush1.msra.mxu0 %v10617_v61  ;;  %v10725_v0 = vld [vmem:[#allocation18_spill] sm:$0xff]  ;;  %v10726_v44 = vld [vmem:[#allocation19_spill] sm:$0xff] }
 0x358   :  { %1799 = vmatpush1.msra.mxu1 %v10618_v40  ;;  %v5167_v58 = vpop.eup %5166  ;;  %1729 = vmatprep.subr.mxu0 %v6763_v36  ;;  %v10717_v36 = vld [vmem:[#allocation13_spill] sm:$0xff]  ;;  %v10727_v61 = vld [vmem:[#allocation107_spill] sm:$0xff]  ;;  %v10728_v40 = vld [vmem:[#allocation20_spill] sm:$0xff] }
 0x359   :  { %1800 = vmatprep.subr.mxu1 %v10619_v13  ;;  %1730 = vmatpush1.msra.mxu0 %v6775_v50  ;;  %v1554_v49 = vmul.f32 %v5167_v58, %v1553_v32  ;;  %v10718_v50 = vld [vmem:[#allocation105_spill] sm:$0xff]  ;;  %v10736_v32 = vld [vmem:[#allocation110_spill] sm:$0xff] }
 0x35a   :  { %1801 = vmatpush1.msra.mxu1 %v10620_v14  ;;  %1731 = vmatprep.subr.mxu0 %v6787_v3  ;;  %v10716_v3 = vld [vmem:[#allocation12_spill] sm:$0xff]  ;;  %v10729_v13 = vld [vmem:[#allocation21_spill] sm:$0xff] }
 0x35b   :  { %1802 = vmatprep.subr.mxu1 %v6792_v5  ;;  %1732 = vmatpush1.msra.mxu0 %v10621_v19  ;;  %v7847_v11 = vadd.f32 %v1555_v17, %v1554_v49  ;;  %v10714_v5 = vld [vmem:[#allocation11_spill] sm:$0xff]  ;;  %v10730_v14 = vld [vmem:[#allocation108_spill] sm:$0xff]  ;;  %v10731_v19 = vld [vmem:[#allocation22_spill] sm:$0xff] }
 0x35c   :  { %1803 = vmatpush1.msra.mxu1 %v10623_v21  ;;  %1836 = vmatprep.mubr.f32.mxu1 %v10458_v35  ;;  %v10732_v21 = vld [vmem:[#allocation23_spill] sm:$0xff]  ;;  %v10735_v58 = vld [vmem:[#allocation25_spill] sm:$0xff]  ;;  %v10737_v49 = vld [vmem:[#allocation26_spill] sm:$0xff] }
 0x35d   :  { %10712 = vst [vmem:[#allocation118_spill] sm:$0xff] %v7847_v11  ;;  %1766 = vmatmul.mubr.f32.vlgmr.msra.gmra.mxu0 %v7558_v34  ;;  %1837 = vmatmul.mubr.f32.vlgmr.msra.gmra.mxu1 %v7847_v11  ;;  %v10738_v17 = vld [vmem:[#allocation27_spill] sm:$0xff] }
 0x35e   :  { %4774 = vmatprep.subr.mxu0 %v10458_v35  ;;  %4806 = vmatprep.mubr.msk.f32.mxu0 %vm5599_vm0, %v10458_v35 }
 0x35f   :  { %4775 = vmatpush3.msra.mxu0 %v10624_v38  ;;  %1967 = vmatprep.subr.mxu1 %v7121_v22  ;;  %v10733_v38 = vld [vmem:[#allocation109_spill] sm:$0xff] }
 0x360   :  { %4776 = vmatprep.subr.mxu0 %v10458_v35  ;;  %1968 = vmatpush1.msra.mxu1 %v7128_v27 }
 0x361   :  { %4777 = vmatpush3.msra.mxu0 %v6830_v23  ;;  %1969 = vmatprep.subr.mxu1 %v7135_v28  ;;  %v10715_v23 = vld [vmem:[#allocation104_spill] sm:$0xff] }
 0x362   :  { %4778 = vmatprep.subr.mxu0 %v10458_v35  ;;  %1970 = vmatpush1.msra.mxu1 %v7142_v62 }
 0x363   :  { %4779 = vmatpush3.msra.mxu0 %v6840_v33  ;;  %1971 = vmatprep.subr.mxu1 %v7149_v24  ;;  %v10713_v33 = vld [vmem:[#allocation10_spill] sm:$0xff] }
 0x364   :  { %4780 = vmatprep.subr.mxu0 %v10458_v35  ;;  %1972 = vmatpush1.msra.mxu1 %v7156_v1 }
 0x365   :  { %4781 = vmatpush3.msra.mxu0 %v6849_v39  ;;  %1973 = vmatprep.subr.mxu1 %v7163_v7  ;;  %v10719_v39 = vld [vmem:[#allocation14_spill] sm:$0xff] }
 0x366   :  { %4782 = vmatprep.subr.mxu0 %v10458_v35  ;;  %1974 = vmatpush1.msra.mxu1 %v7170_v2 }
 0x367   :  { %4783 = vmatpush3.msra.mxu0 %v6858_v45  ;;  %1975 = vmatprep.subr.mxu1 %v7177_v6  ;;  %v10720_v45 = vld [vmem:[#allocation15_spill] sm:$0xff] }
 0x368   :  { %4784 = vmatprep.subr.mxu0 %v10458_v35  ;;  %1976 = vmatpush1.msra.mxu1 %v7184_v52 }
 0x369   :  { %4785 = vmatpush3.msra.mxu0 %v6867_v46  ;;  %1977 = vmatprep.subr.mxu1 %v7191_v56  ;;  %v10721_v46 = vld [vmem:[#allocation4_spill] sm:$0xff] }
 0x36a   :  { %4786 = vmatprep.subr.mxu0 %v10458_v35  ;;  %1978 = vmatpush1.msra.mxu1 %v7198_v31 }
 0x36b   :  { %4787 = vmatpush3.msra.mxu0 %v6876_v47  ;;  %1979 = vmatprep.subr.mxu1 %v10713_v33  ;;  %v10722_v47 = vld [vmem:[#allocation16_spill] sm:$0xff] }
 0x36c   :  { %4788 = vmatprep.subr.mxu0 %v10458_v35  ;;  %1980 = vmatpush1.msra.mxu1 %v10714_v5 }
 0x36d   :  { %4789 = vmatpush3.msra.mxu0 %v10715_v23  ;;  %1981 = vmatprep.subr.mxu1 %v10716_v3  ;;  %v10739_v23 = vld [vmem:[#allocation111_spill] sm:$0xff] }
 0x36e   :  { %4790 = vmatprep.subr.mxu0 %v10458_v35  ;;  %1982 = vmatpush1.msra.mxu1 %v10717_v36 }
 0x36f   :  { %4791 = vmatpush3.msra.mxu0 %v10718_v50  ;;  %1983 = vmatprep.subr.mxu1 %v10719_v39  ;;  %v10740_v50 = vld [vmem:[#allocation28_spill] sm:$0xff] }
 0x370   :  { %4792 = vmatprep.subr.mxu0 %v10458_v35  ;;  %1984 = vmatpush1.msra.mxu1 %v10720_v45 }
 0x371   :  { %4793 = vmatpush3.msra.mxu0 %v10721_v46  ;;  %1985 = vmatprep.subr.mxu1 %v10722_v47  ;;  %v10741_v46 = vld [vmem:[#allocation29_spill] sm:$0xff] }
 0x372   :  { %4794 = vmatprep.subr.mxu0 %v10458_v35  ;;  %1986 = vmatpush1.msra.mxu1 %v10723_v43  ;;  %v10781_v43 = vld [vmem:[#allocation6_spill] sm:$0xff] }
 0x373   :  { %4795 = vmatpush3.msra.mxu0 %v10724_v10  ;;  %1987 = vmatprep.subr.mxu1 %v10725_v0  ;;  %v10742_v10 = vld [vmem:[#allocation30_spill] sm:$0xff] }
 0x374   :  { %4796 = vmatprep.subr.mxu0 %v10458_v35  ;;  %1988 = vmatpush1.msra.mxu1 %v10726_v44 }
 0x375   :  { %4797 = vmatpush3.msra.mxu0 %v10727_v61  ;;  %1989 = vmatprep.subr.mxu1 %v10728_v40  ;;  %v10743_v61 = vld [vmem:[#allocation31_spill] sm:$0xff] }
 0x376   :  { %4798 = vmatprep.subr.mxu0 %v10458_v35  ;;  %1990 = vmatpush1.msra.mxu1 %v10729_v13 }
 0x377   :  { %4799 = vmatpush3.msra.mxu0 %v10730_v14  ;;  %1991 = vmatprep.subr.mxu1 %v10731_v19  ;;  %v10744_v14 = vld [vmem:[#allocation32_spill] sm:$0xff] }
 0x378   :  { %4800 = vmatprep.subr.mxu0 %v10458_v35  ;;  %1992 = vmatpush1.msra.mxu1 %v10732_v21 }
 0x379   :  { %4801 = vmatpush3.msra.mxu0 %v10733_v38  ;;  %1993 = vmatprep.subr.mxu1 %v10734_v63  ;;  %v10745_v38 = vld [vmem:[#allocation35_spill] sm:$0xff] }
 0x37a   :  { %4802 = vmatprep.subr.mxu0 %v10458_v35  ;;  %1994 = vmatpush1.msra.mxu1 %v10735_v58  ;;  %v10777_v63 = vld [vmem:[#allocation39_spill] sm:$0xff] }
 0x37b   :  { %4803 = vmatpush3.msra.mxu0 %v10736_v32  ;;  %1995 = vmatprep.subr.mxu1 %v10737_v49  ;;  %v10746_v32 = vld [vmem:[#allocation36_spill] sm:$0xff]  ;;  %v10756_v49 = vld [vmem:[#allocation65_spill] sm:$0xff] }
 0x37c   :  { %4804 = vmatprep.subr.mxu0 %v10458_v35  ;;  %1996 = vmatpush1.msra.mxu1 %v10738_v17  ;;  %v10754_v17 = vld [vmem:[#allocation63_spill] sm:$0xff] }
 0x37d   :  { %4805 = vmatpush3.msra.mxu0 %v10739_v23  ;;  %1997 = vmatprep.subr.mxu1 %v10740_v50  ;;  %v10747_v23 = vld [vmem:[#allocation33_spill] sm:$0xff]  ;;  %v10749_v50 = vld [vmem:[#allocation47_spill] sm:$0xff] }
 0x37e   :  { %4807 = vmatmul.mubr.f32.vlgmr.msra.gmra.mxu0 %v7847_v11  ;;  %2038 = vmatprep.subr.mxu0 %v10741_v46  ;;  %v10750_v46 = vld [vmem:[#allocation59_spill] sm:$0xff] }
 0x37f   :  { %2039 = vmatpush1.msra.mxu0 %v10742_v10  ;;  %1998 = vmatpush1.msra.mxu1 %v10743_v61  ;;  %v10751_v10 = vld [vmem:[#allocation60_spill] sm:$0xff]  ;;  %v10752_v61 = vld [vmem:[#allocation61_spill] sm:$0xff] }
 0x380   :  { %2040 = vmatprep.subr.mxu0 %v10744_v14  ;;  %2031 = vmatprep.mubr.f32.mxu1 %v10458_v35  ;;  %v10753_v14 = vld [vmem:[#allocation62_spill] sm:$0xff] }
 0x381   :  { %2041 = vmatpush1.msra.mxu0 %v10745_v38  ;;  %2102 = vmatprep.mubr.f32.mxu0 %v10458_v35  ;;  %v10755_v38 = vld [vmem:[#allocation64_spill] sm:$0xff] }
 0x382   :  { %2042 = vmatprep.subr.mxu0 %v10746_v32  ;;  %2109 = vmatprep.subr.mxu1 %v10747_v23  ;;  %v10757_v32 = vld [vmem:[#allocation66_spill] sm:$0xff]  ;;  %v10758_v23 = vld [vmem:[#allocation67_spill] sm:$0xff] }
 0x383   :  { %2043 = vmatpush1.msra.mxu0 %v10748_v20  ;;  %v10759_v20 = vld [vmem:[#allocation68_spill] sm:$0xff] }
 0x384   :  { %2044 = vmatprep.subr.mxu0 %v10749_v50  ;;  %v10760_v50 = vld [vmem:[#allocation69_spill] sm:$0xff] }
 0x385   :  { %2045 = vmatpush1.msra.mxu0 %v10750_v46  ;;  %v10761_v46 = vld [vmem:[#allocation70_spill] sm:$0xff] }
 0x386   :  { %2046 = vmatprep.subr.mxu0 %v10751_v10  ;;  %v10762_v10 = vld [vmem:[#allocation71_spill] sm:$0xff] }
 0x387   :  { %2047 = vmatpush1.msra.mxu0 %v10752_v61  ;;  %v10763_v61 = vld [vmem:[#allocation72_spill] sm:$0xff] }
 0x388   :  { %2048 = vmatprep.subr.mxu0 %v10753_v14  ;;  %v10764_v14 = vld [vmem:[#allocation73_spill] sm:$0xff] }
 0x389   :  { %2049 = vmatpush1.msra.mxu0 %v10754_v17  ;;  %v10765_v17 = vld [vmem:[#allocation74_spill] sm:$0xff] }
 0x38a   :  { %2050 = vmatprep.subr.mxu0 %v10755_v38  ;;  %v10766_v38 = vld [vmem:[#allocation75_spill] sm:$0xff] }
 0x38b   :  { %2051 = vmatpush1.msra.mxu0 %v10756_v49  ;;  %v10767_v49 = vld [vmem:[#allocation76_spill] sm:$0xff] }
 0x38c   :  { %2052 = vmatprep.subr.mxu0 %v10757_v32  ;;  %v10768_v32 = vld [vmem:[#allocation77_spill] sm:$0xff] }
 0x38d   :  { %2053 = vmatpush1.msra.mxu0 %v10758_v23  ;;  %v10769_v23 = vld [vmem:[#allocation78_spill] sm:$0xff] }
 0x38e   :  { %2054 = vmatprep.subr.mxu0 %v10759_v20  ;;  %v10770_v20 = vld [vmem:[#allocation79_spill] sm:$0xff] }
 0x38f   :  { %2055 = vmatpush1.msra.mxu0 %v10760_v50  ;;  %v10771_v50 = vld [vmem:[#allocation80_spill] sm:$0xff] }
 0x390   :  { %2056 = vmatprep.subr.mxu0 %v10761_v46  ;;  %v10772_v46 = vld [vmem:[#allocation81_spill] sm:$0xff] }
 0x391   :  { %2057 = vmatpush1.msra.mxu0 %v10762_v10  ;;  %v10773_v10 = vld [vmem:[#allocation82_spill] sm:$0xff] }
 0x392   :  { %2058 = vmatprep.subr.mxu0 %v10763_v61  ;;  %v10774_v61 = vld [vmem:[#allocation83_spill] sm:$0xff] }
 0x393   :  { %2059 = vmatpush1.msra.mxu0 %v10764_v14  ;;  %v10775_v14 = vld [vmem:[#allocation84_spill] sm:$0xff] }
 0x394   :  { %2060 = vmatprep.subr.mxu0 %v10765_v17 }
 0x395   :  { %2061 = vmatpush1.msra.mxu0 %v10766_v38  ;;  %v10776_v38 = vld [vmem:[#allocation49_spill] sm:$0xff] }
 0x396   :  { %2062 = vmatprep.subr.mxu0 %v10767_v49 }
 0x397   :  { %2063 = vmatpush1.msra.mxu0 %v10768_v32 }
 0x398   :  { %2064 = vmatprep.subr.mxu0 %v10769_v23  ;;  %v10778_v23 = vld [vmem:[#allocation51_spill] sm:$0xff] }
 0x399   :  { %2065 = vmatpush1.msra.mxu0 %v10770_v20  ;;  %v10779_v20 = vld [vmem:[#allocation40_spill] sm:$0xff] }
 0x39a   :  { %2066 = vmatprep.subr.mxu0 %v10771_v50 }
 0x39b   :  { %2067 = vmatpush1.msra.mxu0 %v10772_v46 }
 0x39c   :  { %2068 = vmatprep.subr.mxu0 %v10773_v10 }
 0x39d   :  { %2069 = vmatpush1.msra.mxu0 %v10774_v61 }
 0x39e   :  { %2180 = vmatprep.subr.mxu0 %v10775_v14 }
 0x3fc   :  { %v1625_v17 = vpop.f32.mrf.mxu0  ;;  %v1696_v61 = vpop.f32.mrf.mxu1 }
 0x3fd   :  { %v1917_v58 = vadd.f32 %v1625_v17, %v10776_v38  ;;  %v10780_v17 = vld [vmem:[#allocation5_spill] sm:$0xff] }
 0x3fe   :  { %v1627_v49 = vpop.f32.mrf.mxu0  ;;  %v1698_v14 = vpop.f32.mrf.mxu1 }
 0x3ff   :  { %v1920_v32 = vadd.f32 %v1917_v58, %v10777_v63  ;;  %v1918_v19 = vadd.f32 %v1627_v49, %v10778_v23  ;;  %v1941_v38 = vadd.f32 %v1698_v14, %v10780_v17  ;;  %v10782_v58 = vld [vmem:[#allocation58_spill] sm:$0xff] }
 0x401   :  { %v4395_v21 = vmul.f32 -1.442695, %v1920_v32  ;;  %v1927_v50 = vadd.f32 %v1918_v19, %v10779_v20  ;;  %v1919_v32 = vadd.f32 %v1696_v61, %v10782_v58 }
 0x403   :  { %5168 = vpow2.f32 %v4395_v21  ;;  %v4396_v13 = vmul.f32 -1.442695, %v1927_v50 }
 0x405   :  { %5170 = vpow2.f32 %v4396_v13 }
 0x410   :  { %v5169_v46 = vpop.eup %5168 }
 0x411   :  { %v1924_v10 = vadd.f32 1.0, %v5169_v46  ;;  %v10783_v46 = vld [vmem:[#allocation52_spill] sm:$0xff] }
 0x412   :  { %v5171_v40 = vpop.eup %5170 }
 0x413   :  { %5172 = vrcp.f32 %v1924_v10  ;;  %v1931_v44 = vadd.f32 1.0, %v5171_v40 }
 0x415   :  { %5174 = vrcp.f32 %v1931_v44 }
 0x41d   :  { %v1838_v0 = vpop.f32.mrf.mxu1  ;;  %v1767_v13 = vpop.f32.mrf.mxu0 }
 0x41e   :  { %v1839_v63 = vadd.f32 %v1838_v0, %v10781_v43  ;;  %v1942_v40 = vadd.f32 %v1767_v13, %v7027_v15  ;;  %v10788_v13 = vld [vmem:[#allocation7_spill] sm:$0xff] }
 0x41f   :  { %v1840_v49 = vpop.f32.mrf.mxu1 }
 0x420   :  { %v5173_v21 = vpop.eup %5172  ;;  %v1944_v23 = vadd.f32 %v1941_v38, %v1839_v63  ;;  %v1841_v50 = vadd.f32 %v1840_v49, %v7023_v9  ;;  %v10785_v49 = vld [vmem:[#allocation86_spill] sm:$0xff] }
 0x421   :  { %v1934_v20 = vmul.f32 %v5173_v21, %v1919_v32  ;;  %v10786_v21 = vld [vmem:[#allocation87_spill] sm:$0xff] }
 0x422   :  { %v4397_v19 = vmul.f32 -1.442695, %v1944_v23  ;;  %v1951_v14 = vadd.f32 %v1942_v40, %v1841_v50  ;;  %v5175_v0 = vpop.eup %5174 }
 0x423   :  { %v1935_v10 = vadd.f32 %v1934_v20, %v10783_v46  ;;  %v1937_v58 = vsub.f32 1.0, %v5175_v0  ;;  %v1939_v44 = vmul.f32 %v5175_v0, %v7558_v34  ;;  %v10787_v20 = vld [vmem:[#allocation88_spill] sm:$0xff]  ;;  %v10789_v46 = vld [vmem:[#allocation89_spill] sm:$0xff] }
 0x424   :  { %5176 = vpow2.f32 %v4397_v19  ;;  %v4398_v17 = vmul.f32 -1.442695, %v1951_v14  ;;  %v10791_v14 = vld [vmem:[#allocation91_spill] sm:$0xff] }
 0x425   :  { %5178 = vtanh.f32 %v1935_v10  ;;  %v10790_v10 = vld [vmem:[#allocation90_spill] sm:$0xff] }
 0x426   :  { %5180 = vpow2.f32 %v4398_v17  ;;  %v10784_v17 = vld [vmem:[#allocation85_spill] sm:$0xff] }
 0x431   :  { %v5177_v61 = vpop.eup %5176 }
 0x432   :  { %v5179_v43 = vpop.eup %5178  ;;  %v1948_v38 = vadd.f32 1.0, %v5177_v61 }
 0x433   :  { %v1938_v63 = vmul.f32 %v5179_v43, %v1937_v58  ;;  %v5181_v34 = vpop.eup %5180  ;;  %v1769_v43 = vpop.f32.mrf.mxu0 }
 0x434   :  { %5182 = vrcp.f32 %v1948_v38  ;;  %v1955_v58 = vadd.f32 1.0, %v5181_v34  ;;  %v1943_v0 = vadd.f32 %v1769_v43, %v7053_v37  ;;  %v10792_v38 = vld [vmem:[#allocation92_spill] sm:$0xff]  ;;  %v10794_v34 = vld [vmem:[#allocation94_spill] sm:$0xff]  ;;  %v10796_v43 = vld [vmem:[#allocation97_spill] sm:$0xff] }
 0x435   :  { %v7967_v23 = vadd.f32 %v1939_v44, %v1938_v63  ;;  %v10793_v63 = vld [vmem:[#allocation93_spill] sm:$0xff] }
 0x436   :  { %5184 = vrcp.f32 %v1955_v58  ;;  %v10797_v58 = vld [vmem:[#allocation98_spill] sm:$0xff] }
 0x437   :  { %2032 = vmatmul.mubr.f32.vlgmr.msra.gmra.mxu1 %v7967_v23  ;;  %2103 = vmatmul.mubr.f32.vlgmr.msra.gmra.mxu0 %v7967_v23 }
 0x438   :  { %2110 = vmatpush1.msra.mxu1 %v7565_v59  ;;  %2181 = vmatpush1.msra.mxu0 %v7571_v8 }
 0x439   :  { %2111 = vmatprep.subr.mxu1 %v7577_v29  ;;  %2182 = vmatprep.subr.mxu0 %v7583_v12 }
 0x43a   :  { %2112 = vmatpush1.msra.mxu1 %v7589_v57  ;;  %2183 = vmatpush1.msra.mxu0 %v7595_v54 }
 0x43b   :  { %2113 = vmatprep.subr.mxu1 %v7601_v26  ;;  %2184 = vmatprep.subr.mxu0 %v7607_v60 }
 0x43c   :  { %2114 = vmatpush1.msra.mxu1 %v7613_v51  ;;  %2185 = vmatpush1.msra.mxu0 %v7619_v4 }
 0x43d   :  { %2115 = vmatprep.subr.mxu1 %v7625_v18  ;;  %2186 = vmatprep.subr.mxu0 %v10784_v17 }
 0x43e   :  { %v1909_v32 = vpop.f32.mrf.mxu0  ;;  %2116 = vmatpush1.msra.mxu1 %v10785_v49  ;;  %2187 = vmatpush1.msra.mxu0 %v10786_v21 }
 0x43f   :  { %2117 = vmatprep.subr.mxu1 %v10787_v20  ;;  %2188 = vmatprep.subr.mxu0 %v7655_v41  ;;  %v1910_v19 = vadd.f32 %v1909_v32, %v10788_v13  ;;  %v10795_v32 = vld [vmem:[#allocation95_spill] sm:$0xff] }
 0x440   :  { %v4808_v50 = vpop.f32.mrf.mxu0  ;;  %2118 = vmatpush1.msra.mxu1 %v10789_v46  ;;  %2189 = vmatpush1.msra.mxu0 %v10790_v10 }
 0x441   :  { %v5183_v40 = vpop.eup %5182  ;;  %2119 = vmatprep.subr.mxu1 %v10791_v14  ;;  %2190 = vmatprep.subr.mxu0 %v7680_v30  ;;  %v10799_v50 = vld [vmem:[#allocation100_spill] sm:$0xff] }
 0x442   :  { %v1958_v61 = vmul.f32 %v5183_v40, %v1910_v19  ;;  %2120 = vmatpush1.msra.mxu1 %v7687_v53  ;;  %2191 = vmatpush1.msra.mxu0 %v10792_v38  ;;  %v10798_v19 = vld [vmem:[#allocation99_spill] sm:$0xff]  ;;  %v10800_v40 = vld [vmem:[#allocation101_spill] sm:$0xff] }
 0x443   :  { %2121 = vmatprep.subr.mxu1 %v10793_v63  ;;  %2192 = vmatprep.subr.mxu0 %v7705_v48 }
 0x444   :  { %v1959_v44 = vadd.f32 %v1958_v61, %v1943_v0  ;;  %2122 = vmatpush1.msra.mxu1 %v7711_v16  ;;  %2193 = vmatpush1.msra.mxu0 %v10794_v34  ;;  %v10801_v0 = vld [vmem:[#allocation102_spill] sm:$0xff]  ;;  %v10802_v61 = vld [vmem:[#allocation103_spill] sm:$0xff]  ;;  %v10803_v34 = vld [vmem:[#allocation37_spill] sm:$0xff] }
 0x445   :  { %2123 = vmatprep.subr.mxu1 %v10795_v32  ;;  %2194 = vmatprep.subr.mxu0 %v7729_v55  ;;  %v10804_v32 = vld [vmem:[#allocation38_spill] sm:$0xff]  ;;  %v10805_v55 = vld [vmem:[#allocation53_spill] sm:$0xff] }
 0x446   :  { %5186 = vtanh.f32 %v1959_v44  ;;  %2124 = vmatpush1.msra.mxu1 %v10796_v43  ;;  %2195 = vmatpush1.msra.mxu0 %v10797_v58  ;;  %v10806_v44 = vld [vmem:[#allocation112_spill] sm:$0xff]  ;;  %v10807_v43 = vld [vmem:[#allocation113_spill] sm:$0xff]  ;;  %v10808_v58 = vld [vmem:[#allocation114_spill] sm:$0xff] }
 0x447   :  { %2125 = vmatprep.subr.mxu1 %v10798_v19  ;;  %2196 = vmatprep.subr.mxu0 %v10799_v50 }
 0x448   :  { %2126 = vmatpush1.msra.mxu1 %v10800_v40  ;;  %2197 = vmatpush1.msra.mxu0 %v10801_v0  ;;  %v10809_v40 = vld [vmem:[#allocation117_spill] sm:$0xff] }
 0x449   :  { %2127 = vmatprep.subr.mxu1 %v10802_v61  ;;  %2198 = vmatprep.subr.mxu0 %v10803_v34  ;;  %v8020_v34 = vld [vmem:[%s10429_s24 + $0xe0] sm:$0xff] }
 0x44a   :  { %2128 = vmatpush1.msra.mxu1 %v10804_v32  ;;  %2199 = vmatpush1.msra.mxu0 %v10805_v55  ;;  %10810 = vst [vmem:[#allocation10_spill] sm:$0xff] %v8020_v34 }
 0x44b   :  { %2129 = vmatprep.subr.mxu1 %v10806_v44  ;;  %2200 = vmatprep.subr.mxu0 %v10807_v43  ;;  %v8026_v44 = vld [vmem:[%s9916_s8 + $0x60] sm:$0xff]  ;;  %v8098_v43 = vld [vmem:[%s9916_s8 + $0x18] sm:$0xff] }
 0x44c   :  { %2130 = vmatpush1.msra.mxu1 %v10808_v58  ;;  %2201 = vmatpush1.msra.mxu0 %v7813_v42  ;;  %10811 = vst [vmem:[#allocation11_spill] sm:$0xff] %v8026_v44  ;;  %v5185_v58 = vpop.eup %5184 }
 0x44d   :  { %2131 = vmatprep.subr.mxu1 %v7819_v25  ;;  %2202 = vmatprep.subr.mxu0 %v10809_v40  ;;  %v8032_v25 = vld [vmem:[%s10429_s24 + $0xb8] sm:$0xff]  ;;  %v8038_v40 = vld [vmem:[%s9916_s8 + $0x50] sm:$0xff]  ;;  %v1963_v55 = vmul.f32 %v5185_v58, %v7847_v11  ;;  %v10853_v11 = vld [vmem:[#allocation32_spill] sm:$0xff] }
 0x44e   :  { %2132 = vmatpush1.msra.mxu1 %v8020_v34  ;;  %2203 = vmatpush1.msra.mxu0 %v8026_v44  ;;  %10812 = vst [vmem:[#allocation104_spill] sm:$0xff] %v8032_v25  ;;  %10813 = vst [vmem:[#allocation12_spill] sm:$0xff] %v8038_v40  ;;  %v8044_v34 = vld [vmem:[%s10429_s24 + $0xb0] sm:$0xff]  ;;  %v8050_v44 = vld [vmem:[%s9916_s8 + $0x48] sm:$0xff] }
 0x44f   :  { %2133 = vmatprep.subr.mxu1 %v8032_v25  ;;  %2204 = vmatprep.subr.mxu0 %v8038_v40  ;;  %10814 = vst [vmem:[#allocation13_spill] sm:$0xff] %v8044_v34  ;;  %10815 = vst [vmem:[#allocation105_spill] sm:$0xff] %v8050_v44  ;;  %v8056_v25 = vld [vmem:[%s10429_s24 + $0x88] sm:$0xff]  ;;  %v8062_v40 = vld [vmem:[%s9916_s8 + $0x38] sm:$0xff] }
 0x450   :  { %2134 = vmatpush1.msra.mxu1 %v8044_v34  ;;  %2205 = vmatpush1.msra.mxu0 %v8050_v44  ;;  %10816 = vst [vmem:[#allocation14_spill] sm:$0xff] %v8056_v25  ;;  %10817 = vst [vmem:[#allocation15_spill] sm:$0xff] %v8062_v40  ;;  %v8068_v34 = vld [vmem:[%s10429_s24 + $0x80] sm:$0xff]  ;;  %v8074_v44 = vld [vmem:[%s9916_s8 + $0x30] sm:$0xff] }
 0x451   :  { %2135 = vmatprep.subr.mxu1 %v8056_v25  ;;  %2206 = vmatprep.subr.mxu0 %v8062_v40  ;;  %10818 = vst [vmem:[#allocation4_spill] sm:$0xff] %v8068_v34  ;;  %10819 = vst [vmem:[#allocation16_spill] sm:$0xff] %v8074_v44  ;;  %v1961_v25 = vsub.f32 1.0, %v5185_v58  ;;  %v8080_v40 = vld [vmem:[%s10429_s24 + $0x58] sm:$0xff]  ;;  %v8126_v58 = vld [vmem:[%s9916_s8] sm:$0xff] }
 0x452   :  { %2136 = vmatpush1.msra.mxu1 %v8068_v34  ;;  %2207 = vmatpush1.msra.mxu0 %v8074_v44  ;;  %10820 = vst [vmem:[#allocation106_spill] sm:$0xff] %v8080_v40  ;;  %v8086_v34 = vld [vmem:[%s9916_s8 + $0x20] sm:$0xff]  ;;  %v8092_v44 = vld [vmem:[%s10429_s24 + $0x50] sm:$0xff] }
 0x453   :  { %v5187_v42 = vpop.eup %5186  ;;  %2137 = vmatprep.subr.mxu1 %v8080_v40  ;;  %10821 = vst [vmem:[#allocation107_spill] sm:$0xff] %v8086_v34  ;;  %2208 = vmatprep.subr.mxu0 %v8086_v34  ;;  %10822 = vst [vmem:[#allocation108_spill] sm:$0xff] %v8092_v44  ;;  %v8105_v34 = vld [vmem:[%s10429_s24 + $0x28] sm:$0xff] }
 0x454   :  { %2138 = vmatpush1.msra.mxu1 %v8092_v44  ;;  %2209 = vmatpush1.msra.mxu0 %v8098_v43  ;;  %v1962_v40 = vmul.f32 %v5187_v42, %v1961_v25  ;;  %v8111_v44 = vld [vmem:[%s9916_s8 + $0x8] sm:$0xff]  ;;  %v8117_v42 = vld [vmem:[%s10429_s24 + $0x20] sm:$0xff] }
 0x455   :  { %2139 = vmatprep.subr.mxu1 %v8105_v34  ;;  %2210 = vmatprep.subr.mxu0 %v8111_v44 }
 0x456   :  { %2140 = vmatpush1.msra.mxu1 %v8117_v42  ;;  %2173 = vmatprep.mubr.f32.mxu1 %v10458_v35  ;;  %v8121_v25 = vadd.f32 %v1963_v55, %v1962_v40  ;;  %v8138_v55 = vld [vmem:[%s9916_s8 + $0x178] sm:$0xff]  ;;  %v8147_v40 = vld [vmem:[%s9916_s8 + $0x160] sm:$0xff] }
 0x457   :  { %2211 = vmatpush1.msra.mxu0 %v8126_v58  ;;  %2244 = vmatprep.mubr.f32.mxu0 %v10458_v35 }
 0x458   :  { %10823 = vst [vmem:[#allocation109_spill] sm:$0xff] %v8121_v25  ;;  %2174 = vmatmul.mubr.f32.vlgmr.msra.gmra.mxu1 %v7967_v23  ;;  %2245 = vmatmul.mubr.f32.vlgmr.msra.gmra.mxu0 %v8121_v25 }
 0x459   :  { %4809 = vmatprep.subr.mxu1 %v10458_v35  ;;  %4841 = vmatprep.mubr.msk.f32.mxu1 %vm5599_vm0, %v10458_v35 }
 0x45a   :  { %4810 = vmatpush3.msra.mxu1 %v8138_v55  ;;  %2375 = vmatprep.subr.mxu0 %v7121_v22  ;;  %v8156_v22 = vld [vmem:[%s9916_s8 + $0x148] sm:$0xff] }
 0x45b   :  { %4811 = vmatprep.subr.mxu1 %v10458_v35  ;;  %2376 = vmatpush1.msra.mxu0 %v7128_v27  ;;  %10824 = vst [vmem:[#allocation110_spill] sm:$0xff] %v8156_v22  ;;  %v8165_v27 = vld [vmem:[%s9916_s8 + $0x130] sm:$0xff] }
 0x45c   :  { %4812 = vmatpush3.msra.mxu1 %v8147_v40  ;;  %2377 = vmatprep.subr.mxu0 %v7135_v28  ;;  %10825 = vst [vmem:[#allocation111_spill] sm:$0xff] %v8165_v27  ;;  %v8174_v28 = vld [vmem:[%s9916_s8 + $0x118] sm:$0xff] }
 0x45d   :  { %4813 = vmatprep.subr.mxu1 %v10458_v35  ;;  %2378 = vmatpush1.msra.mxu0 %v7142_v62  ;;  %10826 = vst [vmem:[#allocation39_spill] sm:$0xff] %v8174_v28  ;;  %v8183_v62 = vld [vmem:[%s9916_s8 + $0x100] sm:$0xff] }
 0x45e   :  { %4814 = vmatpush3.msra.mxu1 %v8156_v22  ;;  %2379 = vmatprep.subr.mxu0 %v7149_v24  ;;  %10827 = vst [vmem:[#allocation40_spill] sm:$0xff] %v8183_v62  ;;  %v8192_v24 = vld [vmem:[%s9916_s8 + $0xe8] sm:$0xff]  ;;  %v10890_v22 = vld [vmem:[#allocation6_spill] sm:$0xff] }
 0x45f   :  { %4815 = vmatprep.subr.mxu1 %v10458_v35  ;;  %2380 = vmatpush1.msra.mxu0 %v7156_v1  ;;  %10828 = vst [vmem:[#allocation52_spill] sm:$0xff] %v8192_v24  ;;  %v8201_v1 = vld [vmem:[%s9916_s8 + $0xd0] sm:$0xff] }
 0x460   :  { %4816 = vmatpush3.msra.mxu1 %v8165_v27  ;;  %2381 = vmatprep.subr.mxu0 %v7163_v7  ;;  %10829 = vst [vmem:[#allocation85_spill] sm:$0xff] %v8201_v1  ;;  %v8210_v7 = vld [vmem:[%s9916_s8 + $0xb8] sm:$0xff] }
 0x461   :  { %4817 = vmatprep.subr.mxu1 %v10458_v35  ;;  %2382 = vmatpush1.msra.mxu0 %v7170_v2  ;;  %10830 = vst [vmem:[#allocation86_spill] sm:$0xff] %v8210_v7  ;;  %v8219_v2 = vld [vmem:[%s9916_s8 + $0xa0] sm:$0xff] }
 0x462   :  { %4818 = vmatpush3.msra.mxu1 %v8174_v28  ;;  %2383 = vmatprep.subr.mxu0 %v7177_v6  ;;  %10831 = vst [vmem:[#allocation87_spill] sm:$0xff] %v8219_v2  ;;  %v10832_v6 = vld [vmem:[#allocation17_spill] sm:$0xff] }
 0x463   :  { %4819 = vmatprep.subr.mxu1 %v10458_v35  ;;  %2384 = vmatpush1.msra.mxu0 %v7184_v52  ;;  %v8228_v52 = vld [vmem:[%s9916_s8 + $0x88] sm:$0xff] }
 0x464   :  { %4820 = vmatpush3.msra.mxu1 %v8183_v62  ;;  %2385 = vmatprep.subr.mxu0 %v7191_v56  ;;  %10833 = vst [vmem:[#allocation88_spill] sm:$0xff] %v8228_v52  ;;  %v10834_v56 = vld [vmem:[#allocation18_spill] sm:$0xff] }
 0x465   :  { %4821 = vmatprep.subr.mxu1 %v10458_v35  ;;  %2386 = vmatpush1.msra.mxu0 %v7198_v31  ;;  %v10835_v31 = vld [vmem:[#allocation19_spill] sm:$0xff] }
 0x466   :  { %4822 = vmatpush3.msra.mxu1 %v8192_v24  ;;  %2387 = vmatprep.subr.mxu0 %v10713_v33  ;;  %v8237_v33 = vld [vmem:[%s9916_s8 + $0x70] sm:$0xff] }
 0x467   :  { %4823 = vmatprep.subr.mxu1 %v10458_v35  ;;  %2388 = vmatpush1.msra.mxu0 %v10714_v5  ;;  %10836 = vst [vmem:[#allocation89_spill] sm:$0xff] %v8237_v33  ;;  %v10837_v5 = vld [vmem:[#allocation20_spill] sm:$0xff] }
 0x468   :  { %4824 = vmatpush3.msra.mxu1 %v8201_v1  ;;  %2389 = vmatprep.subr.mxu0 %v10716_v3  ;;  %v10838_v3 = vld [vmem:[#allocation21_spill] sm:$0xff] }
 0x469   :  { %4825 = vmatprep.subr.mxu1 %v10458_v35  ;;  %2390 = vmatpush1.msra.mxu0 %v10717_v36  ;;  %v8246_v36 = vld [vmem:[%s9916_s8 + $0x58] sm:$0xff] }
 0x46a   :  { %4826 = vmatpush3.msra.mxu1 %v8210_v7  ;;  %2391 = vmatprep.subr.mxu0 %v10719_v39  ;;  %10839 = vst [vmem:[#allocation90_spill] sm:$0xff] %v8246_v36  ;;  %v10840_v39 = vld [vmem:[#allocation22_spill] sm:$0xff] }
 0x46b   :  { %4827 = vmatprep.subr.mxu1 %v10458_v35  ;;  %2392 = vmatpush1.msra.mxu0 %v10720_v45  ;;  %v10841_v45 = vld [vmem:[#allocation23_spill] sm:$0xff] }
 0x46c   :  { %4828 = vmatpush3.msra.mxu1 %v8219_v2  ;;  %2393 = vmatprep.subr.mxu0 %v10722_v47  ;;  %v8255_v47 = vld [vmem:[%s9916_s8 + $0x40] sm:$0xff]  ;;  %v10886_v2 = vld [vmem:[#allocation41_spill] sm:$0xff] }
 0x46d   :  { %4829 = vmatprep.subr.mxu1 %v10458_v35  ;;  %2394 = vmatpush1.msra.mxu0 %v10832_v6  ;;  %10842 = vst [vmem:[#allocation91_spill] sm:$0xff] %v8255_v47  ;;  %v10843_v6 = vld [vmem:[#allocation24_spill] sm:$0xff] }
 0x46e   :  { %4830 = vmatpush3.msra.mxu1 %v8228_v52  ;;  %2395 = vmatprep.subr.mxu0 %v10834_v56  ;;  %v10844_v56 = vld [vmem:[#allocation25_spill] sm:$0xff] }
 0x46f   :  { %4831 = vmatprep.subr.mxu1 %v10458_v35  ;;  %2396 = vmatpush1.msra.mxu0 %v10835_v31  ;;  %v8264_v31 = vld [vmem:[%s9916_s8 + $0x28] sm:$0xff] }
 0x470   :  { %4832 = vmatpush3.msra.mxu1 %v8237_v33  ;;  %2397 = vmatprep.subr.mxu0 %v10837_v5  ;;  %10845 = vst [vmem:[#allocation92_spill] sm:$0xff] %v8264_v31  ;;  %v10846_v5 = vld [vmem:[#allocation26_spill] sm:$0xff]  ;;  %v10865_v33 = vld [vmem:[#allocation65_spill] sm:$0xff] }
 0x471   :  { %4833 = vmatprep.subr.mxu1 %v10458_v35  ;;  %2398 = vmatpush1.msra.mxu0 %v10838_v3  ;;  %v10847_v3 = vld [vmem:[#allocation27_spill] sm:$0xff] }
 0x472   :  { %4834 = vmatpush3.msra.mxu1 %v8246_v36  ;;  %2399 = vmatprep.subr.mxu0 %v10840_v39  ;;  %v8273_v39 = vld [vmem:[%s9916_s8 + $0x10] sm:$0xff]  ;;  %v10863_v36 = vld [vmem:[#allocation63_spill] sm:$0xff] }
 0x473   :  { %4835 = vmatprep.subr.mxu1 %v10458_v35  ;;  %2400 = vmatpush1.msra.mxu0 %v10841_v45  ;;  %10848 = vst [vmem:[#allocation93_spill] sm:$0xff] %v8273_v39  ;;  %v10849_v45 = vld [vmem:[#allocation28_spill] sm:$0xff] }
 0x474   :  { %4836 = vmatpush3.msra.mxu1 %v8255_v47  ;;  %2401 = vmatprep.subr.mxu0 %v10843_v6  ;;  %v10850_v6 = vld [vmem:[#allocation29_spill] sm:$0xff]  ;;  %v10858_v47 = vld [vmem:[#allocation47_spill] sm:$0xff] }
 0x475   :  { %4837 = vmatprep.subr.mxu1 %v10458_v35  ;;  %2402 = vmatpush1.msra.mxu0 %v10844_v56  ;;  %v10851_v56 = vld [vmem:[#allocation30_spill] sm:$0xff] }
 0x476   :  { %4838 = vmatpush3.msra.mxu1 %v8264_v31  ;;  %2403 = vmatprep.subr.mxu0 %v10846_v5  ;;  %v10852_v5 = vld [vmem:[#allocation31_spill] sm:$0xff]  ;;  %v10855_v31 = vld [vmem:[#allocation36_spill] sm:$0xff] }
 0x477   :  { %4839 = vmatprep.subr.mxu1 %v10458_v35  ;;  %2404 = vmatpush1.msra.mxu0 %v10847_v3  ;;  %v10854_v3 = vld [vmem:[#allocation35_spill] sm:$0xff] }
 0x478   :  { %4840 = vmatpush3.msra.mxu1 %v8273_v39  ;;  %2405 = vmatprep.subr.mxu0 %v10849_v45  ;;  %v10856_v39 = vld [vmem:[#allocation33_spill] sm:$0xff]  ;;  %v10857_v45 = vld [vmem:[#allocation34_spill] sm:$0xff] }
 0x479   :  { %4842 = vmatmul.mubr.f32.vlgmr.msra.gmra.mxu1 %v8121_v25  ;;  %2446 = vmatprep.subr.mxu1 %v10850_v6  ;;  %v10859_v6 = vld [vmem:[#allocation59_spill] sm:$0xff] }
 0x47a   :  { %2447 = vmatpush1.msra.mxu1 %v10851_v56  ;;  %2406 = vmatpush1.msra.mxu0 %v10852_v5  ;;  %v10860_v56 = vld [vmem:[#allocation60_spill] sm:$0xff]  ;;  %v10861_v5 = vld [vmem:[#allocation61_spill] sm:$0xff] }
 0x47b   :  { %2448 = vmatprep.subr.mxu1 %v10853_v11  ;;  %2439 = vmatprep.mubr.f32.mxu0 %v10458_v35  ;;  %v10862_v11 = vld [vmem:[#allocation62_spill] sm:$0xff] }
 0x47c   :  { %2449 = vmatpush1.msra.mxu1 %v10854_v3  ;;  %2510 = vmatprep.mubr.f32.mxu1 %v10458_v35  ;;  %v10864_v3 = vld [vmem:[#allocation64_spill] sm:$0xff] }
 0x47d   :  { %2450 = vmatprep.subr.mxu1 %v10855_v31  ;;  %2517 = vmatprep.subr.mxu0 %v10856_v39  ;;  %v10866_v31 = vld [vmem:[#allocation66_spill] sm:$0xff]  ;;  %v10867_v39 = vld [vmem:[#allocation67_spill] sm:$0xff] }
 0x47e   :  { %2451 = vmatpush1.msra.mxu1 %v10857_v45  ;;  %v10868_v45 = vld [vmem:[#allocation68_spill] sm:$0xff] }
 0x47f   :  { %2452 = vmatprep.subr.mxu1 %v10858_v47  ;;  %v10869_v47 = vld [vmem:[#allocation69_spill] sm:$0xff] }
 0x480   :  { %2453 = vmatpush1.msra.mxu1 %v10859_v6  ;;  %v10870_v6 = vld [vmem:[#allocation70_spill] sm:$0xff] }
 0x481   :  { %2454 = vmatprep.subr.mxu1 %v10860_v56  ;;  %v10871_v56 = vld [vmem:[#allocation71_spill] sm:$0xff] }
 0x482   :  { %2455 = vmatpush1.msra.mxu1 %v10861_v5  ;;  %v10872_v5 = vld [vmem:[#allocation72_spill] sm:$0xff] }
 0x483   :  { %2456 = vmatprep.subr.mxu1 %v10862_v11  ;;  %v10873_v11 = vld [vmem:[#allocation73_spill] sm:$0xff] }
 0x484   :  { %2457 = vmatpush1.msra.mxu1 %v10863_v36  ;;  %v10874_v36 = vld [vmem:[#allocation74_spill] sm:$0xff] }
 0x485   :  { %2458 = vmatprep.subr.mxu1 %v10864_v3  ;;  %v10875_v3 = vld [vmem:[#allocation75_spill] sm:$0xff] }
 0x486   :  { %2459 = vmatpush1.msra.mxu1 %v10865_v33  ;;  %v10876_v33 = vld [vmem:[#allocation76_spill] sm:$0xff] }
 0x487   :  { %2460 = vmatprep.subr.mxu1 %v10866_v31  ;;  %v10877_v31 = vld [vmem:[#allocation77_spill] sm:$0xff] }
 0x488   :  { %2461 = vmatpush1.msra.mxu1 %v10867_v39  ;;  %v10878_v39 = vld [vmem:[#allocation78_spill] sm:$0xff] }
 0x489   :  { %2462 = vmatprep.subr.mxu1 %v10868_v45  ;;  %v10879_v45 = vld [vmem:[#allocation79_spill] sm:$0xff] }
 0x48a   :  { %2463 = vmatpush1.msra.mxu1 %v10869_v47  ;;  %v10880_v47 = vld [vmem:[#allocation80_spill] sm:$0xff] }
 0x48b   :  { %2464 = vmatprep.subr.mxu1 %v10870_v6  ;;  %v10881_v6 = vld [vmem:[#allocation81_spill] sm:$0xff] }
 0x48c   :  { %2465 = vmatpush1.msra.mxu1 %v10871_v56  ;;  %v10882_v56 = vld [vmem:[#allocation82_spill] sm:$0xff] }
 0x48d   :  { %2466 = vmatprep.subr.mxu1 %v10872_v5  ;;  %v10883_v5 = vld [vmem:[#allocation83_spill] sm:$0xff] }
 0x48e   :  { %2467 = vmatpush1.msra.mxu1 %v10873_v11  ;;  %v10884_v11 = vld [vmem:[#allocation84_spill] sm:$0xff] }
 0x48f   :  { %2468 = vmatprep.subr.mxu1 %v10874_v36 }
 0x490   :  { %2469 = vmatpush1.msra.mxu1 %v10875_v3  ;;  %v10885_v3 = vld [vmem:[#allocation49_spill] sm:$0xff] }
 0x491   :  { %2470 = vmatprep.subr.mxu1 %v10876_v33 }
 0x492   :  { %2471 = vmatpush1.msra.mxu1 %v10877_v31 }
 0x493   :  { %2472 = vmatprep.subr.mxu1 %v10878_v39  ;;  %v10887_v39 = vld [vmem:[#allocation51_spill] sm:$0xff] }
 0x494   :  { %2473 = vmatpush1.msra.mxu1 %v10879_v45  ;;  %v10888_v45 = vld [vmem:[#allocation42_spill] sm:$0xff] }
 0x495   :  { %2474 = vmatprep.subr.mxu1 %v10880_v47 }
 0x496   :  { %2475 = vmatpush1.msra.mxu1 %v10881_v6 }
 0x497   :  { %2476 = vmatprep.subr.mxu1 %v10882_v56 }
 0x498   :  { %2477 = vmatpush1.msra.mxu1 %v10883_v5 }
 0x499   :  { %2588 = vmatprep.subr.mxu1 %v10884_v11 }
 0x4f7   :  { %v2033_v36 = vpop.f32.mrf.mxu1  ;;  %v2104_v5 = vpop.f32.mrf.mxu0 }
 0x4f8   :  { %v2325_v52 = vadd.f32 %v2033_v36, %v10885_v3  ;;  %v10889_v36 = vld [vmem:[#allocation5_spill] sm:$0xff] }
 0x4f9   :  { %v2035_v33 = vpop.f32.mrf.mxu1  ;;  %v2106_v11 = vpop.f32.mrf.mxu0 }
 0x4fa   :  { %v2328_v31 = vadd.f32 %v2325_v52, %v10886_v2  ;;  %v2326_v1 = vadd.f32 %v2035_v33, %v10887_v39  ;;  %v2349_v3 = vadd.f32 %v2106_v11, %v10889_v36  ;;  %v10891_v52 = vld [vmem:[#allocation58_spill] sm:$0xff] }
 0x4fc   :  { %v4399_v7 = vmul.f32 -1.442695, %v2328_v31  ;;  %v2335_v47 = vadd.f32 %v2326_v1, %v10888_v45  ;;  %v2327_v31 = vadd.f32 %v2104_v5, %v10891_v52 }
 0x4fe   :  { %5188 = vpow2.f32 %v4399_v7  ;;  %v4400_v24 = vmul.f32 -1.442695, %v2335_v47 }
 0x500   :  { %5190 = vpow2.f32 %v4400_v24 }
 0x50b   :  { %v5189_v6 = vpop.eup %5188 }
 0x50c   :  { %v2332_v56 = vadd.f32 1.0, %v5189_v6  ;;  %v10892_v6 = vld [vmem:[#allocation55_spill] sm:$0xff] }
 0x50d   :  { %v5191_v62 = vpop.eup %5190 }
 0x50e   :  { %5192 = vrcp.f32 %v2332_v56  ;;  %v2339_v28 = vadd.f32 1.0, %v5191_v62 }
 0x510   :  { %5194 = vrcp.f32 %v2339_v28 }
 0x518   :  { %v2246_v27 = vpop.f32.mrf.mxu0  ;;  %v2175_v24 = vpop.f32.mrf.mxu1 }
 0x519   :  { %v2247_v2 = vadd.f32 %v2246_v27, %v10890_v22  ;;  %v2350_v62 = vadd.f32 %v2175_v24, %v7027_v15  ;;  %v10918_v24 = vld [vmem:[#allocation107_spill] sm:$0xff] }
 0x51a   :  { %v2248_v33 = vpop.f32.mrf.mxu0 }
 0x51b   :  { %v5193_v7 = vpop.eup %5192  ;;  %v2352_v39 = vadd.f32 %v2349_v3, %v2247_v2  ;;  %v2249_v47 = vadd.f32 %v2248_v33, %v7023_v9 }
 0x51c   :  { %v2342_v1 = vmul.f32 %v5193_v7, %v2327_v31  ;;  %v10916_v31 = vld [vmem:[#allocation16_spill] sm:$0xff] }
 0x51d   :  { %v4401_v45 = vmul.f32 -1.442695, %v2352_v39  ;;  %v2359_v11 = vadd.f32 %v2350_v62, %v2249_v47  ;;  %v5195_v27 = vpop.eup %5194  ;;  %v8408_v62 = vld [vmem:[%s10429_s24 + $0x2d8] sm:$0xff] }
 0x51e   :  { %v2343_v56 = vadd.f32 %v2342_v1, %v10892_v6  ;;  %v2345_v52 = vsub.f32 1.0, %v5195_v27  ;;  %v2347_v28 = vmul.f32 %v5195_v27, %v7967_v23  ;;  %v10917_v1 = vld [vmem:[#allocation106_spill] sm:$0xff]  ;;  %v8422_v27 = vld [vmem:[%s10429_s24 + $0x2a8] sm:$0xff] }
 0x51f   :  { %5196 = vpow2.f32 %v4401_v45  ;;  %v4402_v36 = vmul.f32 -1.442695, %v2359_v11  ;;  %v10919_v45 = vld [vmem:[#allocation108_spill] sm:$0xff]  ;;  %v8415_v11 = vld [vmem:[%s10429_s24 + $0x2d0] sm:$0xff] }
 0x520   :  { %5198 = vtanh.f32 %v2343_v56 }
 0x521   :  { %5200 = vpow2.f32 %v4402_v36  ;;  %v10914_v36 = vld [vmem:[#allocation15_spill] sm:$0xff] }
 0x52c   :  { %v5197_v5 = vpop.eup %5196 }
 0x52d   :  { %v5199_v22 = vpop.eup %5198  ;;  %v2356_v3 = vadd.f32 1.0, %v5197_v5  ;;  %v8429_v5 = vld [vmem:[%s10429_s24 + $0x2a0] sm:$0xff] }
 0x52e   :  { %v2346_v2 = vmul.f32 %v5199_v22, %v2345_v52  ;;  %v5201_v23 = vpop.eup %5200  ;;  %v2177_v22 = vpop.f32.mrf.mxu1  ;;  %v10915_v52 = vld [vmem:[#allocation4_spill] sm:$0xff] }
 0x52f   :  { %5202 = vrcp.f32 %v2356_v3  ;;  %v10921_v3 = vld [vmem:[#allocation110_spill] sm:$0xff] }
 0x530   :  { %v8326_v39 = vadd.f32 %v2347_v28, %v2346_v2  ;;  %v8436_v2 = vld [vmem:[%s10429_s24 + $0x278] sm:$0xff]  ;;  %v8443_v28 = vld [vmem:[%s10429_s24 + $0x270] sm:$0xff] }
 0x532   :  { %2440 = vmatmul.mubr.f32.vlgmr.msra.gmra.mxu0 %v8326_v39  ;;  %2511 = vmatmul.mubr.f32.vlgmr.msra.gmra.mxu1 %v8326_v39 }
 0x533   :  { %2518 = vmatpush1.msra.mxu0 %v7565_v59  ;;  %2589 = vmatpush1.msra.mxu1 %v7571_v8  ;;  %v2363_v59 = vadd.f32 1.0, %v5201_v23  ;;  %v10922_v23 = vld [vmem:[#allocation111_spill] sm:$0xff] }
 0x534   :  { %2519 = vmatprep.subr.mxu0 %v7577_v29  ;;  %2590 = vmatprep.subr.mxu1 %v7583_v12 }
 0x535   :  { %2520 = vmatpush1.msra.mxu0 %v7589_v57  ;;  %2591 = vmatpush1.msra.mxu1 %v7595_v54  ;;  %v2351_v54 = vadd.f32 %v2177_v22, %v7053_v37  ;;  %5204 = vrcp.f32 %v2363_v59  ;;  %v8450_v22 = vld [vmem:[%s10429_s24 + $0x248] sm:$0xff]  ;;  %v8457_v59 = vld [vmem:[%s10429_s24 + $0x240] sm:$0xff] }
 0x536   :  { %2521 = vmatprep.subr.mxu0 %v7601_v26  ;;  %2592 = vmatprep.subr.mxu1 %v7607_v60 }
 0x537   :  { %2522 = vmatpush1.msra.mxu0 %v7613_v51  ;;  %2593 = vmatpush1.msra.mxu1 %v7619_v4  ;;  %v10893_v51 = vld [vmem:[#allocation94_spill] sm:$0xff]  ;;  %v10894_v4 = vld [vmem:[#allocation95_spill] sm:$0xff] }
 0x538   :  { %2523 = vmatprep.subr.mxu0 %v7625_v18  ;;  %2594 = vmatprep.subr.mxu1 %v10784_v17  ;;  %v10895_v18 = vld [vmem:[#allocation96_spill] sm:$0xff] }
 0x539   :  { %v2317_v8 = vpop.f32.mrf.mxu1  ;;  %2524 = vmatpush1.msra.mxu0 %v10785_v49  ;;  %2595 = vmatpush1.msra.mxu1 %v10786_v21  ;;  %v10901_v17 = vld [vmem:[#allocation112_spill] sm:$0xff]  ;;  %v10902_v49 = vld [vmem:[#allocation113_spill] sm:$0xff]  ;;  %v10903_v21 = vld [vmem:[#allocation114_spill] sm:$0xff] }
 0x53a   :  { %2525 = vmatprep.subr.mxu0 %v10787_v20  ;;  %2596 = vmatprep.subr.mxu1 %v7655_v41  ;;  %v2318_v29 = vadd.f32 %v2317_v8, %v10788_v13  ;;  %v10896_v41 = vld [vmem:[#allocation97_spill] sm:$0xff]  ;;  %v10904_v20 = vld [vmem:[#allocation115_spill] sm:$0xff] }
 0x53b   :  { %v4843_v12 = vpop.f32.mrf.mxu1  ;;  %2526 = vmatpush1.msra.mxu0 %v10789_v46  ;;  %2597 = vmatpush1.msra.mxu1 %v10790_v10  ;;  %v10905_v46 = vld [vmem:[#allocation116_spill] sm:$0xff]  ;;  %v10906_v10 = vld [vmem:[#allocation117_spill] sm:$0xff]  ;;  %v10923_v8 = vld [vmem:[#allocation39_spill] sm:$0xff] }
 0x53c   :  { %v5203_v57 = vpop.eup %5202  ;;  %2527 = vmatprep.subr.mxu0 %v10791_v14  ;;  %2598 = vmatprep.subr.mxu1 %v7680_v30  ;;  %v10897_v30 = vld [vmem:[#allocation98_spill] sm:$0xff] }
 0x53d   :  { %v2366_v26 = vmul.f32 %v5203_v57, %v2318_v29  ;;  %2528 = vmatpush1.msra.mxu0 %v7687_v53  ;;  %2599 = vmatpush1.msra.mxu1 %v10792_v38  ;;  %v10898_v53 = vld [vmem:[#allocation101_spill] sm:$0xff]  ;;  %v10907_v14 = vld [vmem:[#allocation10_spill] sm:$0xff]  ;;  %v10908_v38 = vld [vmem:[#allocation11_spill] sm:$0xff] }
 0x53e   :  { %2529 = vmatprep.subr.mxu0 %v10793_v63  ;;  %2600 = vmatprep.subr.mxu1 %v7705_v48  ;;  %v10899_v48 = vld [vmem:[#allocation37_spill] sm:$0xff]  ;;  %v8464_v29 = vld [vmem:[%s10429_s24 + $0x218] sm:$0xff]  ;;  %v8471_v12 = vld [vmem:[%s10429_s24 + $0x210] sm:$0xff] }
 0x53f   :  { %v2367_v60 = vadd.f32 %v2366_v26, %v2351_v54  ;;  %2530 = vmatpush1.msra.mxu0 %v7711_v16  ;;  %2601 = vmatpush1.msra.mxu1 %v10893_v51  ;;  %v10900_v16 = vld [vmem:[#allocation53_spill] sm:$0xff]  ;;  %v10924_v57 = vld [vmem:[#allocation40_spill] sm:$0xff]  ;;  %v8492_v51 = vld [vmem:[%s10429_s24 + $0x1b8] sm:$0xff] }
 0x540   :  { %2531 = vmatprep.subr.mxu0 %v10894_v4  ;;  %2602 = vmatprep.subr.mxu1 %v10895_v18  ;;  %v8478_v54 = vld [vmem:[%s10429_s24 + $0x1e8] sm:$0xff]  ;;  %v8485_v26 = vld [vmem:[%s10429_s24 + $0x1e0] sm:$0xff]  ;;  %10926 = vst [vmem:[#allocation100_spill] sm:$0xff] %v8492_v51  ;;  %v8499_v4 = vld [vmem:[%s10429_s24 + $0x1b0] sm:$0xff] }
 0x541   :  { %5206 = vtanh.f32 %v2367_v60  ;;  %2532 = vmatpush1.msra.mxu0 %v10896_v41  ;;  %2603 = vmatpush1.msra.mxu1 %v10897_v30  ;;  %v10925_v60 = vld [vmem:[#allocation52_spill] sm:$0xff]  ;;  %10927 = vst [vmem:[#allocation102_spill] sm:$0xff] %v8499_v4  ;;  %v10928_v18 = vld [vmem:[#allocation85_spill] sm:$0xff] }
 0x542   :  { %2533 = vmatprep.subr.mxu0 %v10798_v19  ;;  %2604 = vmatprep.subr.mxu1 %v10799_v50  ;;  %v5205_v63 = vpop.eup %5204  ;;  %v10910_v19 = vld [vmem:[#allocation12_spill] sm:$0xff]  ;;  %v10911_v50 = vld [vmem:[#allocation13_spill] sm:$0xff] }
 0x543   :  { %2534 = vmatpush1.msra.mxu0 %v10898_v53  ;;  %2605 = vmatpush1.msra.mxu1 %v10801_v0  ;;  %v10912_v0 = vld [vmem:[#allocation105_spill] sm:$0xff]  ;;  %v2369_v33 = vsub.f32 1.0, %v5205_v63  ;;  %v2371_v6 = vmul.f32 %v5205_v63, %v8121_v25  ;;  %v8513_v30 = vld [vmem:[%s10429_s24 + $0x180] sm:$0xff]  ;;  %v10931_v53 = vld [vmem:[#allocation86_spill] sm:$0xff] }
 0x544   :  { %2535 = vmatprep.subr.mxu0 %v10802_v61  ;;  %2606 = vmatprep.subr.mxu1 %v10899_v48  ;;  %v10913_v61 = vld [vmem:[#allocation14_spill] sm:$0xff]  ;;  %v8506_v41 = vld [vmem:[%s10429_s24 + $0x188] sm:$0xff]  ;;  %10930 = vst [vmem:[#allocation38_spill] sm:$0xff] %v8513_v30  ;;  %v8520_v48 = vld [vmem:[%s10429_s24 + $0x158] sm:$0xff] }
 0x545   :  { %2536 = vmatpush1.msra.mxu0 %v10804_v32  ;;  %2607 = vmatpush1.msra.mxu1 %v10900_v16  ;;  %v10909_v32 = vld [vmem:[#allocation104_spill] sm:$0xff]  ;;  %10929 = vst [vmem:[#allocation103_spill] sm:$0xff] %v8506_v41  ;;  %10932 = vst [vmem:[#allocation17_spill] sm:$0xff] %v8520_v48  ;;  %v8527_v16 = vld [vmem:[%s10429_s24 + $0x150] sm:$0xff] }
 0x546   :  { %2537 = vmatprep.subr.mxu0 %v10901_v17  ;;  %2608 = vmatprep.subr.mxu1 %v10902_v49  ;;  %10933 = vst [vmem:[#allocation18_spill] sm:$0xff] %v8527_v16  ;;  %v10934_v17 = vld [vmem:[#allocation87_spill] sm:$0xff]  ;;  %v8534_v49 = vld [vmem:[%s10429_s24 + $0x128] sm:$0xff]  ;;  %v8583_v25 = vld [vmem:[%s10429_s24 + $0x90] sm:$0xff] }
 0x547   :  { %2538 = vmatpush1.msra.mxu0 %v10903_v21  ;;  %2609 = vmatpush1.msra.mxu1 %v10904_v20  ;;  %10935 = vst [vmem:[#allocation19_spill] sm:$0xff] %v8534_v49  ;;  %v8541_v21 = vld [vmem:[%s10429_s24 + $0x120] sm:$0xff]  ;;  %v10940_v63 = vld [vmem:[#allocation89_spill] sm:$0xff]  ;;  %10945 = vst [vmem:[#allocation26_spill] sm:$0xff] %v8583_v25 }
 0x548   :  { %2539 = vmatprep.subr.mxu0 %v10905_v46  ;;  %2610 = vmatprep.subr.mxu1 %v10906_v10  ;;  %10936 = vst [vmem:[#allocation20_spill] sm:$0xff] %v8541_v21  ;;  %v10937_v20 = vld [vmem:[#allocation88_spill] sm:$0xff]  ;;  %v8548_v46 = vld [vmem:[%s10429_s24 + $0xf8] sm:$0xff]  ;;  %v8555_v10 = vld [vmem:[%s10429_s24 + $0xf0] sm:$0xff] }
 0x549   :  { %2540 = vmatpush1.msra.mxu0 %v10907_v14  ;;  %2611 = vmatpush1.msra.mxu1 %v10908_v38  ;;  %10938 = vst [vmem:[#allocation21_spill] sm:$0xff] %v8548_v46  ;;  %10939 = vst [vmem:[#allocation22_spill] sm:$0xff] %v8555_v10 }
 0x54a   :  { %2541 = vmatprep.subr.mxu0 %v10909_v32  ;;  %2612 = vmatprep.subr.mxu1 %v10910_v19 }
 0x54b   :  { %2542 = vmatpush1.msra.mxu0 %v10911_v50  ;;  %2613 = vmatpush1.msra.mxu1 %v10912_v0 }
 0x54c   :  { %2543 = vmatprep.subr.mxu0 %v10913_v61  ;;  %2614 = vmatprep.subr.mxu1 %v10914_v36 }
 0x54d   :  { %2544 = vmatpush1.msra.mxu0 %v10915_v52  ;;  %2615 = vmatpush1.msra.mxu1 %v10916_v31 }
 0x54e   :  { %v5207_v7 = vpop.eup %5206  ;;  %2545 = vmatprep.subr.mxu0 %v10917_v1  ;;  %2616 = vmatprep.subr.mxu1 %v10918_v24 }
 0x54f   :  { %2546 = vmatpush1.msra.mxu0 %v10919_v45  ;;  %2617 = vmatpush1.msra.mxu1 %v8098_v43  ;;  %v2370_v47 = vmul.f32 %v5207_v7, %v2369_v33  ;;  %v8562_v33 = vld [vmem:[%s10429_s24 + $0xc8] sm:$0xff]  ;;  %v8569_v7 = vld [vmem:[%s10429_s24 + $0xc0] sm:$0xff] }
 0x550   :  { %2547 = vmatprep.subr.mxu0 %v8105_v34  ;;  %2618 = vmatprep.subr.mxu1 %v8111_v44  ;;  %10941 = vst [vmem:[#allocation23_spill] sm:$0xff] %v8562_v33  ;;  %10942 = vst [vmem:[#allocation24_spill] sm:$0xff] %v8569_v7 }
 0x551   :  { %2548 = vmatpush1.msra.mxu0 %v8117_v42  ;;  %2581 = vmatprep.mubr.f32.mxu0 %v10458_v35  ;;  %v8395_v56 = vadd.f32 %v2371_v6, %v2370_v47  ;;  %v10943_v47 = vld [vmem:[#allocation90_spill] sm:$0xff]  ;;  %v8576_v6 = vld [vmem:[%s10429_s24 + $0x98] sm:$0xff] }
 0x552   :  { %2619 = vmatpush1.msra.mxu1 %v8126_v58  ;;  %2652 = vmatprep.mubr.f32.mxu1 %v10458_v35  ;;  %10944 = vst [vmem:[#allocation25_spill] sm:$0xff] %v8576_v6 }
 0x553   :  { %10920 = vst [vmem:[#allocation99_spill] sm:$0xff] %v8395_v56  ;;  %2582 = vmatmul.mubr.f32.vlgmr.msra.gmra.mxu0 %v8326_v39  ;;  %2653 = vmatmul.mubr.f32.vlgmr.msra.gmra.mxu1 %v8395_v56 }
 0x554   :  { %4844 = vmatprep.subr.mxu0 %v10458_v35  ;;  %4876 = vmatprep.mubr.msk.f32.mxu0 %vm5599_vm0, %v10458_v35 }
 0x555   :  { %4845 = vmatpush3.msra.mxu0 %v8138_v55  ;;  %2783 = vmatprep.subr.mxu1 %v8408_v62 }
 0x556   :  { %4846 = vmatprep.subr.mxu0 %v10458_v35  ;;  %2784 = vmatpush1.msra.mxu1 %v8415_v11 }
 0x557   :  { %4847 = vmatpush3.msra.mxu0 %v8147_v40  ;;  %2785 = vmatprep.subr.mxu1 %v8422_v27 }
 0x558   :  { %4848 = vmatprep.subr.mxu0 %v10458_v35  ;;  %2786 = vmatpush1.msra.mxu1 %v8429_v5 }
 0x559   :  { %4849 = vmatpush3.msra.mxu0 %v10921_v3  ;;  %2787 = vmatprep.subr.mxu1 %v8436_v2 }
 0x55a   :  { %4850 = vmatprep.subr.mxu0 %v10458_v35  ;;  %2788 = vmatpush1.msra.mxu1 %v8443_v28 }
 0x55b   :  { %4851 = vmatpush3.msra.mxu0 %v10922_v23  ;;  %2789 = vmatprep.subr.mxu1 %v8450_v22 }
 0x55c   :  { %4852 = vmatprep.subr.mxu0 %v10458_v35  ;;  %2790 = vmatpush1.msra.mxu1 %v8457_v59 }
 0x55d   :  { %4853 = vmatpush3.msra.mxu0 %v10923_v8  ;;  %2791 = vmatprep.subr.mxu1 %v8464_v29 }
 0x55e   :  { %4854 = vmatprep.subr.mxu0 %v10458_v35  ;;  %2792 = vmatpush1.msra.mxu1 %v8471_v12 }
 0x55f   :  { %4855 = vmatpush3.msra.mxu0 %v10924_v57  ;;  %2793 = vmatprep.subr.mxu1 %v8478_v54 }
 0x560   :  { %4856 = vmatprep.subr.mxu0 %v10458_v35  ;;  %2794 = vmatpush1.msra.mxu1 %v8485_v26 }
 0x561   :  { %4857 = vmatpush3.msra.mxu0 %v10925_v60  ;;  %2795 = vmatprep.subr.mxu1 %v8492_v51  ;;  %v10994_v51 = vld [vmem:[#allocation6_spill] sm:$0xff] }
 0x562   :  { %4858 = vmatprep.subr.mxu0 %v10458_v35  ;;  %2796 = vmatpush1.msra.mxu1 %v8499_v4 }
 0x563   :  { %4859 = vmatpush3.msra.mxu0 %v10928_v18  ;;  %2797 = vmatprep.subr.mxu1 %v8506_v41 }
 0x564   :  { %4860 = vmatprep.subr.mxu0 %v10458_v35  ;;  %2798 = vmatpush1.msra.mxu1 %v8513_v30 }
 0x565   :  { %4861 = vmatpush3.msra.mxu0 %v10931_v53  ;;  %2799 = vmatprep.subr.mxu1 %v8520_v48 }
 0x566   :  { %4862 = vmatprep.subr.mxu0 %v10458_v35  ;;  %2800 = vmatpush1.msra.mxu1 %v8527_v16 }
 0x567   :  { %4863 = vmatpush3.msra.mxu0 %v10934_v17  ;;  %2801 = vmatprep.subr.mxu1 %v8534_v49  ;;  %v10992_v17 = vld [vmem:[#allocation44_spill] sm:$0xff] }
 0x568   :  { %4864 = vmatprep.subr.mxu0 %v10458_v35  ;;  %2802 = vmatpush1.msra.mxu1 %v8541_v21  ;;  %v10991_v21 = vld [vmem:[#allocation51_spill] sm:$0xff] }
 0x569   :  { %4865 = vmatpush3.msra.mxu0 %v10937_v20  ;;  %2803 = vmatprep.subr.mxu1 %v8548_v46  ;;  %v10990_v46 = vld [vmem:[#allocation43_spill] sm:$0xff] }
 0x56a   :  { %4866 = vmatprep.subr.mxu0 %v10458_v35  ;;  %2804 = vmatpush1.msra.mxu1 %v8555_v10 }
 0x56b   :  { %4867 = vmatpush3.msra.mxu0 %v10940_v63  ;;  %2805 = vmatprep.subr.mxu1 %v8562_v33  ;;  %v10946_v33 = vld [vmem:[#allocation91_spill] sm:$0xff] }
 0x56c   :  { %4868 = vmatprep.subr.mxu0 %v10458_v35  ;;  %2806 = vmatpush1.msra.mxu1 %v8569_v7  ;;  %v10949_v7 = vld [vmem:[#allocation92_spill] sm:$0xff] }
 0x56d   :  { %4869 = vmatpush3.msra.mxu0 %v10943_v47  ;;  %2807 = vmatprep.subr.mxu1 %v8576_v6  ;;  %v8590_v47 = vld [vmem:[%s10429_s24 + $0x68] sm:$0xff]  ;;  %v8597_v6 = vld [vmem:[%s10429_s24 + $0x60] sm:$0xff] }
 0x56e   :  { %4870 = vmatprep.subr.mxu0 %v10458_v35  ;;  %2808 = vmatpush1.msra.mxu1 %v8583_v25  ;;  %10947 = vst [vmem:[#allocation27_spill] sm:$0xff] %v8590_v47  ;;  %10948 = vst [vmem:[#allocation28_spill] sm:$0xff] %v8597_v6  ;;  %v10952_v25 = vld [vmem:[#allocation93_spill] sm:$0xff] }
 0x56f   :  { %4871 = vmatpush3.msra.mxu0 %v10946_v33  ;;  %2809 = vmatprep.subr.mxu1 %v8590_v47  ;;  %v8604_v33 = vld [vmem:[%s10429_s24 + $0x38] sm:$0xff]  ;;  %v8611_v47 = vld [vmem:[%s10429_s24 + $0x30] sm:$0xff] }
 0x570   :  { %4872 = vmatprep.subr.mxu0 %v10458_v35  ;;  %2810 = vmatpush1.msra.mxu1 %v8597_v6  ;;  %10950 = vst [vmem:[#allocation29_spill] sm:$0xff] %v8604_v33  ;;  %10951 = vst [vmem:[#allocation30_spill] sm:$0xff] %v8611_v47  ;;  %v10989_v6 = vld [vmem:[#allocation49_spill] sm:$0xff] }
 0x571   :  { %4873 = vmatpush3.msra.mxu0 %v10949_v7  ;;  %2811 = vmatprep.subr.mxu1 %v8604_v33  ;;  %v8618_v7 = vld [vmem:[%s10429_s24 + $0x8] sm:$0xff] }
 0x572   :  { %4874 = vmatprep.subr.mxu0 %v10458_v35  ;;  %2812 = vmatpush1.msra.mxu1 %v8611_v47  ;;  %10953 = vst [vmem:[#allocation31_spill] sm:$0xff] %v8618_v7  ;;  %v8625_v33 = vld [vmem:[%s10429_s24 + $0x2e8] sm:$0xff]  ;;  %v8643_v47 = vld [vmem:[%s10429_s24 + $0x2b8] sm:$0xff] }
 0x573   :  { %4875 = vmatpush3.msra.mxu0 %v10952_v25  ;;  %2813 = vmatprep.subr.mxu1 %v8618_v7  ;;  %10954 = vst [vmem:[#allocation32_spill] sm:$0xff] %v8625_v33  ;;  %v8631_v25 = vld [vmem:[%s10429_s24 + $0x2e0] sm:$0xff]  ;;  %10957 = vst [vmem:[#allocation33_spill] sm:$0xff] %v8643_v47 }
 0x574   :  { %4877 = vmatmul.mubr.f32.vlgmr.msra.gmra.mxu0 %v8395_v56  ;;  %2854 = vmatprep.subr.mxu0 %v8625_v33  ;;  %10955 = vst [vmem:[#allocation35_spill] sm:$0xff] %v8631_v25  ;;  %v8637_v7 = vld [vmem:[%s10429_s24] sm:$0xff]  ;;  %v8675_v33 = vld [vmem:[%s10429_s24 + $0x258] sm:$0xff] }
 0x575   :  { %2855 = vmatpush1.msra.mxu0 %v8631_v25  ;;  %10956 = vst [vmem:[#allocation36_spill] sm:$0xff] %v8637_v7  ;;  %2814 = vmatpush1.msra.mxu1 %v8637_v7  ;;  %v8650_v25 = vld [vmem:[%s10429_s24 + $0x2b0] sm:$0xff]  ;;  %v8657_v7 = vld [vmem:[%s10429_s24 + $0x288] sm:$0xff]  ;;  %10962 = vst [vmem:[#allocation61_spill] sm:$0xff] %v8675_v33 }
 0x576   :  { %2856 = vmatprep.subr.mxu0 %v8643_v47  ;;  %2847 = vmatprep.mubr.f32.mxu1 %v10458_v35  ;;  %10958 = vst [vmem:[#allocation34_spill] sm:$0xff] %v8650_v25  ;;  %10959 = vst [vmem:[#allocation47_spill] sm:$0xff] %v8657_v7  ;;  %v8663_v47 = vld [vmem:[%s10429_s24 + $0x2f8] sm:$0xff] }
 0x577   :  { %2857 = vmatpush1.msra.mxu0 %v8650_v25  ;;  %2918 = vmatprep.mubr.f32.mxu0 %v10458_v35  ;;  %10960 = vst [vmem:[#allocation59_spill] sm:$0xff] %v8663_v47  ;;  %v8669_v25 = vld [vmem:[%s10429_s24 + $0x280] sm:$0xff] }
 0x578   :  { %2858 = vmatprep.subr.mxu0 %v8657_v7  ;;  %2925 = vmatprep.subr.mxu1 %v8663_v47  ;;  %10961 = vst [vmem:[#allocation60_spill] sm:$0xff] %v8669_v25  ;;  %v8681_v7 = vld [vmem:[%s10429_s24 + $0x250] sm:$0xff]  ;;  %v8687_v47 = vld [vmem:[%s10429_s24 + $0x228] sm:$0xff] }
 0x579   :  { %2859 = vmatpush1.msra.mxu0 %v8669_v25  ;;  %10963 = vst [vmem:[#allocation62_spill] sm:$0xff] %v8681_v7  ;;  %10964 = vst [vmem:[#allocation63_spill] sm:$0xff] %v8687_v47  ;;  %v8693_v25 = vld [vmem:[%s10429_s24 + $0x220] sm:$0xff] }
 0x57a   :  { %2860 = vmatprep.subr.mxu0 %v8675_v33  ;;  %10965 = vst [vmem:[#allocation64_spill] sm:$0xff] %v8693_v25  ;;  %v8699_v33 = vld [vmem:[%s10429_s24 + $0x1f8] sm:$0xff] }
 0x57b   :  { %2861 = vmatpush1.msra.mxu0 %v8681_v7  ;;  %10966 = vst [vmem:[#allocation65_spill] sm:$0xff] %v8699_v33  ;;  %v8705_v7 = vld [vmem:[%s10429_s24 + $0x1f0] sm:$0xff] }
 0x57c   :  { %2862 = vmatprep.subr.mxu0 %v8687_v47  ;;  %10967 = vst [vmem:[#allocation66_spill] sm:$0xff] %v8705_v7  ;;  %v8711_v47 = vld [vmem:[%s10429_s24 + $0x1c8] sm:$0xff] }
 0x57d   :  { %2863 = vmatpush1.msra.mxu0 %v8693_v25  ;;  %10968 = vst [vmem:[#allocation67_spill] sm:$0xff] %v8711_v47  ;;  %v8717_v25 = vld [vmem:[%s10429_s24 + $0x1c0] sm:$0xff] }
 0x57e   :  { %2864 = vmatprep.subr.mxu0 %v8699_v33  ;;  %10969 = vst [vmem:[#allocation68_spill] sm:$0xff] %v8717_v25  ;;  %v8723_v33 = vld [vmem:[%s10429_s24 + $0x198] sm:$0xff] }
 0x57f   :  { %2865 = vmatpush1.msra.mxu0 %v8705_v7  ;;  %10970 = vst [vmem:[#allocation69_spill] sm:$0xff] %v8723_v33  ;;  %v8729_v7 = vld [vmem:[%s10429_s24 + $0x190] sm:$0xff] }
 0x580   :  { %2866 = vmatprep.subr.mxu0 %v8711_v47  ;;  %10971 = vst [vmem:[#allocation70_spill] sm:$0xff] %v8729_v7  ;;  %v8735_v47 = vld [vmem:[%s10429_s24 + $0x168] sm:$0xff] }
 0x581   :  { %2867 = vmatpush1.msra.mxu0 %v8717_v25  ;;  %10972 = vst [vmem:[#allocation71_spill] sm:$0xff] %v8735_v47  ;;  %v8741_v25 = vld [vmem:[%s10429_s24 + $0x160] sm:$0xff] }
 0x582   :  { %2868 = vmatprep.subr.mxu0 %v8723_v33  ;;  %10973 = vst [vmem:[#allocation72_spill] sm:$0xff] %v8741_v25  ;;  %v8747_v33 = vld [vmem:[%s10429_s24 + $0x138] sm:$0xff] }
 0x583   :  { %2869 = vmatpush1.msra.mxu0 %v8729_v7  ;;  %10974 = vst [vmem:[#allocation73_spill] sm:$0xff] %v8747_v33  ;;  %v8753_v7 = vld [vmem:[%s10429_s24 + $0x130] sm:$0xff] }
 0x584   :  { %2870 = vmatprep.subr.mxu0 %v8735_v47  ;;  %10975 = vst [vmem:[#allocation74_spill] sm:$0xff] %v8753_v7  ;;  %v8759_v47 = vld [vmem:[%s10429_s24 + $0x108] sm:$0xff] }
 0x585   :  { %2871 = vmatpush1.msra.mxu0 %v8741_v25  ;;  %10976 = vst [vmem:[#allocation75_spill] sm:$0xff] %v8759_v47  ;;  %v8765_v25 = vld [vmem:[%s10429_s24 + $0x100] sm:$0xff] }
 0x586   :  { %2872 = vmatprep.subr.mxu0 %v8747_v33  ;;  %10977 = vst [vmem:[#allocation76_spill] sm:$0xff] %v8765_v25  ;;  %v8771_v33 = vld [vmem:[%s10429_s24 + $0xd8] sm:$0xff] }
 0x587   :  { %2873 = vmatpush1.msra.mxu0 %v8753_v7  ;;  %10978 = vst [vmem:[#allocation77_spill] sm:$0xff] %v8771_v33  ;;  %v8777_v7 = vld [vmem:[%s10429_s24 + $0xd0] sm:$0xff] }
 0x588   :  { %2874 = vmatprep.subr.mxu0 %v8759_v47  ;;  %10979 = vst [vmem:[#allocation78_spill] sm:$0xff] %v8777_v7  ;;  %v8783_v47 = vld [vmem:[%s10429_s24 + $0xa8] sm:$0xff] }
 0x589   :  { %2875 = vmatpush1.msra.mxu0 %v8765_v25  ;;  %10980 = vst [vmem:[#allocation79_spill] sm:$0xff] %v8783_v47  ;;  %v8789_v25 = vld [vmem:[%s10429_s24 + $0xa0] sm:$0xff] }
 0x58a   :  { %2876 = vmatprep.subr.mxu0 %v8771_v33  ;;  %10981 = vst [vmem:[#allocation80_spill] sm:$0xff] %v8789_v25  ;;  %v8795_v33 = vld [vmem:[%s10429_s24 + $0x78] sm:$0xff] }
 0x58b   :  { %2877 = vmatpush1.msra.mxu0 %v8777_v7  ;;  %10982 = vst [vmem:[#allocation81_spill] sm:$0xff] %v8795_v33  ;;  %v8801_v7 = vld [vmem:[%s10429_s24 + $0x70] sm:$0xff] }
 0x58c   :  { %2878 = vmatprep.subr.mxu0 %v8783_v47  ;;  %10983 = vst [vmem:[#allocation82_spill] sm:$0xff] %v8801_v7  ;;  %v8807_v47 = vld [vmem:[%s10429_s24 + $0x48] sm:$0xff] }
 0x58d   :  { %2879 = vmatpush1.msra.mxu0 %v8789_v25  ;;  %10984 = vst [vmem:[#allocation83_spill] sm:$0xff] %v8807_v47  ;;  %v8813_v25 = vld [vmem:[%s10429_s24 + $0x40] sm:$0xff] }
 0x58e   :  { %2880 = vmatprep.subr.mxu0 %v8795_v33  ;;  %10985 = vst [vmem:[#allocation84_spill] sm:$0xff] %v8813_v25  ;;  %v8819_v33 = vld [vmem:[%s10429_s24 + $0x18] sm:$0xff] }
 0x58f   :  { %2881 = vmatpush1.msra.mxu0 %v8801_v7  ;;  %10986 = vst [vmem:[#allocation41_spill] sm:$0xff] %v8819_v33  ;;  %v8825_v7 = vld [vmem:[%s10429_s24 + $0x10] sm:$0xff] }
 0x590   :  { %2882 = vmatprep.subr.mxu0 %v8807_v47  ;;  %10987 = vst [vmem:[#allocation42_spill] sm:$0xff] %v8825_v7  ;;  %v8831_v47 = vld [vmem:[%s9916_s8 + $0x170] sm:$0xff] }
 0x591   :  { %2883 = vmatpush1.msra.mxu0 %v8813_v25  ;;  %10988 = vst [vmem:[#allocation55_spill] sm:$0xff] %v8831_v47 }
 0x592   :  { %2884 = vmatprep.subr.mxu0 %v8819_v33 }
 0x593   :  { %2885 = vmatpush1.msra.mxu0 %v8825_v7 }
 0x594   :  { %2996 = vmatprep.subr.mxu0 %v8831_v47 }
 0x5f2   :  { %v2441_v25 = vpop.f32.mrf.mxu0  ;;  %v2512_v30 = vpop.f32.mrf.mxu1 }
 0x5f3   :  { %v2733_v63 = vadd.f32 %v2441_v25, %v10989_v6  ;;  %v10993_v25 = vld [vmem:[#allocation5_spill] sm:$0xff] }
 0x5f4   :  { %v2443_v10 = vpop.f32.mrf.mxu0  ;;  %v2514_v47 = vpop.f32.mrf.mxu1 }
 0x5f5   :  { %v2736_v33 = vadd.f32 %v2733_v63, %v10990_v46  ;;  %v2734_v49 = vadd.f32 %v2443_v10, %v10991_v21  ;;  %v2757_v6 = vadd.f32 %v2514_v47, %v10993_v25  ;;  %v10995_v63 = vld [vmem:[#allocation58_spill] sm:$0xff] }
 0x5f7   :  { %v4403_v20 = vmul.f32 -1.442695, %v2736_v33  ;;  %v2743_v16 = vadd.f32 %v2734_v49, %v10992_v17  ;;  %v2735_v33 = vadd.f32 %v2512_v30, %v10995_v63 }
 0x5f9   :  { %5208 = vpow2.f32 %v4403_v20  ;;  %v4404_v7 = vmul.f32 -1.442695, %v2743_v16 }
 0x5fb   :  { %5210 = vpow2.f32 %v4404_v7 }
 0x606   :  { %v5209_v48 = vpop.eup %5208 }
 0x607   :  { %v2740_v53 = vadd.f32 1.0, %v5209_v48  ;;  %v10996_v48 = vld [vmem:[#allocation54_spill] sm:$0xff] }
 0x608   :  { %v5211_v41 = vpop.eup %5210 }
 0x609   :  { %5212 = vrcp.f32 %v2740_v53  ;;  %v2747_v18 = vadd.f32 1.0, %v5211_v41 }
 0x60b   :  { %5214 = vrcp.f32 %v2747_v18 }
 0x613   :  { %v2654_v4 = vpop.f32.mrf.mxu1  ;;  %v2583_v16 = vpop.f32.mrf.mxu0 }
 0x614   :  { %v2655_v46 = vadd.f32 %v2654_v4, %v10994_v51  ;;  %v2758_v41 = vadd.f32 %v2583_v16, %v7027_v15  ;;  %v8894_v16 = vld [vmem:[%s9916_s8 + $0x140] sm:$0xff] }
 0x615   :  { %v2656_v10 = vpop.f32.mrf.mxu1  ;;  %10997 = vst [vmem:[#allocation94_spill] sm:$0xff] %v8894_v16 }
 0x616   :  { %v5213_v20 = vpop.eup %5212  ;;  %v2760_v21 = vadd.f32 %v2757_v6, %v2655_v46  ;;  %v2657_v53 = vadd.f32 %v2656_v10, %v7023_v9  ;;  %v8882_v10 = vld [vmem:[%s9916_s8 + $0x150] sm:$0xff] }
 0x617   :  { %v2750_v17 = vmul.f32 %v5213_v20, %v2735_v33  ;;  %v8852_v33 = vld [vmem:[%s10429_s24 + $0x2f0] sm:$0xff] }
 0x618   :  { %v4405_v49 = vmul.f32 -1.442695, %v2760_v21  ;;  %v2767_v47 = vadd.f32 %v2758_v41, %v2657_v53  ;;  %v5215_v4 = vpop.eup %5214  ;;  %v8900_v53 = vld [vmem:[%s10429_s24 + $0x290] sm:$0xff]  ;;  %v8918_v41 = vld [vmem:[%s9916_s8 + $0x128] sm:$0xff] }
 0x619   :  { %v2751_v7 = vadd.f32 %v2750_v17, %v10996_v48  ;;  %v2753_v63 = vsub.f32 1.0, %v5215_v4  ;;  %v2755_v18 = vmul.f32 %v5215_v4, %v8326_v39  ;;  %v8864_v39 = vld [vmem:[%s10429_s24 + $0x2c8] sm:$0xff]  ;;  %v8888_v17 = vld [vmem:[%s10429_s24 + $0x298] sm:$0xff]  ;;  %10999 = vst [vmem:[#allocation96_spill] sm:$0xff] %v8918_v41 }
 0x61a   :  { %5216 = vpow2.f32 %v4405_v49  ;;  %v4406_v25 = vmul.f32 -1.442695, %v2767_v47  ;;  %v2585_v49 = vpop.f32.mrf.mxu0  ;;  %v8906_v48 = vld [vmem:[%s9916_s8 + $0x138] sm:$0xff] }
 0x61b   :  { %5218 = vtanh.f32 %v2751_v7  ;;  %10998 = vst [vmem:[#allocation95_spill] sm:$0xff] %v8906_v48  ;;  %v8912_v7 = vld [vmem:[%s10429_s24 + $0x268] sm:$0xff] }
 0x61c   :  { %5220 = vpow2.f32 %v4406_v25  ;;  %v8870_v25 = vld [vmem:[%s9916_s8 + $0x158] sm:$0xff] }
 0x627   :  { %v5217_v30 = vpop.eup %5216 }
 0x628   :  { %v5219_v51 = vpop.eup %5218  ;;  %v2764_v6 = vadd.f32 1.0, %v5217_v30  ;;  %v8924_v30 = vld [vmem:[%s10429_s24 + $0x260] sm:$0xff] }
 0x629   :  { %v2754_v46 = vmul.f32 %v5219_v51, %v2753_v63  ;;  %v8858_v51 = vld [vmem:[%s9916_s8 + $0x168] sm:$0xff]  ;;  %v8876_v63 = vld [vmem:[%s10429_s24 + $0x2c0] sm:$0xff]  ;;  %v5221_v20 = vpop.eup %5220  ;;  %11000 = vst [vmem:[#allocation97_spill] sm:$0xff] %v8924_v30 }
 0x62a   :  { %5222 = vrcp.f32 %v2764_v6  ;;  %v2771_v47 = vadd.f32 1.0, %v5221_v20  ;;  %v8930_v6 = vld [vmem:[%s9916_s8 + $0x120] sm:$0xff] }
 0x62b   :  { %v8845_v21 = vadd.f32 %v2755_v18, %v2754_v46  ;;  %11001 = vst [vmem:[#allocation98_spill] sm:$0xff] %v8930_v6  ;;  %v8936_v46 = vld [vmem:[%s10429_s24 + $0x238] sm:$0xff]  ;;  %v8942_v18 = vld [vmem:[%s9916_s8 + $0x110] sm:$0xff] }
 0x62c   :  { %11002 = vst [vmem:[#allocation101_spill] sm:$0xff] %v8936_v46  ;;  %11003 = vst [vmem:[#allocation37_spill] sm:$0xff] %v8942_v18  ;;  %5224 = vrcp.f32 %v2771_v47 }
 0x62d   :  { %2848 = vmatmul.mubr.f32.vlgmr.msra.gmra.mxu1 %v8845_v21  ;;  %2919 = vmatmul.mubr.f32.vlgmr.msra.gmra.mxu0 %v8845_v21 }
 0x62e   :  { %2926 = vmatpush1.msra.mxu1 %v8852_v33  ;;  %2997 = vmatpush1.msra.mxu0 %v8858_v51 }
 0x62f   :  { %2927 = vmatprep.subr.mxu1 %v8864_v39  ;;  %2998 = vmatprep.subr.mxu0 %v8870_v25 }
 0x630   :  { %2928 = vmatpush1.msra.mxu1 %v8876_v63  ;;  %2999 = vmatpush1.msra.mxu0 %v8882_v10 }
 0x631   :  { %2929 = vmatprep.subr.mxu1 %v8888_v17  ;;  %3000 = vmatprep.subr.mxu0 %v8894_v16 }
 0x632   :  { %2930 = vmatpush1.msra.mxu1 %v8900_v53  ;;  %3001 = vmatpush1.msra.mxu0 %v8906_v48 }
 0x633   :  { %2931 = vmatprep.subr.mxu1 %v8912_v7  ;;  %3002 = vmatprep.subr.mxu0 %v8918_v41 }
 0x634   :  { %v2725_v4 = vpop.f32.mrf.mxu0  ;;  %2932 = vmatpush1.msra.mxu1 %v8924_v30  ;;  %3003 = vmatpush1.msra.mxu0 %v8930_v6  ;;  %v8949_v6 = vld [vmem:[%s10429_s24 + $0x230] sm:$0xff] }
 0x635   :  { %2933 = vmatprep.subr.mxu1 %v8936_v46  ;;  %3004 = vmatprep.subr.mxu0 %v8942_v18  ;;  %v2726_v20 = vadd.f32 %v2725_v4, %v10788_v13  ;;  %11004 = vst [vmem:[#allocation53_spill] sm:$0xff] %v8949_v6  ;;  %v8955_v46 = vld [vmem:[%s9916_s8 + $0x108] sm:$0xff] }
 0x636   :  { %v4878_v30 = vpop.f32.mrf.mxu0  ;;  %2934 = vmatpush1.msra.mxu1 %v8949_v6  ;;  %11005 = vst [vmem:[#allocation112_spill] sm:$0xff] %v8955_v46  ;;  %3005 = vmatpush1.msra.mxu0 %v8955_v46  ;;  %v8961_v4 = vld [vmem:[%s10429_s24 + $0x208] sm:$0xff]  ;;  %v2759_v6 = vadd.f32 %v2585_v49, %v7053_v37  ;;  %v8974_v46 = vld [vmem:[%s10429_s24 + $0x200] sm:$0xff]  ;;  %v8986_v49 = vld [vmem:[%s10429_s24 + $0x1d8] sm:$0xff] }
 0x637   :  { %v5223_v41 = vpop.eup %5222  ;;  %11006 = vst [vmem:[#allocation113_spill] sm:$0xff] %v8961_v4  ;;  %2935 = vmatprep.subr.mxu1 %v8961_v4  ;;  %v8967_v30 = vld [vmem:[%s9916_s8 + $0xf8] sm:$0xff]  ;;  %v8980_v4 = vld [vmem:[%s9916_s8 + $0xf0] sm:$0xff]  ;;  %11009 = vst [vmem:[#allocation116_spill] sm:$0xff] %v8986_v49  ;;  %2989 = vmatprep.mubr.f32.mxu1 %v10458_v35 }
 0x638   :  { %11007 = vst [vmem:[#allocation114_spill] sm:$0xff] %v8967_v30  ;;  %3006 = vmatprep.subr.mxu0 %v8967_v30  ;;  %v2774_v13 = vmul.f32 %v5223_v41, %v2726_v20  ;;  %2936 = vmatpush1.msra.mxu1 %v8974_v46  ;;  %11008 = vst [vmem:[#allocation115_spill] sm:$0xff] %v8980_v4  ;;  %v8992_v41 = vld [vmem:[%s9916_s8 + $0xe0] sm:$0xff]  ;;  %v8998_v20 = vld [vmem:[%s10429_s24 + $0x1d0] sm:$0xff] }
 0x639   :  { %3007 = vmatpush1.msra.mxu0 %v8980_v4  ;;  %2937 = vmatprep.subr.mxu1 %v8986_v49  ;;  %11010 = vst [vmem:[#allocation117_spill] sm:$0xff] %v8992_v41  ;;  %v9004_v4 = vld [vmem:[%s9916_s8 + $0xd8] sm:$0xff]  ;;  %v9010_v49 = vld [vmem:[%s10429_s24 + $0x1a8] sm:$0xff] }
 0x63a   :  { %3008 = vmatprep.subr.mxu0 %v8992_v41  ;;  %v2775_v47 = vadd.f32 %v2774_v13, %v2759_v6  ;;  %2938 = vmatpush1.msra.mxu1 %v8998_v20  ;;  %11011 = vst [vmem:[#allocation10_spill] sm:$0xff] %v9004_v4  ;;  %11012 = vst [vmem:[#allocation11_spill] sm:$0xff] %v9010_v49  ;;  %v9016_v13 = vld [vmem:[%s9916_s8 + $0xc8] sm:$0xff]  ;;  %v9022_v6 = vld [vmem:[%s10429_s24 + $0x1a0] sm:$0xff] }
 0x63b   :  { %3009 = vmatpush1.msra.mxu0 %v9004_v4  ;;  %2939 = vmatprep.subr.mxu1 %v9010_v49  ;;  %11013 = vst [vmem:[#allocation104_spill] sm:$0xff] %v9016_v13  ;;  %11014 = vst [vmem:[#allocation12_spill] sm:$0xff] %v9022_v6  ;;  %v9028_v4 = vld [vmem:[%s9916_s8 + $0xc0] sm:$0xff]  ;;  %v9034_v49 = vld [vmem:[%s10429_s24 + $0x178] sm:$0xff] }
 0x63c   :  { %3010 = vmatprep.subr.mxu0 %v9016_v13  ;;  %5226 = vtanh.f32 %v2775_v47  ;;  %2940 = vmatpush1.msra.mxu1 %v9022_v6  ;;  %11015 = vst [vmem:[#allocation13_spill] sm:$0xff] %v9028_v4  ;;  %11016 = vst [vmem:[#allocation105_spill] sm:$0xff] %v9034_v49  ;;  %v9040_v47 = vld [vmem:[%s9916_s8 + $0xb0] sm:$0xff] }
 0x63d   :  { %3011 = vmatpush1.msra.mxu0 %v9028_v4  ;;  %2941 = vmatprep.subr.mxu1 %v9034_v49  ;;  %11017 = vst [vmem:[#allocation14_spill] sm:$0xff] %v9040_v47  ;;  %v9046_v6 = vld [vmem:[%s10429_s24 + $0x170] sm:$0xff]  ;;  %v9052_v4 = vld [vmem:[%s9916_s8 + $0xa8] sm:$0xff] }
 0x63e   :  { %3012 = vmatprep.subr.mxu0 %v9040_v47  ;;  %11018 = vst [vmem:[#allocation15_spill] sm:$0xff] %v9046_v6  ;;  %2942 = vmatpush1.msra.mxu1 %v9046_v6  ;;  %11019 = vst [vmem:[#allocation4_spill] sm:$0xff] %v9052_v4  ;;  %v9058_v49 = vld [vmem:[%s10429_s24 + $0x148] sm:$0xff]  ;;  %v9064_v47 = vld [vmem:[%s9916_s8 + $0x98] sm:$0xff] }
 0x63f   :  { %3013 = vmatpush1.msra.mxu0 %v9052_v4  ;;  %11020 = vst [vmem:[#allocation16_spill] sm:$0xff] %v9058_v49  ;;  %2943 = vmatprep.subr.mxu1 %v9058_v49  ;;  %11021 = vst [vmem:[#allocation106_spill] sm:$0xff] %v9064_v47  ;;  %v9070_v6 = vld [vmem:[%s10429_s24 + $0x140] sm:$0xff]  ;;  %v9076_v4 = vld [vmem:[%s9916_s8 + $0x90] sm:$0xff] }
 0x640   :  { %3014 = vmatprep.subr.mxu0 %v9064_v47  ;;  %11022 = vst [vmem:[#allocation107_spill] sm:$0xff] %v9070_v6  ;;  %2944 = vmatpush1.msra.mxu1 %v9070_v6  ;;  %11023 = vst [vmem:[#allocation108_spill] sm:$0xff] %v9076_v4  ;;  %v9082_v49 = vld [vmem:[%s10429_s24 + $0x118] sm:$0xff]  ;;  %v9088_v47 = vld [vmem:[%s9916_s8 + $0x80] sm:$0xff] }
 0x641   :  { %3015 = vmatpush1.msra.mxu0 %v9076_v4  ;;  %11024 = vst [vmem:[#allocation110_spill] sm:$0xff] %v9082_v49  ;;  %2945 = vmatprep.subr.mxu1 %v9082_v49  ;;  %11025 = vst [vmem:[#allocation111_spill] sm:$0xff] %v9088_v47  ;;  %v9094_v6 = vld [vmem:[%s10429_s24 + $0x110] sm:$0xff]  ;;  %v9100_v4 = vld [vmem:[%s9916_s8 + $0x78] sm:$0xff] }
 0x642   :  { %3016 = vmatprep.subr.mxu0 %v9088_v47  ;;  %11026 = vst [vmem:[#allocation39_spill] sm:$0xff] %v9094_v6  ;;  %2946 = vmatpush1.msra.mxu1 %v9094_v6  ;;  %11027 = vst [vmem:[#allocation40_spill] sm:$0xff] %v9100_v4  ;;  %v9106_v49 = vld [vmem:[%s10429_s24 + $0xe8] sm:$0xff]  ;;  %v5225_v6 = vpop.eup %5224 }
 0x643   :  { %3017 = vmatpush1.msra.mxu0 %v9100_v4  ;;  %2947 = vmatprep.subr.mxu1 %v9106_v49  ;;  %v9112_v47 = vld [vmem:[%s9916_s8 + $0x68] sm:$0xff] }
 0x644   :  { %11028 = vst [vmem:[#allocation52_spill] sm:$0xff] %v9112_v47  ;;  %3018 = vmatprep.subr.mxu0 %v9112_v47  ;;  %2948 = vmatpush1.msra.mxu1 %v10907_v14  ;;  %v2777_v14 = vsub.f32 1.0, %v5225_v6 }
 0x645   :  { %3019 = vmatpush1.msra.mxu0 %v10908_v38  ;;  %2949 = vmatprep.subr.mxu1 %v10909_v32  ;;  %v2779_v32 = vmul.f32 %v5225_v6, %v8395_v56  ;;  %v11062_v6 = vld [vmem:[#allocation47_spill] sm:$0xff]  ;;  %v11093_v56 = vld [vmem:[#allocation45_spill] sm:$0xff] }
 0x646   :  { %3020 = vmatprep.subr.mxu0 %v10910_v19  ;;  %2950 = vmatpush1.msra.mxu1 %v10911_v50  ;;  %v11036_v50 = vld [vmem:[#allocation18_spill] sm:$0xff] }
 0x647   :  { %3021 = vmatpush1.msra.mxu0 %v10912_v0  ;;  %2951 = vmatprep.subr.mxu1 %v10913_v61  ;;  %v11037_v0 = vld [vmem:[#allocation87_spill] sm:$0xff] }
 0x648   :  { %3022 = vmatprep.subr.mxu0 %v10914_v36  ;;  %2952 = vmatpush1.msra.mxu1 %v10915_v52  ;;  %v11038_v61 = vld [vmem:[#allocation19_spill] sm:$0xff]  ;;  %v11039_v36 = vld [vmem:[#allocation20_spill] sm:$0xff] }
 0x649   :  { %3023 = vmatpush1.msra.mxu0 %v10916_v31  ;;  %v5227_v47 = vpop.eup %5226  ;;  %2953 = vmatprep.subr.mxu1 %v10917_v1  ;;  %v11040_v52 = vld [vmem:[#allocation88_spill] sm:$0xff]  ;;  %v11041_v31 = vld [vmem:[#allocation21_spill] sm:$0xff]  ;;  %v11042_v1 = vld [vmem:[#allocation22_spill] sm:$0xff] }
 0x64a   :  { %3024 = vmatprep.subr.mxu0 %v10918_v24  ;;  %2954 = vmatpush1.msra.mxu1 %v10919_v45  ;;  %v2778_v38 = vmul.f32 %v5227_v47, %v2777_v14  ;;  %v11043_v24 = vld [vmem:[#allocation89_spill] sm:$0xff]  ;;  %v11044_v45 = vld [vmem:[#allocation23_spill] sm:$0xff]  ;;  %v11064_v14 = vld [vmem:[#allocation60_spill] sm:$0xff] }
 0x64b   :  { %3025 = vmatpush1.msra.mxu0 %v8098_v43  ;;  %2955 = vmatprep.subr.mxu1 %v8105_v34  ;;  %v11029_v34 = vld [vmem:[#allocation100_spill] sm:$0xff]  ;;  %v11030_v43 = vld [vmem:[#allocation102_spill] sm:$0xff]  ;;  %v11063_v47 = vld [vmem:[#allocation59_spill] sm:$0xff] }
 0x64c   :  { %3026 = vmatprep.subr.mxu0 %v8111_v44  ;;  %2956 = vmatpush1.msra.mxu1 %v8117_v42  ;;  %v9134_v19 = vadd.f32 %v2779_v32, %v2778_v38  ;;  %v11031_v44 = vld [vmem:[#allocation85_spill] sm:$0xff]  ;;  %v11032_v42 = vld [vmem:[#allocation103_spill] sm:$0xff]  ;;  %v11066_v32 = vld [vmem:[#allocation62_spill] sm:$0xff] }
 0x64d   :  { %3027 = vmatpush1.msra.mxu0 %v8126_v58  ;;  %3060 = vmatprep.mubr.f32.mxu0 %v10458_v35  ;;  %v11033_v58 = vld [vmem:[#allocation38_spill] sm:$0xff]  ;;  %v11065_v38 = vld [vmem:[#allocation61_spill] sm:$0xff] }
 0x64e   :  { %2990 = vmatmul.mubr.f32.vlgmr.msra.gmra.mxu1 %v8845_v21  ;;  %3061 = vmatmul.mubr.f32.vlgmr.msra.gmra.mxu0 %v9134_v19 }
 0x64f   :  { %4879 = vmatprep.subr.mxu1 %v10458_v35  ;;  %4911 = vmatprep.mubr.msk.f32.mxu1 %vm5599_vm0, %v10458_v35 }
 0x650   :  { %4880 = vmatpush3.msra.mxu1 %v8138_v55  ;;  %3191 = vmatprep.subr.mxu0 %v8408_v62  ;;  %v11034_v55 = vld [vmem:[#allocation86_spill] sm:$0xff]  ;;  %v11045_v62 = vld [vmem:[#allocation24_spill] sm:$0xff] }
 0x651   :  { %4881 = vmatprep.subr.mxu1 %v10458_v35  ;;  %3192 = vmatpush1.msra.mxu0 %v8415_v11  ;;  %v11046_v11 = vld [vmem:[#allocation90_spill] sm:$0xff] }
 0x652   :  { %4882 = vmatpush3.msra.mxu1 %v8147_v40  ;;  %3193 = vmatprep.subr.mxu0 %v8422_v27  ;;  %v11035_v40 = vld [vmem:[#allocation17_spill] sm:$0xff] }
 0x653   :  { %4883 = vmatprep.subr.mxu1 %v10458_v35  ;;  %3194 = vmatpush1.msra.mxu0 %v8429_v5  ;;  %v11047_v27 = vld [vmem:[#allocation25_spill] sm:$0xff]  ;;  %v11048_v5 = vld [vmem:[#allocation26_spill] sm:$0xff] }
 0x654   :  { %4884 = vmatpush3.msra.mxu1 %v10921_v3  ;;  %3195 = vmatprep.subr.mxu0 %v8436_v2  ;;  %v11049_v3 = vld [vmem:[#allocation91_spill] sm:$0xff] }
 0x655   :  { %4885 = vmatprep.subr.mxu1 %v10458_v35  ;;  %3196 = vmatpush1.msra.mxu0 %v8443_v28  ;;  %v11050_v2 = vld [vmem:[#allocation27_spill] sm:$0xff]  ;;  %v11051_v28 = vld [vmem:[#allocation28_spill] sm:$0xff] }
 0x656   :  { %4886 = vmatpush3.msra.mxu1 %v10922_v23  ;;  %3197 = vmatprep.subr.mxu0 %v8450_v22  ;;  %v11052_v23 = vld [vmem:[#allocation92_spill] sm:$0xff]  ;;  %v11053_v22 = vld [vmem:[#allocation29_spill] sm:$0xff] }
 0x657   :  { %4887 = vmatprep.subr.mxu1 %v10458_v35  ;;  %3198 = vmatpush1.msra.mxu0 %v8457_v59  ;;  %v11054_v59 = vld [vmem:[#allocation30_spill] sm:$0xff] }
 0x658   :  { %4888 = vmatpush3.msra.mxu1 %v10923_v8  ;;  %3199 = vmatprep.subr.mxu0 %v8464_v29  ;;  %v11055_v8 = vld [vmem:[#allocation93_spill] sm:$0xff]  ;;  %v11056_v29 = vld [vmem:[#allocation31_spill] sm:$0xff] }
 0x659   :  { %4889 = vmatprep.subr.mxu1 %v10458_v35  ;;  %3200 = vmatpush1.msra.mxu0 %v8471_v12  ;;  %v11057_v12 = vld [vmem:[#allocation32_spill] sm:$0xff] }
 0x65a   :  { %4890 = vmatpush3.msra.mxu1 %v10924_v57  ;;  %3201 = vmatprep.subr.mxu0 %v8478_v54  ;;  %v11058_v57 = vld [vmem:[#allocation35_spill] sm:$0xff]  ;;  %v11059_v54 = vld [vmem:[#allocation36_spill] sm:$0xff] }
 0x65b   :  { %4891 = vmatprep.subr.mxu1 %v10458_v35  ;;  %3202 = vmatpush1.msra.mxu0 %v8485_v26  ;;  %v11060_v26 = vld [vmem:[#allocation33_spill] sm:$0xff] }
 0x65c   :  { %4892 = vmatpush3.msra.mxu1 %v10925_v60  ;;  %3203 = vmatprep.subr.mxu0 %v11029_v34  ;;  %v11061_v60 = vld [vmem:[#allocation34_spill] sm:$0xff]  ;;  %v11067_v34 = vld [vmem:[#allocation63_spill] sm:$0xff] }
 0x65d   :  { %4893 = vmatprep.subr.mxu1 %v10458_v35  ;;  %3204 = vmatpush1.msra.mxu0 %v11030_v43  ;;  %v11068_v43 = vld [vmem:[#allocation64_spill] sm:$0xff] }
 0x65e   :  { %4894 = vmatpush3.msra.mxu1 %v11031_v44  ;;  %3205 = vmatprep.subr.mxu0 %v11032_v42  ;;  %v11069_v44 = vld [vmem:[#allocation65_spill] sm:$0xff]  ;;  %v11070_v42 = vld [vmem:[#allocation66_spill] sm:$0xff] }
 0x65f   :  { %4895 = vmatprep.subr.mxu1 %v10458_v35  ;;  %3206 = vmatpush1.msra.mxu0 %v11033_v58  ;;  %v11071_v58 = vld [vmem:[#allocation67_spill] sm:$0xff] }
 0x660   :  { %4896 = vmatpush3.msra.mxu1 %v11034_v55  ;;  %3207 = vmatprep.subr.mxu0 %v11035_v40  ;;  %v11072_v55 = vld [vmem:[#allocation68_spill] sm:$0xff]  ;;  %v11073_v40 = vld [vmem:[#allocation69_spill] sm:$0xff] }
 0x661   :  { %4897 = vmatprep.subr.mxu1 %v10458_v35  ;;  %3208 = vmatpush1.msra.mxu0 %v11036_v50  ;;  %v11074_v50 = vld [vmem:[#allocation70_spill] sm:$0xff] }
 0x662   :  { %4898 = vmatpush3.msra.mxu1 %v11037_v0  ;;  %3209 = vmatprep.subr.mxu0 %v11038_v61  ;;  %v11075_v0 = vld [vmem:[#allocation71_spill] sm:$0xff]  ;;  %v11076_v61 = vld [vmem:[#allocation72_spill] sm:$0xff] }
 0x663   :  { %4899 = vmatprep.subr.mxu1 %v10458_v35  ;;  %3210 = vmatpush1.msra.mxu0 %v11039_v36  ;;  %v11077_v36 = vld [vmem:[#allocation73_spill] sm:$0xff] }
 0x664   :  { %4900 = vmatpush3.msra.mxu1 %v11040_v52  ;;  %3211 = vmatprep.subr.mxu0 %v11041_v31  ;;  %v11078_v52 = vld [vmem:[#allocation74_spill] sm:$0xff]  ;;  %v11079_v31 = vld [vmem:[#allocation75_spill] sm:$0xff] }
 0x665   :  { %4901 = vmatprep.subr.mxu1 %v10458_v35  ;;  %3212 = vmatpush1.msra.mxu0 %v11042_v1  ;;  %v11080_v1 = vld [vmem:[#allocation76_spill] sm:$0xff] }
 0x666   :  { %4902 = vmatpush3.msra.mxu1 %v11043_v24  ;;  %3213 = vmatprep.subr.mxu0 %v11044_v45  ;;  %v11081_v24 = vld [vmem:[#allocation77_spill] sm:$0xff]  ;;  %v11082_v45 = vld [vmem:[#allocation78_spill] sm:$0xff] }
 0x667   :  { %4903 = vmatprep.subr.mxu1 %v10458_v35  ;;  %3214 = vmatpush1.msra.mxu0 %v11045_v62  ;;  %v11083_v62 = vld [vmem:[#allocation79_spill] sm:$0xff] }
 0x668   :  { %4904 = vmatpush3.msra.mxu1 %v11046_v11  ;;  %3215 = vmatprep.subr.mxu0 %v11047_v27  ;;  %v11084_v11 = vld [vmem:[#allocation80_spill] sm:$0xff]  ;;  %v11085_v27 = vld [vmem:[#allocation81_spill] sm:$0xff] }
 0x669   :  { %4905 = vmatprep.subr.mxu1 %v10458_v35  ;;  %3216 = vmatpush1.msra.mxu0 %v11048_v5  ;;  %v11086_v5 = vld [vmem:[#allocation82_spill] sm:$0xff] }
 0x66a   :  { %4906 = vmatpush3.msra.mxu1 %v11049_v3  ;;  %3217 = vmatprep.subr.mxu0 %v11050_v2  ;;  %v11087_v3 = vld [vmem:[#allocation83_spill] sm:$0xff]  ;;  %v11088_v2 = vld [vmem:[#allocation84_spill] sm:$0xff] }
 0x66b   :  { %4907 = vmatprep.subr.mxu1 %v10458_v35  ;;  %3218 = vmatpush1.msra.mxu0 %v11051_v28  ;;  %v11089_v28 = vld [vmem:[#allocation41_spill] sm:$0xff] }
 0x66c   :  { %4908 = vmatpush3.msra.mxu1 %v11052_v23  ;;  %3219 = vmatprep.subr.mxu0 %v11053_v22  ;;  %v11090_v23 = vld [vmem:[#allocation42_spill] sm:$0xff]  ;;  %v11091_v22 = vld [vmem:[#allocation55_spill] sm:$0xff] }
 0x66d   :  { %4909 = vmatprep.subr.mxu1 %v10458_v35  ;;  %3220 = vmatpush1.msra.mxu0 %v11054_v59 }
 0x66e   :  { %4910 = vmatpush3.msra.mxu1 %v11055_v8  ;;  %3221 = vmatprep.subr.mxu0 %v11056_v29  ;;  %v11092_v8 = vld [vmem:[#allocation49_spill] sm:$0xff] }
 0x66f   :  { %4912 = vmatmul.mubr.f32.vlgmr.msra.gmra.mxu1 %v9134_v19  ;;  %3262 = vmatprep.subr.mxu1 %v11057_v12 }
 0x670   :  { %3263 = vmatpush1.msra.mxu1 %v11058_v57  ;;  %3222 = vmatpush1.msra.mxu0 %v11059_v54 }
 0x671   :  { %3264 = vmatprep.subr.mxu1 %v11060_v26  ;;  %3255 = vmatprep.mubr.f32.mxu0 %v10458_v35 }
 0x672   :  { %3265 = vmatpush1.msra.mxu1 %v11061_v60  ;;  %3326 = vmatprep.mubr.f32.mxu1 %v10458_v35 }
 0x673   :  { %3266 = vmatprep.subr.mxu1 %v11062_v6  ;;  %3333 = vmatprep.subr.mxu0 %v11063_v47 }
 0x674   :  { %3267 = vmatpush1.msra.mxu1 %v11064_v14 }
 0x675   :  { %3268 = vmatprep.subr.mxu1 %v11065_v38 }
 0x676   :  { %3269 = vmatpush1.msra.mxu1 %v11066_v32 }
 0x677   :  { %3270 = vmatprep.subr.mxu1 %v11067_v34 }
 0x678   :  { %3271 = vmatpush1.msra.mxu1 %v11068_v43 }
 0x679   :  { %3272 = vmatprep.subr.mxu1 %v11069_v44 }
 0x67a   :  { %3273 = vmatpush1.msra.mxu1 %v11070_v42 }
 0x67b   :  { %3274 = vmatprep.subr.mxu1 %v11071_v58 }
 0x67c   :  { %3275 = vmatpush1.msra.mxu1 %v11072_v55 }
 0x67d   :  { %3276 = vmatprep.subr.mxu1 %v11073_v40 }
 0x67e   :  { %3277 = vmatpush1.msra.mxu1 %v11074_v50 }
 0x67f   :  { %3278 = vmatprep.subr.mxu1 %v11075_v0 }
 0x680   :  { %3279 = vmatpush1.msra.mxu1 %v11076_v61 }
 0x681   :  { %3280 = vmatprep.subr.mxu1 %v11077_v36 }
 0x682   :  { %3281 = vmatpush1.msra.mxu1 %v11078_v52  ;;  %v11097_v52 = vld [vmem:[#allocation6_spill] sm:$0xff] }
 0x683   :  { %3282 = vmatprep.subr.mxu1 %v11079_v31 }
 0x684   :  { %3283 = vmatpush1.msra.mxu1 %v11080_v1 }
 0x685   :  { %3284 = vmatprep.subr.mxu1 %v11081_v24 }
 0x686   :  { %3285 = vmatpush1.msra.mxu1 %v11082_v45 }
 0x687   :  { %3286 = vmatprep.subr.mxu1 %v11083_v62 }
 0x688   :  { %3287 = vmatpush1.msra.mxu1 %v11084_v11 }
 0x689   :  { %3288 = vmatprep.subr.mxu1 %v11085_v27  ;;  %v11094_v27 = vld [vmem:[#allocation51_spill] sm:$0xff] }
 0x68a   :  { %3289 = vmatpush1.msra.mxu1 %v11086_v5  ;;  %v11095_v5 = vld [vmem:[#allocation46_spill] sm:$0xff] }
 0x68b   :  { %3290 = vmatprep.subr.mxu1 %v11087_v3 }
 0x68c   :  { %3291 = vmatpush1.msra.mxu1 %v11088_v2 }
 0x68d   :  { %3292 = vmatprep.subr.mxu1 %v11089_v28 }
 0x68e   :  { %3293 = vmatpush1.msra.mxu1 %v11090_v23 }
 0x68f   :  { %3404 = vmatprep.subr.mxu1 %v11091_v22 }
 0x6ed   :  { %v2849_v59 = vpop.f32.mrf.mxu1  ;;  %v2920_v23 = vpop.f32.mrf.mxu0 }
 0x6ee   :  { %v3141_v29 = vadd.f32 %v2849_v59, %v11092_v8  ;;  %v11096_v59 = vld [vmem:[#allocation5_spill] sm:$0xff] }
 0x6ef   :  { %v2851_v54 = vpop.f32.mrf.mxu1  ;;  %v2922_v22 = vpop.f32.mrf.mxu0 }
 0x6f0   :  { %v3144_v47 = vadd.f32 %v3141_v29, %v11093_v56  ;;  %v3142_v62 = vadd.f32 %v2851_v54, %v11094_v27  ;;  %v3165_v8 = vadd.f32 %v2922_v22, %v11096_v59 }
 0x6f2   :  { %v4407_v11 = vmul.f32 -1.442695, %v3144_v47  ;;  %v3151_v3 = vadd.f32 %v3142_v62, %v11095_v5  ;;  %v11098_v47 = vld [vmem:[#allocation58_spill] sm:$0xff] }
 0x6f3   :  { %v3143_v29 = vadd.f32 %v2920_v23, %v11098_v47 }
 0x6f4   :  { %5228 = vpow2.f32 %v4407_v11  ;;  %v4408_v45 = vmul.f32 -1.442695, %v3151_v3 }
 0x6f6   :  { %5230 = vpow2.f32 %v4408_v45 }
 0x701   :  { %v5229_v2 = vpop.eup %5228 }
 0x702   :  { %v3148_v28 = vadd.f32 1.0, %v5229_v2  ;;  %v11099_v2 = vld [vmem:[#allocation57_spill] sm:$0xff] }
 0x703   :  { %v5231_v24 = vpop.eup %5230 }
 0x704   :  { %5232 = vrcp.f32 %v3148_v28  ;;  %v3155_v1 = vadd.f32 1.0, %v5231_v24 }
 0x706   :  { %5234 = vrcp.f32 %v3155_v1 }
 0x70e   :  { %v3062_v31 = vpop.f32.mrf.mxu0  ;;  %v2991_v45 = vpop.f32.mrf.mxu1 }
 0x70f   :  { %v3063_v56 = vadd.f32 %v3062_v31, %v11097_v52  ;;  %v3166_v24 = vadd.f32 %v2991_v45, %v7027_v15  ;;  %v11104_v45 = vld [vmem:[#allocation7_spill] sm:$0xff] }
 0x710   :  { %v3064_v54 = vpop.f32.mrf.mxu0 }
 0x711   :  { %v5233_v11 = vpop.eup %5232  ;;  %v3168_v27 = vadd.f32 %v3165_v8, %v3063_v56  ;;  %v3065_v3 = vadd.f32 %v3064_v54, %v7023_v9  ;;  %v11101_v54 = vld [vmem:[#allocation97_spill] sm:$0xff] }
 0x712   :  { %v3158_v62 = vmul.f32 %v5233_v11, %v3143_v29  ;;  %v11102_v11 = vld [vmem:[#allocation98_spill] sm:$0xff] }
 0x713   :  { %v4409_v5 = vmul.f32 -1.442695, %v3168_v27  ;;  %v3175_v22 = vadd.f32 %v3166_v24, %v3065_v3  ;;  %v5235_v31 = vpop.eup %5234 }
 0x714   :  { %v3159_v28 = vadd.f32 %v3158_v62, %v11099_v2  ;;  %v3161_v47 = vsub.f32 1.0, %v5235_v31  ;;  %v3163_v1 = vmul.f32 %v5235_v31, %v8845_v21  ;;  %v11103_v62 = vld [vmem:[#allocation101_spill] sm:$0xff] }
 0x715   :  { %5236 = vpow2.f32 %v4409_v5  ;;  %v4410_v59 = vmul.f32 -1.442695, %v3175_v22  ;;  %v11105_v2 = vld [vmem:[#allocation53_spill] sm:$0xff] }
 0x716   :  { %5238 = vtanh.f32 %v3159_v28  ;;  %v11106_v28 = vld [vmem:[#allocation112_spill] sm:$0xff]  ;;  %v11107_v22 = vld [vmem:[#allocation113_spill] sm:$0xff] }
 0x717   :  { %5240 = vpow2.f32 %v4410_v59  ;;  %v11100_v59 = vld [vmem:[#allocation96_spill] sm:$0xff] }
 0x722   :  { %v5237_v23 = vpop.eup %5236 }
 0x723   :  { %v5239_v52 = vpop.eup %5238  ;;  %v3172_v8 = vadd.f32 1.0, %v5237_v23 }
 0x724   :  { %v3162_v56 = vmul.f32 %v5239_v52, %v3161_v47  ;;  %v5241_v21 = vpop.eup %5240  ;;  %v2993_v52 = vpop.f32.mrf.mxu1 }
 0x725   :  { %5242 = vrcp.f32 %v3172_v8  ;;  %v3179_v47 = vadd.f32 1.0, %v5241_v21  ;;  %v3167_v31 = vadd.f32 %v2993_v52, %v7053_v37  ;;  %v11108_v8 = vld [vmem:[#allocation115_spill] sm:$0xff]  ;;  %v11110_v21 = vld [vmem:[#allocation10_spill] sm:$0xff]  ;;  %v11112_v52 = vld [vmem:[#allocation12_spill] sm:$0xff] }
 0x726   :  { %v9254_v27 = vadd.f32 %v3163_v1, %v3162_v56  ;;  %v11109_v56 = vld [vmem:[#allocation116_spill] sm:$0xff]  ;;  %v9343_v37 = vld [vmem:[%s10429_s24 + $0x88] sm:$0xff] }
 0x727   :  { %5244 = vrcp.f32 %v3179_v47  ;;  %v11113_v47 = vld [vmem:[#allocation13_spill] sm:$0xff] }
 0x728   :  { %3256 = vmatmul.mubr.f32.vlgmr.msra.gmra.mxu0 %v9254_v27  ;;  %3327 = vmatmul.mubr.f32.vlgmr.msra.gmra.mxu1 %v9254_v27 }
 0x729   :  { %3334 = vmatpush1.msra.mxu0 %v8852_v33  ;;  %3405 = vmatpush1.msra.mxu1 %v8858_v51 }
 0x72a   :  { %3335 = vmatprep.subr.mxu0 %v8864_v39  ;;  %3406 = vmatprep.subr.mxu1 %v8870_v25 }
 0x72b   :  { %3336 = vmatpush1.msra.mxu0 %v8876_v63  ;;  %3407 = vmatpush1.msra.mxu1 %v8882_v10 }
 0x72c   :  { %3337 = vmatprep.subr.mxu0 %v8888_v17  ;;  %3408 = vmatprep.subr.mxu1 %v8894_v16  ;;  %v9398_v16 = vld [vmem:[%s9916_s8 + $0x8] sm:$0xff] }
 0x72d   :  { %3338 = vmatpush1.msra.mxu0 %v8900_v53  ;;  %3409 = vmatpush1.msra.mxu1 %v8906_v48 }
 0x72e   :  { %3339 = vmatprep.subr.mxu0 %v8912_v7  ;;  %3410 = vmatprep.subr.mxu1 %v11100_v59 }
 0x72f   :  { %v3133_v29 = vpop.f32.mrf.mxu1  ;;  %3340 = vmatpush1.msra.mxu0 %v11101_v54  ;;  %3411 = vmatpush1.msra.mxu1 %v11102_v11  ;;  %v9385_v11 = vld [vmem:[%s9916_s8 + $0x18] sm:$0xff] }
 0x730   :  { %3341 = vmatprep.subr.mxu0 %v11103_v62  ;;  %3412 = vmatprep.subr.mxu1 %v8942_v18  ;;  %v3134_v5 = vadd.f32 %v3133_v29, %v11104_v45  ;;  %v11111_v29 = vld [vmem:[#allocation11_spill] sm:$0xff]  ;;  %v9373_v18 = vld [vmem:[%s9916_s8 + $0x20] sm:$0xff] }
 0x731   :  { %v4913_v3 = vpop.f32.mrf.mxu1  ;;  %3342 = vmatpush1.msra.mxu0 %v11105_v2  ;;  %3413 = vmatpush1.msra.mxu1 %v11106_v28  ;;  %11131 = vst [vmem:[#allocation85_spill] sm:$0xff] %v9373_v18 }
 0x732   :  { %v5243_v24 = vpop.eup %5242  ;;  %3343 = vmatprep.subr.mxu0 %v11107_v22  ;;  %3414 = vmatprep.subr.mxu1 %v8967_v30  ;;  %v11115_v3 = vld [vmem:[#allocation14_spill] sm:$0xff]  ;;  %v9355_v30 = vld [vmem:[%s10429_s24 + $0x80] sm:$0xff] }
 0x733   :  { %v3182_v23 = vmul.f32 %v5243_v24, %v3134_v5  ;;  %3344 = vmatpush1.msra.mxu0 %v8974_v46  ;;  %3415 = vmatpush1.msra.mxu1 %v11108_v8  ;;  %v11114_v5 = vld [vmem:[#allocation105_spill] sm:$0xff]  ;;  %v11116_v24 = vld [vmem:[#allocation15_spill] sm:$0xff] }
 0x734   :  { %3345 = vmatprep.subr.mxu0 %v11109_v56  ;;  %3416 = vmatprep.subr.mxu1 %v8992_v41  ;;  %v11120_v41 = vld [vmem:[#allocation107_spill] sm:$0xff] }
 0x735   :  { %v3183_v1 = vadd.f32 %v3182_v23, %v3167_v31  ;;  %3346 = vmatpush1.msra.mxu0 %v8998_v20  ;;  %3417 = vmatpush1.msra.mxu1 %v11110_v21  ;;  %v11117_v31 = vld [vmem:[#allocation4_spill] sm:$0xff]  ;;  %v11119_v21 = vld [vmem:[#allocation106_spill] sm:$0xff]  ;;  %v11123_v8 = vld [vmem:[#allocation111_spill] sm:$0xff] }
 0x736   :  { %3347 = vmatprep.subr.mxu0 %v11111_v29  ;;  %3418 = vmatprep.subr.mxu1 %v9016_v13  ;;  %v11118_v23 = vld [vmem:[#allocation16_spill] sm:$0xff] }
 0x737   :  { %5246 = vtanh.f32 %v3183_v1  ;;  %3348 = vmatpush1.msra.mxu0 %v11112_v52  ;;  %3419 = vmatpush1.msra.mxu1 %v11113_v47  ;;  %v11121_v13 = vld [vmem:[#allocation108_spill] sm:$0xff]  ;;  %v11122_v1 = vld [vmem:[#allocation110_spill] sm:$0xff]  ;;  %v11124_v47 = vld [vmem:[#allocation39_spill] sm:$0xff] }
 0x738   :  { %3349 = vmatprep.subr.mxu0 %v11114_v5  ;;  %3420 = vmatprep.subr.mxu1 %v11115_v3  ;;  %v11125_v3 = vld [vmem:[#allocation52_spill] sm:$0xff] }
 0x739   :  { %3350 = vmatpush1.msra.mxu0 %v11116_v24  ;;  %3421 = vmatpush1.msra.mxu1 %v11117_v31  ;;  %v9331_v31 = vld [vmem:[%s10429_s24 + $0xb0] sm:$0xff] }
 0x73a   :  { %3351 = vmatprep.subr.mxu0 %v11118_v23  ;;  %3422 = vmatprep.subr.mxu1 %v11119_v21  ;;  %v9307_v21 = vld [vmem:[%s10429_s24 + $0xe0] sm:$0xff] }
 0x73b   :  { %3352 = vmatpush1.msra.mxu0 %v11120_v41  ;;  %3423 = vmatpush1.msra.mxu1 %v11121_v13  ;;  %v9313_v13 = vld [vmem:[%s9916_s8 + $0x60] sm:$0xff] }
 0x73c   :  { %3353 = vmatprep.subr.mxu0 %v11122_v1  ;;  %3424 = vmatprep.subr.mxu1 %v11123_v8  ;;  %11126 = vst [vmem:[#allocation43_spill] sm:$0xff] %v9313_v13  ;;  %v5245_v8 = vpop.eup %5244 }
 0x73d   :  { %3354 = vmatpush1.msra.mxu0 %v11124_v47  ;;  %3425 = vmatpush1.msra.mxu1 %v9100_v4  ;;  %v9319_v4 = vld [vmem:[%s10429_s24 + $0xb8] sm:$0xff]  ;;  %v3185_v28 = vsub.f32 1.0, %v5245_v8  ;;  %v3187_v48 = vmul.f32 %v5245_v8, %v9134_v19  ;;  %v9413_v8 = vld [vmem:[%s9916_s8] sm:$0xff] }
 0x73e   :  { %3355 = vmatprep.subr.mxu0 %v9106_v49  ;;  %3426 = vmatprep.subr.mxu1 %v11125_v3  ;;  %v9325_v3 = vld [vmem:[%s9916_s8 + $0x50] sm:$0xff] }
 0x73f   :  { %3356 = vmatpush1.msra.mxu0 %v9307_v21  ;;  %3427 = vmatpush1.msra.mxu1 %v9313_v13  ;;  %11127 = vst [vmem:[#allocation44_spill] sm:$0xff] %v9325_v3  ;;  %v9337_v13 = vld [vmem:[%s9916_s8 + $0x48] sm:$0xff] }
 0x740   :  { %3357 = vmatprep.subr.mxu0 %v9319_v4  ;;  %3428 = vmatprep.subr.mxu1 %v9325_v3  ;;  %11128 = vst [vmem:[#allocation54_spill] sm:$0xff] %v9337_v13  ;;  %v9349_v3 = vld [vmem:[%s9916_s8 + $0x38] sm:$0xff] }
 0x741   :  { %3358 = vmatpush1.msra.mxu0 %v9331_v31  ;;  %3429 = vmatpush1.msra.mxu1 %v9337_v13  ;;  %11129 = vst [vmem:[#allocation100_spill] sm:$0xff] %v9349_v3  ;;  %v9361_v13 = vld [vmem:[%s9916_s8 + $0x30] sm:$0xff] }
 0x742   :  { %3359 = vmatprep.subr.mxu0 %v9343_v37  ;;  %3430 = vmatprep.subr.mxu1 %v9349_v3  ;;  %11130 = vst [vmem:[#allocation102_spill] sm:$0xff] %v9361_v13  ;;  %v9367_v3 = vld [vmem:[%s10429_s24 + $0x58] sm:$0xff] }
 0x743   :  { %3360 = vmatpush1.msra.mxu0 %v9355_v30  ;;  %3431 = vmatpush1.msra.mxu1 %v9361_v13  ;;  %v9379_v13 = vld [vmem:[%s10429_s24 + $0x50] sm:$0xff] }
 0x744   :  { %v5247_v45 = vpop.eup %5246  ;;  %3361 = vmatprep.subr.mxu0 %v9367_v3  ;;  %3432 = vmatprep.subr.mxu1 %v9373_v18  ;;  %v9392_v18 = vld [vmem:[%s10429_s24 + $0x28] sm:$0xff] }
 0x745   :  { %3362 = vmatpush1.msra.mxu0 %v9379_v13  ;;  %3433 = vmatpush1.msra.mxu1 %v9385_v11  ;;  %v3186_v59 = vmul.f32 %v5247_v45, %v3185_v28  ;;  %v9404_v45 = vld [vmem:[%s10429_s24 + $0x20] sm:$0xff] }
 0x746   :  { %3363 = vmatprep.subr.mxu0 %v9392_v18  ;;  %3434 = vmatprep.subr.mxu1 %v9398_v16 }
 0x747   :  { %3364 = vmatpush1.msra.mxu0 %v9404_v45  ;;  %3397 = vmatprep.mubr.f32.mxu0 %v10458_v35  ;;  %v9408_v28 = vadd.f32 %v3187_v48, %v3186_v59  ;;  %v9425_v48 = vld [vmem:[%s9916_s8 + $0x178] sm:$0xff]  ;;  %v9434_v59 = vld [vmem:[%s9916_s8 + $0x160] sm:$0xff] }
 0x748   :  { %3435 = vmatpush1.msra.mxu1 %v9413_v8  ;;  %3468 = vmatprep.mubr.f32.mxu1 %v10458_v35 }
 0x749   :  { %3398 = vmatmul.mubr.f32.vlgmr.msra.gmra.mxu0 %v9254_v27  ;;  %3469 = vmatmul.mubr.f32.vlgmr.msra.gmra.mxu1 %v9408_v28 }
 0x74a   :  { %4914 = vmatprep.subr.mxu0 %v10458_v35  ;;  %4946 = vmatprep.mubr.msk.f32.mxu0 %vm5599_vm0, %v10458_v35 }
 0x74b   :  { %4915 = vmatpush3.msra.mxu0 %v9425_v48  ;;  %3599 = vmatprep.subr.mxu1 %v11057_v12  ;;  %v9443_v12 = vld [vmem:[%s9916_s8 + $0x148] sm:$0xff] }
 0x74c   :  { %4916 = vmatprep.subr.mxu0 %v10458_v35  ;;  %3600 = vmatpush1.msra.mxu1 %v11058_v57  ;;  %v9452_v57 = vld [vmem:[%s9916_s8 + $0x130] sm:$0xff] }
 0x74d   :  { %4917 = vmatpush3.msra.mxu0 %v9434_v59  ;;  %3601 = vmatprep.subr.mxu1 %v11060_v26  ;;  %v9461_v26 = vld [vmem:[%s9916_s8 + $0x118] sm:$0xff] }
 0x74e   :  { %4918 = vmatprep.subr.mxu0 %v10458_v35  ;;  %3602 = vmatpush1.msra.mxu1 %v11061_v60  ;;  %v9470_v60 = vld [vmem:[%s9916_s8 + $0x100] sm:$0xff] }
 0x74f   :  { %4919 = vmatpush3.msra.mxu0 %v9443_v12  ;;  %3603 = vmatprep.subr.mxu1 %v11062_v6  ;;  %v9479_v6 = vld [vmem:[%s9916_s8 + $0xe8] sm:$0xff] }
 0x750   :  { %4920 = vmatprep.subr.mxu0 %v10458_v35  ;;  %3604 = vmatpush1.msra.mxu1 %v11064_v14  ;;  %v9488_v14 = vld [vmem:[%s9916_s8 + $0xd0] sm:$0xff] }
 0x751   :  { %4921 = vmatpush3.msra.mxu0 %v9452_v57  ;;  %3605 = vmatprep.subr.mxu1 %v11065_v38  ;;  %v9497_v38 = vld [vmem:[%s9916_s8 + $0xb8] sm:$0xff] }
 0x752   :  { %4922 = vmatprep.subr.mxu0 %v10458_v35  ;;  %3606 = vmatpush1.msra.mxu1 %v11066_v32  ;;  %v9506_v32 = vld [vmem:[%s9916_s8 + $0xa0] sm:$0xff] }
 0x753   :  { %4923 = vmatpush3.msra.mxu0 %v9461_v26  ;;  %3607 = vmatprep.subr.mxu1 %v11067_v34  ;;  %v11132_v34 = vld [vmem:[#allocation74_spill] sm:$0xff] }
 0x754   :  { %4924 = vmatprep.subr.mxu0 %v10458_v35  ;;  %3608 = vmatpush1.msra.mxu1 %v11068_v43  ;;  %v9515_v43 = vld [vmem:[%s9916_s8 + $0x88] sm:$0xff] }
 0x755   :  { %4925 = vmatpush3.msra.mxu0 %v9470_v60  ;;  %3609 = vmatprep.subr.mxu1 %v11069_v44  ;;  %v11133_v44 = vld [vmem:[#allocation75_spill] sm:$0xff] }
 0x756   :  { %4926 = vmatprep.subr.mxu0 %v10458_v35  ;;  %3610 = vmatpush1.msra.mxu1 %v11070_v42  ;;  %v11134_v42 = vld [vmem:[#allocation76_spill] sm:$0xff] }
 0x757   :  { %4927 = vmatpush3.msra.mxu0 %v9479_v6  ;;  %3611 = vmatprep.subr.mxu1 %v11071_v58  ;;  %v9524_v58 = vld [vmem:[%s9916_s8 + $0x70] sm:$0xff] }
 0x758   :  { %4928 = vmatprep.subr.mxu0 %v10458_v35  ;;  %3612 = vmatpush1.msra.mxu1 %v11072_v55  ;;  %v11135_v55 = vld [vmem:[#allocation77_spill] sm:$0xff] }
 0x759   :  { %4929 = vmatpush3.msra.mxu0 %v9488_v14  ;;  %3613 = vmatprep.subr.mxu1 %v11073_v40  ;;  %v11136_v40 = vld [vmem:[#allocation78_spill] sm:$0xff] }
 0x75a   :  { %4930 = vmatprep.subr.mxu0 %v10458_v35  ;;  %3614 = vmatpush1.msra.mxu1 %v11074_v50  ;;  %v9533_v50 = vld [vmem:[%s9916_s8 + $0x58] sm:$0xff] }
 0x75b   :  { %4931 = vmatpush3.msra.mxu0 %v9497_v38  ;;  %3615 = vmatprep.subr.mxu1 %v11075_v0  ;;  %v11137_v0 = vld [vmem:[#allocation79_spill] sm:$0xff] }
 0x75c   :  { %4932 = vmatprep.subr.mxu0 %v10458_v35  ;;  %3616 = vmatpush1.msra.mxu1 %v11076_v61  ;;  %v11138_v61 = vld [vmem:[#allocation80_spill] sm:$0xff] }
 0x75d   :  { %4933 = vmatpush3.msra.mxu0 %v9506_v32  ;;  %3617 = vmatprep.subr.mxu1 %v11077_v36  ;;  %v9542_v36 = vld [vmem:[%s9916_s8 + $0x40] sm:$0xff] }
 0x75e   :  { %4934 = vmatprep.subr.mxu0 %v10458_v35  ;;  %3618 = vmatpush1.msra.mxu1 %v11132_v34  ;;  %v11139_v34 = vld [vmem:[#allocation81_spill] sm:$0xff] }
 0x75f   :  { %4935 = vmatpush3.msra.mxu0 %v9515_v43  ;;  %3619 = vmatprep.subr.mxu1 %v11133_v44  ;;  %v11140_v44 = vld [vmem:[#allocation82_spill] sm:$0xff] }
 0x760   :  { %4936 = vmatprep.subr.mxu0 %v10458_v35  ;;  %3620 = vmatpush1.msra.mxu1 %v11134_v42  ;;  %v9551_v42 = vld [vmem:[%s9916_s8 + $0x28] sm:$0xff] }
 0x761   :  { %4937 = vmatpush3.msra.mxu0 %v9524_v58  ;;  %3621 = vmatprep.subr.mxu1 %v11135_v55  ;;  %v11141_v55 = vld [vmem:[#allocation83_spill] sm:$0xff] }
 0x762   :  { %4938 = vmatprep.subr.mxu0 %v10458_v35  ;;  %3622 = vmatpush1.msra.mxu1 %v11136_v40  ;;  %v11142_v40 = vld [vmem:[#allocation84_spill] sm:$0xff] }
 0x763   :  { %4939 = vmatpush3.msra.mxu0 %v9533_v50  ;;  %3623 = vmatprep.subr.mxu1 %v11137_v0  ;;  %v9560_v0 = vld [vmem:[%s9916_s8 + $0x10] sm:$0xff] }
 0x764   :  { %4940 = vmatprep.subr.mxu0 %v10458_v35  ;;  %3624 = vmatpush1.msra.mxu1 %v11138_v61  ;;  %v11143_v61 = vld [vmem:[#allocation41_spill] sm:$0xff] }
 0x765   :  { %4941 = vmatpush3.msra.mxu0 %v9542_v36  ;;  %3625 = vmatprep.subr.mxu1 %v11139_v34  ;;  %v11144_v34 = vld [vmem:[#allocation59_spill] sm:$0xff] }
 0x766   :  { %4942 = vmatprep.subr.mxu0 %v10458_v35  ;;  %3626 = vmatpush1.msra.mxu1 %v11140_v44  ;;  %v11145_v44 = vld [vmem:[#allocation42_spill] sm:$0xff] }
 0x767   :  { %4943 = vmatpush3.msra.mxu0 %v9551_v42  ;;  %3627 = vmatprep.subr.mxu1 %v11141_v55  ;;  %v11146_v55 = vld [vmem:[#allocation55_spill] sm:$0xff] }
 0x768   :  { %4944 = vmatprep.subr.mxu0 %v10458_v35  ;;  %3628 = vmatpush1.msra.mxu1 %v11142_v40 }
 0x769   :  { %4945 = vmatpush3.msra.mxu0 %v9560_v0  ;;  %3629 = vmatprep.subr.mxu1 %v11143_v61  ;;  %v11154_v61 = vld [vmem:[#allocation56_spill] sm:$0xff] }
 0x76a   :  { %4947 = vmatmul.mubr.f32.vlgmr.msra.gmra.mxu0 %v9408_v28  ;;  %3669 = vmatprep.subr.mxu0 %v11144_v34 }
 0x76b   :  { %3670 = vmatpush1.msra.mxu0 %v8852_v33  ;;  %3630 = vmatpush1.msra.mxu1 %v11145_v44 }
 0x76c   :  { %3671 = vmatprep.subr.mxu0 %v8864_v39  ;;  %3663 = vmatprep.mubr.f32.mxu1 %v10458_v35  ;;  %v11147_v39 = vld [vmem:[#allocation49_spill] sm:$0xff] }
 0x76d   :  { %3672 = vmatpush1.msra.mxu0 %v8876_v63  ;;  %3733 = vmatprep.mubr.f32.mxu0 %v10458_v35 }
 0x76e   :  { %3673 = vmatprep.subr.mxu0 %v8888_v17  ;;  %3743 = vmatprep.subr.mxu1 %v11146_v55 }
 0x76f   :  { %3674 = vmatpush1.msra.mxu0 %v8900_v53  ;;  %v11148_v53 = vld [vmem:[#allocation48_spill] sm:$0xff] }
 0x770   :  { %3675 = vmatprep.subr.mxu0 %v8912_v7 }
 0x771   :  { %3676 = vmatpush1.msra.mxu0 %v11101_v54 }
 0x772   :  { %3677 = vmatprep.subr.mxu0 %v11103_v62 }
 0x773   :  { %3678 = vmatpush1.msra.mxu0 %v11105_v2 }
 0x774   :  { %3679 = vmatprep.subr.mxu0 %v11107_v22 }
 0x775   :  { %3680 = vmatpush1.msra.mxu0 %v8974_v46 }
 0x776   :  { %3681 = vmatprep.subr.mxu0 %v11109_v56  ;;  %v11151_v56 = vld [vmem:[#allocation5_spill] sm:$0xff] }
 0x777   :  { %3682 = vmatpush1.msra.mxu0 %v8998_v20 }
 0x778   :  { %3683 = vmatprep.subr.mxu0 %v11111_v29  ;;  %v11152_v29 = vld [vmem:[#allocation6_spill] sm:$0xff] }
 0x779   :  { %3684 = vmatpush1.msra.mxu0 %v11112_v52 }
 0x77a   :  { %3685 = vmatprep.subr.mxu0 %v11114_v5 }
 0x77b   :  { %3686 = vmatpush1.msra.mxu0 %v11116_v24 }
 0x77c   :  { %3687 = vmatprep.subr.mxu0 %v11118_v23 }
 0x77d   :  { %3688 = vmatpush1.msra.mxu0 %v11120_v41 }
 0x77e   :  { %3689 = vmatprep.subr.mxu0 %v11122_v1 }
 0x77f   :  { %3690 = vmatpush1.msra.mxu0 %v11124_v47  ;;  %v11153_v47 = vld [vmem:[#allocation58_spill] sm:$0xff] }
 0x780   :  { %3691 = vmatprep.subr.mxu0 %v9106_v49 }
 0x781   :  { %3692 = vmatpush1.msra.mxu0 %v9307_v21 }
 0x782   :  { %3693 = vmatprep.subr.mxu0 %v9319_v4 }
 0x783   :  { %3694 = vmatpush1.msra.mxu0 %v9331_v31 }
 0x784   :  { %3695 = vmatprep.subr.mxu0 %v9343_v37  ;;  %v11149_v37 = vld [vmem:[#allocation51_spill] sm:$0xff] }
 0x785   :  { %3696 = vmatpush1.msra.mxu0 %v9355_v30  ;;  %v11150_v30 = vld [vmem:[#allocation50_spill] sm:$0xff] }
 0x786   :  { %3697 = vmatprep.subr.mxu0 %v9367_v3 }
 0x787   :  { %3698 = vmatpush1.msra.mxu0 %v9379_v13 }
 0x788   :  { %3699 = vmatprep.subr.mxu0 %v9392_v18 }
 0x789   :  { %3700 = vmatpush1.msra.mxu0 %v9404_v45 }
 0x78a   :  { %4949 = vmatprep.subr.mxu0 %v10458_v35 }
 0x7e8   :  { %v3257_v33 = vpop.f32.mrf.mxu0  ;;  %v3328_v13 = vpop.f32.mrf.mxu1 }
 0x7e9   :  { %v3549_v63 = vadd.f32 %v3257_v33, %v11147_v39  ;;  %v3551_v5 = vadd.f32 %v3328_v13, %v11153_v47 }
 0x7ea   :  { %v3259_v17 = vpop.f32.mrf.mxu0  ;;  %v3330_v62 = vpop.f32.mrf.mxu1 }
 0x7eb   :  { %v3552_v7 = vadd.f32 %v3549_v63, %v11148_v53  ;;  %v3550_v4 = vadd.f32 %v3259_v17, %v11149_v37  ;;  %v3573_v21 = vadd.f32 %v3330_v62, %v11151_v56  ;;  %v11162_v62 = vld [vmem:[#allocation114_spill] sm:$0xff] }
 0x7ed   :  { %v4411_v46 = vmul.f32 -1.442695, %v3552_v7  ;;  %v3559_v49 = vadd.f32 %v3550_v4, %v11150_v30  ;;  %v11155_v30 = vld [vmem:[#allocation94_spill] sm:$0xff] }
 0x7ef   :  { %5248 = vpow2.f32 %v4411_v46  ;;  %v4412_v41 = vmul.f32 -1.442695, %v3559_v49 }
 0x7f1   :  { %5250 = vpow2.f32 %v4412_v41  ;;  %v11156_v41 = vld [vmem:[#allocation95_spill] sm:$0xff] }
 0x7fc   :  { %v5249_v20 = vpop.eup %5248 }
 0x7fd   :  { %v3556_v18 = vadd.f32 1.0, %v5249_v20  ;;  %v11158_v20 = vld [vmem:[#allocation98_spill] sm:$0xff] }
 0x7fe   :  { %v5251_v54 = vpop.eup %5250 }
 0x7ff   :  { %5252 = vrcp.f32 %v3556_v18  ;;  %v3563_v2 = vadd.f32 1.0, %v5251_v54  ;;  %v11161_v54 = vld [vmem:[#allocation112_spill] sm:$0xff] }
 0x801   :  { %5254 = vrcp.f32 %v3563_v2  ;;  %v11163_v2 = vld [vmem:[#allocation8_spill] sm:$0xff] }
 0x809   :  { %v3470_v22 = vpop.f32.mrf.mxu1  ;;  %v3399_v1 = vpop.f32.mrf.mxu0 }
 0x80a   :  { %v3471_v52 = vadd.f32 %v3470_v22, %v11152_v29  ;;  %v3574_v44 = vadd.f32 %v3399_v1, %v7027_v15  ;;  %v11175_v1 = vld [vmem:[#allocation52_spill] sm:$0xff] }
 0x80b   :  { %v3472_v3 = vpop.f32.mrf.mxu1  ;;  %v3401_v49 = vpop.f32.mrf.mxu0 }
 0x80c   :  { %v5253_v24 = vpop.eup %5252  ;;  %v3576_v31 = vadd.f32 %v3573_v21, %v3471_v52  ;;  %v3473_v40 = vadd.f32 %v3472_v3, %v7023_v9  ;;  %v3575_v22 = vadd.f32 %v3401_v49, %v11163_v2  ;;  %v11164_v21 = vld [vmem:[#allocation115_spill] sm:$0xff]  ;;  %v11165_v52 = vld [vmem:[#allocation117_spill] sm:$0xff]  ;;  %v11183_v49 = vld [vmem:[#allocation118_spill] sm:$0xff] }
 0x80d   :  { %v3566_v23 = vmul.f32 %v5253_v24, %v3551_v5  ;;  %v11166_v5 = vld [vmem:[#allocation10_spill] sm:$0xff]  ;;  %v11168_v3 = vld [vmem:[#allocation13_spill] sm:$0xff] }
 0x80e   :  { %v4413_v45 = vmul.f32 -1.442695, %v3576_v31  ;;  %v3583_v55 = vadd.f32 %v3574_v44, %v3473_v40  ;;  %v5255_v39 = vpop.eup %5254  ;;  %v11169_v24 = vld [vmem:[#allocation14_spill] sm:$0xff]  ;;  %v11177_v40 = vld [vmem:[#allocation44_spill] sm:$0xff] }
 0x80f   :  { %v3567_v34 = vadd.f32 %v3566_v23, %v11154_v61  ;;  %v3569_v17 = vsub.f32 1.0, %v5255_v39  ;;  %v3571_v37 = vmul.f32 %v5255_v39, %v9254_v27  ;;  %v11171_v31 = vld [vmem:[#allocation106_spill] sm:$0xff]  ;;  %v11173_v23 = vld [vmem:[#allocation111_spill] sm:$0xff]  ;;  %v11179_v61 = vld [vmem:[#allocation100_spill] sm:$0xff] }
 0x810   :  { %5256 = vpow2.f32 %v4413_v45  ;;  %v4414_v33 = vmul.f32 -1.442695, %v3583_v55  ;;  %v3926_v39 = vld [vmem:[%s9923_s10 + $0x48] sm:$0xff] }
 0x811   :  { %5258 = vtanh.f32 %v3567_v34 }
 0x812   :  { %5260 = vpow2.f32 %v4414_v33  ;;  %v3932_v33 = vld [vmem:[%s9923_s10 + $0x78] sm:$0xff] }
 0x81d   :  { %v5257_v63 = vpop.eup %5256 }
 0x81e   :  { %v5259_v53 = vpop.eup %5258  ;;  %v3580_v7 = vadd.f32 1.0, %v5257_v63  ;;  %v3925_v63 = vld [vmem:[%s9923_s10 + $0x40] sm:$0xff] }
 0x81f   :  { %v3570_v46 = vmul.f32 %v5259_v53, %v3569_v17  ;;  %v5261_v27 = vpop.eup %5260  ;;  %v3924_v17 = vld [vmem:[%s9923_s10 + $0x38] sm:$0xff]  ;;  %v3923_v53 = vld [vmem:[%s9923_s10 + $0x30] sm:$0xff] }
 0x820   :  { %5262 = vrcp.f32 %v3580_v7  ;;  %v3922_v7 = vld [vmem:[%s9923_s10 + $0x28] sm:$0xff] }
 0x821   :  { %v3572_v4 = vadd.f32 %v3571_v37, %v3570_v46  ;;  %v3921_v46 = vld [vmem:[%s9923_s10 + $0x20] sm:$0xff]  ;;  %v3920_v37 = vld [vmem:[%s9923_s10 + $0x18] sm:$0xff] }
 0x823   :  { %3664 = vmatmul.mubr.f32.vlgmr.msra.gmra.mxu1 %v3572_v4  ;;  %3907 = vst [vmem:[%s9922_s17] sm:$0xff] %v3572_v4  ;;  %3734 = vmatmul.mubr.f32.vlgmr.msra.gmra.mxu0 %v3572_v4  ;;  %v3919_v4 = vld [vmem:[%s9923_s10 + $0x10] sm:$0xff] }
 0x824   :  { %3744 = vmatpush1.msra.mxu1 %v8858_v51  ;;  %4950 = vmatpush3.msra.mxu0 %v9425_v48  ;;  %v11157_v51 = vld [vmem:[#allocation96_spill] sm:$0xff] }
 0x825   :  { %3745 = vmatprep.subr.mxu1 %v8870_v25  ;;  %4951 = vmatprep.subr.mxu0 %v10458_v35  ;;  %v3587_v25 = vadd.f32 1.0, %v5261_v27  ;;  %v3918_v27 = vld [vmem:[%s9923_s10 + $0x8] sm:$0xff] }
 0x826   :  { %3746 = vmatpush1.msra.mxu1 %v8882_v10  ;;  %4952 = vmatpush3.msra.mxu0 %v9434_v59  ;;  %v11159_v10 = vld [vmem:[#allocation37_spill] sm:$0xff]  ;;  %v11160_v59 = vld [vmem:[#allocation7_spill] sm:$0xff] }
 0x827   :  { %3747 = vmatprep.subr.mxu1 %v11155_v30  ;;  %4953 = vmatprep.subr.mxu0 %v10458_v35  ;;  %5264 = vrcp.f32 %v3587_v25  ;;  %v3917_v30 = vld [vmem:[%s9923_s10] sm:$0xff]  ;;  %v4068_v25 = vld [vmem:[%s9924_s12 + $0x78] sm:$0xff] }
 0x828   :  { %3748 = vmatpush1.msra.mxu1 %v11156_v41  ;;  %4954 = vmatpush3.msra.mxu0 %v9443_v12  ;;  %v11184_v41 = vld [vmem:[#allocation109_spill] sm:$0xff] }
 0x829   :  { %3749 = vmatprep.subr.mxu1 %v11157_v51  ;;  %4955 = vmatprep.subr.mxu0 %v10458_v35  ;;  %v11185_v51 = vld [vmem:[#allocation99_spill] sm:$0xff] }
 0x82a   :  { %v3541_v48 = vpop.f32.mrf.mxu0  ;;  %3750 = vmatpush1.msra.mxu1 %v11158_v20  ;;  %4956 = vmatpush3.msra.mxu0 %v9452_v57  ;;  %v4064_v20 = vld [vmem:[%s9924_s12 + $0x58] sm:$0xff] }
 0x82b   :  { %3751 = vmatprep.subr.mxu1 %v11159_v10  ;;  %4957 = vmatprep.subr.mxu0 %v10458_v35  ;;  %v3542_v18 = vadd.f32 %v3541_v48, %v11160_v59  ;;  %v4067_v48 = vld [vmem:[%s9924_s12 + $0x70] sm:$0xff] }
 0x82c   :  { %v4948_v13 = vpop.f32.mrf.mxu0  ;;  %3752 = vmatpush1.msra.mxu1 %v11161_v54  ;;  %4958 = vmatpush3.msra.mxu0 %v9461_v26  ;;  %v11167_v26 = vld [vmem:[#allocation104_spill] sm:$0xff]  ;;  %v4063_v10 = vld [vmem:[%s9924_s12 + $0x50] sm:$0xff]  ;;  %v4060_v54 = vld [vmem:[%s9924_s12 + $0x38] sm:$0xff] }
 0x82d   :  { %v5263_v12 = vpop.eup %5262  ;;  %3753 = vmatprep.subr.mxu1 %v11162_v62  ;;  %4959 = vmatprep.subr.mxu0 %v10458_v35  ;;  %v4061_v13 = vld [vmem:[%s9924_s12 + $0x40] sm:$0xff]  ;;  %v4058_v62 = vld [vmem:[%s9924_s12 + $0x28] sm:$0xff] }
 0x82e   :  { %v3590_v57 = vmul.f32 %v5263_v12, %v3542_v18  ;;  %3754 = vmatpush1.msra.mxu1 %v11164_v21  ;;  %4960 = vmatpush3.msra.mxu0 %v9470_v60  ;;  %v11170_v60 = vld [vmem:[#allocation4_spill] sm:$0xff]  ;;  %v4062_v18 = vld [vmem:[%s9924_s12 + $0x48] sm:$0xff]  ;;  %v4059_v12 = vld [vmem:[%s9924_s12 + $0x30] sm:$0xff] }
 0x82f   :  { %3755 = vmatprep.subr.mxu1 %v11165_v52  ;;  %4961 = vmatprep.subr.mxu0 %v10458_v35  ;;  %v4055_v21 = vld [vmem:[%s9924_s12 + $0x10] sm:$0xff]  ;;  %v4054_v52 = vld [vmem:[%s9924_s12 + $0x8] sm:$0xff] }
 0x830   :  { %v3591_v47 = vadd.f32 %v3590_v57, %v3575_v22  ;;  %3756 = vmatpush1.msra.mxu1 %v11166_v5  ;;  %4962 = vmatpush3.msra.mxu0 %v9479_v6  ;;  %v11172_v6 = vld [vmem:[#allocation108_spill] sm:$0xff]  ;;  %v4056_v57 = vld [vmem:[%s9924_s12 + $0x18] sm:$0xff] }
 0x831   :  { %3757 = vmatprep.subr.mxu1 %v11167_v26  ;;  %4963 = vmatprep.subr.mxu0 %v10458_v35  ;;  %v4057_v22 = vld [vmem:[%s9924_s12 + $0x20] sm:$0xff]  ;;  %v4204_v5 = vld [vmem:[%s9925_s14 + $0x78] sm:$0xff]  ;;  %v4203_v26 = vld [vmem:[%s9925_s14 + $0x70] sm:$0xff] }
 0x832   :  { %5266 = vtanh.f32 %v3591_v47  ;;  %3758 = vmatpush1.msra.mxu1 %v11168_v3  ;;  %4964 = vmatpush3.msra.mxu0 %v9488_v14  ;;  %v11174_v14 = vld [vmem:[#allocation40_spill] sm:$0xff]  ;;  %v4202_v3 = vld [vmem:[%s9925_s14 + $0x68] sm:$0xff] }
 0x833   :  { %3759 = vmatprep.subr.mxu1 %v11169_v24  ;;  %4965 = vmatprep.subr.mxu0 %v10458_v35  ;;  %v4053_v47 = vld [vmem:[%s9924_s12] sm:$0xff] }
 0x834   :  { %3760 = vmatpush1.msra.mxu1 %v11170_v60  ;;  %4966 = vmatpush3.msra.mxu0 %v9497_v38  ;;  %v11176_v38 = vld [vmem:[#allocation43_spill] sm:$0xff]  ;;  %v5265_v45 = vpop.eup %5264  ;;  %v4201_v24 = vld [vmem:[%s9925_s14 + $0x60] sm:$0xff] }
 0x835   :  { %3761 = vmatprep.subr.mxu1 %v11171_v31  ;;  %4967 = vmatprep.subr.mxu0 %v10458_v35  ;;  %v3593_v34 = vsub.f32 1.0, %v5265_v45  ;;  %v4200_v60 = vld [vmem:[%s9925_s14 + $0x58] sm:$0xff]  ;;  %v4199_v31 = vld [vmem:[%s9925_s14 + $0x50] sm:$0xff] }
 0x836   :  { %3762 = vmatpush1.msra.mxu1 %v11172_v6  ;;  %4968 = vmatpush3.msra.mxu0 %v9506_v32  ;;  %v11178_v32 = vld [vmem:[#allocation54_spill] sm:$0xff]  ;;  %v4198_v6 = vld [vmem:[%s9925_s14 + $0x48] sm:$0xff] }
 0x837   :  { %3763 = vmatprep.subr.mxu1 %v11173_v23  ;;  %4969 = vmatprep.subr.mxu0 %v10458_v35  ;;  %v4197_v23 = vld [vmem:[%s9925_s14 + $0x40] sm:$0xff] }
 0x838   :  { %3764 = vmatpush1.msra.mxu1 %v11174_v14  ;;  %4970 = vmatpush3.msra.mxu0 %v9515_v43  ;;  %v11180_v43 = vld [vmem:[#allocation102_spill] sm:$0xff]  ;;  %v4196_v14 = vld [vmem:[%s9925_s14 + $0x38] sm:$0xff] }
 0x839   :  { %3765 = vmatprep.subr.mxu1 %v11175_v1  ;;  %4971 = vmatprep.subr.mxu0 %v10458_v35  ;;  %v4195_v1 = vld [vmem:[%s9925_s14 + $0x30] sm:$0xff] }
 0x83a   :  { %3766 = vmatpush1.msra.mxu1 %v11176_v38  ;;  %4972 = vmatpush3.msra.mxu0 %v9524_v58  ;;  %v11181_v58 = vld [vmem:[#allocation85_spill] sm:$0xff] }
 0x83b   :  { %3767 = vmatprep.subr.mxu1 %v11177_v40  ;;  %4973 = vmatprep.subr.mxu0 %v10458_v35  ;;  %v4194_v38 = vld [vmem:[%s9925_s14 + $0x28] sm:$0xff] }
 0x83c   :  { %3768 = vmatpush1.msra.mxu1 %v11178_v32  ;;  %4974 = vmatpush3.msra.mxu0 %v9533_v50  ;;  %v3595_v50 = vmul.f32 %v5265_v45, %v9408_v28  ;;  %v4193_v45 = vld [vmem:[%s9925_s14 + $0x20] sm:$0xff] }
 0x83d   :  { %3769 = vmatprep.subr.mxu1 %v11179_v61  ;;  %4975 = vmatprep.subr.mxu0 %v10458_v35 }
 0x83e   :  { %3770 = vmatpush1.msra.mxu1 %v11180_v43  ;;  %4976 = vmatpush3.msra.mxu0 %v9542_v36 }
 0x83f   :  { %v5267_v44 = vpop.eup %5266  ;;  %3771 = vmatprep.subr.mxu1 %v11181_v58  ;;  %4977 = vmatprep.subr.mxu0 %v10458_v35 }
 0x840   :  { %3772 = vmatpush1.msra.mxu1 %v9385_v11  ;;  %4978 = vmatpush3.msra.mxu0 %v9551_v42  ;;  %v3594_v55 = vmul.f32 %v5267_v44, %v3593_v34  ;;  %v11182_v11 = vld [vmem:[#allocation9_spill] sm:$0xff]  ;;  %v3928_v42 = vld [vmem:[%s9923_s10 + $0x58] sm:$0xff] }
 0x841   :  { %3773 = vmatprep.subr.mxu1 %v9398_v16  ;;  %4979 = vmatprep.subr.mxu0 %v10458_v35  ;;  %v3931_v16 = vld [vmem:[%s9923_s10 + $0x70] sm:$0xff] }
 0x842   :  { %3774 = vmatpush1.msra.mxu1 %v9413_v8  ;;  %3807 = vmatprep.mubr.f32.mxu1 %v10458_v35  ;;  %v9681_v36 = vadd.f32 %v3595_v50, %v3594_v55  ;;  %v3930_v8 = vld [vmem:[%s9923_s10 + $0x68] sm:$0xff] }
 0x843   :  { %4980 = vmatpush3.msra.mxu0 %v9560_v0  ;;  %4981 = vmatprep.mubr.msk.f32.mxu0 %vm5599_vm0, %v10458_v35  ;;  %v3929_v35 = vld [vmem:[%s9923_s10 + $0x60] sm:$0xff]  ;;  %v3927_v0 = vld [vmem:[%s9923_s10 + $0x50] sm:$0xff] }
 0x844   :  { %3808 = vmatmul.mubr.f32.vlgmr.msra.gmra.mxu1 %v9681_v36  ;;  %4982 = vmatmul.mubr.f32.vlgmr.msra.gmra.mxu0 %v9681_v36 }
 0x845   :  { %4984 = vmatprep.subr.mxu1 %v3932_v33  ;;  %5016 = vmatprep.mubr.f32.mxu1 %v11182_v11 }
 0x846   :  { %4985 = vmatpush3.msra.mxu1 %v3932_v33  ;;  %5028 = vmatprep.subr.mxu0 %v4068_v25 }
 0x847   :  { %4986 = vmatprep.subr.mxu1 %v3931_v16  ;;  %5029 = vmatpush3.msra.mxu0 %v4068_v25 }
 0x848   :  { %4987 = vmatpush3.msra.mxu1 %v3931_v16  ;;  %5030 = vmatprep.subr.mxu0 %v4067_v48 }
 0x849   :  { %4988 = vmatprep.subr.mxu1 %v3930_v8  ;;  %5031 = vmatpush3.msra.mxu0 %v4067_v48 }
 0x84a   :  { %4989 = vmatpush3.msra.mxu1 %v3930_v8 }
 0x84b   :  { %4990 = vmatprep.subr.mxu1 %v3929_v35 }
 0x84c   :  { %4991 = vmatpush3.msra.mxu1 %v3929_v35 }
 0x84d   :  { %4992 = vmatprep.subr.mxu1 %v3928_v42 }
 0x84e   :  { %4993 = vmatpush3.msra.mxu1 %v3928_v42 }
 0x84f   :  { %4994 = vmatprep.subr.mxu1 %v3927_v0 }
 0x850   :  { %4995 = vmatpush3.msra.mxu1 %v3927_v0 }
 0x851   :  { %4996 = vmatprep.subr.mxu1 %v3926_v39 }
 0x852   :  { %4997 = vmatpush3.msra.mxu1 %v3926_v39 }
 0x853   :  { %4998 = vmatprep.subr.mxu1 %v3925_v63 }
 0x854   :  { %4999 = vmatpush3.msra.mxu1 %v3925_v63 }
 0x855   :  { %5000 = vmatprep.subr.mxu1 %v3924_v17 }
 0x856   :  { %5001 = vmatpush3.msra.mxu1 %v3924_v17 }
 0x857   :  { %5002 = vmatprep.subr.mxu1 %v3923_v53 }
 0x858   :  { %5003 = vmatpush3.msra.mxu1 %v3923_v53 }
 0x859   :  { %5004 = vmatprep.subr.mxu1 %v3922_v7 }
 0x85a   :  { %5005 = vmatpush3.msra.mxu1 %v3922_v7 }
 0x85b   :  { %5006 = vmatprep.subr.mxu1 %v3921_v46 }
 0x85c   :  { %5007 = vmatpush3.msra.mxu1 %v3921_v46 }
 0x85d   :  { %5008 = vmatprep.subr.mxu1 %v3920_v37 }
 0x85e   :  { %5009 = vmatpush3.msra.mxu1 %v3920_v37 }
 0x85f   :  { %5010 = vmatprep.subr.mxu1 %v3919_v4 }
 0x860   :  { %5011 = vmatpush3.msra.mxu1 %v3919_v4 }
 0x861   :  { %5012 = vmatprep.subr.mxu1 %v3918_v27 }
 0x862   :  { %5013 = vmatpush3.msra.mxu1 %v3918_v27 }
 0x863   :  { %5014 = vmatprep.subr.mxu1 %v3917_v30 }
 0x864   :  { %5015 = vmatpush3.msra.mxu1 %v3917_v30 }
 0x865   :  { %5017 = vmatmul.mubr.f32.vlgmr.msra.gmra.mxu1 %v11183_v49  ;;  %5072 = vmatprep.subr.mxu1 %v4204_v5 }
 0x866   :  { %5019 = vmatprep.mubr.f32.mxu1 %v11184_v41  ;;  %5073 = vmatpush3.msra.mxu1 %v4204_v5  ;;  %v4191_v5 = vld [vmem:[%s9925_s14 + $0x10] sm:$0xff] }
 0x867   :  { %5074 = vmatprep.subr.mxu1 %v4203_v26 }
 0x868   :  { %5075 = vmatpush3.msra.mxu1 %v4203_v26  ;;  %v4189_v26 = vld [vmem:[%s9925_s14] sm:$0xff] }
 0x869   :  { %5020 = vmatmul.mubr.f32.gmra.mxu1 %v11185_v51  ;;  %5076 = vmatprep.subr.mxu1 %v4202_v3 }
 0x86a   :  { %5022 = vmatprep.mubr.f32.mxu1 %v9134_v19  ;;  %v4066_v19 = vld [vmem:[%s9924_s12 + $0x68] sm:$0xff]  ;;  %5077 = vmatpush3.msra.mxu1 %v4202_v3  ;;  %v9863_v3 = vld [vmem:[%s9928_s13] ss:$0 sm:$0xff] }
 0x86b   :  { %5032 = vmatprep.subr.mxu0 %v4066_v19  ;;  %5078 = vmatprep.subr.mxu1 %v4201_v24 }
 0x86c   :  { %5033 = vmatpush3.msra.mxu0 %v4066_v19  ;;  %5079 = vmatpush3.msra.mxu1 %v4201_v24 }
 0x86d   :  { %5023 = vmatmul.mubr.f32.gmra.mxu1 %v9408_v28  ;;  %v4065_v28 = vld [vmem:[%s9924_s12 + $0x60] sm:$0xff]  ;;  %5080 = vmatprep.subr.mxu1 %v4200_v60 }
 0x86e   :  { %5025 = vmatprep.mubr.f32.mxu1 %v9681_v36  ;;  %5034 = vmatprep.subr.mxu0 %v4065_v28 }
 0x86f   :  { %5035 = vmatpush3.msra.mxu0 %v4065_v28  ;;  %5081 = vmatpush3.msra.mxu1 %v4200_v60 }
 0x870   :  { %5036 = vmatprep.subr.mxu0 %v4064_v20  ;;  %5082 = vmatprep.subr.mxu1 %v4199_v31 }
 0x871   :  { %5037 = vmatpush3.msra.mxu0 %v4064_v20  ;;  %5083 = vmatpush3.msra.mxu1 %v4199_v31 }
 0x872   :  { %5038 = vmatprep.subr.mxu0 %v4063_v10  ;;  %5084 = vmatprep.subr.mxu1 %v4198_v6 }
 0x873   :  { %5039 = vmatpush3.msra.mxu0 %v4063_v10  ;;  %5085 = vmatpush3.msra.mxu1 %v4198_v6 }
 0x874   :  { %5040 = vmatprep.subr.mxu0 %v4062_v18  ;;  %5086 = vmatprep.subr.mxu1 %v4197_v23 }
 0x875   :  { %5041 = vmatpush3.msra.mxu0 %v4062_v18  ;;  %5087 = vmatpush3.msra.mxu1 %v4197_v23 }
 0x876   :  { %5042 = vmatprep.subr.mxu0 %v4061_v13  ;;  %5088 = vmatprep.subr.mxu1 %v4196_v14 }
 0x877   :  { %5043 = vmatpush3.msra.mxu0 %v4061_v13  ;;  %5089 = vmatpush3.msra.mxu1 %v4196_v14 }
 0x878   :  { %5044 = vmatprep.subr.mxu0 %v4060_v54  ;;  %5090 = vmatprep.subr.mxu1 %v4195_v1 }
 0x879   :  { %5045 = vmatpush3.msra.mxu0 %v4060_v54  ;;  %5091 = vmatpush3.msra.mxu1 %v4195_v1 }
 0x87a   :  { %5046 = vmatprep.subr.mxu0 %v4059_v12  ;;  %5092 = vmatprep.subr.mxu1 %v4194_v38 }
 0x87b   :  { %5047 = vmatpush3.msra.mxu0 %v4059_v12  ;;  %5093 = vmatpush3.msra.mxu1 %v4194_v38 }
 0x87c   :  { %5048 = vmatprep.subr.mxu0 %v4058_v62  ;;  %5094 = vmatprep.subr.mxu1 %v4193_v45 }
 0x87d   :  { %5049 = vmatpush3.msra.mxu0 %v4058_v62  ;;  %5095 = vmatpush3.msra.mxu1 %v4193_v45 }
 0x87e   :  { %5050 = vmatprep.subr.mxu0 %v4057_v22 }
 0x87f   :  { %5051 = vmatpush3.msra.mxu0 %v4057_v22 }
 0x880   :  { %5052 = vmatprep.subr.mxu0 %v4056_v57 }
 0x881   :  { %5053 = vmatpush3.msra.mxu0 %v4056_v57 }
 0x882   :  { %5054 = vmatprep.subr.mxu0 %v4055_v21 }
 0x883   :  { %5055 = vmatpush3.msra.mxu0 %v4055_v21 }
 0x884   :  { %5056 = vmatprep.subr.mxu0 %v4054_v52 }
 0x885   :  { %5057 = vmatpush3.msra.mxu0 %v4054_v52 }
 0x886   :  { %5058 = vmatprep.subr.mxu0 %v4053_v47 }
 0x887   :  { %5059 = vmatpush3.msra.mxu0 %v4053_v47  ;;  %v4192_v47 = vld [vmem:[%s9925_s14 + $0x18] sm:$0xff] }
 0x888   :  { %5096 = vmatprep.subr.mxu1 %v4192_v47 }
 0x889   :  { %5097 = vmatpush3.msra.mxu1 %v4192_v47 }
 0x88a   :  { %5098 = vmatprep.subr.mxu1 %v4191_v5 }
 0x88b   :  { %5099 = vmatpush3.msra.mxu1 %v4191_v5 }
 0x8e3   :  { %v3665_v40 = vpop.f32.mrf.mxu1  ;;  %v3735_v32 = vpop.f32.mrf.mxu0 }
 0x8e4   :  { %v3741_v35 = vadd.f32 %v3735_v32, %v7027_v15 }
 0x8e5   :  { %v3666_v61 = vpop.f32.mrf.mxu1  ;;  %v3737_v43 = vpop.f32.mrf.mxu0 }
 0x8e6   :  { %v3740_v58 = vadd.f32 %v3666_v61, %v11151_v56  ;;  %v9834_v56 = vld [vmem:[%s9926_s11] ss:$0 sm:$0xff]  ;;  %v3742_v4 = vadd.f32 %v3737_v43, %v11163_v2 }
 0x904   :  { %v3809_v34 = vpop.f32.mrf.mxu1  ;;  %v3880_v44 = vpop.f32.mrf.mxu0 }
 0x905   :  { %v3810_v55 = vadd.f32 %v3809_v34, %v11152_v29  ;;  %v3881_v7 = vadd.f32 %v3880_v44, %v11160_v59 }
 0x906   :  { %v3811_v50 = vpop.f32.mrf.mxu1  ;;  %v4983_v33 = vpop.f32.mrf.mxu0 }
 0x907   :  { %v3884_v16 = vadd.f32 %v3810_v55, %v3740_v58  ;;  %v3812_v8 = vadd.f32 %v3811_v50, %v7023_v9 }
 0x909   :  { %v4415_v11 = vmul.f32 -1.442695, %v3884_v16  ;;  %v3891_v42 = vadd.f32 %v3812_v8, %v3741_v35 }
 0x90b   :  { %5268 = vpow2.f32 %v4415_v11  ;;  %v4416_v0 = vmul.f32 -1.442695, %v3891_v42 }
 0x90d   :  { %5270 = vpow2.f32 %v4416_v0  ;;  %v9876_v0 = vld [vmem:[%s9929_s15] ss:$0 sm:$0xff] }
 0x918   :  { %v5269_v39 = vpop.eup %5268 }
 0x919   :  { %v3888_v63 = vadd.f32 1.0, %v5269_v39 }
 0x91a   :  { %v5271_v17 = vpop.eup %5270 }
 0x91b   :  { %5272 = vrcp.f32 %v3888_v63  ;;  %v3895_v29 = vadd.f32 1.0, %v5271_v17 }
 0x91d   :  { %5274 = vrcp.f32 %v3895_v29 }
 0x925   :  { %v5018_v53 = vpop.f32.mrf.mxu1 }
 0x926   :  { %v4012_v9 = vadd.f32 %v5018_v53, %v9834_v56 }
 0x927   :  { %v4006_v15 = vpop.f32.mrf.mxu1 }
 0x928   :  { %v5273_v46 = vpop.eup %5272  ;;  %v4007_v37 = vadd.f32 %v9834_v56, %v4006_v15  ;;  %v4046_v51 = vmax.f32 %v4012_v9, 0.0 }
 0x929   :  { %v3898_v27 = vmul.f32 %v5273_v46, %v3881_v7  ;;  %v5021_v30 = vpop.f32.mrf.mxu1 }
 0x92a   :  { %v4045_v49 = vmax.f32 %v4007_v37, 0.0  ;;  %v4022_v25 = vadd.f32 %v5021_v30, %v9834_v56  ;;  %v5275_v12 = vpop.eup %5274 }
 0x92b   :  { %v3899_v41 = vadd.f32 %v3898_v27, %v3742_v4  ;;  %v4016_v48 = vpop.f32.mrf.mxu1  ;;  %v3901_v62 = vsub.f32 1.0, %v5275_v12  ;;  %v3903_v21 = vmul.f32 %v5275_v12, %v9681_v36  ;;  %v4190_v36 = vld [vmem:[%s9925_s14 + $0x8] sm:$0xff] }
 0x92c   :  { %v4017_v19 = vadd.f32 %v9834_v56, %v4016_v48  ;;  %5060 = vmatprep.mubr.f32.mxu0 %v4045_v49  ;;  %v4048_v20 = vmax.f32 %v4022_v25, 0.0  ;;  %5100 = vmatprep.subr.mxu1 %v4190_v36 }
 0x92d   :  { %5276 = vtanh.f32 %v3899_v41  ;;  %v5024_v59 = vpop.f32.mrf.mxu1  ;;  %5061 = vmatmul.mubr.f32.vlgmr.msra.gmra.mxu0 %v4046_v51  ;;  %5101 = vmatpush3.msra.mxu1 %v4190_v36 }
 0x92e   :  { %v4047_v28 = vmax.f32 %v4017_v19, 0.0  ;;  %v4032_v10 = vadd.f32 %v5024_v59, %v9834_v56  ;;  %5102 = vmatprep.subr.mxu1 %v4189_v26 }
 0x92f   :  { %v4026_v2 = vpop.f32.mrf.mxu1  ;;  %5103 = vmatpush3.msra.mxu1 %v4189_v26 }
 0x930   :  { %v4027_v18 = vadd.f32 %v9834_v56, %v4026_v2  ;;  %5063 = vmatprep.mubr.f32.mxu0 %v4047_v28  ;;  %v4050_v54 = vmax.f32 %v4032_v10, 0.0 }
 0x931   :  { %5064 = vmatmul.mubr.f32.gmra.mxu0 %v4048_v20 }
 0x932   :  { %v4049_v13 = vmax.f32 %v4027_v18, 0.0 }
 0x934   :  { %5066 = vmatprep.mubr.f32.mxu0 %v4049_v13 }
 0x935   :  { %5067 = vmatmul.mubr.f32.gmra.mxu0 %v4050_v54 }
 0x93a   :  { %v5277_v22 = vpop.eup %5276 }
 0x93b   :  { %v3902_v57 = vmul.f32 %v5277_v22, %v3901_v62 }
 0x93d   :  { %v3904_v52 = vadd.f32 %v3903_v21, %v3902_v57 }
 0x93f   :  { %3908 = vst [vmem:[%s9927_s18] sm:$0xff] %v3904_v52  ;;  %5026 = vmatmul.mubr.f32.gmra.mxu1 %v3904_v52 }
 0x9ed   :  { %v5062_v24 = vpop.f32.mrf.mxu0 }
 0x9ee   :  { %v4148_v60 = vadd.f32 %v5062_v24, %v9863_v3 }
 0x9ef   :  { %v4142_v31 = vpop.f32.mrf.mxu0 }
 0x9f0   :  { %v4143_v6 = vadd.f32 %v9863_v3, %v4142_v31  ;;  %v4182_v1 = vmax.f32 %v4148_v60, 0.0 }
 0x9f1   :  { %v5065_v23 = vpop.f32.mrf.mxu0 }
 0x9f2   :  { %v4181_v14 = vmax.f32 %v4143_v6, 0.0  ;;  %v4158_v38 = vadd.f32 %v5065_v23, %v9863_v3 }
 0x9f3   :  { %v4152_v45 = vpop.f32.mrf.mxu0 }
 0x9f4   :  { %v4153_v40 = vadd.f32 %v9863_v3, %v4152_v45  ;;  %5104 = vmatprep.mubr.f32.mxu1 %v4181_v14  ;;  %v4184_v43 = vmax.f32 %v4158_v38, 0.0 }
 0x9f5   :  { %v5068_v32 = vpop.f32.mrf.mxu0  ;;  %5105 = vmatmul.mubr.f32.vlgmr.msra.gmra.mxu1 %v4182_v1 }
 0x9f6   :  { %v4183_v61 = vmax.f32 %v4153_v40, 0.0  ;;  %v4168_v34 = vadd.f32 %v5068_v32, %v9863_v3 }
 0x9f7   :  { %v4162_v44 = vpop.f32.mrf.mxu0 }
 0x9f8   :  { %v4163_v58 = vadd.f32 %v9863_v3, %v4162_v44  ;;  %5107 = vmatprep.mubr.f32.mxu1 %v4183_v61  ;;  %v4186_v50 = vmax.f32 %v4168_v34, 0.0 }
 0x9f9   :  { %5108 = vmatmul.mubr.f32.gmra.mxu1 %v4184_v43 }
 0x9fa   :  { %v4185_v55 = vmax.f32 %v4163_v58, 0.0 }
 0x9fc   :  { %5110 = vmatprep.mubr.f32.mxu1 %v4185_v55 }
 0x9fd   :  { %5111 = vmatmul.mubr.f32.gmra.mxu1 %v4186_v50 }
 0x9ff   :  { %v5027_v33 = vpop.f32.mrf.mxu1 }
 0xa00   :  { %v4042_v16 = vadd.f32 %v5027_v33, %v9834_v56 }
 0xa01   :  { %v4036_v11 = vpop.f32.mrf.mxu1 }
 0xa02   :  { %v4037_v8 = vadd.f32 %v9834_v56, %v4036_v11  ;;  %v4052_v42 = vmax.f32 %v4042_v16, 0.0 }
 0xa04   :  { %v4051_v35 = vmax.f32 %v4037_v8, 0.0 }
 0xa06   :  { %5069 = vmatprep.mubr.f32.mxu0 %v4051_v35 }
 0xa07   :  { %5070 = vmatmul.mubr.f32.gmra.mxu0 %v4052_v42 }
 0xab5   :  { %v5106_v39 = vpop.f32.mrf.mxu1 }
 0xab6   :  { %v4284_v63 = vadd.f32 %v5106_v39, %v9876_v0 }
 0xab7   :  { %v4278_v17 = vpop.f32.mrf.mxu1 }
 0xab8   :  { %v4421_v29 = vmul.f32 -1.442695, %v4284_v63  ;;  %v4279_v53 = vadd.f32 %v9876_v0, %v4278_v17 }
 0xab9   :  { %v5109_v7 = vpop.f32.mrf.mxu1 }
 0xaba   :  { %5278 = vpow2.f32 %v4421_v29  ;;  %v4420_v9 = vmul.f32 -1.442695, %v4279_v53  ;;  %v4294_v56 = vadd.f32 %v5109_v7, %v9876_v0 }
 0xabb   :  { %v4288_v15 = vpop.f32.mrf.mxu1 }
 0xabc   :  { %5280 = vpow2.f32 %v4420_v9  ;;  %v4423_v46 = vmul.f32 -1.442695, %v4294_v56  ;;  %v4289_v37 = vadd.f32 %v9876_v0, %v4288_v15 }
 0xabd   :  { %v5112_v4 = vpop.f32.mrf.mxu1 }
 0xabe   :  { %5282 = vpow2.f32 %v4423_v46  ;;  %v4422_v27 = vmul.f32 -1.442695, %v4289_v37  ;;  %v4304_v30 = vadd.f32 %v5112_v4, %v9876_v0 }
 0xabf   :  { %v4298_v49 = vpop.f32.mrf.mxu1 }
 0xac0   :  { %5284 = vpow2.f32 %v4422_v27  ;;  %v4425_v41 = vmul.f32 -1.442695, %v4304_v30  ;;  %v4299_v51 = vadd.f32 %v9876_v0, %v4298_v49 }
 0xac2   :  { %5286 = vpow2.f32 %v4425_v41  ;;  %v4424_v25 = vmul.f32 -1.442695, %v4299_v51 }
 0xac4   :  { %5288 = vpow2.f32 %v4424_v25 }
 0xac7   :  { %v5279_v48 = vpop.eup %5278  ;;  %v5071_v19 = vpop.f32.mrf.mxu0 }
 0xac8   :  { %v4342_v59 = vadd.f32 1.0, %v5279_v48  ;;  %v4178_v20 = vadd.f32 %v5071_v19, %v9863_v3 }
 0xac9   :  { %v5281_v28 = vpop.eup %5280  ;;  %v4172_v10 = vpop.f32.mrf.mxu0 }
 0xaca   :  { %5290 = vrcp.f32 %v4342_v59  ;;  %v4341_v2 = vadd.f32 1.0, %v5281_v28  ;;  %v4173_v18 = vadd.f32 %v9863_v3, %v4172_v10  ;;  %v4188_v22 = vmax.f32 %v4178_v20, 0.0 }
 0xacb   :  { %v5283_v13 = vpop.eup %5282 }
 0xacc   :  { %5292 = vrcp.f32 %v4341_v2  ;;  %v4344_v54 = vadd.f32 1.0, %v5283_v13  ;;  %v4187_v12 = vmax.f32 %v4173_v18, 0.0 }
 0xacd   :  { %v5285_v62 = vpop.eup %5284 }
 0xace   :  { %5294 = vrcp.f32 %v4344_v54  ;;  %v4343_v57 = vadd.f32 1.0, %v5285_v62  ;;  %5113 = vmatprep.mubr.f32.mxu1 %v4187_v12 }
 0xacf   :  { %v5287_v21 = vpop.eup %5286  ;;  %5114 = vmatmul.mubr.f32.gmra.mxu1 %v4188_v22 }
 0xad0   :  { %5296 = vrcp.f32 %v4343_v57  ;;  %v4346_v52 = vadd.f32 1.0, %v5287_v21 }
 0xad1   :  { %v5289_v47 = vpop.eup %5288 }
 0xad2   :  { %5298 = vrcp.f32 %v4346_v52  ;;  %v4345_v5 = vadd.f32 1.0, %v5289_v47 }
 0xad4   :  { %5300 = vrcp.f32 %v4345_v5 }
 0xad7   :  { %v5291_v36 = vpop.eup %5290 }
 0xad8   :  { %4366 = vst [vmem:[%s9930_s16 + $0x8] sm:$0xff] %v5291_v36 }
 0xad9   :  { %v5293_v26 = vpop.eup %5292 }
 0xada   :  { %4365 = vst [vmem:[%s9930_s16] sm:$0xff] %v5293_v26 }
 0xadb   :  { %v5295_v3 = vpop.eup %5294 }
 0xadc   :  { %4368 = vst [vmem:[%s9930_s16 + $0x18] sm:$0xff] %v5295_v3 }
 0xadd   :  { %v5297_v24 = vpop.eup %5296 }
 0xade   :  { %4367 = vst [vmem:[%s9930_s16 + $0x10] sm:$0xff] %v5297_v24 }
 0xadf   :  { %v5299_v60 = vpop.eup %5298 }
 0xae0   :  { %4370 = vst [vmem:[%s9930_s16 + $0x28] sm:$0xff] %v5299_v60 }
 0xae1   :  { %v5301_v31 = vpop.eup %5300 }
 0xae2   :  { %4369 = vst [vmem:[%s9930_s16 + $0x20] sm:$0xff] %v5301_v31 }
 0xb8f   :  { %v5115_v6 = vpop.f32.mrf.mxu1 }
 0xb90   :  { %v4314_v23 = vadd.f32 %v5115_v6, %v9876_v0 }
 0xb91   :  { %v4308_v14 = vpop.f32.mrf.mxu1 }
 0xb92   :  { %v4427_v1 = vmul.f32 -1.442695, %v4314_v23  ;;  %v4309_v38 = vadd.f32 %v9876_v0, %v4308_v14 }
 0xb94   :  { %5302 = vpow2.f32 %v4427_v1  ;;  %v4426_v45 = vmul.f32 -1.442695, %v4309_v38 }
 0xb96   :  { %5304 = vpow2.f32 %v4426_v45 }
 0xba1   :  { %v5303_v40 = vpop.eup %5302 }
 0xba2   :  { %v4348_v32 = vadd.f32 1.0, %v5303_v40 }
 0xba3   :  { %v5305_v61 = vpop.eup %5304 }
 0xba4   :  { %5306 = vrcp.f32 %v4348_v32  ;;  %v4347_v43 = vadd.f32 1.0, %v5305_v61 }
 0xba6   :  { %5308 = vrcp.f32 %v4347_v43 }
 0xbb1   :  { %v5307_v34 = vpop.eup %5306 }
 0xbb2   :  { %4372 = vst [vmem:[%s9930_s16 + $0x38] sm:$0xff] %v5307_v34 }
 0xbb3   :  { %v5309_v44 = vpop.eup %5308 }
 0xbb4   :  { %4371 = vst [vmem:[%s9930_s16 + $0x30] sm:$0xff] %v5309_v44 }

</bundles_post_ra>
